<compile_context>
chip_gen: v7x
topology: tpu7x:2x2x1
jax: 0.10.0
libtpu: 0.0.40
codegen_flags: <defaults>
</compile_context>

<pallas_src>
import jax
import jax.numpy as jnp
from jax.experimental import pallas as pl
from jax.experimental.pallas import tpu as pltpu

BATCH = 64        # forced by reshape((64, 1, 128)) in the reference forward
ENC_DIM = 768     # encoder output width (bert / vit / clip)
SIM_DIM = 10      # width of clip_sim(...) output (max taken over this axis)
HID1 = 512
HID2 = 128


def _vmem():
    return pl.BlockSpec(memory_space=pltpu.MemorySpace.VMEM)


# ----------------------------------------------------------------------------
# Fused kernel: 3 projection stacks + folded cross-attention + head, one call.
# ----------------------------------------------------------------------------
def _fused_kernel(
    # encoder outputs
    bert_ref, clip_t_ref, vit_ref, clip_i_ref, sim_ref,
    # text projection stack (BN folded; first layer split-K over the 1536 input)
    t_w1a, t_w1b, t_b1, t_w2, t_b2,
    # img projection stack
    i_w1a, i_w1b, i_b1, i_w2, i_b2,
    # fused projection stack
    f_w1a, f_w1b, f_b1, f_w2, f_b2,
    # cross_att folded to one linear map: Wc = Wv@Wo, bc2 = 2*(bv@Wo + bo)
    wc_ref, bc2_ref,
    # head: fc1+BN and fc3, zero-padded to 128 output lanes
    h_w1, h_b1, h_w3, h_b3,
    # outputs
    out_ref, feat_ref,
):
    bf16 = jnp.bfloat16

    bert = bert_ref[...].astype(bf16)
    clip_t = clip_t_ref[...].astype(bf16)
    vit = vit_ref[...].astype(bf16)
    clip_i = clip_i_ref[...].astype(bf16)

    def proj(xa, xb, w1a, w1b, b1, w2, b2):
        # relu(BN(Linear1(cat(xa, xb)))) -> dropout(identity, eval)
        #   -> relu(BN(Linear2(.)));  cat+matmul == split-K sum of two matmuls.
        h = (jnp.dot(xa, w1a[...], preferred_element_type=jnp.float32)
             + jnp.dot(xb, w1b[...], preferred_element_type=jnp.float32)
             + b1[...])
        h = jnp.maximum(h, 0.0).astype(bf16)
        o = jnp.dot(h, w2[...], preferred_element_type=jnp.float32) + b2[...]
        return jnp.maximum(o, 0.0)

    text_feat = proj(bert, clip_t, t_w1a, t_w1b, t_b1, t_w2, t_b2)      # (64,128)
    img_feat = proj(vit, clip_i, i_w1a, i_w1b, i_b1, i_w2, i_b2)        # (64,128)
    fused_feat = proj(clip_t, clip_i, f_w1a, f_w1b, f_b1, f_w2, f_b2)   # (64,128)

    # MultiheadAttention with seq_len == 1: softmax over one key == 1, so each
    # cross_att output is exactly out_proj(v_proj(value)).  Both are linear, so
    #   txt_attn + img_attn = (img_feat + text_feat) @ (Wv@Wo) + 2*(bv@Wo + bo)
    attn_sum = (jnp.dot((text_feat + img_feat).astype(bf16), wc_ref[...],
                        preferred_element_type=jnp.float32) + bc2_ref[...])

    # sim_weight = sim_tensor.max(1).reshape(64,1).expand(64,128)
    sim_w = jnp.max(sim_ref[...], axis=1, keepdims=True)                # (64,1)
    feat = sim_w * fused_feat + attn_sum                                # (64,128)
    feat_ref[...] = feat

    # out = fc3(dropout(relu(fc1+BN(feat)))); weights padded to 128 lanes so the
    # MXU / intermediate stores stay lane-dense; only the first 2 lanes are real.
    h = jnp.maximum(
        jnp.dot(feat.astype(bf16), h_w1[...], preferred_element_type=jnp.float32)
        + h_b1[...], 0.0)
    out_pad = (jnp.dot(h.astype(bf16), h_w3[...], preferred_element_type=jnp.float32)
               + h_b3[...])
    out_ref[...] = out_pad[:, :2]


# ----------------------------------------------------------------------------
# pallas_call wrapper (whole problem fits in VMEM -> single block, no grid)
# ----------------------------------------------------------------------------
def baseline_forward(bert_t, clip_text_t, vit_t, clip_img_t, sim_t, params):
    args = (bert_t, clip_text_t, vit_t, clip_img_t, sim_t) + tuple(params)
    out, feat = pl.pallas_call(
        _fused_kernel,
        out_shape=(jax.ShapeDtypeStruct((BATCH, 2), jnp.float32),      # out
                   jax.ShapeDtypeStruct((BATCH, HID2), jnp.float32)),  # feat
        in_specs=[_vmem()] * len(args),
        out_specs=(_vmem(), _vmem()),
        compiler_params=pltpu.CompilerParams(vmem_limit_bytes=32 * 1024 * 1024),
    )(*args)
    # TODO(synk): for serving, pin the ~5 MiB of bf16 weights resident in VMEM
    # across calls (cross-call prefetch / P10) instead of re-DMAing per forward.
    return out, feat


# ----------------------------------------------------------------------------
# Parameter construction (deterministic, shapes from BaselineModel.__init__)
# ----------------------------------------------------------------------------
def _fold_bn(w, b, gamma, beta, mean, var, eps=1e-5):
    # Fold eval-mode BatchNorm1d into the preceding Linear.
    scale = gamma / jnp.sqrt(var + eps)
    return w * scale[None, :], (b - mean) * scale + beta


def _linear_bn(key, in_f, out_f):
    kw, kb = jax.random.split(key)
    w = jax.random.normal(kw, (in_f, out_f), jnp.float32) * 0.02
    b = jax.random.normal(kb, (out_f,), jnp.float32) * 0.02
    # Fresh BatchNorm1d: gamma=1, beta=0, running_mean=0, running_var=1.
    gamma = jnp.ones((out_f,), jnp.float32)
    beta = jnp.zeros((out_f,), jnp.float32)
    mean = jnp.zeros((out_f,), jnp.float32)
    var = jnp.ones((out_f,), jnp.float32)
    return _fold_bn(w, b, gamma, beta, mean, var)


def make_params(key):
    keys = jax.random.split(key, 10)
    flat = []
    # text / img / fused projection stacks: Linear(1536,512)+BN, Linear(512,128)+BN
    for i in range(3):
        w1, b1 = _linear_bn(keys[2 * i], 2 * ENC_DIM, HID1)
        w2, b2 = _linear_bn(keys[2 * i + 1], HID1, HID2)
        flat += [
            w1[:ENC_DIM].astype(jnp.bfloat16),     # W1a: acts on first cat half
            w1[ENC_DIM:].astype(jnp.bfloat16),     # W1b: acts on second cat half
            b1.reshape(1, HID1),
            w2.astype(jnp.bfloat16),
            b2.reshape(1, HID2),
        ]
    # cross_att (embed_dim=128): with seq_len 1 only v_proj/out_proj reach the
    # output; fold them into a single linear map shared by both attention calls.
    kv, kvb, ko, kob = jax.random.split(keys[6], 4)
    wv = jax.random.normal(kv, (HID2, HID2), jnp.float32) * 0.02
    bv = jax.random.normal(kvb, (HID2,), jnp.float32) * 0.02
    wo = jax.random.normal(ko, (HID2, HID2), jnp.float32) * 0.02
    bo = jax.random.normal(kob, (HID2,), jnp.float32) * 0.02
    wc = (wv @ wo).astype(jnp.bfloat16)                      # (128,128)
    bc2 = (2.0 * (bv @ wo + bo)).reshape(1, HID2)            # (1,128)
    flat += [wc, bc2]
    # fc1: Linear(128,16)+BN(16);  fc3: Linear(16,2) — zero-padded to 128 lanes.
    hw1, hb1 = _linear_bn(keys[7], HID2, 16)
    k3w, k3b = jax.random.split(keys[8])
    hw3 = jax.random.normal(k3w, (16, 2), jnp.float32) * 0.02
    hb3 = jax.random.normal(k3b, (2,), jnp.float32) * 0.02
    hw1_pad = jnp.zeros((HID2, HID2), jnp.float32).at[:, :16].set(hw1)
    hb1_pad = jnp.zeros((1, HID2), jnp.float32).at[:, :16].set(hb1)
    hw3_pad = jnp.zeros((HID2, HID2), jnp.float32).at[:16, :2].set(hw3)
    hb3_pad = jnp.zeros((1, HID2), jnp.float32).at[:, :2].set(hb3)
    flat += [hw1_pad.astype(jnp.bfloat16), hb1_pad,
             hw3_pad.astype(jnp.bfloat16), hb3_pad]
    # TODO(synk): ahead_att, self_att, mlp, fc2 are constructed in __init__ but
    # never used on forward's returned path; they are intentionally omitted.
    return tuple(flat)


if __name__ == "__main__":
    key = jax.random.PRNGKey(0)
    kp, k1, k2, k3, k4, k5 = jax.random.split(key, 6)

    params = make_params(kp)

    # Encoder outputs (the PyTorch forward calls external pretrained models to
    # produce these; here they are synthetic deterministic inputs).
    bert_tensor = jax.random.normal(k1, (BATCH, ENC_DIM), jnp.float32)
    clip_text_tensor = jax.random.normal(k2, (BATCH, ENC_DIM), jnp.float32)
    vit_tensor = jax.random.normal(k3, (BATCH, ENC_DIM), jnp.float32)
    clip_image_tensor = jax.random.normal(k4, (BATCH, ENC_DIM), jnp.float32)
    sim_tensor = jax.random.normal(k5, (BATCH, SIM_DIM), jnp.float32)

    fwd = jax.jit(baseline_forward)
    out, feat = fwd(bert_tensor, clip_text_tensor, vit_tensor,
                    clip_image_tensor, sim_tensor, params)
    jax.block_until_ready((out, feat))

    assert out.shape == (BATCH, 2) and feat.shape == (BATCH, HID2)
    assert bool(jnp.all(jnp.isfinite(out))) and bool(jnp.all(jnp.isfinite(feat)))
    print("KERNEL_OK")
</pallas_src>

<mosaic_0001>
module attributes {stable_mosaic.version = 11 : i64} {
  func.func @_fused_kernel(%arg0: memref<64x768xf32, #tpu.memory_space<vmem>>, %arg1: memref<64x768xf32, #tpu.memory_space<vmem>>, %arg2: memref<64x768xf32, #tpu.memory_space<vmem>>, %arg3: memref<64x768xf32, #tpu.memory_space<vmem>>, %arg4: memref<64x10xf32, #tpu.memory_space<vmem>>, %arg5: memref<768x512xbf16, #tpu.memory_space<vmem>>, %arg6: memref<768x512xbf16, #tpu.memory_space<vmem>>, %arg7: memref<1x512xf32, #tpu.memory_space<vmem>>, %arg8: memref<512x128xbf16, #tpu.memory_space<vmem>>, %arg9: memref<1x128xf32, #tpu.memory_space<vmem>>, %arg10: memref<768x512xbf16, #tpu.memory_space<vmem>>, %arg11: memref<768x512xbf16, #tpu.memory_space<vmem>>, %arg12: memref<1x512xf32, #tpu.memory_space<vmem>>, %arg13: memref<512x128xbf16, #tpu.memory_space<vmem>>, %arg14: memref<1x128xf32, #tpu.memory_space<vmem>>, %arg15: memref<768x512xbf16, #tpu.memory_space<vmem>>, %arg16: memref<768x512xbf16, #tpu.memory_space<vmem>>, %arg17: memref<1x512xf32, #tpu.memory_space<vmem>>, %arg18: memref<512x128xbf16, #tpu.memory_space<vmem>>, %arg19: memref<1x128xf32, #tpu.memory_space<vmem>>, %arg20: memref<128x128xbf16, #tpu.memory_space<vmem>>, %arg21: memref<1x128xf32, #tpu.memory_space<vmem>>, %arg22: memref<128x128xbf16, #tpu.memory_space<vmem>>, %arg23: memref<1x128xf32, #tpu.memory_space<vmem>>, %arg24: memref<128x128xbf16, #tpu.memory_space<vmem>>, %arg25: memref<1x128xf32, #tpu.memory_space<vmem>>, %arg26: memref<64x2xf32, #tpu.memory_space<vmem>>, %arg27: memref<64x128xf32, #tpu.memory_space<vmem>>) attributes {dimension_semantics = [], scalar_prefetch = 0 : i64, scratch_operands = 0 : i64, tpu.core_type = #tpu.core_type<tc>} {
    %c0 = arith.constant 0 : index
    %c0_0 = arith.constant 0 : index
    %0 = vector.load %arg0[%c0, %c0_0] : memref<64x768xf32, #tpu.memory_space<vmem>>, vector<64x768xf32>
    %1 = arith.truncf %0 : vector<64x768xf32> to vector<64x768xbf16>
    %c0_1 = arith.constant 0 : index
    %c0_2 = arith.constant 0 : index
    %2 = vector.load %arg1[%c0_1, %c0_2] : memref<64x768xf32, #tpu.memory_space<vmem>>, vector<64x768xf32>
    %3 = arith.truncf %2 : vector<64x768xf32> to vector<64x768xbf16>
    %c0_3 = arith.constant 0 : index
    %c0_4 = arith.constant 0 : index
    %4 = vector.load %arg2[%c0_3, %c0_4] : memref<64x768xf32, #tpu.memory_space<vmem>>, vector<64x768xf32>
    %5 = arith.truncf %4 : vector<64x768xf32> to vector<64x768xbf16>
    %c0_5 = arith.constant 0 : index
    %c0_6 = arith.constant 0 : index
    %6 = vector.load %arg3[%c0_5, %c0_6] : memref<64x768xf32, #tpu.memory_space<vmem>>, vector<64x768xf32>
    %7 = arith.truncf %6 : vector<64x768xf32> to vector<64x768xbf16>
    %c0_7 = arith.constant 0 : index
    %c0_8 = arith.constant 0 : index
    %8 = vector.load %arg5[%c0_7, %c0_8] : memref<768x512xbf16, #tpu.memory_space<vmem>>, vector<768x512xbf16>
    %cst = arith.constant dense<0.000000e+00> : vector<64x512xf32>
    %9 = tpu.matmul %1, %8, %cst {dimension_numbers = #tpu.dot_dimension_numbers<[1], [0], [0], [1], [0, 0, 1, 1], [], []>} : vector<64x768xbf16>, vector<768x512xbf16>, vector<64x512xf32> -> vector<64x512xf32>
    %c0_9 = arith.constant 0 : index
    %c0_10 = arith.constant 0 : index
    %10 = vector.load %arg6[%c0_9, %c0_10] : memref<768x512xbf16, #tpu.memory_space<vmem>>, vector<768x512xbf16>
    %cst_11 = arith.constant dense<0.000000e+00> : vector<64x512xf32>
    %11 = tpu.matmul %3, %10, %cst_11 {dimension_numbers = #tpu.dot_dimension_numbers<[1], [0], [0], [1], [0, 0, 1, 1], [], []>} : vector<64x768xbf16>, vector<768x512xbf16>, vector<64x512xf32> -> vector<64x512xf32>
    %12 = arith.addf %9, %11 : vector<64x512xf32>
    %c0_12 = arith.constant 0 : index
    %c0_13 = arith.constant 0 : index
    %13 = vector.load %arg7[%c0_12, %c0_13] : memref<1x512xf32, #tpu.memory_space<vmem>>, vector<1x512xf32>
    %14 = vector.broadcast %13 : vector<1x512xf32> to vector<64x512xf32>
    %15 = arith.addf %12, %14 : vector<64x512xf32>
    %cst_14 = arith.constant 0.000000e+00 : f32
    %16 = vector.broadcast %cst_14 : f32 to vector<64x512xf32>
    %17 = arith.maximumf %15, %16 : vector<64x512xf32>
    %18 = arith.truncf %17 : vector<64x512xf32> to vector<64x512xbf16>
    %c0_15 = arith.constant 0 : index
    %c0_16 = arith.constant 0 : index
    %19 = vector.load %arg8[%c0_15, %c0_16] : memref<512x128xbf16, #tpu.memory_space<vmem>>, vector<512x128xbf16>
    %cst_17 = arith.constant dense<0.000000e+00> : vector<64x128xf32>
    %20 = tpu.matmul %18, %19, %cst_17 {dimension_numbers = #tpu.dot_dimension_numbers<[1], [0], [0], [1], [0, 0, 1, 1], [], []>} : vector<64x512xbf16>, vector<512x128xbf16>, vector<64x128xf32> -> vector<64x128xf32>
    %c0_18 = arith.constant 0 : index
    %c0_19 = arith.constant 0 : index
    %21 = vector.load %arg9[%c0_18, %c0_19] : memref<1x128xf32, #tpu.memory_space<vmem>>, vector<1x128xf32>
    %22 = vector.broadcast %21 : vector<1x128xf32> to vector<64x128xf32>
    %23 = arith.addf %20, %22 : vector<64x128xf32>
    %cst_20 = arith.constant 0.000000e+00 : f32
    %24 = vector.broadcast %cst_20 : f32 to vector<64x128xf32>
    %25 = arith.maximumf %23, %24 : vector<64x128xf32>
    %c0_21 = arith.constant 0 : index
    %c0_22 = arith.constant 0 : index
    %26 = vector.load %arg10[%c0_21, %c0_22] : memref<768x512xbf16, #tpu.memory_space<vmem>>, vector<768x512xbf16>
    %cst_23 = arith.constant dense<0.000000e+00> : vector<64x512xf32>
    %27 = tpu.matmul %5, %26, %cst_23 {dimension_numbers = #tpu.dot_dimension_numbers<[1], [0], [0], [1], [0, 0, 1, 1], [], []>} : vector<64x768xbf16>, vector<768x512xbf16>, vector<64x512xf32> -> vector<64x512xf32>
    %c0_24 = arith.constant 0 : index
    %c0_25 = arith.constant 0 : index
    %28 = vector.load %arg11[%c0_24, %c0_25] : memref<768x512xbf16, #tpu.memory_space<vmem>>, vector<768x512xbf16>
    %cst_26 = arith.constant dense<0.000000e+00> : vector<64x512xf32>
    %29 = tpu.matmul %7, %28, %cst_26 {dimension_numbers = #tpu.dot_dimension_numbers<[1], [0], [0], [1], [0, 0, 1, 1], [], []>} : vector<64x768xbf16>, vector<768x512xbf16>, vector<64x512xf32> -> vector<64x512xf32>
    %30 = arith.addf %27, %29 : vector<64x512xf32>
    %c0_27 = arith.constant 0 : index
    %c0_28 = arith.constant 0 : index
    %31 = vector.load %arg12[%c0_27, %c0_28] : memref<1x512xf32, #tpu.memory_space<vmem>>, vector<1x512xf32>
    %32 = vector.broadcast %31 : vector<1x512xf32> to vector<64x512xf32>
    %33 = arith.addf %30, %32 : vector<64x512xf32>
    %cst_29 = arith.constant 0.000000e+00 : f32
    %34 = vector.broadcast %cst_29 : f32 to vector<64x512xf32>
    %35 = arith.maximumf %33, %34 : vector<64x512xf32>
    %36 = arith.truncf %35 : vector<64x512xf32> to vector<64x512xbf16>
    %c0_30 = arith.constant 0 : index
    %c0_31 = arith.constant 0 : index
    %37 = vector.load %arg13[%c0_30, %c0_31] : memref<512x128xbf16, #tpu.memory_space<vmem>>, vector<512x128xbf16>
    %cst_32 = arith.constant dense<0.000000e+00> : vector<64x128xf32>
    %38 = tpu.matmul %36, %37, %cst_32 {dimension_numbers = #tpu.dot_dimension_numbers<[1], [0], [0], [1], [0, 0, 1, 1], [], []>} : vector<64x512xbf16>, vector<512x128xbf16>, vector<64x128xf32> -> vector<64x128xf32>
    %c0_33 = arith.constant 0 : index
    %c0_34 = arith.constant 0 : index
    %39 = vector.load %arg14[%c0_33, %c0_34] : memref<1x128xf32, #tpu.memory_space<vmem>>, vector<1x128xf32>
    %40 = vector.broadcast %39 : vector<1x128xf32> to vector<64x128xf32>
    %41 = arith.addf %38, %40 : vector<64x128xf32>
    %cst_35 = arith.constant 0.000000e+00 : f32
    %42 = vector.broadcast %cst_35 : f32 to vector<64x128xf32>
    %43 = arith.maximumf %41, %42 : vector<64x128xf32>
    %c0_36 = arith.constant 0 : index
    %c0_37 = arith.constant 0 : index
    %44 = vector.load %arg15[%c0_36, %c0_37] : memref<768x512xbf16, #tpu.memory_space<vmem>>, vector<768x512xbf16>
    %cst_38 = arith.constant dense<0.000000e+00> : vector<64x512xf32>
    %45 = tpu.matmul %3, %44, %cst_38 {dimension_numbers = #tpu.dot_dimension_numbers<[1], [0], [0], [1], [0, 0, 1, 1], [], []>} : vector<64x768xbf16>, vector<768x512xbf16>, vector<64x512xf32> -> vector<64x512xf32>
    %c0_39 = arith.constant 0 : index
    %c0_40 = arith.constant 0 : index
    %46 = vector.load %arg16[%c0_39, %c0_40] : memref<768x512xbf16, #tpu.memory_space<vmem>>, vector<768x512xbf16>
    %cst_41 = arith.constant dense<0.000000e+00> : vector<64x512xf32>
    %47 = tpu.matmul %7, %46, %cst_41 {dimension_numbers = #tpu.dot_dimension_numbers<[1], [0], [0], [1], [0, 0, 1, 1], [], []>} : vector<64x768xbf16>, vector<768x512xbf16>, vector<64x512xf32> -> vector<64x512xf32>
    %48 = arith.addf %45, %47 : vector<64x512xf32>
    %c0_42 = arith.constant 0 : index
    %c0_43 = arith.constant 0 : index
    %49 = vector.load %arg17[%c0_42, %c0_43] : memref<1x512xf32, #tpu.memory_space<vmem>>, vector<1x512xf32>
    %50 = vector.broadcast %49 : vector<1x512xf32> to vector<64x512xf32>
    %51 = arith.addf %48, %50 : vector<64x512xf32>
    %cst_44 = arith.constant 0.000000e+00 : f32
    %52 = vector.broadcast %cst_44 : f32 to vector<64x512xf32>
    %53 = arith.maximumf %51, %52 : vector<64x512xf32>
    %54 = arith.truncf %53 : vector<64x512xf32> to vector<64x512xbf16>
    %c0_45 = arith.constant 0 : index
    %c0_46 = arith.constant 0 : index
    %55 = vector.load %arg18[%c0_45, %c0_46] : memref<512x128xbf16, #tpu.memory_space<vmem>>, vector<512x128xbf16>
    %cst_47 = arith.constant dense<0.000000e+00> : vector<64x128xf32>
    %56 = tpu.matmul %54, %55, %cst_47 {dimension_numbers = #tpu.dot_dimension_numbers<[1], [0], [0], [1], [0, 0, 1, 1], [], []>} : vector<64x512xbf16>, vector<512x128xbf16>, vector<64x128xf32> -> vector<64x128xf32>
    %c0_48 = arith.constant 0 : index
    %c0_49 = arith.constant 0 : index
    %57 = vector.load %arg19[%c0_48, %c0_49] : memref<1x128xf32, #tpu.memory_space<vmem>>, vector<1x128xf32>
    %58 = vector.broadcast %57 : vector<1x128xf32> to vector<64x128xf32>
    %59 = arith.addf %56, %58 : vector<64x128xf32>
    %cst_50 = arith.constant 0.000000e+00 : f32
    %60 = vector.broadcast %cst_50 : f32 to vector<64x128xf32>
    %61 = arith.maximumf %59, %60 : vector<64x128xf32>
    %62 = arith.addf %25, %43 : vector<64x128xf32>
    %63 = arith.truncf %62 : vector<64x128xf32> to vector<64x128xbf16>
    %c0_51 = arith.constant 0 : index
    %c0_52 = arith.constant 0 : index
    %64 = vector.load %arg20[%c0_51, %c0_52] : memref<128x128xbf16, #tpu.memory_space<vmem>>, vector<128x128xbf16>
    %cst_53 = arith.constant dense<0.000000e+00> : vector<64x128xf32>
    %65 = tpu.matmul %63, %64, %cst_53 {dimension_numbers = #tpu.dot_dimension_numbers<[1], [0], [0], [1], [0, 0, 1, 1], [], []>} : vector<64x128xbf16>, vector<128x128xbf16>, vector<64x128xf32> -> vector<64x128xf32>
    %c0_54 = arith.constant 0 : index
    %c0_55 = arith.constant 0 : index
    %66 = vector.load %arg21[%c0_54, %c0_55] : memref<1x128xf32, #tpu.memory_space<vmem>>, vector<1x128xf32>
    %67 = vector.broadcast %66 : vector<1x128xf32> to vector<64x128xf32>
    %68 = arith.addf %65, %67 : vector<64x128xf32>
    %c0_56 = arith.constant 0 : index
    %c0_57 = arith.constant 0 : index
    %69 = vector.load %arg4[%c0_56, %c0_57] : memref<64x10xf32, #tpu.memory_space<vmem>>, vector<64x10xf32>
    %cst_58 = arith.constant dense<0xFF800000> : vector<64xf32>
    %70 = vector.multi_reduction <maximumf>, %69, %cst_58 [1] : vector<64x10xf32> to vector<64xf32>
    %71 = vector.shape_cast %70 : vector<64xf32> to vector<64x1xf32>
    %72 = vector.broadcast %71 : vector<64x1xf32> to vector<64x128xf32>
    %73 = arith.mulf %72, %61 : vector<64x128xf32>
    %74 = arith.addf %73, %68 : vector<64x128xf32>
    %c0_59 = arith.constant 0 : index
    %c0_60 = arith.constant 0 : index
    %75 = vector.load %arg27[%c0_59, %c0_60] : memref<64x128xf32, #tpu.memory_space<vmem>>, vector<64x128xf32>
    tpu.vector_store %arg27[%c0_59, %c0_60], %74 {strides = array<i32>} : memref<64x128xf32, #tpu.memory_space<vmem>>, vector<64x128xf32>,
    %76 = arith.truncf %74 : vector<64x128xf32> to vector<64x128xbf16>
    %c0_61 = arith.constant 0 : index
    %c0_62 = arith.constant 0 : index
    %77 = vector.load %arg22[%c0_61, %c0_62] : memref<128x128xbf16, #tpu.memory_space<vmem>>, vector<128x128xbf16>
    %cst_63 = arith.constant dense<0.000000e+00> : vector<64x128xf32>
    %78 = tpu.matmul %76, %77, %cst_63 {dimension_numbers = #tpu.dot_dimension_numbers<[1], [0], [0], [1], [0, 0, 1, 1], [], []>} : vector<64x128xbf16>, vector<128x128xbf16>, vector<64x128xf32> -> vector<64x128xf32>
    %c0_64 = arith.constant 0 : index
    %c0_65 = arith.constant 0 : index
    %79 = vector.load %arg23[%c0_64, %c0_65] : memref<1x128xf32, #tpu.memory_space<vmem>>, vector<1x128xf32>
    %80 = vector.broadcast %79 : vector<1x128xf32> to vector<64x128xf32>
    %81 = arith.addf %78, %80 : vector<64x128xf32>
    %cst_66 = arith.constant 0.000000e+00 : f32
    %82 = vector.broadcast %cst_66 : f32 to vector<64x128xf32>
    %83 = arith.maximumf %81, %82 : vector<64x128xf32>
    %84 = arith.truncf %83 : vector<64x128xf32> to vector<64x128xbf16>
    %c0_67 = arith.constant 0 : index
    %c0_68 = arith.constant 0 : index
    %85 = vector.load %arg24[%c0_67, %c0_68] : memref<128x128xbf16, #tpu.memory_space<vmem>>, vector<128x128xbf16>
    %cst_69 = arith.constant dense<0.000000e+00> : vector<64x128xf32>
    %86 = tpu.matmul %84, %85, %cst_69 {dimension_numbers = #tpu.dot_dimension_numbers<[1], [0], [0], [1], [0, 0, 1, 1], [], []>} : vector<64x128xbf16>, vector<128x128xbf16>, vector<64x128xf32> -> vector<64x128xf32>
    %c0_70 = arith.constant 0 : index
    %c0_71 = arith.constant 0 : index
    %87 = vector.load %arg25[%c0_70, %c0_71] : memref<1x128xf32, #tpu.memory_space<vmem>>, vector<1x128xf32>
    %88 = vector.broadcast %87 : vector<1x128xf32> to vector<64x128xf32>
    %89 = arith.addf %86, %88 : vector<64x128xf32>
    %90 = vector.extract_strided_slice %89 {offsets = [0, 0], sizes = [64, 2], strides = [1, 1]} : vector<64x128xf32> to vector<64x2xf32>
    %c0_72 = arith.constant 0 : index
    %c0_73 = arith.constant 0 : index
    %91 = vector.load %arg26[%c0_72, %c0_73] : memref<64x2xf32, #tpu.memory_space<vmem>>, vector<64x2xf32>
    tpu.vector_store %arg26[%c0_72, %c0_73], %90 {strides = array<i32>} : memref<64x2xf32, #tpu.memory_space<vmem>>, vector<64x2xf32>,
    return
  }
}

</mosaic_0001>

<bundles_post_ra>
// kernel: baseline_forward.1
= control target key start
LH: loop header
LB: loop body
LE: loop exit
PB: predicated region body
PF: predicated region fallthrough
CT: control target
= control target key end

     0   :  { %s17757_s0 = inlined_call_operand.hbm [shape: f32[64,768], index: 0, kind: input, shape index: {}]   ;;  %s17758_s1 = inlined_call_operand.hbm [shape: f32[64,768], index: 1, kind: input, shape index: {}]   ;;  %s17759_s2 = inlined_call_operand.hbm [shape: f32[64,768], index: 2, kind: input, shape index: {}]   ;;  %s17760_s3 = inlined_call_operand.hbm [shape: f32[64,768], index: 3, kind: input, shape index: {}]   ;;  %s17761_s4 = inlined_call_operand.vmem [shape: f32[64,10], index: 4, kind: input, shape index: {}]   ;;  %s17762_s5 = inlined_call_operand.hbm [shape: bf16[768,512], index: 5, kind: input, shape index: {}]   ;;  %s17763_s6 = inlined_call_operand.hbm [shape: bf16[768,512], index: 6, kind: input, shape index: {}]   ;;  %s17764_s7 = inlined_call_operand.hbm [shape: f32[1,512], index: 7, kind: input, shape index: {}]   ;;  %s17765_s8 = inlined_call_operand.hbm [shape: bf16[512,128], index: 8, kind: input, shape index: {}]   ;;  %s17766_s9 = inlined_call_operand.vmem [shape: f32[1,128], index: 9, kind: input, shape index: {}]   ;;  %s17767_s10 = inlined_call_operand.hbm [shape: bf16[768,512], index: 10, kind: input, shape index: {}]   ;;  %s17768_s11 = inlined_call_operand.hbm [shape: bf16[768,512], index: 11, kind: input, shape index: {}]   ;;  %s17769_s12 = inlined_call_operand.hbm [shape: f32[1,512], index: 12, kind: input, shape index: {}]   ;;  %s17770_s13 = inlined_call_operand.hbm [shape: bf16[512,128], index: 13, kind: input, shape index: {}]   ;;  %s17771_s14 = inlined_call_operand.hbm [shape: f32[1,128], index: 14, kind: input, shape index: {}]   ;;  %s17772_s15 = inlined_call_operand.hbm [shape: bf16[768,512], index: 15, kind: input, shape index: {}]   ;;  %s17773_s16 = inlined_call_operand.hbm [shape: bf16[768,512], index: 16, kind: input, shape index: {}]   ;;  %s17774_s17 = inlined_call_operand.vmem [shape: f32[1,512], index: 17, kind: input, shape index: {}]   ;;  %s17775_s18 = inlined_call_operand.hbm [shape: bf16[512,128], index: 18, kind: input, shape index: {}]   ;;  %s17776_s19 = inlined_call_operand.vmem [shape: f32[1,128], index: 19, kind: input, shape index: {}]   ;;  %s17777_s20 = inlined_call_operand.vmem [shape: bf16[128,128], index: 20, kind: input, shape index: {}]   ;;  %s17778_s21 = inlined_call_operand.vmem [shape: f32[1,128], index: 21, kind: input, shape index: {}]   ;;  %s17779_s22 = inlined_call_operand.vmem [shape: bf16[128,128], index: 22, kind: input, shape index: {}]   ;;  %s17780_s23 = inlined_call_operand.vmem [shape: f32[1,128], index: 23, kind: input, shape index: {}]   ;;  %s17781_s24 = inlined_call_operand.hbm [shape: bf16[128,128], index: 24, kind: input, shape index: {}]   ;;  %s17782_s25 = inlined_call_operand.vmem [shape: f32[1,128], index: 25, kind: input, shape index: {}]   ;;  %s17783_s26 = inlined_call_operand.vmem [shape: f32[64,2], index: 26, kind: output, shape index: {0}]   ;;  %s17784_s27 = inlined_call_operand.hbm [shape: f32[64,128], index: 27, kind: output, shape index: {1}]  }
   0x1   :  { %17857 = sst [smem:[#allocation69_spill]] %s17757_s0 }
   0x2   :  { %17858 = sst [smem:[#allocation70_spill]] %s17758_s1 }
   0x3   :  { %17859 = sst [smem:[#allocation71_spill]] %s17759_s2 }
   0x4   :  { %17860 = sst [smem:[#allocation72_spill]] %s17760_s3 }
   0x5   :  { %17861 = sst [smem:[#allocation73_spill]] %s17761_s4 }
   0x6   :  { %17862 = sst [smem:[#allocation74_spill]] %s17762_s5 }
   0x7   :  { %17863 = sst [smem:[#allocation75_spill]] %s17763_s6 }
   0x8   :  { %17864 = sst [smem:[#allocation76_spill]] %s17764_s7 }
   0x9   :  { %17865 = sst [smem:[#allocation77_spill]] %s17765_s8 }
   0xa   :  { %17866 = sst [smem:[#allocation78_spill]] %s17766_s9 }
   0xb   :  { %17867 = sst [smem:[#allocation79_spill]] %s17767_s10 }
   0xc   :  { %17868 = sst [smem:[#allocation80_spill]] %s17768_s11 }
   0xd   :  { %17869 = sst [smem:[#allocation81_spill]] %s17782_s25 }
   0xe   :  { %17870 = sst [smem:[#allocation82_spill]] %s17783_s26 }
   0xf   :  { %17871 = sst [smem:[#allocation83_spill]] %s17784_s27 }
  0x10   :  { %33 = vsyncpa [#allocation3], 0 }
  0x11   :  { %34 = vsyncpa [#allocation6], 0 }
  0x12   :  { %35 = vsyncpa [#allocation9], 0 }
  0x13   :  { %36 = vsyncpa [#allocation12], 0 }
  0x14   :  { %37 = vsyncpa [#allocation15], 0 }
  0x15   :  { %38 = vsyncpa [#allocation18], 0 }
  0x16   :  { %39 = vsyncpa [#allocation21], 0 }
  0x17   :  { %40 = vsyncpa [#allocation24], 0 }
  0x18   :  { %41 = vsyncpa [#allocation27], 0 }
  0x19   :  { %42 = vsyncpa [#allocation4], 0  ;;  %s16591_s7 = smov [#allocation5]   ;;  %s16592_s8 = smov [#allocation8]  }
  0x1a   :  { %s60_s4 = sshll.u32 %s16591_s7, 4  ;;  %s84_s30 = sshll.u32 %s16592_s8, 4  ;;  %s61_s4 = int_to_ptr.vmem [resolvable:$true] %s60_s4  ;;  %s16757_s30 = int_to_ptr.vmem [resolvable:$true] %s84_s30 }
  0x1b   :  { %s17872_s28 = sld [smem:[#allocation70_spill]] }
  0x21   :  { %s16175_s0 = scalar_lea.hbm %s17872_s28, 6144 }
  0x22   :  { %p16176_p0 = scmp.ne.s32.totalorder %s17872_s28, %s16175_s0  ;;  %p16179_p1 = scmp.lt.u32.totalorder %s16175_s0, %s17872_s28 }
  0x24   :  { %p16181_p2 = pnand %p16179_p1, %p16176_p0 }
  0x26   :  { %16184 = shalt.err (!%p16181_p2)
}
  0x27   :  { %s16185_s11 = scalar_lea.vmem %s61_s4, 6144  ;;  %p16190_p4 = scmp.lt.s32.totalorder %s61_s4, %s61_s4 }
  0x28   :  { %p16186_p3 = scmp.ne.s32.totalorder %s61_s4, %s16185_s11  ;;  %p16191_p5 = scmp.lt.s32.totalorder %s16185_s11, %s16185_s11 }
  0x2a   :  { %p16192_p6 = por %p16191_p5, %p16190_p4 }
  0x2c   :  { %p16193_p7 = pnand %p16192_p6, %p16186_p3 }
  0x2e   :  { %16196 = shalt.err (!%p16193_p7)
}
  0x2f   :  { %s17798_s2 = smov 768   ;;  %s17800_s3 = smov 48  }
  0x30   :  { %66 = dma.hbm_to_vmem [thread:$0]  %s17872_s28, 6144, %s61_s4, [#allocation6], %s17798_s2, %s17798_s2, %s17800_s3  }
  0x31   :  { %s17873_s0 = sld [smem:[#allocation72_spill]] }
  0x37   :  { %s16197_s10 = scalar_lea.hbm %s17873_s0, 6144 }
  0x38   :  { %p16198_p8 = scmp.ne.s32.totalorder %s17873_s0, %s16197_s10  ;;  %p16201_p9 = scmp.lt.u32.totalorder %s16197_s10, %s17873_s0 }
  0x3a   :  { %p16203_p10 = pnand %p16201_p9, %p16198_p8 }
  0x3c   :  { %16206 = shalt.err (!%p16203_p10)
}
  0x3d   :  { %s16207_s26 = scalar_lea.vmem %s16757_s30, 6144  ;;  %p16212_p12 = scmp.lt.s32.totalorder %s16757_s30, %s16757_s30 }
  0x3e   :  { %p16208_p11 = scmp.ne.s32.totalorder %s16757_s30, %s16207_s26  ;;  %p16213_p13 = scmp.lt.s32.totalorder %s16207_s26, %s16207_s26 }
  0x40   :  { %p16214_p0 = por %p16213_p13, %p16212_p12 }
  0x42   :  { %p16215_p1 = pnand %p16214_p0, %p16208_p11 }
  0x44   :  { %16218 = shalt.err (!%p16215_p1)
}
  0x45   :  { %90 = dma.hbm_to_vmem [thread:$0]  %s17873_s0, 6144, %s16757_s30, [#allocation9], %s17798_s2, %s17798_s2, %s17800_s3  }
  0x46   :  { %s16595_s7 = smov [#allocation11]   ;;  %s16596_s9 = smov [#allocation14]  }
  0x47   :  { %s110_s8 = sshll.u32 %s16595_s7, 4  ;;  %s132_s5 = sshll.u32 %s16596_s9, 4  ;;  %s111_s8 = int_to_ptr.vmem [resolvable:$true] %s110_s8  ;;  %s16794_s5 = int_to_ptr.vmem [resolvable:$true] %s132_s5 }
  0x48   :  { %s17874_s29 = sld [smem:[#allocation75_spill]] }
  0x4e   :  { %s16219_s1 = scalar_lea.hbm %s17874_s29, 24576 }
  0x4f   :  { %p16220_p2 = scmp.ne.s32.totalorder %s17874_s29, %s16219_s1  ;;  %p16223_p3 = scmp.lt.u32.totalorder %s16219_s1, %s17874_s29 }
  0x51   :  { %p16225_p4 = pnand %p16223_p3, %p16220_p2 }
  0x53   :  { %16228 = shalt.err (!%p16225_p4)
}
  0x54   :  { %s16229_s30 = scalar_lea.vmem %s111_s8, 24576  ;;  %p16234_p6 = scmp.lt.s32.totalorder %s111_s8, %s111_s8 }
  0x55   :  { %p16230_p5 = scmp.ne.s32.totalorder %s111_s8, %s16229_s30  ;;  %p16235_p7 = scmp.lt.s32.totalorder %s16229_s30, %s16229_s30 }
  0x57   :  { %p16236_p8 = por %p16235_p7, %p16234_p6 }
  0x59   :  { %p16237_p9 = pnand %p16236_p8, %p16230_p5 }
  0x5b   :  { %16240 = shalt.err (!%p16237_p9)
}
  0x5c   :  { %s17802_s0 = smov 256   ;;  %s17804_s4 = smov 16  }
  0x5d   :  { %116 = dma.hbm_to_vmem [thread:$0]  %s17874_s29, 24576, %s111_s8, [#allocation12], %s17802_s0, %s17802_s0, %s17804_s4  }
  0x5e   :  { %s17875_s9 = sld [smem:[#allocation77_spill]] }
  0x64   :  { %s16241_s10 = scalar_lea.hbm %s17875_s9, 4096 }
  0x65   :  { %p16242_p10 = scmp.ne.s32.totalorder %s17875_s9, %s16241_s10  ;;  %p16245_p11 = scmp.lt.u32.totalorder %s16241_s10, %s17875_s9 }
  0x67   :  { %p16247_p12 = pnand %p16245_p11, %p16242_p10 }
  0x69   :  { %16250 = shalt.err (!%p16247_p12)
}
  0x6a   :  { %s16251_s30 = scalar_lea.vmem %s16794_s5, 4096  ;;  %p16256_p0 = scmp.lt.s32.totalorder %s16794_s5, %s16794_s5 }
  0x6b   :  { %p16252_p13 = scmp.ne.s32.totalorder %s16794_s5, %s16251_s30  ;;  %p16257_p1 = scmp.lt.s32.totalorder %s16251_s30, %s16251_s30 }
  0x6d   :  { %p16258_p2 = por %p16257_p1, %p16256_p0 }
  0x6f   :  { %p16259_p3 = pnand %p16258_p2, %p16252_p13 }
  0x71   :  { %16262 = shalt.err (!%p16259_p3)
}
  0x72   :  { %s17806_s8 = smov 64   ;;  %s16600_s29 = smov 4  }
  0x73   :  { %138 = dma.hbm_to_vmem [thread:$0]  %s17875_s9, 4096, %s16794_s5, [#allocation15], %s17806_s8, %s17806_s8, %s16600_s29  }
  0x74   :  { %s16601_s25 = smov [#allocation17]   ;;  %s16602_s10 = smov [#allocation20]  }
  0x75   :  { %s158_s27 = sshll.u32 %s16601_s25, 4  ;;  %s180_s26 = sshll.u32 %s16602_s10, 4  ;;  %s159_s27 = int_to_ptr.vmem [resolvable:$true] %s158_s27  ;;  %s16831_s26 = int_to_ptr.vmem [resolvable:$true] %s180_s26 }
  0x76   :  { %s17876_s11 = sld [smem:[#allocation80_spill]] }
  0x7c   :  { %s16263_s30 = scalar_lea.hbm %s17876_s11, 24576 }
  0x7d   :  { %p16264_p4 = scmp.ne.s32.totalorder %s17876_s11, %s16263_s30  ;;  %p16267_p5 = scmp.lt.u32.totalorder %s16263_s30, %s17876_s11 }
  0x7f   :  { %p16269_p6 = pnand %p16267_p5, %p16264_p4 }
  0x81   :  { %16272 = shalt.err (!%p16269_p6)
}
  0x82   :  { %s16273_s5 = scalar_lea.vmem %s159_s27, 24576  ;;  %p16278_p8 = scmp.lt.s32.totalorder %s159_s27, %s159_s27 }
  0x83   :  { %p16274_p7 = scmp.ne.s32.totalorder %s159_s27, %s16273_s5  ;;  %p16279_p9 = scmp.lt.s32.totalorder %s16273_s5, %s16273_s5 }
  0x85   :  { %p16280_p10 = por %p16279_p9, %p16278_p8 }
  0x87   :  { %p16281_p11 = pnand %p16280_p10, %p16274_p7 }
  0x89   :  { %16284 = shalt.err (!%p16281_p11)
}
  0x8a   :  { %s17877_s9 = smov 16   ;;  %s17878_s28 = smov 256  }
  0x8b   :  { %164 = dma.hbm_to_vmem [thread:$0]  %s17876_s11, 24576, %s159_s27, [#allocation18], %s17878_s28, %s17878_s28, %s17877_s9  }
  0x8c   :  { %s16285_s0 = scalar_lea.hbm %s17770_s13, 4096 }
  0x8d   :  { %p16286_p12 = scmp.ne.s32.totalorder %s17770_s13, %s16285_s0  ;;  %p16289_p13 = scmp.lt.u32.totalorder %s16285_s0, %s17770_s13 }
  0x8f   :  { %p16291_p0 = pnand %p16289_p13, %p16286_p12 }
  0x91   :  { %16294 = shalt.err (!%p16291_p0)
}
  0x92   :  { %s16295_s30 = scalar_lea.vmem %s16831_s26, 4096  ;;  %p16300_p2 = scmp.lt.s32.totalorder %s16831_s26, %s16831_s26 }
  0x93   :  { %p16296_p1 = scmp.ne.s32.totalorder %s16831_s26, %s16295_s30  ;;  %p16301_p3 = scmp.lt.s32.totalorder %s16295_s30, %s16295_s30 }
  0x95   :  { %p16302_p4 = por %p16301_p3, %p16300_p2 }
  0x97   :  { %p16303_p5 = pnand %p16302_p4, %p16296_p1 }
  0x99   :  { %16306 = shalt.err (!%p16303_p5)
}
  0x9a   :  { %186 = dma.hbm_to_vmem [thread:$0]  %s17770_s13, 4096, %s16831_s26, [#allocation21], %s17806_s8, %s17806_s8, %s16600_s29  }
  0x9b   :  { %s16603_s5 = smov [#allocation23]   ;;  %s16604_s25 = smov [#allocation26]  }
  0x9c   :  { %s202_s7 = sshll.u32 %s16603_s5, 4  ;;  %s228_s2 = sshll.u32 %s16604_s25, 4  ;;  %s203_s7 = int_to_ptr.vmem [resolvable:$true] %s202_s7  ;;  %s16868_s2 = int_to_ptr.vmem [resolvable:$true] %s228_s2 }
  0x9d   :  { %s16307_s4 = scalar_lea.hbm %s17772_s15, 24576 }
  0x9e   :  { %p16308_p6 = scmp.ne.s32.totalorder %s17772_s15, %s16307_s4  ;;  %p16311_p7 = scmp.lt.u32.totalorder %s16307_s4, %s17772_s15 }
  0xa0   :  { %p16313_p8 = pnand %p16311_p7, %p16308_p6 }
  0xa2   :  { %16316 = shalt.err (!%p16313_p8)
}
  0xa3   :  { %s16317_s13 = scalar_lea.vmem %s203_s7, 24576  ;;  %p16322_p10 = scmp.lt.s32.totalorder %s203_s7, %s203_s7 }
  0xa4   :  { %p16318_p9 = scmp.ne.s32.totalorder %s203_s7, %s16317_s13  ;;  %p16323_p11 = scmp.lt.s32.totalorder %s16317_s13, %s16317_s13 }
  0xa6   :  { %p16324_p12 = por %p16323_p11, %p16322_p10 }
  0xa8   :  { %p16325_p13 = pnand %p16324_p12, %p16318_p9 }
  0xaa   :  { %16328 = shalt.err (!%p16325_p13)
}
  0xab   :  { %208 = dma.hbm_to_vmem [thread:$0]  %s17772_s15, 24576, %s203_s7, [#allocation24], %s17878_s28, %s17878_s28, %s17877_s9  }
  0xac   :  { %s16329_s25 = scalar_lea.hbm %s17775_s18, 4096 }
  0xad   :  { %p16330_p0 = scmp.ne.s32.totalorder %s17775_s18, %s16329_s25  ;;  %p16333_p1 = scmp.lt.u32.totalorder %s16329_s25, %s17775_s18 }
  0xaf   :  { %p16335_p2 = pnand %p16333_p1, %p16330_p0 }
  0xb1   :  { %16338 = shalt.err (!%p16335_p2)
}
  0xb2   :  { %s16339_s1 = scalar_lea.vmem %s16868_s2, 4096  ;;  %p16344_p4 = scmp.lt.s32.totalorder %s16868_s2, %s16868_s2 }
  0xb3   :  { %p16340_p3 = scmp.ne.s32.totalorder %s16868_s2, %s16339_s1  ;;  %p16345_p5 = scmp.lt.s32.totalorder %s16339_s1, %s16339_s1 }
  0xb5   :  { %p16346_p6 = por %p16345_p5, %p16344_p4 }
  0xb7   :  { %p16347_p7 = pnand %p16346_p6, %p16340_p3 }
  0xb9   :  { %16350 = shalt.err (!%p16347_p7)
}
  0xba   :  { %234 = dma.hbm_to_vmem [thread:$0]  %s17775_s18, 4096, %s16868_s2, [#allocation27], %s17806_s8, %s17806_s8, %s16600_s29  }
  0xbb   :  { %s16605_s6 = smov [#allocation2]   ;;  %s16606_s13 = smov [#allocation7]  }
  0xbc   :  { %s48_s30 = sshll.u32 %s16605_s6, 4  ;;  %s72_s26 = sshll.u32 %s16606_s13, 4  ;;  %s49_s30 = int_to_ptr.vmem [resolvable:$true] %s48_s30  ;;  %s16905_s26 = int_to_ptr.vmem [resolvable:$true] %s72_s26 }
  0xbd   :  { %s17879_s5 = sld [smem:[#allocation69_spill]] }
  0xc3   :  { %s16351_s25 = scalar_lea.hbm %s17879_s5, 6144 }
  0xc4   :  { %p16352_p8 = scmp.ne.s32.totalorder %s17879_s5, %s16351_s25  ;;  %p16355_p9 = scmp.lt.u32.totalorder %s16351_s25, %s17879_s5 }
  0xc6   :  { %p16357_p10 = pnand %p16355_p9, %p16352_p8 }
  0xc8   :  { %16360 = shalt.err (!%p16357_p10)
}
  0xc9   :  { %s16361_s18 = scalar_lea.vmem %s49_s30, 6144  ;;  %p16366_p12 = scmp.lt.s32.totalorder %s49_s30, %s49_s30 }
  0xca   :  { %p16362_p11 = scmp.ne.s32.totalorder %s49_s30, %s16361_s18  ;;  %p16367_p13 = scmp.lt.s32.totalorder %s16361_s18, %s16361_s18 }
  0xcc   :  { %p16368_p0 = por %p16367_p13, %p16366_p12 }
  0xce   :  { %p16369_p1 = pnand %p16368_p0, %p16362_p11 }
  0xd0   :  { %16372 = shalt.err (!%p16369_p1)
}
  0xd1   :  { %s17880_s2 = smov 48   ;;  %s17881_s1 = smov 768  }
  0xd2   :  { %54 = dma.hbm_to_vmem [thread:$0]  %s17879_s5, 6144, %s49_s30, [#allocation3], %s17881_s1, %s17881_s1, %s17880_s2  }
  0xd3   :  { %s17882_s27 = sld [smem:[#allocation71_spill]] }
  0xd9   :  { %s16373_s11 = scalar_lea.hbm %s17882_s27, 6144 }
  0xda   :  { %p16374_p2 = scmp.ne.s32.totalorder %s17882_s27, %s16373_s11  ;;  %p16377_p3 = scmp.lt.u32.totalorder %s16373_s11, %s17882_s27 }
  0xdc   :  { %p16379_p4 = pnand %p16377_p3, %p16374_p2 }
  0xde   :  { %16382 = shalt.err (!%p16379_p4)
}
  0xdf   :  { %s16383_s10 = scalar_lea.vmem %s16905_s26, 6144  ;;  %p16388_p6 = scmp.lt.s32.totalorder %s16905_s26, %s16905_s26 }
  0xe0   :  { %p16384_p5 = scmp.ne.s32.totalorder %s16905_s26, %s16383_s10  ;;  %p16389_p7 = scmp.lt.s32.totalorder %s16383_s10, %s16383_s10 }
  0xe2   :  { %p16390_p8 = por %p16389_p7, %p16388_p6 }
  0xe4   :  { %p16391_p9 = pnand %p16390_p8, %p16384_p5 }
  0xe6   :  { %16394 = shalt.err (!%p16391_p9)
}
  0xe7   :  { %78 = dma.hbm_to_vmem [thread:$0]  %s17882_s27, 6144, %s16905_s26, [#allocation6], %s17881_s1, %s17881_s1, %s17880_s2  }
  0xe8   :  { %s16607_s18 = smov [#allocation10]   ;;  %s16608_s7 = smov [#allocation13]  }
  0xe9   :  { %s98_s15 = sshll.u32 %s16607_s18, 4  ;;  %s123_s6 = sshll.u32 %s16608_s7, 4  ;;  %s99_s15 = int_to_ptr.vmem [resolvable:$true] %s98_s15  ;;  %s124_s6 = int_to_ptr.vmem [resolvable:$true] %s123_s6 }
  0xea   :  { %s17883_s25 = sld [smem:[#allocation74_spill]] }
  0xf0   :  { %s16395_s3 = scalar_lea.hbm %s17883_s25, 24576 }
  0xf1   :  { %p16396_p10 = scmp.ne.s32.totalorder %s17883_s25, %s16395_s3  ;;  %p16399_p11 = scmp.lt.u32.totalorder %s16395_s3, %s17883_s25 }
  0xf3   :  { %p16401_p12 = pnand %p16399_p11, %p16396_p10 }
  0xf5   :  { %16404 = shalt.err (!%p16401_p12)
}
  0xf6   :  { %s16405_s26 = scalar_lea.vmem %s99_s15, 24576  ;;  %p16410_p0 = scmp.lt.s32.totalorder %s99_s15, %s99_s15 }
  0xf7   :  { %p16406_p13 = scmp.ne.s32.totalorder %s99_s15, %s16405_s26  ;;  %p16411_p1 = scmp.lt.s32.totalorder %s16405_s26, %s16405_s26 }
  0xf9   :  { %p16412_p2 = por %p16411_p1, %p16410_p0 }
  0xfb   :  { %p16413_p3 = pnand %p16412_p2, %p16406_p13 }
  0xfd   :  { %16416 = shalt.err (!%p16413_p3)
}
  0xfe   :  { %104 = dma.hbm_to_vmem [thread:$0]  %s17883_s25, 24576, %s99_s15, [#allocation9], %s17878_s28, %s17878_s28, %s17877_s9  }
  0xff   :  { %s17884_s8 = sld [smem:[#allocation76_spill]] }
 0x105   :  { %s16417_s5 = scalar_lea.hbm %s17884_s8, 64 }
 0x106   :  { %p16418_p4 = scmp.ne.s32.totalorder %s17884_s8, %s16417_s5  ;;  %p16421_p5 = scmp.lt.u32.totalorder %s16417_s5, %s17884_s8 }
 0x108   :  { %p16423_p6 = pnand %p16421_p5, %p16418_p4 }
 0x10a   :  { %16426 = shalt.err (!%p16423_p6)
}
 0x10b   :  { %s16427_s3 = scalar_lea.vmem %s124_s6, 64  ;;  %p16432_p8 = scmp.lt.s32.totalorder %s124_s6, %s124_s6 }
 0x10c   :  { %p16428_p7 = scmp.ne.s32.totalorder %s124_s6, %s16427_s3  ;;  %p16433_p9 = scmp.lt.s32.totalorder %s16427_s3, %s16427_s3 }
 0x10e   :  { %p16434_p10 = por %p16433_p9, %p16432_p8 }
 0x110   :  { %p16435_p11 = pnand %p16434_p10, %p16428_p7 }
 0x112   :  { %16438 = shalt.err (!%p16435_p11)
}
 0x113   :  { %126 = dma.hbm_to_vmem [thread:$0]  %s17884_s8, 64, %s124_s6, [#allocation12]  }
 0x114   :  { %s16609_s0 = smov [#allocation16]   ;;  %s16610_s10 = smov [#allocation19]  }
 0x115   :  { %s146_s4 = sshll.u32 %s16609_s0, 4  ;;  %s171_s26 = sshll.u32 %s16610_s10, 4  ;;  %s147_s4 = int_to_ptr.vmem [resolvable:$true] %s146_s4  ;;  %s172_s26 = int_to_ptr.vmem [resolvable:$true] %s171_s26 }
 0x116   :  { %s17885_s27 = sld [smem:[#allocation79_spill]] }
 0x11c   :  { %s16439_s30 = scalar_lea.hbm %s17885_s27, 24576 }
 0x11d   :  { %p16440_p12 = scmp.ne.s32.totalorder %s17885_s27, %s16439_s30  ;;  %p16443_p13 = scmp.lt.u32.totalorder %s16439_s30, %s17885_s27 }
 0x11f   :  { %p16445_p0 = pnand %p16443_p13, %p16440_p12 }
 0x121   :  { %16448 = shalt.err (!%p16445_p0)
}
 0x122   :  { %s16449_s6 = scalar_lea.vmem %s147_s4, 24576  ;;  %p16454_p2 = scmp.lt.s32.totalorder %s147_s4, %s147_s4 }
 0x123   :  { %p16450_p1 = scmp.ne.s32.totalorder %s147_s4, %s16449_s6  ;;  %p16455_p3 = scmp.lt.s32.totalorder %s16449_s6, %s16449_s6 }
 0x125   :  { %p16456_p4 = por %p16455_p3, %p16454_p2 }
 0x127   :  { %p16457_p5 = pnand %p16456_p4, %p16450_p1 }
 0x129   :  { %16460 = shalt.err (!%p16457_p5)
}
 0x12a   :  { %152 = dma.hbm_to_vmem [thread:$0]  %s17885_s27, 24576, %s147_s4, [#allocation15], %s17878_s28, %s17878_s28, %s17877_s9  }
 0x12b   :  { %s16461_s25 = scalar_lea.hbm %s17769_s12, 64 }
 0x12c   :  { %p16462_p6 = scmp.ne.s32.totalorder %s17769_s12, %s16461_s25  ;;  %p16465_p7 = scmp.lt.u32.totalorder %s16461_s25, %s17769_s12 }
 0x12e   :  { %p16467_p8 = pnand %p16465_p7, %p16462_p6 }
 0x130   :  { %16470 = shalt.err (!%p16467_p8)
}
 0x131   :  { %s16471_s30 = scalar_lea.vmem %s172_s26, 64  ;;  %p16476_p10 = scmp.lt.s32.totalorder %s172_s26, %s172_s26 }
 0x132   :  { %p16472_p9 = scmp.ne.s32.totalorder %s172_s26, %s16471_s30  ;;  %p16477_p11 = scmp.lt.s32.totalorder %s16471_s30, %s16471_s30 }
 0x134   :  { %p16478_p12 = por %p16477_p11, %p16476_p10 }
 0x136   :  { %p16479_p13 = pnand %p16478_p12, %p16472_p9 }
 0x138   :  { %16482 = shalt.err (!%p16479_p13)
}
 0x139   :  { %174 = dma.hbm_to_vmem [thread:$0]  %s17769_s12, 64, %s172_s26, [#allocation18]  }
 0x13a   :  { %s16611_s5 = smov [#allocation22]   ;;  %s16612_s7 = smov [#allocation25]  }
 0x13b   :  { %s193_s18 = sshll.u32 %s16611_s5, 4  ;;  %s214_s13 = sshll.u32 %s16612_s7, 4  ;;  %s194_s18 = int_to_ptr.vmem [resolvable:$true] %s193_s18  ;;  %s16996_s13 = int_to_ptr.vmem [resolvable:$true] %s214_s13 }
 0x13c   :  { %s16483_s11 = scalar_lea.hbm %s17771_s14, 16 }
 0x13d   :  { %p16484_p0 = scmp.ne.s32.totalorder %s17771_s14, %s16483_s11  ;;  %p16487_p1 = scmp.lt.u32.totalorder %s16483_s11, %s17771_s14 }
 0x13f   :  { %p16489_p2 = pnand %p16487_p1, %p16484_p0 }
 0x141   :  { %16492 = shalt.err (!%p16489_p2)
}
 0x142   :  { %s16493_s12 = scalar_lea.vmem %s194_s18, 16  ;;  %s16497_s26 = scalar_lea.vmem %s194_s18, 32 }
 0x143   :  { %p16494_p3 = scmp.ne.s32.totalorder %s194_s18, %s16493_s12  ;;  %p16498_p4 = scmp.lt.s32.totalorder %s194_s18, %s194_s18 }
 0x144   :  { %p16499_p5 = scmp.lt.s32.totalorder %s16497_s26, %s16493_s12 }
 0x146   :  { %p16500_p6 = por %p16499_p5, %p16498_p4 }
 0x148   :  { %p16501_p7 = pnand %p16500_p6, %p16494_p3 }
 0x14a   :  { %16504 = shalt.err (!%p16501_p7)
}
 0x14b   :  { %196 = dma.hbm_to_vmem [thread:$0]  %s17771_s14, 16, %s194_s18, [#allocation21]  }
 0x14c   :  { %s16505_s4 = scalar_lea.hbm %s17773_s16, 24576 }
 0x14d   :  { %p16506_p8 = scmp.ne.s32.totalorder %s17773_s16, %s16505_s4  ;;  %p16509_p9 = scmp.lt.u32.totalorder %s16505_s4, %s17773_s16 }
 0x14f   :  { %p16511_p10 = pnand %p16509_p9, %p16506_p8 }
 0x151   :  { %16514 = shalt.err (!%p16511_p10)
}
 0x152   :  { %s16515_s8 = scalar_lea.vmem %s16996_s13, 24576  ;;  %p16520_p12 = scmp.lt.s32.totalorder %s16996_s13, %s16996_s13 }
 0x153   :  { %p16516_p11 = scmp.ne.s32.totalorder %s16996_s13, %s16515_s8  ;;  %p16521_p13 = scmp.lt.s32.totalorder %s16515_s8, %s16515_s8 }
 0x155   :  { %p16522_p0 = por %p16521_p13, %p16520_p12 }
 0x157   :  { %p16523_p1 = pnand %p16522_p0, %p16516_p11 }
 0x159   :  { %16526 = shalt.err (!%p16523_p1)
}
 0x15a   :  { %220 = dma.hbm_to_vmem [thread:$0]  %s17773_s16, 24576, %s16996_s13, [#allocation24], %s17878_s28, %s17878_s28, %s17877_s9  }
 0x15b   :  { %s16613_s11 = smov [#allocation28]   ;;  %s16527_s0 = scalar_lea.hbm %s17781_s24, 1024 }
 0x15c   :  { %s250_s3 = sshll.u32 %s16613_s11, 4  ;;  %p16528_p2 = scmp.ne.s32.totalorder %s17781_s24, %s16527_s0  ;;  %s251_s3 = int_to_ptr.vmem [resolvable:$true] %s250_s3 }
 0x15d   :  { %p16531_p3 = scmp.lt.u32.totalorder %s16527_s0, %s17781_s24 }
 0x15f   :  { %p16533_p4 = pnand %p16531_p3, %p16528_p2 }
 0x161   :  { %16536 = shalt.err (!%p16533_p4)
}
 0x162   :  { %s16537_s1 = scalar_lea.vmem %s251_s3, 1024  ;;  %p16542_p6 = scmp.lt.s32.totalorder %s251_s3, %s251_s3 }
 0x163   :  { %p16538_p5 = scmp.ne.s32.totalorder %s251_s3, %s16537_s1  ;;  %p16543_p7 = scmp.lt.s32.totalorder %s16537_s1, %s16537_s1 }
 0x165   :  { %p16544_p8 = por %p16543_p7, %p16542_p6 }
 0x167   :  { %p16545_p9 = pnand %p16544_p8, %p16538_p5 }
 0x169   :  { %16548 = shalt.err (!%p16545_p9)
}
 0x16a   :  { %s17886_s16 = smov 64  }
 0x16b   :  { %256 = dma.hbm_to_vmem [thread:$0]  %s17781_s24, 1024, %s251_s3, [#allocation27], %s17886_s16, %s17886_s16, %s16600_s29  }
 0x16c   :  { %16571 = dma.done.wait [#allocation3], 6144  }
 0x16d   :  { %16572 = vsyncadd [#allocation3], 4294961152 }
 0x16e   :  { %16573 = dma.done.wait [#allocation6], 12288  }
 0x16f   :  { %16574 = vsyncadd [#allocation6], 4294955008 }
 0x170   :  { %16575 = dma.done.wait [#allocation9], 30720  }
 0x171   :  { %16576 = vsyncadd [#allocation9], 4294936576 }
 0x172   :  { %16577 = dma.done.wait [#allocation12], 24640  }
 0x173   :  { %16578 = vsyncadd [#allocation12], 4294942656 }
 0x174   :  { %16579 = dma.done.wait [#allocation15], 28672  }
 0x175   :  { %16580 = vsyncadd [#allocation15], 4294938624 }
 0x176   :  { %16581 = dma.done.wait [#allocation18], 24640  }
 0x177   :  { %16582 = vsyncadd [#allocation18], 4294942656 }
 0x178   :  { %16583 = dma.done.wait [#allocation21], 4112  }
 0x179   :  { %16584 = vsyncadd [#allocation21], 4294963184 }
 0x17a   :  { %16585 = dma.done.wait [#allocation24], 49152  }
 0x17b   :  { %16586 = vsyncadd [#allocation24], 4294918144 }
 0x17c   :  { %16587 = dma.done.wait [#allocation27], 5120  }
 0x17d   :  { %16588 = vsyncadd [#allocation27], 4294962176  ;;  %v14327_v0 = vld [vmem:[#allocation11 + $0x4] ss:$16 sps:$4 sm:$0xff]   ;;  %v14329_v1 = vld [vmem:[#allocation11 + $0xc] ss:$16 sps:$4 sm:$0xff]  }
 0x17e   :  { %1943 = vmatprep.subr.bf16.mxu0 %v14327_v0  ;;  %v14331_v2 = vld [vmem:[#allocation11] ss:$16 sps:$4 sm:$0xff]   ;;  %v14332_v3 = vld [vmem:[#allocation11 + $0x8] ss:$16 sps:$4 sm:$0xff]   ;;  %2162 = vmatprep.subr.bf16.mxu1 %v14329_v1  ;;  %v14333_v4 = vld [vmem:[#allocation11 + $0x24] ss:$16 sps:$4 sm:$0xff]  }
 0x17f   :  { %1944 = vmatpush1.bf16.msra.mxu0 %v14331_v2  ;;  %2163 = vmatpush1.bf16.msra.mxu1 %v14332_v3  ;;  %v14335_v5 = vld [vmem:[#allocation11 + $0x2c] ss:$16 sps:$4 sm:$0xff]   ;;  %v14337_v6 = vld [vmem:[#allocation11 + $0x20] ss:$16 sps:$4 sm:$0xff]   ;;  %v14338_v7 = vld [vmem:[#allocation11 + $0x28] ss:$16 sps:$4 sm:$0xff]  }
 0x180   :  { %1945 = vmatprep.subr.bf16.mxu0 %v14333_v4  ;;  %2164 = vmatprep.subr.bf16.mxu1 %v14335_v5  ;;  %v14339_v8 = vld [vmem:[#allocation11 + $0x44] ss:$16 sps:$4 sm:$0xff]   ;;  %v14341_v9 = vld [vmem:[#allocation11 + $0x4c] ss:$16 sps:$4 sm:$0xff]   ;;  %v14343_v10 = vld [vmem:[#allocation11 + $0x40] ss:$16 sps:$4 sm:$0xff]  }
 0x181   :  { %v14344_v11 = vld [vmem:[#allocation11 + $0x48] ss:$16 sps:$4 sm:$0xff]   ;;  %v14345_v12 = vld [vmem:[#allocation11 + $0x64] ss:$16 sps:$4 sm:$0xff]   ;;  %v14347_v13 = vld [vmem:[#allocation11 + $0x6c] ss:$16 sps:$4 sm:$0xff]  }
 0x182   :  { %v14349_v14 = vld [vmem:[#allocation11 + $0x60] ss:$16 sps:$4 sm:$0xff]   ;;  %v14350_v15 = vld [vmem:[#allocation11 + $0x68] ss:$16 sps:$4 sm:$0xff]   ;;  %v14351_v16 = vld [vmem:[#allocation11 + $0x84] ss:$16 sps:$4 sm:$0xff]  }
 0x183   :  { %1946 = vmatpush1.bf16.msra.mxu0 %v14337_v6  ;;  %2165 = vmatpush1.bf16.msra.mxu1 %v14338_v7  ;;  %v14353_v17 = vld [vmem:[#allocation11 + $0x8c] ss:$16 sps:$4 sm:$0xff]   ;;  %v14355_v18 = vld [vmem:[#allocation11 + $0x80] ss:$16 sps:$4 sm:$0xff]   ;;  %v14356_v19 = vld [vmem:[#allocation11 + $0x88] ss:$16 sps:$4 sm:$0xff]  }
 0x184   :  { %1947 = vmatprep.subr.bf16.mxu0 %v14339_v8  ;;  %2166 = vmatprep.subr.bf16.mxu1 %v14341_v9  ;;  %v14357_v20 = vld [vmem:[#allocation11 + $0xa4] ss:$16 sps:$4 sm:$0xff]   ;;  %v14359_v21 = vld [vmem:[#allocation11 + $0xac] ss:$16 sps:$4 sm:$0xff]   ;;  %v14361_v22 = vld [vmem:[#allocation11 + $0xa0] ss:$16 sps:$4 sm:$0xff]  }
 0x185   :  { %v14362_v23 = vld [vmem:[#allocation11 + $0xa8] ss:$16 sps:$4 sm:$0xff]   ;;  %v14363_v24 = vld [vmem:[#allocation11 + $0xc4] ss:$16 sps:$4 sm:$0xff]   ;;  %v14365_v25 = vld [vmem:[#allocation11 + $0xcc] ss:$16 sps:$4 sm:$0xff]  }
 0x186   :  { %v14367_v26 = vld [vmem:[#allocation11 + $0xc0] ss:$16 sps:$4 sm:$0xff]   ;;  %v14368_v27 = vld [vmem:[#allocation11 + $0xc8] ss:$16 sps:$4 sm:$0xff]   ;;  %v14369_v28 = vld [vmem:[#allocation11 + $0xe4] ss:$16 sps:$4 sm:$0xff]  }
 0x187   :  { %1948 = vmatpush1.bf16.msra.mxu0 %v14343_v10  ;;  %2167 = vmatpush1.bf16.msra.mxu1 %v14344_v11  ;;  %v14371_v29 = vld [vmem:[#allocation11 + $0xec] ss:$16 sps:$4 sm:$0xff]   ;;  %v14373_v30 = vld [vmem:[#allocation11 + $0xe0] ss:$16 sps:$4 sm:$0xff]   ;;  %v14374_v31 = vld [vmem:[#allocation11 + $0xe8] ss:$16 sps:$4 sm:$0xff]  }
 0x188   :  { %1949 = vmatprep.subr.bf16.mxu0 %v14345_v12  ;;  %2168 = vmatprep.subr.bf16.mxu1 %v14347_v13  ;;  %v14375_v32 = vld [vmem:[#allocation11 + $0x104] ss:$16 sps:$4 sm:$0xff]   ;;  %v14377_v33 = vld [vmem:[#allocation11 + $0x10c] ss:$16 sps:$4 sm:$0xff]   ;;  %v14379_v34 = vld [vmem:[#allocation11 + $0x100] ss:$16 sps:$4 sm:$0xff]  }
 0x189   :  { %v14380_v35 = vld [vmem:[#allocation11 + $0x108] ss:$16 sps:$4 sm:$0xff]   ;;  %v14381_v36 = vld [vmem:[#allocation11 + $0x124] ss:$16 sps:$4 sm:$0xff]   ;;  %v14383_v37 = vld [vmem:[#allocation11 + $0x12c] ss:$16 sps:$4 sm:$0xff]  }
 0x18a   :  { %v14385_v38 = vld [vmem:[#allocation11 + $0x120] ss:$16 sps:$4 sm:$0xff]   ;;  %v14386_v39 = vld [vmem:[#allocation11 + $0x128] ss:$16 sps:$4 sm:$0xff]   ;;  %v14387_v40 = vld [vmem:[#allocation11 + $0x144] ss:$16 sps:$4 sm:$0xff]  }
 0x18b   :  { %1950 = vmatpush1.bf16.msra.mxu0 %v14349_v14  ;;  %2169 = vmatpush1.bf16.msra.mxu1 %v14350_v15  ;;  %v14389_v41 = vld [vmem:[#allocation11 + $0x14c] ss:$16 sps:$4 sm:$0xff]   ;;  %v14391_v42 = vld [vmem:[#allocation11 + $0x140] ss:$16 sps:$4 sm:$0xff]   ;;  %v14392_v43 = vld [vmem:[#allocation11 + $0x148] ss:$16 sps:$4 sm:$0xff]  }
 0x18c   :  { %1951 = vmatprep.subr.bf16.mxu0 %v14351_v16  ;;  %2170 = vmatprep.subr.bf16.mxu1 %v14353_v17  ;;  %v14393_v44 = vld [vmem:[#allocation11 + $0x164] ss:$16 sps:$4 sm:$0xff]   ;;  %v14395_v45 = vld [vmem:[#allocation11 + $0x16c] ss:$16 sps:$4 sm:$0xff]   ;;  %v14397_v48 = vld [vmem:[#allocation11 + $0x160] ss:$16 sps:$4 sm:$0xff]  }
 0x18d   :  { %v384_v46 = vld [vmem:[#allocation5 + $0x8] sm:$0xff]  ;;  %v390_v47 = vld [vmem:[#allocation5 + $0x38] sm:$0xff]  ;;  %v14399_v51 = vld [vmem:[#allocation11 + $0x184] ss:$16 sps:$4 sm:$0xff]   ;;  %s17914_s13 = sld [smem:[#allocation78_spill]]  ;;  %s17942_s7 = sld [smem:[#allocation73_spill]] }
 0x18e   :  { %v14398_v49 = vld [vmem:[#allocation11 + $0x168] ss:$16 sps:$4 sm:$0xff]   ;;  %v17045_v50 = vpack.c.bf16 %v390_v47, %v384_v46  ;;  %v14401_v52 = vld [vmem:[#allocation11 + $0x18c] ss:$16 sps:$4 sm:$0xff]   ;;  %v14403_v53 = vld [vmem:[#allocation11 + $0x180] ss:$16 sps:$4 sm:$0xff]  }
 0x18f   :  { %1952 = vmatpush1.bf16.msra.mxu0 %v14355_v18  ;;  %2171 = vmatpush1.bf16.msra.mxu1 %v14356_v19  ;;  %v14404_v54 = vld [vmem:[#allocation11 + $0x188] ss:$16 sps:$4 sm:$0xff]   ;;  %v14405_v55 = vld [vmem:[#allocation11 + $0x1a4] ss:$16 sps:$4 sm:$0xff]   ;;  %v14407_v56 = vld [vmem:[#allocation11 + $0x1ac] ss:$16 sps:$4 sm:$0xff]  }
 0x190   :  { %1953 = vmatprep.subr.bf16.mxu0 %v14357_v20  ;;  %2172 = vmatprep.subr.bf16.mxu1 %v14359_v21  ;;  %v14409_v57 = vld [vmem:[#allocation11 + $0x1a0] ss:$16 sps:$4 sm:$0xff]   ;;  %v14410_v58 = vld [vmem:[#allocation11 + $0x1a8] ss:$16 sps:$4 sm:$0xff]   ;;  %v14411_v59 = vld [vmem:[#allocation11 + $0x1c4] ss:$16 sps:$4 sm:$0xff]  }
 0x191   :  { %1975 = vmatprep.mubr.bf16.mxu0 %v17045_v50  ;;  %2194 = vmatprep.mubr.bf16.mxu1 %v17045_v50  ;;  %v14413_v60 = vld [vmem:[#allocation11 + $0x1cc] ss:$16 sps:$4 sm:$0xff]   ;;  %v14415_v61 = vld [vmem:[#allocation11 + $0x1c0] ss:$16 sps:$4 sm:$0xff]   ;;  %v14416_v62 = vld [vmem:[#allocation11 + $0x1c8] ss:$16 sps:$4 sm:$0xff]  }
 0x192   :  { %v14417_v63 = vld [vmem:[#allocation11 + $0x1e4] ss:$16 sps:$4 sm:$0xff]   ;;  %v14419_v0 = vld [vmem:[#allocation11 + $0x1ec] ss:$16 sps:$4 sm:$0xff]   ;;  %v14421_v1 = vld [vmem:[#allocation11 + $0x1e0] ss:$16 sps:$4 sm:$0xff]  }
 0x193   :  { %1954 = vmatpush1.bf16.msra.mxu0 %v14361_v22  ;;  %2173 = vmatpush1.bf16.msra.mxu1 %v14362_v23  ;;  %v14422_v2 = vld [vmem:[#allocation11 + $0x1e8] ss:$16 sps:$4 sm:$0xff]   ;;  %v14425_v3 = vld [vmem:[#allocation11 + $0x204] ss:$16 sps:$4 sm:$0xff]   ;;  %v14428_v6 = vld [vmem:[#allocation11 + $0x20c] ss:$16 sps:$4 sm:$0xff]  }
 0x194   :  { %1955 = vmatprep.subr.bf16.mxu0 %v14363_v24  ;;  %2174 = vmatprep.subr.bf16.mxu1 %v14365_v25  ;;  %v383_v4 = vld [vmem:[#allocation5] sm:$0xff]  ;;  %v389_v5 = vld [vmem:[#allocation5 + $0x30] sm:$0xff]  ;;  %v14426_v8 = vld [vmem:[#allocation11 + $0x208] ss:$16 sps:$4 sm:$0xff]   ;;  %vm11804_vm0 = vcmask 80896  }
 0x195   :  { %v14423_v7 = vld [vmem:[#allocation11 + $0x200] ss:$16 sps:$4 sm:$0xff]   ;;  %v17049_v9 = vpack.c.bf16 %v389_v5, %v383_v4  ;;  %v14431_v10 = vld [vmem:[#allocation11 + $0x224] ss:$16 sps:$4 sm:$0xff]   ;;  %v14434_v11 = vld [vmem:[#allocation11 + $0x22c] ss:$16 sps:$4 sm:$0xff]  }
 0x196   :  { %v14429_v12 = vld [vmem:[#allocation11 + $0x220] ss:$16 sps:$4 sm:$0xff]   ;;  %v14432_v13 = vld [vmem:[#allocation11 + $0x228] ss:$16 sps:$4 sm:$0xff]   ;;  %v14437_v14 = vld [vmem:[#allocation11 + $0x244] ss:$16 sps:$4 sm:$0xff]  }
 0x197   :  { %1956 = vmatpush1.bf16.msra.mxu0 %v14367_v26  ;;  %2175 = vmatpush1.bf16.msra.mxu1 %v14368_v27  ;;  %17887 = vst [vmem:[#allocation40_spill] sm:$0xff] %v17049_v9  ;;  %v14440_v15 = vld [vmem:[#allocation11 + $0x24c] ss:$16 sps:$4 sm:$0xff]   ;;  %v14435_v18 = vld [vmem:[#allocation11 + $0x240] ss:$16 sps:$4 sm:$0xff]  }
 0x198   :  { %1957 = vmatprep.subr.bf16.mxu0 %v14369_v28  ;;  %2176 = vmatprep.subr.bf16.mxu1 %v14371_v29  ;;  %v396_v16 = vld [vmem:[#allocation5 + $0x68] sm:$0xff]  ;;  %v402_v17 = vld [vmem:[#allocation5 + $0x98] sm:$0xff]  ;;  %v14443_v21 = vld [vmem:[#allocation11 + $0x264] ss:$16 sps:$4 sm:$0xff]  }
 0x199   :  { %v14438_v19 = vld [vmem:[#allocation11 + $0x248] ss:$16 sps:$4 sm:$0xff]   ;;  %v17053_v20 = vpack.c.bf16 %v402_v17, %v396_v16  ;;  %v14446_v22 = vld [vmem:[#allocation11 + $0x26c] ss:$16 sps:$4 sm:$0xff]   ;;  %v395_v23 = vld [vmem:[#allocation5 + $0x60] sm:$0xff] }
 0x19a   :  { %v401_v24 = vld [vmem:[#allocation5 + $0x90] sm:$0xff]  ;;  %v14444_v26 = vld [vmem:[#allocation11 + $0x268] ss:$16 sps:$4 sm:$0xff]   ;;  %v14452_v29 = vld [vmem:[#allocation11 + $0x28c] ss:$16 sps:$4 sm:$0xff]  }
 0x19b   :  { %1958 = vmatpush1.bf16.msra.mxu0 %v14373_v30  ;;  %2177 = vmatpush1.bf16.msra.mxu1 %v14374_v31  ;;  %17888 = vst [vmem:[#allocation41_spill] sm:$0xff] %v17053_v20  ;;  %v14441_v25 = vld [vmem:[#allocation11 + $0x260] ss:$16 sps:$4 sm:$0xff]   ;;  %v17057_v27 = vpack.c.bf16 %v401_v24, %v395_v23  ;;  %v14449_v28 = vld [vmem:[#allocation11 + $0x284] ss:$16 sps:$4 sm:$0xff]   ;;  %v408_v30 = vld [vmem:[#allocation5 + $0xc8] sm:$0xff] }
 0x19c   :  { %1959 = vmatprep.subr.bf16.mxu0 %v14375_v32  ;;  %2178 = vmatprep.subr.bf16.mxu1 %v14377_v33  ;;  %v414_v31 = vld [vmem:[#allocation5 + $0xf8] sm:$0xff]  ;;  %v14447_v32 = vld [vmem:[#allocation11 + $0x280] ss:$16 sps:$4 sm:$0xff]   ;;  %v14485_v4 = vld [vmem:[#allocation11 + $0x344] ss:$16 sps:$4 sm:$0xff]  }
 0x19d   :  { %17889 = vst [vmem:[#allocation42_spill] sm:$0xff] %v17057_v27  ;;  %v17061_v33 = vpack.c.bf16 %v414_v31, %v408_v30  ;;  %v14459_v47 = vld [vmem:[#allocation11 + $0x2c0] ss:$16 sps:$4 sm:$0xff]   ;;  %v14488_v5 = vld [vmem:[#allocation11 + $0x34c] ss:$16 sps:$4 sm:$0xff]  }
 0x19e   :  { %v14498_v16 = vld [vmem:[#allocation11 + $0x388] ss:$16 sps:$4 sm:$0xff]   ;;  %v14503_v17 = vld [vmem:[#allocation11 + $0x3a4] ss:$16 sps:$4 sm:$0xff]   ;;  %v14512_v23 = vld [vmem:[#allocation11 + $0x3cc] ss:$16 sps:$4 sm:$0xff]  }
 0x19f   :  { %1960 = vmatpush1.bf16.msra.mxu0 %v14379_v34  ;;  %2179 = vmatpush1.bf16.msra.mxu1 %v14380_v35  ;;  %17890 = vst [vmem:[#allocation43_spill] sm:$0xff] %v17061_v33  ;;  %v14450_v34 = vld [vmem:[#allocation11 + $0x288] ss:$16 sps:$4 sm:$0xff]   ;;  %v14455_v35 = vld [vmem:[#allocation11 + $0x2a4] ss:$16 sps:$4 sm:$0xff]  }
 0x1a0   :  { %1961 = vmatprep.subr.bf16.mxu0 %v14381_v36  ;;  %2180 = vmatprep.subr.bf16.mxu1 %v14383_v37  ;;  %v14458_v36 = vld [vmem:[#allocation11 + $0x2ac] ss:$16 sps:$4 sm:$0xff]   ;;  %v407_v37 = vld [vmem:[#allocation5 + $0xc0] sm:$0xff]  ;;  %v14516_v30 = vld [vmem:[#allocation11 + $0x3e8] ss:$16 sps:$4 sm:$0xff]  }
 0x1a1   :  { %v14507_v24 = vld [vmem:[#allocation11 + $0x3c0] ss:$16 sps:$4 sm:$0xff]  }
 0x1a2   :  { %v385_v31 = vld [vmem:[#allocation5 + $0x10] sm:$0xff] }
 0x1a3   :  { %1962 = vmatpush1.bf16.msra.mxu0 %v14385_v38  ;;  %2181 = vmatpush1.bf16.msra.mxu1 %v14386_v39  ;;  %v413_v38 = vld [vmem:[#allocation5 + $0xf0] sm:$0xff] }
 0x1a4   :  { %1963 = vmatprep.subr.bf16.mxu0 %v14387_v40  ;;  %2182 = vmatprep.subr.bf16.mxu1 %v14389_v41  ;;  %v17065_v39 = vpack.c.bf16 %v413_v38, %v407_v37  ;;  %v14453_v40 = vld [vmem:[#allocation11 + $0x2a0] ss:$16 sps:$4 sm:$0xff]   ;;  %v14456_v41 = vld [vmem:[#allocation11 + $0x2a8] ss:$16 sps:$4 sm:$0xff]  }
 0x1a5   :  { %v404_v38 = vld [vmem:[#allocation5 + $0xa8] sm:$0xff] }
 0x1a6   :  { %17891 = vst [vmem:[#allocation44_spill] sm:$0xff] %v17065_v39 }
 0x1a7   :  { %1964 = vmatpush1.bf16.msra.mxu0 %v14391_v42  ;;  %2183 = vmatpush1.bf16.msra.mxu1 %v14392_v43  ;;  %v420_v42 = vld [vmem:[#allocation5 + $0x128] sm:$0xff]  ;;  %v426_v43 = vld [vmem:[#allocation5 + $0x158] sm:$0xff] }
 0x1a8   :  { %1965 = vmatprep.subr.bf16.mxu0 %v14393_v44  ;;  %2184 = vmatprep.subr.bf16.mxu1 %v14395_v45  ;;  %v14461_v44 = vld [vmem:[#allocation11 + $0x2c4] ss:$16 sps:$4 sm:$0xff]   ;;  %v14464_v45 = vld [vmem:[#allocation11 + $0x2cc] ss:$16 sps:$4 sm:$0xff]   ;;  %v17067_v46 = vpack.c.bf16 %v426_v43, %v420_v42 }
 0x1a9   :  { %v14527_v42 = vld [vmem:[#allocation11 + $0x424] ss:$16 sps:$4 sm:$0xff]   ;;  %v14530_v43 = vld [vmem:[#allocation11 + $0x42c] ss:$16 sps:$4 sm:$0xff]  }
 0x1aa   :  { %17892 = vst [vmem:[#allocation45_spill] sm:$0xff] %v17067_v46 }
 0x1ab   :  { %1966 = vmatpush1.bf16.msra.mxu0 %v14397_v48  ;;  %2185 = vmatpush1.bf16.msra.mxu1 %v14398_v49  ;;  %v14462_v48 = vld [vmem:[#allocation11 + $0x2c8] ss:$16 sps:$4 sm:$0xff]   ;;  %v419_v49 = vld [vmem:[#allocation5 + $0x120] sm:$0xff] }
 0x1ac   :  { %1967 = vmatprep.subr.bf16.mxu0 %v14399_v51  ;;  %2186 = vmatprep.subr.bf16.mxu1 %v14401_v52  ;;  %v425_v51 = vld [vmem:[#allocation5 + $0x150] sm:$0xff] }
 0x1ad   :  { %v14467_v52 = vld [vmem:[#allocation11 + $0x2e4] ss:$16 sps:$4 sm:$0xff]  }
 0x1af   :  { %1968 = vmatpush1.bf16.msra.mxu0 %v14403_v53  ;;  %2187 = vmatpush1.bf16.msra.mxu1 %v14404_v54  ;;  %v14470_v53 = vld [vmem:[#allocation11 + $0x2ec] ss:$16 sps:$4 sm:$0xff]   ;;  %v17073_v54 = vpack.c.bf16 %v425_v51, %v419_v49  ;;  %v403_v49 = vld [vmem:[#allocation5 + $0xa0] sm:$0xff] }
 0x1b0   :  { %1969 = vmatprep.subr.bf16.mxu0 %v14405_v55  ;;  %2188 = vmatprep.subr.bf16.mxu1 %v14407_v56  ;;  %v386_v55 = vld [vmem:[#allocation5 + $0x18] sm:$0xff]  ;;  %v392_v56 = vld [vmem:[#allocation5 + $0x48] sm:$0xff]  ;;  %v14533_v51 = vld [vmem:[#allocation11 + $0x444] ss:$16 sps:$4 sm:$0xff]  }
 0x1b1   :  { %17893 = vst [vmem:[#allocation46_spill] sm:$0xff] %v17073_v54 }
 0x1b3   :  { %1970 = vmatpush1.bf16.msra.mxu0 %v14409_v57  ;;  %2189 = vmatpush1.bf16.msra.mxu1 %v14410_v58  ;;  %v14465_v57 = vld [vmem:[#allocation11 + $0x2e0] ss:$16 sps:$4 sm:$0xff]   ;;  %v14468_v58 = vld [vmem:[#allocation11 + $0x2e8] ss:$16 sps:$4 sm:$0xff]  }
 0x1b4   :  { %1971 = vmatprep.subr.bf16.mxu0 %v14411_v59  ;;  %2190 = vmatprep.subr.bf16.mxu1 %v14413_v60  ;;  %v17075_v59 = vpack.c.bf16 %v392_v56, %v386_v55  ;;  %v14473_v60 = vld [vmem:[#allocation11 + $0x304] ss:$16 sps:$4 sm:$0xff]   ;;  %v14534_v55 = vld [vmem:[#allocation11 + $0x448] ss:$16 sps:$4 sm:$0xff]  }
 0x1b6   :  { %17894 = vst [vmem:[#allocation47_spill] sm:$0xff] %v17075_v59 }
 0x1b7   :  { %1972 = vmatpush1.bf16.msra.mxu0 %v14415_v61  ;;  %2191 = vmatpush1.bf16.msra.mxu1 %v14416_v62  ;;  %v14476_v61 = vld [vmem:[#allocation11 + $0x30c] ss:$16 sps:$4 sm:$0xff]   ;;  %v14471_v62 = vld [vmem:[#allocation11 + $0x300] ss:$16 sps:$4 sm:$0xff]  }
 0x1b8   :  { %1973 = vmatprep.subr.bf16.mxu0 %v14417_v63  ;;  %2192 = vmatprep.subr.bf16.mxu1 %v14419_v0  ;;  %v14474_v63 = vld [vmem:[#allocation11 + $0x308] ss:$16 sps:$4 sm:$0xff]   ;;  %v14479_v0 = vld [vmem:[#allocation11 + $0x324] ss:$16 sps:$4 sm:$0xff]  }
 0x1bb   :  { %1974 = vmatpush1.bf16.msra.mxu0 %v14421_v1  ;;  %2193 = vmatpush1.bf16.msra.mxu1 %v14422_v2  ;;  %v14482_v1 = vld [vmem:[#allocation11 + $0x32c] ss:$16 sps:$4 sm:$0xff]   ;;  %v14477_v2 = vld [vmem:[#allocation11 + $0x320] ss:$16 sps:$4 sm:$0xff]  }
 0x1bc   :  { %2016 = vmatprep.subr.bf16.mxu0 %v14425_v3  ;;  %2235 = vmatprep.subr.bf16.mxu1 %v14428_v6  ;;  %v14480_v3 = vld [vmem:[#allocation11 + $0x328] ss:$16 sps:$4 sm:$0xff]   ;;  %v14483_v6 = vld [vmem:[#allocation11 + $0x340] ss:$16 sps:$4 sm:$0xff]  }
 0x1be   :  { %1976 = vmatmul.mubr.bf16.vlgmr.msra.gmra.mrb[0].mxu0 %v17049_v9  ;;  %2195 = vmatmul.mubr.bf16.vlgmr.msra.gmra.mrb[0].mxu1 %v17049_v9 }
 0x1bf   :  { %2017 = vmatpush1.bf16.msra.mxu0 %v14423_v7  ;;  %2236 = vmatpush1.bf16.msra.mxu1 %v14426_v8  ;;  %v14486_v7 = vld [vmem:[#allocation11 + $0x348] ss:$16 sps:$4 sm:$0xff]   ;;  %v14491_v8 = vld [vmem:[#allocation11 + $0x364] ss:$16 sps:$4 sm:$0xff]  }
 0x1c0   :  { %2018 = vmatprep.subr.bf16.mxu0 %v14431_v10  ;;  %2237 = vmatprep.subr.bf16.mxu1 %v14434_v11  ;;  %v14494_v10 = vld [vmem:[#allocation11 + $0x36c] ss:$16 sps:$4 sm:$0xff]   ;;  %v14489_v11 = vld [vmem:[#allocation11 + $0x360] ss:$16 sps:$4 sm:$0xff]  }
 0x1c1   :  { %1985 = vmatprep.mubr.bf16.mxu0 %v17053_v20  ;;  %2204 = vmatprep.mubr.bf16.mxu1 %v17053_v20  ;;  %v15546_v20 = vld [vmem:[#allocation25 + $0x8] ss:$16 sps:$4 sm:$0xff]  }
 0x1c3   :  { %2019 = vmatpush1.bf16.msra.mxu0 %v14429_v12  ;;  %2238 = vmatpush1.bf16.msra.mxu1 %v14432_v13  ;;  %v14492_v12 = vld [vmem:[#allocation11 + $0x368] ss:$16 sps:$4 sm:$0xff]   ;;  %v14497_v13 = vld [vmem:[#allocation11 + $0x384] ss:$16 sps:$4 sm:$0xff]  }
 0x1c4   :  { %2020 = vmatprep.subr.bf16.mxu0 %v14437_v14  ;;  %2239 = vmatprep.subr.bf16.mxu1 %v14440_v15  ;;  %v14500_v14 = vld [vmem:[#allocation11 + $0x38c] ss:$16 sps:$4 sm:$0xff]   ;;  %v14495_v15 = vld [vmem:[#allocation11 + $0x380] ss:$16 sps:$4 sm:$0xff]  }
 0x1c6   :  { %1986 = vmatmul.mubr.bf16.gmra.mrb[4].mxu0 %v17057_v27  ;;  %2205 = vmatmul.mubr.bf16.gmra.mrb[4].mxu1 %v17057_v27  ;;  %v15543_v27 = vld [vmem:[#allocation25] ss:$16 sps:$4 sm:$0xff]  }
 0x1c7   :  { %2021 = vmatpush1.bf16.msra.mxu0 %v14435_v18  ;;  %2240 = vmatpush1.bf16.msra.mxu1 %v14438_v19  ;;  %v14506_v18 = vld [vmem:[#allocation11 + $0x3ac] ss:$16 sps:$4 sm:$0xff]   ;;  %v14501_v19 = vld [vmem:[#allocation11 + $0x3a0] ss:$16 sps:$4 sm:$0xff]  }
 0x1c8   :  { %2022 = vmatprep.subr.bf16.mxu0 %v14443_v21  ;;  %2241 = vmatprep.subr.bf16.mxu1 %v14446_v22  ;;  %v14504_v21 = vld [vmem:[#allocation11 + $0x3a8] ss:$16 sps:$4 sm:$0xff]   ;;  %v14509_v22 = vld [vmem:[#allocation11 + $0x3c4] ss:$16 sps:$4 sm:$0xff]  }
 0x1c9   :  { %1995 = vmatprep.mubr.bf16.mxu0 %v17061_v33  ;;  %2214 = vmatprep.mubr.bf16.mxu1 %v17061_v33 }
 0x1cb   :  { %2023 = vmatpush1.bf16.msra.mxu0 %v14441_v25  ;;  %2242 = vmatpush1.bf16.msra.mxu1 %v14444_v26  ;;  %v14510_v25 = vld [vmem:[#allocation11 + $0x3c8] ss:$16 sps:$4 sm:$0xff]   ;;  %v14515_v26 = vld [vmem:[#allocation11 + $0x3e4] ss:$16 sps:$4 sm:$0xff]  }
 0x1cc   :  { %2024 = vmatprep.subr.bf16.mxu0 %v14449_v28  ;;  %2243 = vmatprep.subr.bf16.mxu1 %v14452_v29  ;;  %v14518_v28 = vld [vmem:[#allocation11 + $0x3ec] ss:$16 sps:$4 sm:$0xff]   ;;  %v14513_v29 = vld [vmem:[#allocation11 + $0x3e0] ss:$16 sps:$4 sm:$0xff]  }
 0x1ce   :  { %1996 = vmatmul.mubr.bf16.gmra.mrb[8].mxu0 %v17065_v39  ;;  %2215 = vmatmul.mubr.bf16.gmra.mrb[8].mxu1 %v17065_v39 }
 0x1cf   :  { %2025 = vmatpush1.bf16.msra.mxu0 %v14447_v32  ;;  %2244 = vmatpush1.bf16.msra.mxu1 %v14450_v34  ;;  %v391_v32 = vld [vmem:[#allocation5 + $0x40] sm:$0xff] }
 0x1d0   :  { %2026 = vmatprep.subr.bf16.mxu0 %v14455_v35  ;;  %2245 = vmatprep.subr.bf16.mxu1 %v14458_v36  ;;  %v14521_v34 = vld [vmem:[#allocation11 + $0x404] ss:$16 sps:$4 sm:$0xff]   ;;  %v14524_v35 = vld [vmem:[#allocation11 + $0x40c] ss:$16 sps:$4 sm:$0xff]   ;;  %v17081_v37 = vpack.c.bf16 %v391_v32, %v385_v31  ;;  %v14564_v31 = vld [vmem:[#allocation11 + $0x4e8] ss:$16 sps:$4 sm:$0xff]  }
 0x1d1   :  { %2005 = vmatprep.mubr.bf16.mxu0 %v17067_v46  ;;  %2224 = vmatprep.mubr.bf16.mxu1 %v17067_v46  ;;  %v398_v36 = vld [vmem:[#allocation5 + $0x78] sm:$0xff]  ;;  %v14569_v32 = vld [vmem:[#allocation11 + $0x504] ss:$16 sps:$4 sm:$0xff]  }
 0x1d2   :  { %17895 = vst [vmem:[#allocation48_spill] sm:$0xff] %v17081_v37 }
 0x1d3   :  { %2027 = vmatpush1.bf16.msra.mxu0 %v14453_v40  ;;  %2246 = vmatpush1.bf16.msra.mxu1 %v14456_v41  ;;  %v14519_v40 = vld [vmem:[#allocation11 + $0x400] ss:$16 sps:$4 sm:$0xff]   ;;  %v14522_v41 = vld [vmem:[#allocation11 + $0x408] ss:$16 sps:$4 sm:$0xff]  }
 0x1d4   :  { %2028 = vmatprep.subr.bf16.mxu0 %v14461_v44  ;;  %2247 = vmatprep.subr.bf16.mxu1 %v14464_v45  ;;  %v17083_v44 = vpack.c.bf16 %v404_v38, %v398_v36  ;;  %v14525_v45 = vld [vmem:[#allocation11 + $0x420] ss:$16 sps:$4 sm:$0xff]   ;;  %v14570_v36 = vld [vmem:[#allocation11 + $0x508] ss:$16 sps:$4 sm:$0xff]   ;;  %v14575_v38 = vld [vmem:[#allocation11 + $0x524] ss:$16 sps:$4 sm:$0xff]  }
 0x1d6   :  { %2006 = vmatmul.mubr.bf16.gmra.mrb[12].mxu0 %v17073_v54  ;;  %2225 = vmatmul.mubr.bf16.gmra.mrb[12].mxu1 %v17073_v54  ;;  %17896 = vst [vmem:[#allocation49_spill] sm:$0xff] %v17083_v44 }
 0x1d7   :  { %2029 = vmatpush1.bf16.msra.mxu0 %v14459_v47  ;;  %2248 = vmatpush1.bf16.msra.mxu1 %v14462_v48  ;;  %v14528_v47 = vld [vmem:[#allocation11 + $0x428] ss:$16 sps:$4 sm:$0xff]   ;;  %v397_v48 = vld [vmem:[#allocation5 + $0x70] sm:$0xff] }
 0x1d8   :  { %2030 = vmatprep.subr.bf16.mxu0 %v14467_v52  ;;  %2249 = vmatprep.subr.bf16.mxu1 %v14470_v53  ;;  %v14536_v52 = vld [vmem:[#allocation11 + $0x44c] ss:$16 sps:$4 sm:$0xff]   ;;  %v14531_v53 = vld [vmem:[#allocation11 + $0x440] ss:$16 sps:$4 sm:$0xff]   ;;  %v17089_v56 = vpack.c.bf16 %v403_v49, %v397_v48  ;;  %v14582_v48 = vld [vmem:[#allocation11 + $0x548] ss:$16 sps:$4 sm:$0xff]  }
 0x1d9   :  { %2048 = vmatprep.mubr.bf16.mxu0 %v17075_v59  ;;  %2267 = vmatprep.mubr.bf16.mxu1 %v17075_v59  ;;  %v14587_v49 = vld [vmem:[#allocation11 + $0x564] ss:$16 sps:$4 sm:$0xff]  }
 0x1da   :  { %17897 = vst [vmem:[#allocation50_spill] sm:$0xff] %v17089_v56 }
 0x1db   :  { %2031 = vmatpush1.bf16.msra.mxu0 %v14465_v57  ;;  %2250 = vmatpush1.bf16.msra.mxu1 %v14468_v58  ;;  %v410_v57 = vld [vmem:[#allocation5 + $0xd8] sm:$0xff]  ;;  %v416_v58 = vld [vmem:[#allocation5 + $0x108] sm:$0xff] }
 0x1dc   :  { %2032 = vmatprep.subr.bf16.mxu0 %v14473_v60  ;;  %2251 = vmatprep.subr.bf16.mxu1 %v14476_v61  ;;  %v14539_v60 = vld [vmem:[#allocation11 + $0x464] ss:$16 sps:$4 sm:$0xff]   ;;  %v14542_v61 = vld [vmem:[#allocation11 + $0x46c] ss:$16 sps:$4 sm:$0xff]  }
 0x1df   :  { %2033 = vmatpush1.bf16.msra.mxu0 %v14471_v62  ;;  %2252 = vmatpush1.bf16.msra.mxu1 %v14474_v63  ;;  %v14537_v62 = vld [vmem:[#allocation11 + $0x460] ss:$16 sps:$4 sm:$0xff]   ;;  %v17091_v63 = vpack.c.bf16 %v416_v58, %v410_v57  ;;  %v14596_v57 = vld [vmem:[#allocation11 + $0x58c] ss:$16 sps:$4 sm:$0xff]  }
 0x1e0   :  { %2034 = vmatprep.subr.bf16.mxu0 %v14479_v0  ;;  %2253 = vmatprep.subr.bf16.mxu1 %v14482_v1  ;;  %v14540_v0 = vld [vmem:[#allocation11 + $0x468] ss:$16 sps:$4 sm:$0xff]   ;;  %v409_v1 = vld [vmem:[#allocation5 + $0xd0] sm:$0xff] }
 0x1e1   :  { %17898 = vst [vmem:[#allocation51_spill] sm:$0xff] %v17091_v63  ;;  %v14591_v58 = vld [vmem:[#allocation11 + $0x580] ss:$16 sps:$4 sm:$0xff]  }
 0x1e3   :  { %2035 = vmatpush1.bf16.msra.mxu0 %v14477_v2  ;;  %2254 = vmatpush1.bf16.msra.mxu1 %v14480_v3  ;;  %v415_v2 = vld [vmem:[#allocation5 + $0x100] sm:$0xff] }
 0x1e4   :  { %2036 = vmatprep.subr.bf16.mxu0 %v14485_v4  ;;  %2255 = vmatprep.subr.bf16.mxu1 %v14488_v5  ;;  %v14545_v3 = vld [vmem:[#allocation11 + $0x484] ss:$16 sps:$4 sm:$0xff]   ;;  %v14548_v4 = vld [vmem:[#allocation11 + $0x48c] ss:$16 sps:$4 sm:$0xff]   ;;  %v14543_v5 = vld [vmem:[#allocation11 + $0x480] ss:$16 sps:$4 sm:$0xff]  }
 0x1e7   :  { %2037 = vmatpush1.bf16.msra.mxu0 %v14483_v6  ;;  %2256 = vmatpush1.bf16.msra.mxu1 %v14486_v7  ;;  %v14546_v6 = vld [vmem:[#allocation11 + $0x488] ss:$16 sps:$4 sm:$0xff]   ;;  %v17097_v7 = vpack.c.bf16 %v415_v2, %v409_v1  ;;  %v14605_v2 = vld [vmem:[#allocation11 + $0x5c4] ss:$16 sps:$4 sm:$0xff]  }
 0x1e8   :  { %2038 = vmatprep.subr.bf16.mxu0 %v14491_v8  ;;  %2257 = vmatprep.subr.bf16.mxu1 %v14494_v10  ;;  %v422_v8 = vld [vmem:[#allocation5 + $0x138] sm:$0xff]  ;;  %v428_v10 = vld [vmem:[#allocation5 + $0x168] sm:$0xff] }
 0x1e9   :  { %17899 = vst [vmem:[#allocation52_spill] sm:$0xff] %v17097_v7  ;;  %v14600_v1 = vld [vmem:[#allocation11 + $0x5a8] ss:$16 sps:$4 sm:$0xff]  }
 0x1eb   :  { %2039 = vmatpush1.bf16.msra.mxu0 %v14489_v11  ;;  %2258 = vmatpush1.bf16.msra.mxu1 %v14492_v12  ;;  %v14551_v11 = vld [vmem:[#allocation11 + $0x4a4] ss:$16 sps:$4 sm:$0xff]   ;;  %v14554_v12 = vld [vmem:[#allocation11 + $0x4ac] ss:$16 sps:$4 sm:$0xff]  }
 0x1ec   :  { %2040 = vmatprep.subr.bf16.mxu0 %v14497_v13  ;;  %2259 = vmatprep.subr.bf16.mxu1 %v14500_v14  ;;  %v14549_v13 = vld [vmem:[#allocation11 + $0x4a0] ss:$16 sps:$4 sm:$0xff]   ;;  %v14552_v14 = vld [vmem:[#allocation11 + $0x4a8] ss:$16 sps:$4 sm:$0xff]  }
 0x1ef   :  { %2041 = vmatpush1.bf16.msra.mxu0 %v14495_v15  ;;  %2260 = vmatpush1.bf16.msra.mxu1 %v14498_v16  ;;  %v17099_v15 = vpack.c.bf16 %v428_v10, %v422_v8  ;;  %v14557_v16 = vld [vmem:[#allocation11 + $0x4c4] ss:$16 sps:$4 sm:$0xff]   ;;  %v14614_v8 = vld [vmem:[#allocation11 + $0x5ec] ss:$16 sps:$4 sm:$0xff]   ;;  %v14609_v10 = vld [vmem:[#allocation11 + $0x5e0] ss:$16 sps:$4 sm:$0xff]  }
 0x1f0   :  { %2042 = vmatprep.subr.bf16.mxu0 %v14503_v17  ;;  %2261 = vmatprep.subr.bf16.mxu1 %v14506_v18  ;;  %v421_v17 = vld [vmem:[#allocation5 + $0x130] sm:$0xff]  ;;  %v427_v18 = vld [vmem:[#allocation5 + $0x160] sm:$0xff] }
 0x1f1   :  { %17900 = vst [vmem:[#allocation53_spill] sm:$0xff] %v17099_v15 }
 0x1f3   :  { %2043 = vmatpush1.bf16.msra.mxu0 %v14501_v19  ;;  %2262 = vmatpush1.bf16.msra.mxu1 %v14504_v21  ;;  %v14560_v19 = vld [vmem:[#allocation11 + $0x4cc] ss:$16 sps:$4 sm:$0xff]   ;;  %v14555_v21 = vld [vmem:[#allocation11 + $0x4c0] ss:$16 sps:$4 sm:$0xff]  }
 0x1f4   :  { %2044 = vmatprep.subr.bf16.mxu0 %v14509_v22  ;;  %2263 = vmatprep.subr.bf16.mxu1 %v14512_v23  ;;  %v14558_v22 = vld [vmem:[#allocation11 + $0x4c8] ss:$16 sps:$4 sm:$0xff]   ;;  %v17105_v23 = vpack.c.bf16 %v427_v18, %v421_v17  ;;  %v14615_v17 = vld [vmem:[#allocation10] ss:$16 sps:$4 sm:$0xff]  }
 0x1f5   :  { %v14618_v18 = vld [vmem:[#allocation10 + $0x8] ss:$16 sps:$4 sm:$0xff]  }
 0x1f6   :  { %17901 = vst [vmem:[#allocation54_spill] sm:$0xff] %v17105_v23 }
 0x1f7   :  { %2045 = vmatpush1.bf16.msra.mxu0 %v14507_v24  ;;  %2264 = vmatpush1.bf16.msra.mxu1 %v14510_v25  ;;  %v388_v24 = vld [vmem:[#allocation5 + $0x28] sm:$0xff]  ;;  %v394_v25 = vld [vmem:[#allocation5 + $0x58] sm:$0xff] }
 0x1f8   :  { %2046 = vmatprep.subr.bf16.mxu0 %v14515_v26  ;;  %2265 = vmatprep.subr.bf16.mxu1 %v14518_v28  ;;  %v14563_v26 = vld [vmem:[#allocation11 + $0x4e4] ss:$16 sps:$4 sm:$0xff]   ;;  %v14566_v28 = vld [vmem:[#allocation11 + $0x4ec] ss:$16 sps:$4 sm:$0xff]  }
 0x1fb   :  { %2047 = vmatpush1.bf16.msra.mxu0 %v14513_v29  ;;  %2266 = vmatpush1.bf16.msra.mxu1 %v14516_v30  ;;  %v17107_v29 = vpack.c.bf16 %v394_v25, %v388_v24  ;;  %v14561_v30 = vld [vmem:[#allocation11 + $0x4e0] ss:$16 sps:$4 sm:$0xff]   ;;  %v14623_v24 = vld [vmem:[#allocation10 + $0x24] ss:$16 sps:$4 sm:$0xff]   ;;  %v14626_v25 = vld [vmem:[#allocation10 + $0x2c] ss:$16 sps:$4 sm:$0xff]  }
 0x1fc   :  { %2089 = vmatprep.subr.bf16.mxu0 %v14521_v34  ;;  %2308 = vmatprep.subr.bf16.mxu1 %v14524_v35  ;;  %v14572_v34 = vld [vmem:[#allocation11 + $0x50c] ss:$16 sps:$4 sm:$0xff]   ;;  %v14567_v35 = vld [vmem:[#allocation11 + $0x500] ss:$16 sps:$4 sm:$0xff]  }
 0x1fd   :  { %17902 = vst [vmem:[#allocation55_spill] sm:$0xff] %v17107_v29 }
 0x1fe   :  { %2049 = vmatmul.mubr.bf16.vlgmr.msra.gmra.mrb[0].mxu0 %v17081_v37  ;;  %2268 = vmatmul.mubr.bf16.vlgmr.msra.gmra.mrb[0].mxu1 %v17081_v37 }
 0x1ff   :  { %2090 = vmatpush1.bf16.msra.mxu0 %v14519_v40  ;;  %2309 = vmatpush1.bf16.msra.mxu1 %v14522_v41  ;;  %v14578_v40 = vld [vmem:[#allocation11 + $0x52c] ss:$16 sps:$4 sm:$0xff]   ;;  %v14573_v41 = vld [vmem:[#allocation11 + $0x520] ss:$16 sps:$4 sm:$0xff]  }
 0x200   :  { %2091 = vmatprep.subr.bf16.mxu0 %v14527_v42  ;;  %2310 = vmatprep.subr.bf16.mxu1 %v14530_v43  ;;  %v14576_v42 = vld [vmem:[#allocation11 + $0x528] ss:$16 sps:$4 sm:$0xff]   ;;  %v14581_v43 = vld [vmem:[#allocation11 + $0x544] ss:$16 sps:$4 sm:$0xff]  }
 0x201   :  { %2058 = vmatprep.mubr.bf16.mxu0 %v17083_v44  ;;  %2277 = vmatprep.mubr.bf16.mxu1 %v17083_v44 }
 0x203   :  { %2092 = vmatpush1.bf16.msra.mxu0 %v14525_v45  ;;  %2311 = vmatpush1.bf16.msra.mxu1 %v14528_v47  ;;  %v14584_v45 = vld [vmem:[#allocation11 + $0x54c] ss:$16 sps:$4 sm:$0xff]   ;;  %v14579_v47 = vld [vmem:[#allocation11 + $0x540] ss:$16 sps:$4 sm:$0xff]  }
 0x204   :  { %2093 = vmatprep.subr.bf16.mxu0 %v14533_v51  ;;  %2312 = vmatprep.subr.bf16.mxu1 %v14536_v52  ;;  %v14590_v51 = vld [vmem:[#allocation11 + $0x56c] ss:$16 sps:$4 sm:$0xff]   ;;  %v14585_v52 = vld [vmem:[#allocation11 + $0x560] ss:$16 sps:$4 sm:$0xff]  }
 0x206   :  { %2059 = vmatmul.mubr.bf16.gmra.mrb[4].mxu0 %v17089_v56  ;;  %2278 = vmatmul.mubr.bf16.gmra.mrb[4].mxu1 %v17089_v56 }
 0x207   :  { %2094 = vmatpush1.bf16.msra.mxu0 %v14531_v53  ;;  %2313 = vmatpush1.bf16.msra.mxu1 %v14534_v55  ;;  %v14588_v53 = vld [vmem:[#allocation11 + $0x568] ss:$16 sps:$4 sm:$0xff]   ;;  %v14593_v55 = vld [vmem:[#allocation11 + $0x584] ss:$16 sps:$4 sm:$0xff]  }
 0x208   :  { %2095 = vmatprep.subr.bf16.mxu0 %v14539_v60  ;;  %2314 = vmatprep.subr.bf16.mxu1 %v14542_v61  ;;  %v14594_v60 = vld [vmem:[#allocation11 + $0x588] ss:$16 sps:$4 sm:$0xff]   ;;  %v14599_v61 = vld [vmem:[#allocation11 + $0x5a4] ss:$16 sps:$4 sm:$0xff]  }
 0x209   :  { %2068 = vmatprep.mubr.bf16.mxu0 %v17091_v63  ;;  %2287 = vmatprep.mubr.bf16.mxu1 %v17091_v63 }
 0x20b   :  { %2096 = vmatpush1.bf16.msra.mxu0 %v14537_v62  ;;  %2315 = vmatpush1.bf16.msra.mxu1 %v14540_v0  ;;  %v14602_v62 = vld [vmem:[#allocation11 + $0x5ac] ss:$16 sps:$4 sm:$0xff]   ;;  %v14597_v0 = vld [vmem:[#allocation11 + $0x5a0] ss:$16 sps:$4 sm:$0xff]  }
 0x20c   :  { %2097 = vmatprep.subr.bf16.mxu0 %v14545_v3  ;;  %2316 = vmatprep.subr.bf16.mxu1 %v14548_v4  ;;  %v14608_v3 = vld [vmem:[#allocation11 + $0x5cc] ss:$16 sps:$4 sm:$0xff]   ;;  %v14603_v4 = vld [vmem:[#allocation11 + $0x5c0] ss:$16 sps:$4 sm:$0xff]  }
 0x20e   :  { %2069 = vmatmul.mubr.bf16.gmra.mrb[8].mxu0 %v17097_v7  ;;  %2288 = vmatmul.mubr.bf16.gmra.mrb[8].mxu1 %v17097_v7  ;;  %v15270_v7 = vld [vmem:[#allocation16 + $0xec] ss:$16 sps:$4 sm:$0xff]  }
 0x20f   :  { %2098 = vmatpush1.bf16.msra.mxu0 %v14543_v5  ;;  %2317 = vmatpush1.bf16.msra.mxu1 %v14546_v6  ;;  %v14606_v5 = vld [vmem:[#allocation11 + $0x5c8] ss:$16 sps:$4 sm:$0xff]   ;;  %v14611_v6 = vld [vmem:[#allocation11 + $0x5e4] ss:$16 sps:$4 sm:$0xff]  }
 0x210   :  { %2099 = vmatprep.subr.bf16.mxu0 %v14551_v11  ;;  %2318 = vmatprep.subr.bf16.mxu1 %v14554_v12  ;;  %v14612_v11 = vld [vmem:[#allocation11 + $0x5e8] ss:$16 sps:$4 sm:$0xff]   ;;  %v387_v12 = vld [vmem:[#allocation5 + $0x20] sm:$0xff] }
 0x211   :  { %2078 = vmatprep.mubr.bf16.mxu0 %v17099_v15  ;;  %2297 = vmatprep.mubr.bf16.mxu1 %v17099_v15  ;;  %v15267_v15 = vld [vmem:[#allocation16 + $0xe4] ss:$16 sps:$4 sm:$0xff]  }
 0x213   :  { %2100 = vmatpush1.bf16.msra.mxu0 %v14549_v13  ;;  %2319 = vmatpush1.bf16.msra.mxu1 %v14552_v14  ;;  %v393_v13 = vld [vmem:[#allocation5 + $0x50] sm:$0xff] }
 0x214   :  { %2101 = vmatprep.subr.bf16.mxu0 %v14557_v16  ;;  %2320 = vmatprep.subr.bf16.mxu1 %v14560_v19  ;;  %v14617_v14 = vld [vmem:[#allocation10 + $0x4] ss:$16 sps:$4 sm:$0xff]   ;;  %v14620_v16 = vld [vmem:[#allocation10 + $0xc] ss:$16 sps:$4 sm:$0xff]   ;;  %v17113_v19 = vpack.c.bf16 %v393_v13, %v387_v12 }
 0x215   :  { %v318_v13 = vld [vmem:[#allocation2 + $0x38] sm:$0xff] }
 0x216   :  { %2079 = vmatmul.mubr.bf16.gmra.mrb[12].mxu0 %v17105_v23  ;;  %2298 = vmatmul.mubr.bf16.gmra.mrb[12].mxu1 %v17105_v23  ;;  %17903 = vst [vmem:[#allocation56_spill] sm:$0xff] %v17113_v19 }
 0x217   :  { %2102 = vmatpush1.bf16.msra.mxu0 %v14555_v21  ;;  %2321 = vmatpush1.bf16.msra.mxu1 %v14558_v22  ;;  %v400_v21 = vld [vmem:[#allocation5 + $0x88] sm:$0xff]  ;;  %v406_v22 = vld [vmem:[#allocation5 + $0xb8] sm:$0xff] }
 0x218   :  { %2103 = vmatprep.subr.bf16.mxu0 %v14563_v26  ;;  %2322 = vmatprep.subr.bf16.mxu1 %v14566_v28  ;;  %v14621_v26 = vld [vmem:[#allocation10 + $0x20] ss:$16 sps:$4 sm:$0xff]   ;;  %v14624_v28 = vld [vmem:[#allocation10 + $0x28] ss:$16 sps:$4 sm:$0xff]  }
 0x219   :  { %2121 = vmatprep.mubr.bf16.mxu0 %v17107_v29  ;;  %2340 = vmatprep.mubr.bf16.mxu1 %v17107_v29 }
 0x21b   :  { %2104 = vmatpush1.bf16.msra.mxu0 %v14561_v30  ;;  %2323 = vmatpush1.bf16.msra.mxu1 %v14564_v31  ;;  %v17115_v30 = vpack.c.bf16 %v406_v22, %v400_v21  ;;  %v14629_v31 = vld [vmem:[#allocation10 + $0x44] ss:$16 sps:$4 sm:$0xff]   ;;  %v14657_v22 = vld [vmem:[#allocation10 + $0xe0] ss:$16 sps:$4 sm:$0xff]  }
 0x21c   :  { %2105 = vmatprep.subr.bf16.mxu0 %v14569_v32  ;;  %2324 = vmatprep.subr.bf16.mxu1 %v14572_v34  ;;  %v399_v32 = vld [vmem:[#allocation5 + $0x80] sm:$0xff]  ;;  %v405_v34 = vld [vmem:[#allocation5 + $0xb0] sm:$0xff] }
 0x21d   :  { %17904 = vst [vmem:[#allocation57_spill] sm:$0xff] %v17115_v30 }
 0x21f   :  { %2106 = vmatpush1.bf16.msra.mxu0 %v14567_v35  ;;  %2325 = vmatpush1.bf16.msra.mxu1 %v14570_v36  ;;  %v14632_v35 = vld [vmem:[#allocation10 + $0x4c] ss:$16 sps:$4 sm:$0xff]   ;;  %v14627_v36 = vld [vmem:[#allocation10 + $0x40] ss:$16 sps:$4 sm:$0xff]  }
 0x220   :  { %2107 = vmatprep.subr.bf16.mxu0 %v14575_v38  ;;  %2326 = vmatprep.subr.bf16.mxu1 %v14578_v40  ;;  %v14630_v38 = vld [vmem:[#allocation10 + $0x48] ss:$16 sps:$4 sm:$0xff]   ;;  %v17121_v40 = vpack.c.bf16 %v405_v34, %v399_v32  ;;  %v14671_v32 = vld [vmem:[#allocation10 + $0x124] ss:$16 sps:$4 sm:$0xff]   ;;  %v14674_v34 = vld [vmem:[#allocation10 + $0x12c] ss:$16 sps:$4 sm:$0xff]  }
 0x222   :  { %17905 = vst [vmem:[#allocation58_spill] sm:$0xff] %v17121_v40 }
 0x223   :  { %2108 = vmatpush1.bf16.msra.mxu0 %v14573_v41  ;;  %2327 = vmatpush1.bf16.msra.mxu1 %v14576_v42  ;;  %v412_v41 = vld [vmem:[#allocation5 + $0xe8] sm:$0xff]  ;;  %v418_v42 = vld [vmem:[#allocation5 + $0x118] sm:$0xff] }
 0x224   :  { %2109 = vmatprep.subr.bf16.mxu0 %v14581_v43  ;;  %2328 = vmatprep.subr.bf16.mxu1 %v14584_v45  ;;  %v14635_v43 = vld [vmem:[#allocation10 + $0x64] ss:$16 sps:$4 sm:$0xff]   ;;  %v14638_v45 = vld [vmem:[#allocation10 + $0x6c] ss:$16 sps:$4 sm:$0xff]  }
 0x227   :  { %2110 = vmatpush1.bf16.msra.mxu0 %v14579_v47  ;;  %2329 = vmatpush1.bf16.msra.mxu1 %v14582_v48  ;;  %v14633_v47 = vld [vmem:[#allocation10 + $0x60] ss:$16 sps:$4 sm:$0xff]   ;;  %v14636_v48 = vld [vmem:[#allocation10 + $0x68] ss:$16 sps:$4 sm:$0xff]  }
 0x228   :  { %2111 = vmatprep.subr.bf16.mxu0 %v14587_v49  ;;  %2330 = vmatprep.subr.bf16.mxu1 %v14590_v51  ;;  %v17123_v49 = vpack.c.bf16 %v418_v42, %v412_v41  ;;  %v14641_v51 = vld [vmem:[#allocation10 + $0x84] ss:$16 sps:$4 sm:$0xff]   ;;  %v14680_v41 = vld [vmem:[#allocation10 + $0x14c] ss:$16 sps:$4 sm:$0xff]   ;;  %v14675_v42 = vld [vmem:[#allocation10 + $0x140] ss:$16 sps:$4 sm:$0xff]  }
 0x22a   :  { %17906 = vst [vmem:[#allocation59_spill] sm:$0xff] %v17123_v49 }
 0x22b   :  { %2112 = vmatpush1.bf16.msra.mxu0 %v14585_v52  ;;  %2331 = vmatpush1.bf16.msra.mxu1 %v14588_v53  ;;  %v411_v52 = vld [vmem:[#allocation5 + $0xe0] sm:$0xff]  ;;  %v417_v53 = vld [vmem:[#allocation5 + $0x110] sm:$0xff] }
 0x22c   :  { %2113 = vmatprep.subr.bf16.mxu0 %v14593_v55  ;;  %2332 = vmatprep.subr.bf16.mxu1 %v14596_v57  ;;  %v14644_v55 = vld [vmem:[#allocation10 + $0x8c] ss:$16 sps:$4 sm:$0xff]   ;;  %v14639_v57 = vld [vmem:[#allocation10 + $0x80] ss:$16 sps:$4 sm:$0xff]  }
 0x22f   :  { %2114 = vmatpush1.bf16.msra.mxu0 %v14591_v58  ;;  %2333 = vmatpush1.bf16.msra.mxu1 %v14594_v60  ;;  %v14642_v58 = vld [vmem:[#allocation10 + $0x88] ss:$16 sps:$4 sm:$0xff]   ;;  %v17129_v60 = vpack.c.bf16 %v417_v53, %v411_v52  ;;  %v14689_v52 = vld [vmem:[#allocation10 + $0x184] ss:$16 sps:$4 sm:$0xff]   ;;  %v14692_v53 = vld [vmem:[#allocation10 + $0x18c] ss:$16 sps:$4 sm:$0xff]  }
 0x230   :  { %2115 = vmatprep.subr.bf16.mxu0 %v14599_v61  ;;  %2334 = vmatprep.subr.bf16.mxu1 %v14602_v62  ;;  %v424_v61 = vld [vmem:[#allocation5 + $0x148] sm:$0xff]  ;;  %v430_v62 = vld [vmem:[#allocation5 + $0x178] sm:$0xff] }
 0x231   :  { %17907 = vst [vmem:[#allocation60_spill] sm:$0xff] %v17129_v60 }
 0x233   :  { %2116 = vmatpush1.bf16.msra.mxu0 %v14597_v0  ;;  %2335 = vmatpush1.bf16.msra.mxu1 %v14600_v1  ;;  %v14647_v0 = vld [vmem:[#allocation10 + $0xa4] ss:$16 sps:$4 sm:$0xff]   ;;  %v14650_v1 = vld [vmem:[#allocation10 + $0xac] ss:$16 sps:$4 sm:$0xff]  }
 0x234   :  { %2117 = vmatprep.subr.bf16.mxu0 %v14605_v2  ;;  %2336 = vmatprep.subr.bf16.mxu1 %v14608_v3  ;;  %v14645_v2 = vld [vmem:[#allocation10 + $0xa0] ss:$16 sps:$4 sm:$0xff]   ;;  %v14648_v3 = vld [vmem:[#allocation10 + $0xa8] ss:$16 sps:$4 sm:$0xff]  }
 0x237   :  { %2118 = vmatpush1.bf16.msra.mxu0 %v14603_v4  ;;  %2337 = vmatpush1.bf16.msra.mxu1 %v14606_v5  ;;  %v17131_v4 = vpack.c.bf16 %v430_v62, %v424_v61  ;;  %v14653_v5 = vld [vmem:[#allocation10 + $0xc4] ss:$16 sps:$4 sm:$0xff]   ;;  %v14698_v61 = vld [vmem:[#allocation10 + $0x1ac] ss:$16 sps:$4 sm:$0xff]   ;;  %v14693_v62 = vld [vmem:[#allocation10 + $0x1a0] ss:$16 sps:$4 sm:$0xff]  }
 0x238   :  { %2119 = vmatprep.subr.bf16.mxu0 %v14611_v6  ;;  %2338 = vmatprep.subr.bf16.mxu1 %v14614_v8  ;;  %v423_v6 = vld [vmem:[#allocation5 + $0x140] sm:$0xff]  ;;  %v429_v8 = vld [vmem:[#allocation5 + $0x170] sm:$0xff] }
 0x239   :  { %17908 = vst [vmem:[#allocation61_spill] sm:$0xff] %v17131_v4  ;;  %v17137_v12 = vpack.c.bf16 %v429_v8, %v423_v6  ;;  %v14707_v6 = vld [vmem:[#allocation10 + $0x1e4] ss:$16 sps:$4 sm:$0xff]   ;;  %v14710_v8 = vld [vmem:[#allocation10 + $0x1ec] ss:$16 sps:$4 sm:$0xff]  }
 0x23b   :  { %2120 = vmatpush1.bf16.msra.mxu0 %v14609_v10  ;;  %2339 = vmatpush1.bf16.msra.mxu1 %v14612_v11  ;;  %v14656_v10 = vld [vmem:[#allocation10 + $0xcc] ss:$16 sps:$4 sm:$0xff]   ;;  %17909 = vst [vmem:[#allocation62_spill] sm:$0xff] %v17137_v12 }
 0x23c   :  { %3341 = vmatprep.subr.bf16.mxu0 %v14617_v14  ;;  %3560 = vmatprep.subr.bf16.mxu1 %v14620_v16  ;;  %v312_v11 = vld [vmem:[#allocation2 + $0x8] sm:$0xff]  ;;  %v14651_v14 = vld [vmem:[#allocation10 + $0xc0] ss:$16 sps:$4 sm:$0xff]  }
 0x23d   :  { %v14654_v16 = vld [vmem:[#allocation10 + $0xc8] ss:$16 sps:$4 sm:$0xff]   ;;  %v360_v21 = vpack.c.bf16 %v318_v13, %v312_v11  ;;  %v14713_v13 = vld [vmem:[#allocation10 + $0x204] ss:$16 sps:$4 sm:$0xff]  }
 0x23e   :  { %2122 = vmatmul.mubr.bf16.vlgmr.msra.gmra.mrb[0].mxu0 %v17113_v19  ;;  %2341 = vmatmul.mubr.bf16.vlgmr.msra.gmra.mrb[0].mxu1 %v17113_v19  ;;  %v14708_v11 = vld [vmem:[#allocation10 + $0x1e8] ss:$16 sps:$4 sm:$0xff]   ;;  %v15262_v19 = vld [vmem:[#allocation16 + $0xc8] ss:$16 sps:$4 sm:$0xff]  }
 0x23f   :  { %3342 = vmatpush1.bf16.msra.mxu0 %v14615_v17  ;;  %3561 = vmatpush1.bf16.msra.mxu1 %v14618_v18  ;;  %v14659_v17 = vld [vmem:[#allocation10 + $0xe4] ss:$16 sps:$4 sm:$0xff]   ;;  %v14662_v18 = vld [vmem:[#allocation10 + $0xec] ss:$16 sps:$4 sm:$0xff]  }
 0x240   :  { %3343 = vmatprep.subr.bf16.mxu0 %v14623_v24  ;;  %3562 = vmatprep.subr.bf16.mxu1 %v14626_v25  ;;  %v14660_v24 = vld [vmem:[#allocation10 + $0xe8] ss:$16 sps:$4 sm:$0xff]   ;;  %v14665_v25 = vld [vmem:[#allocation10 + $0x104] ss:$16 sps:$4 sm:$0xff]  }
 0x241   :  { %2131 = vmatprep.mubr.bf16.mxu0 %v17115_v30  ;;  %2350 = vmatprep.mubr.bf16.mxu1 %v17115_v30  ;;  %v15259_v30 = vld [vmem:[#allocation16 + $0xc0] ss:$16 sps:$4 sm:$0xff]  }
 0x243   :  { %3344 = vmatpush1.bf16.msra.mxu0 %v14621_v26  ;;  %3563 = vmatpush1.bf16.msra.mxu1 %v14624_v28  ;;  %v14668_v26 = vld [vmem:[#allocation10 + $0x10c] ss:$16 sps:$4 sm:$0xff]   ;;  %v14663_v28 = vld [vmem:[#allocation10 + $0x100] ss:$16 sps:$4 sm:$0xff]  }
 0x244   :  { %3345 = vmatprep.subr.bf16.mxu0 %v14629_v31  ;;  %3564 = vmatprep.subr.bf16.mxu1 %v14632_v35  ;;  %v14666_v31 = vld [vmem:[#allocation10 + $0x108] ss:$16 sps:$4 sm:$0xff]   ;;  %v14669_v35 = vld [vmem:[#allocation10 + $0x120] ss:$16 sps:$4 sm:$0xff]  }
 0x246   :  { %2132 = vmatmul.mubr.bf16.gmra.mrb[4].mxu0 %v17121_v40  ;;  %2351 = vmatmul.mubr.bf16.gmra.mrb[4].mxu1 %v17121_v40 }
 0x247   :  { %3346 = vmatpush1.bf16.msra.mxu0 %v14627_v36  ;;  %3565 = vmatpush1.bf16.msra.mxu1 %v14630_v38  ;;  %v14672_v36 = vld [vmem:[#allocation10 + $0x128] ss:$16 sps:$4 sm:$0xff]   ;;  %v14677_v38 = vld [vmem:[#allocation10 + $0x144] ss:$16 sps:$4 sm:$0xff]  }
 0x248   :  { %3347 = vmatprep.subr.bf16.mxu0 %v14635_v43  ;;  %3566 = vmatprep.subr.bf16.mxu1 %v14638_v45  ;;  %v14678_v43 = vld [vmem:[#allocation10 + $0x148] ss:$16 sps:$4 sm:$0xff]   ;;  %v14683_v45 = vld [vmem:[#allocation10 + $0x164] ss:$16 sps:$4 sm:$0xff]  }
 0x249   :  { %2141 = vmatprep.mubr.bf16.mxu0 %v17123_v49  ;;  %2360 = vmatprep.mubr.bf16.mxu1 %v17123_v49 }
 0x24b   :  { %3348 = vmatpush1.bf16.msra.mxu0 %v14633_v47  ;;  %3567 = vmatpush1.bf16.msra.mxu1 %v14636_v48  ;;  %v14686_v47 = vld [vmem:[#allocation10 + $0x16c] ss:$16 sps:$4 sm:$0xff]   ;;  %v14681_v48 = vld [vmem:[#allocation10 + $0x160] ss:$16 sps:$4 sm:$0xff]  }
 0x24c   :  { %3349 = vmatprep.subr.bf16.mxu0 %v14641_v51  ;;  %3568 = vmatprep.subr.bf16.mxu1 %v14644_v55  ;;  %v14684_v51 = vld [vmem:[#allocation10 + $0x168] ss:$16 sps:$4 sm:$0xff]   ;;  %v14687_v55 = vld [vmem:[#allocation10 + $0x180] ss:$16 sps:$4 sm:$0xff]  }
 0x24e   :  { %2142 = vmatmul.mubr.bf16.gmra.mrb[8].mxu0 %v17129_v60  ;;  %2361 = vmatmul.mubr.bf16.gmra.mrb[8].mxu1 %v17129_v60 }
 0x24f   :  { %3350 = vmatpush1.bf16.msra.mxu0 %v14639_v57  ;;  %3569 = vmatpush1.bf16.msra.mxu1 %v14642_v58  ;;  %v14690_v57 = vld [vmem:[#allocation10 + $0x188] ss:$16 sps:$4 sm:$0xff]   ;;  %v14695_v58 = vld [vmem:[#allocation10 + $0x1a4] ss:$16 sps:$4 sm:$0xff]  }
 0x250   :  { %3351 = vmatprep.subr.bf16.mxu0 %v14647_v0  ;;  %3570 = vmatprep.subr.bf16.mxu1 %v14650_v1  ;;  %v14696_v0 = vld [vmem:[#allocation10 + $0x1a8] ss:$16 sps:$4 sm:$0xff]   ;;  %v14701_v1 = vld [vmem:[#allocation10 + $0x1c4] ss:$16 sps:$4 sm:$0xff]  }
 0x251   :  { %2151 = vmatprep.mubr.bf16.mxu0 %v17131_v4  ;;  %2370 = vmatprep.mubr.bf16.mxu1 %v17131_v4  ;;  %v456_v4 = vld [vmem:[#allocation7 + $0x8] sm:$0xff] }
 0x253   :  { %3352 = vmatpush1.bf16.msra.mxu0 %v14645_v2  ;;  %3571 = vmatpush1.bf16.msra.mxu1 %v14648_v3  ;;  %v14704_v2 = vld [vmem:[#allocation10 + $0x1cc] ss:$16 sps:$4 sm:$0xff]   ;;  %v14699_v3 = vld [vmem:[#allocation10 + $0x1c0] ss:$16 sps:$4 sm:$0xff]  }
 0x254   :  { %3353 = vmatprep.subr.bf16.mxu0 %v14653_v5  ;;  %3572 = vmatprep.subr.bf16.mxu1 %v14656_v10  ;;  %v14702_v5 = vld [vmem:[#allocation10 + $0x1c8] ss:$16 sps:$4 sm:$0xff]   ;;  %v14705_v10 = vld [vmem:[#allocation10 + $0x1e0] ss:$16 sps:$4 sm:$0xff]  }
 0x256   :  { %2152 = vmatmul.mubr.bf16.gmra.mrb[12].mxu0 %v17137_v12  ;;  %2371 = vmatmul.mubr.bf16.gmra.mrb[12].mxu1 %v17137_v12  ;;  %v573_v12 = vld [vmem:[#allocation8 + $0x170] sm:$0xff] }
 0x257   :  { %3354 = vmatpush1.bf16.msra.mxu0 %v14651_v14  ;;  %3573 = vmatpush1.bf16.msra.mxu1 %v14654_v16  ;;  %v311_v14 = vld [vmem:[#allocation2] sm:$0xff]  ;;  %v317_v16 = vld [vmem:[#allocation2 + $0x30] sm:$0xff] }
 0x258   :  { %3355 = vmatprep.subr.bf16.mxu0 %v14659_v17  ;;  %3574 = vmatprep.subr.bf16.mxu1 %v14662_v18  ;;  %v14716_v17 = vld [vmem:[#allocation10 + $0x20c] ss:$16 sps:$4 sm:$0xff]   ;;  %v14711_v18 = vld [vmem:[#allocation10 + $0x200] ss:$16 sps:$4 sm:$0xff]  }
 0x259   :  { %3373 = vmatprep.mubr.bf16.mxu0 %v360_v21  ;;  %3592 = vmatprep.mubr.bf16.mxu1 %v360_v21  ;;  %v14714_v21 = vld [vmem:[#allocation10 + $0x208] ss:$16 sps:$4 sm:$0xff]  }
 0x25b   :  { %3356 = vmatpush1.bf16.msra.mxu0 %v14657_v22  ;;  %3575 = vmatpush1.bf16.msra.mxu1 %v14660_v24  ;;  %v359_v22 = vpack.c.bf16 %v317_v16, %v311_v14  ;;  %v324_v24 = vld [vmem:[#allocation2 + $0x68] sm:$0xff]  ;;  %v14749_v16 = vld [vmem:[#allocation10 + $0x2c4] ss:$16 sps:$4 sm:$0xff]  }
 0x25c   :  { %3357 = vmatprep.subr.bf16.mxu0 %v14665_v25  ;;  %3576 = vmatprep.subr.bf16.mxu1 %v14668_v26  ;;  %v330_v25 = vld [vmem:[#allocation2 + $0x98] sm:$0xff]  ;;  %v14719_v26 = vld [vmem:[#allocation10 + $0x224] ss:$16 sps:$4 sm:$0xff]  }
 0x25d   :  { %v14744_v14 = vld [vmem:[#allocation10 + $0x2a8] ss:$16 sps:$4 sm:$0xff]  }
 0x25f   :  { %3358 = vmatpush1.bf16.msra.mxu0 %v14663_v28  ;;  %3577 = vmatpush1.bf16.msra.mxu1 %v14666_v31  ;;  %v14722_v28 = vld [vmem:[#allocation10 + $0x22c] ss:$16 sps:$4 sm:$0xff]   ;;  %v14717_v31 = vld [vmem:[#allocation10 + $0x220] ss:$16 sps:$4 sm:$0xff]  }
 0x260   :  { %3359 = vmatprep.subr.bf16.mxu0 %v14671_v32  ;;  %3578 = vmatprep.subr.bf16.mxu1 %v14674_v34  ;;  %v14720_v32 = vld [vmem:[#allocation10 + $0x228] ss:$16 sps:$4 sm:$0xff]   ;;  %v366_v34 = vpack.c.bf16 %v330_v25, %v324_v24 }
 0x261   :  { %v14750_v24 = vld [vmem:[#allocation10 + $0x2c8] ss:$16 sps:$4 sm:$0xff]  }
 0x263   :  { %3360 = vmatpush1.bf16.msra.mxu0 %v14669_v35  ;;  %3579 = vmatpush1.bf16.msra.mxu1 %v14672_v36  ;;  %v14725_v35 = vld [vmem:[#allocation10 + $0x244] ss:$16 sps:$4 sm:$0xff]  }
 0x264   :  { %3361 = vmatprep.subr.bf16.mxu0 %v14677_v38  ;;  %3580 = vmatprep.subr.bf16.mxu1 %v14680_v41  ;;  %v323_v36 = vld [vmem:[#allocation2 + $0x60] sm:$0xff]  ;;  %v329_v38 = vld [vmem:[#allocation2 + $0x90] sm:$0xff]  ;;  %v14728_v41 = vld [vmem:[#allocation10 + $0x24c] ss:$16 sps:$4 sm:$0xff]  }
 0x267   :  { %3362 = vmatpush1.bf16.msra.mxu0 %v14675_v42  ;;  %3581 = vmatpush1.bf16.msra.mxu1 %v14678_v43  ;;  %v14723_v42 = vld [vmem:[#allocation10 + $0x240] ss:$16 sps:$4 sm:$0xff]   ;;  %v14726_v43 = vld [vmem:[#allocation10 + $0x248] ss:$16 sps:$4 sm:$0xff]  }
 0x268   :  { %3363 = vmatprep.subr.bf16.mxu0 %v14683_v45  ;;  %3582 = vmatprep.subr.bf16.mxu1 %v14686_v47  ;;  %v365_v45 = vpack.c.bf16 %v329_v38, %v323_v36  ;;  %v336_v47 = vld [vmem:[#allocation2 + $0xc8] sm:$0xff]  ;;  %v14761_v38 = vld [vmem:[#allocation10 + $0x304] ss:$16 sps:$4 sm:$0xff]  }
 0x269   :  { %v14756_v36 = vld [vmem:[#allocation10 + $0x2e8] ss:$16 sps:$4 sm:$0xff]  }
 0x26b   :  { %3364 = vmatpush1.bf16.msra.mxu0 %v14681_v48  ;;  %3583 = vmatpush1.bf16.msra.mxu1 %v14684_v51  ;;  %v342_v48 = vld [vmem:[#allocation2 + $0xf8] sm:$0xff]  ;;  %v14731_v51 = vld [vmem:[#allocation10 + $0x264] ss:$16 sps:$4 sm:$0xff]  }
 0x26c   :  { %3365 = vmatprep.subr.bf16.mxu0 %v14689_v52  ;;  %3584 = vmatprep.subr.bf16.mxu1 %v14692_v53  ;;  %v14734_v52 = vld [vmem:[#allocation10 + $0x26c] ss:$16 sps:$4 sm:$0xff]   ;;  %v14729_v53 = vld [vmem:[#allocation10 + $0x260] ss:$16 sps:$4 sm:$0xff]  }
 0x26f   :  { %3366 = vmatpush1.bf16.msra.mxu0 %v14687_v55  ;;  %3585 = vmatpush1.bf16.msra.mxu1 %v14690_v57  ;;  %v372_v55 = vpack.c.bf16 %v342_v48, %v336_v47  ;;  %v14732_v57 = vld [vmem:[#allocation10 + $0x268] ss:$16 sps:$4 sm:$0xff]   ;;  %v14770_v47 = vld [vmem:[#allocation10 + $0x32c] ss:$16 sps:$4 sm:$0xff]   ;;  %v14765_v48 = vld [vmem:[#allocation10 + $0x320] ss:$16 sps:$4 sm:$0xff]  }
 0x270   :  { %3367 = vmatprep.subr.bf16.mxu0 %v14695_v58  ;;  %3586 = vmatprep.subr.bf16.mxu1 %v14698_v61  ;;  %v335_v58 = vld [vmem:[#allocation2 + $0xc0] sm:$0xff]  ;;  %v341_v61 = vld [vmem:[#allocation2 + $0xf0] sm:$0xff] }
 0x273   :  { %3368 = vmatpush1.bf16.msra.mxu0 %v14693_v62  ;;  %3587 = vmatpush1.bf16.msra.mxu1 %v14696_v0  ;;  %v14737_v62 = vld [vmem:[#allocation10 + $0x284] ss:$16 sps:$4 sm:$0xff]   ;;  %v14740_v0 = vld [vmem:[#allocation10 + $0x28c] ss:$16 sps:$4 sm:$0xff]  }
 0x274   :  { %3369 = vmatprep.subr.bf16.mxu0 %v14701_v1  ;;  %3588 = vmatprep.subr.bf16.mxu1 %v14704_v2  ;;  %v14735_v1 = vld [vmem:[#allocation10 + $0x280] ss:$16 sps:$4 sm:$0xff]   ;;  %v14738_v2 = vld [vmem:[#allocation10 + $0x288] ss:$16 sps:$4 sm:$0xff]  }
 0x277   :  { %3370 = vmatpush1.bf16.msra.mxu0 %v14699_v3  ;;  %3589 = vmatpush1.bf16.msra.mxu1 %v14702_v5  ;;  %v371_v3 = vpack.c.bf16 %v341_v61, %v335_v58  ;;  %v348_v5 = vld [vmem:[#allocation2 + $0x128] sm:$0xff]  ;;  %v14779_v58 = vld [vmem:[#allocation10 + $0x364] ss:$16 sps:$4 sm:$0xff]  }
 0x278   :  { %3371 = vmatprep.subr.bf16.mxu0 %v14707_v6  ;;  %3590 = vmatprep.subr.bf16.mxu1 %v14710_v8  ;;  %v354_v6 = vld [vmem:[#allocation2 + $0x158] sm:$0xff]  ;;  %v14743_v8 = vld [vmem:[#allocation10 + $0x2a4] ss:$16 sps:$4 sm:$0xff]  }
 0x279   :  { %v14782_v61 = vld [vmem:[#allocation10 + $0x36c] ss:$16 sps:$4 sm:$0xff]  }
 0x27b   :  { %3372 = vmatpush1.bf16.msra.mxu0 %v14705_v10  ;;  %3591 = vmatpush1.bf16.msra.mxu1 %v14708_v11  ;;  %v14746_v10 = vld [vmem:[#allocation10 + $0x2ac] ss:$16 sps:$4 sm:$0xff]   ;;  %v378_v11 = vpack.c.bf16 %v354_v6, %v348_v5  ;;  %v14786_v5 = vld [vmem:[#allocation10 + $0x388] ss:$16 sps:$4 sm:$0xff]   ;;  %v14791_v6 = vld [vmem:[#allocation10 + $0x3a4] ss:$16 sps:$4 sm:$0xff]  }
 0x27c   :  { %3414 = vmatprep.subr.bf16.mxu0 %v14713_v13  ;;  %3633 = vmatprep.subr.bf16.mxu1 %v14716_v17  ;;  %v14741_v13 = vld [vmem:[#allocation10 + $0x2a0] ss:$16 sps:$4 sm:$0xff]  }
 0x27d   :  { %v347_v17 = vld [vmem:[#allocation2 + $0x120] sm:$0xff] }
 0x27e   :  { %3374 = vmatmul.mubr.bf16.vlgmr.msra.gmra.mrb[0].mxu0 %v359_v22  ;;  %3593 = vmatmul.mubr.bf16.vlgmr.msra.gmra.mrb[0].mxu1 %v359_v22  ;;  %v14747_v22 = vld [vmem:[#allocation10 + $0x2c0] ss:$16 sps:$4 sm:$0xff]  }
 0x27f   :  { %3415 = vmatpush1.bf16.msra.mxu0 %v14711_v18  ;;  %3634 = vmatpush1.bf16.msra.mxu1 %v14714_v21  ;;  %v353_v18 = vld [vmem:[#allocation2 + $0x150] sm:$0xff]  ;;  %v14752_v21 = vld [vmem:[#allocation10 + $0x2cc] ss:$16 sps:$4 sm:$0xff]  }
 0x280   :  { %3416 = vmatprep.subr.bf16.mxu0 %v14719_v26  ;;  %3635 = vmatprep.subr.bf16.mxu1 %v14722_v28  ;;  %v377_v25 = vpack.c.bf16 %v353_v18, %v347_v17  ;;  %v314_v26 = vld [vmem:[#allocation2 + $0x18] sm:$0xff]  ;;  %v320_v28 = vld [vmem:[#allocation2 + $0x48] sm:$0xff]  ;;  %v14803_v18 = vld [vmem:[#allocation10 + $0x3e4] ss:$16 sps:$4 sm:$0xff]  }
 0x281   :  { %3383 = vmatprep.mubr.bf16.mxu0 %v366_v34  ;;  %3602 = vmatprep.mubr.bf16.mxu1 %v366_v34  ;;  %v362_v34 = vpack.c.bf16 %v320_v28, %v314_v26  ;;  %v14798_v17 = vld [vmem:[#allocation10 + $0x3c8] ss:$16 sps:$4 sm:$0xff]   ;;  %v319_v26 = vld [vmem:[#allocation2 + $0x40] sm:$0xff] }
 0x282   :  { %v14809_v28 = vld [vmem:[#allocation10 + $0x404] ss:$16 sps:$4 sm:$0xff]  }
 0x283   :  { %3417 = vmatpush1.bf16.msra.mxu0 %v14717_v31  ;;  %3636 = vmatpush1.bf16.msra.mxu1 %v14720_v32  ;;  %v14755_v31 = vld [vmem:[#allocation10 + $0x2e4] ss:$16 sps:$4 sm:$0xff]   ;;  %v14758_v32 = vld [vmem:[#allocation10 + $0x2ec] ss:$16 sps:$4 sm:$0xff]  }
 0x284   :  { %3418 = vmatprep.subr.bf16.mxu0 %v14725_v35  ;;  %3637 = vmatprep.subr.bf16.mxu1 %v14728_v41  ;;  %v14753_v35 = vld [vmem:[#allocation10 + $0x2e0] ss:$16 sps:$4 sm:$0xff]   ;;  %v14764_v41 = vld [vmem:[#allocation10 + $0x30c] ss:$16 sps:$4 sm:$0xff]  }
 0x286   :  { %3384 = vmatmul.mubr.bf16.gmra.mrb[4].mxu0 %v365_v45  ;;  %3603 = vmatmul.mubr.bf16.gmra.mrb[4].mxu1 %v365_v45  ;;  %v14767_v45 = vld [vmem:[#allocation10 + $0x324] ss:$16 sps:$4 sm:$0xff]  }
 0x287   :  { %3419 = vmatpush1.bf16.msra.mxu0 %v14723_v42  ;;  %3638 = vmatpush1.bf16.msra.mxu1 %v14726_v43  ;;  %v14759_v42 = vld [vmem:[#allocation10 + $0x300] ss:$16 sps:$4 sm:$0xff]   ;;  %v14762_v43 = vld [vmem:[#allocation10 + $0x308] ss:$16 sps:$4 sm:$0xff]  }
 0x288   :  { %3420 = vmatprep.subr.bf16.mxu0 %v14731_v51  ;;  %3639 = vmatprep.subr.bf16.mxu1 %v14734_v52  ;;  %v14768_v51 = vld [vmem:[#allocation10 + $0x328] ss:$16 sps:$4 sm:$0xff]   ;;  %v14773_v52 = vld [vmem:[#allocation10 + $0x344] ss:$16 sps:$4 sm:$0xff]  }
 0x289   :  { %3393 = vmatprep.mubr.bf16.mxu0 %v372_v55  ;;  %3612 = vmatprep.mubr.bf16.mxu1 %v372_v55  ;;  %v14771_v55 = vld [vmem:[#allocation10 + $0x340] ss:$16 sps:$4 sm:$0xff]  }
 0x28b   :  { %3421 = vmatpush1.bf16.msra.mxu0 %v14729_v53  ;;  %3640 = vmatpush1.bf16.msra.mxu1 %v14732_v57  ;;  %v14776_v53 = vld [vmem:[#allocation10 + $0x34c] ss:$16 sps:$4 sm:$0xff]   ;;  %v14774_v57 = vld [vmem:[#allocation10 + $0x348] ss:$16 sps:$4 sm:$0xff]  }
 0x28c   :  { %3422 = vmatprep.subr.bf16.mxu0 %v14737_v62  ;;  %3641 = vmatprep.subr.bf16.mxu1 %v14740_v0  ;;  %v14777_v62 = vld [vmem:[#allocation10 + $0x360] ss:$16 sps:$4 sm:$0xff]   ;;  %v14780_v0 = vld [vmem:[#allocation10 + $0x368] ss:$16 sps:$4 sm:$0xff]  }
 0x28e   :  { %3394 = vmatmul.mubr.bf16.gmra.mrb[8].mxu0 %v371_v3  ;;  %3613 = vmatmul.mubr.bf16.gmra.mrb[8].mxu1 %v371_v3  ;;  %v14783_v3 = vld [vmem:[#allocation10 + $0x380] ss:$16 sps:$4 sm:$0xff]  }
 0x28f   :  { %3423 = vmatpush1.bf16.msra.mxu0 %v14735_v1  ;;  %3642 = vmatpush1.bf16.msra.mxu1 %v14738_v2  ;;  %v14785_v1 = vld [vmem:[#allocation10 + $0x384] ss:$16 sps:$4 sm:$0xff]   ;;  %v14788_v2 = vld [vmem:[#allocation10 + $0x38c] ss:$16 sps:$4 sm:$0xff]  }
 0x290   :  { %3424 = vmatprep.subr.bf16.mxu0 %v14743_v8  ;;  %3643 = vmatprep.subr.bf16.mxu1 %v14746_v10  ;;  %v14794_v8 = vld [vmem:[#allocation10 + $0x3ac] ss:$16 sps:$4 sm:$0xff]   ;;  %v14789_v10 = vld [vmem:[#allocation10 + $0x3a0] ss:$16 sps:$4 sm:$0xff]  }
 0x291   :  { %3403 = vmatprep.mubr.bf16.mxu0 %v378_v11  ;;  %3622 = vmatprep.mubr.bf16.mxu1 %v378_v11  ;;  %v14792_v11 = vld [vmem:[#allocation10 + $0x3a8] ss:$16 sps:$4 sm:$0xff]  }
 0x293   :  { %3425 = vmatpush1.bf16.msra.mxu0 %v14741_v13  ;;  %3644 = vmatpush1.bf16.msra.mxu1 %v14744_v14  ;;  %v14797_v13 = vld [vmem:[#allocation10 + $0x3c4] ss:$16 sps:$4 sm:$0xff]   ;;  %v14800_v14 = vld [vmem:[#allocation10 + $0x3cc] ss:$16 sps:$4 sm:$0xff]  }
 0x294   :  { %3426 = vmatprep.subr.bf16.mxu0 %v14749_v16  ;;  %3645 = vmatprep.subr.bf16.mxu1 %v14752_v21  ;;  %v14795_v16 = vld [vmem:[#allocation10 + $0x3c0] ss:$16 sps:$4 sm:$0xff]   ;;  %v14806_v21 = vld [vmem:[#allocation10 + $0x3ec] ss:$16 sps:$4 sm:$0xff]  }
 0x296   :  { %3404 = vmatmul.mubr.bf16.gmra.mrb[12].mxu0 %v377_v25  ;;  %3623 = vmatmul.mubr.bf16.gmra.mrb[12].mxu1 %v377_v25  ;;  %v313_v25 = vld [vmem:[#allocation2 + $0x10] sm:$0xff] }
 0x297   :  { %3427 = vmatpush1.bf16.msra.mxu0 %v14747_v22  ;;  %3646 = vmatpush1.bf16.msra.mxu1 %v14750_v24  ;;  %v14801_v22 = vld [vmem:[#allocation10 + $0x3e0] ss:$16 sps:$4 sm:$0xff]   ;;  %v14804_v24 = vld [vmem:[#allocation10 + $0x3e8] ss:$16 sps:$4 sm:$0xff]  }
 0x298   :  { %3428 = vmatprep.subr.bf16.mxu0 %v14755_v31  ;;  %3647 = vmatprep.subr.bf16.mxu1 %v14758_v32  ;;  %v14812_v31 = vld [vmem:[#allocation10 + $0x40c] ss:$16 sps:$4 sm:$0xff]  }
 0x299   :  { %3446 = vmatprep.mubr.bf16.mxu0 %v362_v34  ;;  %3665 = vmatprep.mubr.bf16.mxu1 %v362_v34  ;;  %v326_v32 = vld [vmem:[#allocation2 + $0x78] sm:$0xff]  ;;  %v332_v34 = vld [vmem:[#allocation2 + $0xa8] sm:$0xff] }
 0x29b   :  { %3429 = vmatpush1.bf16.msra.mxu0 %v14753_v35  ;;  %3648 = vmatpush1.bf16.msra.mxu1 %v14756_v36  ;;  %v14807_v35 = vld [vmem:[#allocation10 + $0x400] ss:$16 sps:$4 sm:$0xff]   ;;  %v14810_v36 = vld [vmem:[#allocation10 + $0x408] ss:$16 sps:$4 sm:$0xff]  }
 0x29c   :  { %3430 = vmatprep.subr.bf16.mxu0 %v14761_v38  ;;  %3649 = vmatprep.subr.bf16.mxu1 %v14764_v41  ;;  %v361_v38 = vpack.c.bf16 %v319_v26, %v313_v25  ;;  %v14815_v41 = vld [vmem:[#allocation10 + $0x424] ss:$16 sps:$4 sm:$0xff]   ;;  %v14840_v25 = vld [vmem:[#allocation10 + $0x4a8] ss:$16 sps:$4 sm:$0xff]  }
 0x29f   :  { %3431 = vmatpush1.bf16.msra.mxu0 %v14759_v42  ;;  %3650 = vmatpush1.bf16.msra.mxu1 %v14762_v43  ;;  %v14818_v42 = vld [vmem:[#allocation10 + $0x42c] ss:$16 sps:$4 sm:$0xff]   ;;  %v14813_v43 = vld [vmem:[#allocation10 + $0x420] ss:$16 sps:$4 sm:$0xff]  }
 0x2a0   :  { %3432 = vmatprep.subr.bf16.mxu0 %v14767_v45  ;;  %3651 = vmatprep.subr.bf16.mxu1 %v14770_v47  ;;  %v14816_v45 = vld [vmem:[#allocation10 + $0x428] ss:$16 sps:$4 sm:$0xff]   ;;  %v368_v47 = vpack.c.bf16 %v332_v34, %v326_v32  ;;  %v14845_v32 = vld [vmem:[#allocation10 + $0x4c4] ss:$16 sps:$4 sm:$0xff]   ;;  %v14848_v34 = vld [vmem:[#allocation10 + $0x4cc] ss:$16 sps:$4 sm:$0xff]  }
 0x2a3   :  { %3433 = vmatpush1.bf16.msra.mxu0 %v14765_v48  ;;  %3652 = vmatpush1.bf16.msra.mxu1 %v14768_v51  ;;  %v325_v48 = vld [vmem:[#allocation2 + $0x70] sm:$0xff]  ;;  %v331_v51 = vld [vmem:[#allocation2 + $0xa0] sm:$0xff] }
 0x2a4   :  { %3434 = vmatprep.subr.bf16.mxu0 %v14773_v52  ;;  %3653 = vmatprep.subr.bf16.mxu1 %v14776_v53  ;;  %v14821_v52 = vld [vmem:[#allocation10 + $0x444] ss:$16 sps:$4 sm:$0xff]   ;;  %v14824_v53 = vld [vmem:[#allocation10 + $0x44c] ss:$16 sps:$4 sm:$0xff]  }
 0x2a7   :  { %3435 = vmatpush1.bf16.msra.mxu0 %v14771_v55  ;;  %3654 = vmatpush1.bf16.msra.mxu1 %v14774_v57  ;;  %v338_v55 = vld [vmem:[#allocation2 + $0xd8] sm:$0xff]  ;;  %v344_v57 = vld [vmem:[#allocation2 + $0x108] sm:$0xff] }
 0x2a8   :  { %3436 = vmatprep.subr.bf16.mxu0 %v14779_v58  ;;  %3655 = vmatprep.subr.bf16.mxu1 %v14782_v61  ;;  %v14819_v58 = vld [vmem:[#allocation10 + $0x440] ss:$16 sps:$4 sm:$0xff]   ;;  %v14822_v61 = vld [vmem:[#allocation10 + $0x448] ss:$16 sps:$4 sm:$0xff]  }
 0x2ab   :  { %3437 = vmatpush1.bf16.msra.mxu0 %v14777_v62  ;;  %3656 = vmatpush1.bf16.msra.mxu1 %v14780_v0  ;;  %v14827_v62 = vld [vmem:[#allocation10 + $0x464] ss:$16 sps:$4 sm:$0xff]   ;;  %v14830_v0 = vld [vmem:[#allocation10 + $0x46c] ss:$16 sps:$4 sm:$0xff]  }
 0x2ac   :  { %3438 = vmatprep.subr.bf16.mxu0 %v14785_v1  ;;  %3657 = vmatprep.subr.bf16.mxu1 %v14788_v2  ;;  %v367_v1 = vpack.c.bf16 %v331_v51, %v325_v48  ;;  %v14825_v2 = vld [vmem:[#allocation10 + $0x460] ss:$16 sps:$4 sm:$0xff]   ;;  %v14852_v48 = vld [vmem:[#allocation10 + $0x4e8] ss:$16 sps:$4 sm:$0xff]  }
 0x2af   :  { %3439 = vmatpush1.bf16.msra.mxu0 %v14783_v3  ;;  %3658 = vmatpush1.bf16.msra.mxu1 %v14786_v5  ;;  %v14828_v3 = vld [vmem:[#allocation10 + $0x468] ss:$16 sps:$4 sm:$0xff]   ;;  %v374_v5 = vpack.c.bf16 %v344_v57, %v338_v55  ;;  %v14855_v55 = vld [vmem:[#allocation10 + $0x500] ss:$16 sps:$4 sm:$0xff]  }
 0x2b0   :  { %3440 = vmatprep.subr.bf16.mxu0 %v14791_v6  ;;  %3659 = vmatprep.subr.bf16.mxu1 %v14794_v8  ;;  %v337_v6 = vld [vmem:[#allocation2 + $0xd0] sm:$0xff]  ;;  %v343_v8 = vld [vmem:[#allocation2 + $0x100] sm:$0xff]  ;;  %v14858_v57 = vld [vmem:[#allocation10 + $0x508] ss:$16 sps:$4 sm:$0xff]  }
 0x2b3   :  { %3441 = vmatpush1.bf16.msra.mxu0 %v14789_v10  ;;  %3660 = vmatpush1.bf16.msra.mxu1 %v14792_v11  ;;  %v14833_v10 = vld [vmem:[#allocation10 + $0x484] ss:$16 sps:$4 sm:$0xff]   ;;  %v14836_v11 = vld [vmem:[#allocation10 + $0x48c] ss:$16 sps:$4 sm:$0xff]  }
 0x2b4   :  { %3442 = vmatprep.subr.bf16.mxu0 %v14797_v13  ;;  %3661 = vmatprep.subr.bf16.mxu1 %v14800_v14  ;;  %v350_v13 = vld [vmem:[#allocation2 + $0x138] sm:$0xff]  ;;  %v356_v14 = vld [vmem:[#allocation2 + $0x168] sm:$0xff] }
 0x2b5   :  { %v380_v26 = vpack.c.bf16 %v356_v14, %v350_v13  ;;  %v14881_v13 = vld [vmem:[#allocation10 + $0x584] ss:$16 sps:$4 sm:$0xff]   ;;  %v14884_v14 = vld [vmem:[#allocation10 + $0x58c] ss:$16 sps:$4 sm:$0xff]  }
 0x2b7   :  { %3443 = vmatpush1.bf16.msra.mxu0 %v14795_v16  ;;  %3662 = vmatpush1.bf16.msra.mxu1 %v14798_v17  ;;  %v14831_v16 = vld [vmem:[#allocation10 + $0x480] ss:$16 sps:$4 sm:$0xff]   ;;  %v14834_v17 = vld [vmem:[#allocation10 + $0x488] ss:$16 sps:$4 sm:$0xff]  }
 0x2b8   :  { %3444 = vmatprep.subr.bf16.mxu0 %v14803_v18  ;;  %3663 = vmatprep.subr.bf16.mxu1 %v14806_v21  ;;  %v14839_v18 = vld [vmem:[#allocation10 + $0x4a4] ss:$16 sps:$4 sm:$0xff]   ;;  %v14842_v21 = vld [vmem:[#allocation10 + $0x4ac] ss:$16 sps:$4 sm:$0xff]  }
 0x2bb   :  { %3445 = vmatpush1.bf16.msra.mxu0 %v14801_v22  ;;  %3664 = vmatpush1.bf16.msra.mxu1 %v14804_v24  ;;  %v373_v22 = vpack.c.bf16 %v343_v8, %v337_v6  ;;  %v14837_v24 = vld [vmem:[#allocation10 + $0x4a0] ss:$16 sps:$4 sm:$0xff]   ;;  %v14875_v6 = vld [vmem:[#allocation10 + $0x564] ss:$16 sps:$4 sm:$0xff]   ;;  %v14878_v8 = vld [vmem:[#allocation10 + $0x56c] ss:$16 sps:$4 sm:$0xff]  }
 0x2bc   :  { %3487 = vmatprep.subr.bf16.mxu0 %v14809_v28  ;;  %3706 = vmatprep.subr.bf16.mxu1 %v14812_v31  ;;  %v349_v28 = vld [vmem:[#allocation2 + $0x130] sm:$0xff]  ;;  %v355_v31 = vld [vmem:[#allocation2 + $0x160] sm:$0xff] }
 0x2be   :  { %3447 = vmatmul.mubr.bf16.vlgmr.msra.gmra.mrb[0].mxu0 %v361_v38  ;;  %3666 = vmatmul.mubr.bf16.vlgmr.msra.gmra.mrb[0].mxu1 %v361_v38  ;;  %v14843_v38 = vld [vmem:[#allocation10 + $0x4c0] ss:$16 sps:$4 sm:$0xff]  }
 0x2bf   :  { %3488 = vmatpush1.bf16.msra.mxu0 %v14807_v35  ;;  %3707 = vmatpush1.bf16.msra.mxu1 %v14810_v36  ;;  %v316_v35 = vld [vmem:[#allocation2 + $0x28] sm:$0xff]  ;;  %v322_v36 = vld [vmem:[#allocation2 + $0x58] sm:$0xff] }
 0x2c0   :  { %3489 = vmatprep.subr.bf16.mxu0 %v14815_v41  ;;  %3708 = vmatprep.subr.bf16.mxu1 %v14818_v42  ;;  %v14846_v41 = vld [vmem:[#allocation10 + $0x4c8] ss:$16 sps:$4 sm:$0xff]   ;;  %v14851_v42 = vld [vmem:[#allocation10 + $0x4e4] ss:$16 sps:$4 sm:$0xff]   ;;  %v364_v51 = vpack.c.bf16 %v322_v36, %v316_v35  ;;  %v14897_v35 = vld [vmem:[#allocation10 + $0x5e0] ss:$16 sps:$4 sm:$0xff]  }
 0x2c1   :  { %3456 = vmatprep.mubr.bf16.mxu0 %v368_v47  ;;  %3675 = vmatprep.mubr.bf16.mxu1 %v368_v47  ;;  %v14849_v47 = vld [vmem:[#allocation10 + $0x4e0] ss:$16 sps:$4 sm:$0xff]   ;;  %v14900_v36 = vld [vmem:[#allocation10 + $0x5e8] ss:$16 sps:$4 sm:$0xff]  }
 0x2c3   :  { %3490 = vmatpush1.bf16.msra.mxu0 %v14813_v43  ;;  %3709 = vmatpush1.bf16.msra.mxu1 %v14816_v45  ;;  %v14854_v43 = vld [vmem:[#allocation10 + $0x4ec] ss:$16 sps:$4 sm:$0xff]   ;;  %v379_v45 = vpack.c.bf16 %v355_v31, %v349_v28  ;;  %v14891_v28 = vld [vmem:[#allocation10 + $0x5c0] ss:$16 sps:$4 sm:$0xff]   ;;  %v14894_v31 = vld [vmem:[#allocation10 + $0x5c8] ss:$16 sps:$4 sm:$0xff]  }
 0x2c4   :  { %3491 = vmatprep.subr.bf16.mxu0 %v14821_v52  ;;  %3710 = vmatprep.subr.bf16.mxu1 %v14824_v53  ;;  %v14857_v52 = vld [vmem:[#allocation10 + $0x504] ss:$16 sps:$4 sm:$0xff]   ;;  %v14860_v53 = vld [vmem:[#allocation10 + $0x50c] ss:$16 sps:$4 sm:$0xff]  }
 0x2c6   :  { %3457 = vmatmul.mubr.bf16.gmra.mrb[4].mxu0 %v367_v1  ;;  %3676 = vmatmul.mubr.bf16.gmra.mrb[4].mxu1 %v367_v1  ;;  %v14869_v1 = vld [vmem:[#allocation10 + $0x544] ss:$16 sps:$4 sm:$0xff]  }
 0x2c7   :  { %3492 = vmatpush1.bf16.msra.mxu0 %v14819_v58  ;;  %3711 = vmatpush1.bf16.msra.mxu1 %v14822_v61  ;;  %v14863_v58 = vld [vmem:[#allocation10 + $0x524] ss:$16 sps:$4 sm:$0xff]   ;;  %v14866_v61 = vld [vmem:[#allocation10 + $0x52c] ss:$16 sps:$4 sm:$0xff]  }
 0x2c8   :  { %3493 = vmatprep.subr.bf16.mxu0 %v14827_v62  ;;  %3712 = vmatprep.subr.bf16.mxu1 %v14830_v0  ;;  %v14861_v62 = vld [vmem:[#allocation10 + $0x520] ss:$16 sps:$4 sm:$0xff]   ;;  %v14864_v0 = vld [vmem:[#allocation10 + $0x528] ss:$16 sps:$4 sm:$0xff]  }
 0x2c9   :  { %3466 = vmatprep.mubr.bf16.mxu0 %v374_v5  ;;  %3685 = vmatprep.mubr.bf16.mxu1 %v374_v5  ;;  %v14870_v5 = vld [vmem:[#allocation10 + $0x548] ss:$16 sps:$4 sm:$0xff]  }
 0x2cb   :  { %3494 = vmatpush1.bf16.msra.mxu0 %v14825_v2  ;;  %3713 = vmatpush1.bf16.msra.mxu1 %v14828_v3  ;;  %v14872_v2 = vld [vmem:[#allocation10 + $0x54c] ss:$16 sps:$4 sm:$0xff]   ;;  %v14867_v3 = vld [vmem:[#allocation10 + $0x540] ss:$16 sps:$4 sm:$0xff]  }
 0x2cc   :  { %3495 = vmatprep.subr.bf16.mxu0 %v14833_v10  ;;  %3714 = vmatprep.subr.bf16.mxu1 %v14836_v11  ;;  %v14873_v10 = vld [vmem:[#allocation10 + $0x560] ss:$16 sps:$4 sm:$0xff]   ;;  %v14876_v11 = vld [vmem:[#allocation10 + $0x568] ss:$16 sps:$4 sm:$0xff]  }
 0x2ce   :  { %3467 = vmatmul.mubr.bf16.gmra.mrb[8].mxu0 %v373_v22  ;;  %3686 = vmatmul.mubr.bf16.gmra.mrb[8].mxu1 %v373_v22  ;;  %v14885_v22 = vld [vmem:[#allocation10 + $0x5a0] ss:$16 sps:$4 sm:$0xff]  }
 0x2cf   :  { %3496 = vmatpush1.bf16.msra.mxu0 %v14831_v16  ;;  %3715 = vmatpush1.bf16.msra.mxu1 %v14834_v17  ;;  %v14879_v16 = vld [vmem:[#allocation10 + $0x580] ss:$16 sps:$4 sm:$0xff]   ;;  %v14882_v17 = vld [vmem:[#allocation10 + $0x588] ss:$16 sps:$4 sm:$0xff]  }
 0x2d0   :  { %3497 = vmatprep.subr.bf16.mxu0 %v14839_v18  ;;  %3716 = vmatprep.subr.bf16.mxu1 %v14842_v21  ;;  %v14887_v18 = vld [vmem:[#allocation10 + $0x5a4] ss:$16 sps:$4 sm:$0xff]   ;;  %v14890_v21 = vld [vmem:[#allocation10 + $0x5ac] ss:$16 sps:$4 sm:$0xff]  }
 0x2d1   :  { %3476 = vmatprep.mubr.bf16.mxu0 %v380_v26  ;;  %3695 = vmatprep.mubr.bf16.mxu1 %v380_v26  ;;  %v14896_v26 = vld [vmem:[#allocation10 + $0x5cc] ss:$16 sps:$4 sm:$0xff]  }
 0x2d3   :  { %3498 = vmatpush1.bf16.msra.mxu0 %v14837_v24  ;;  %3717 = vmatpush1.bf16.msra.mxu1 %v14840_v25  ;;  %v14888_v24 = vld [vmem:[#allocation10 + $0x5a8] ss:$16 sps:$4 sm:$0xff]   ;;  %v14893_v25 = vld [vmem:[#allocation10 + $0x5c4] ss:$16 sps:$4 sm:$0xff]  }
 0x2d4   :  { %3499 = vmatprep.subr.bf16.mxu0 %v14845_v32  ;;  %3718 = vmatprep.subr.bf16.mxu1 %v14848_v34  ;;  %v14899_v32 = vld [vmem:[#allocation10 + $0x5e4] ss:$16 sps:$4 sm:$0xff]   ;;  %v14902_v34 = vld [vmem:[#allocation10 + $0x5ec] ss:$16 sps:$4 sm:$0xff]  }
 0x2d6   :  { %3477 = vmatmul.mubr.bf16.gmra.mrb[12].mxu0 %v379_v45  ;;  %3696 = vmatmul.mubr.bf16.gmra.mrb[12].mxu1 %v379_v45  ;;  %v14903_v45 = vld [vmem:[#allocation14 + $0x40] sm:$0xff]  }
 0x2d7   :  { %3500 = vmatpush1.bf16.msra.mxu0 %v14843_v38  ;;  %3719 = vmatpush1.bf16.msra.mxu1 %v14846_v41  ;;  %v315_v38 = vld [vmem:[#allocation2 + $0x20] sm:$0xff]  ;;  %v321_v41 = vld [vmem:[#allocation2 + $0x50] sm:$0xff] }
 0x2d8   :  { %3501 = vmatprep.subr.bf16.mxu0 %v14851_v42  ;;  %3720 = vmatprep.subr.bf16.mxu1 %v14854_v43  ;;  %v328_v42 = vld [vmem:[#allocation2 + $0x88] sm:$0xff]  ;;  %v334_v43 = vld [vmem:[#allocation2 + $0xb8] sm:$0xff] }
 0x2d9   :  { %3519 = vmatprep.mubr.bf16.mxu0 %v364_v51  ;;  %3738 = vmatprep.mubr.bf16.mxu1 %v364_v51  ;;  %v14905_v51 = vld [vmem:[#allocation14] sm:$0xff]  }
 0x2db   :  { %3502 = vmatpush1.bf16.msra.mxu0 %v14849_v47  ;;  %3721 = vmatpush1.bf16.msra.mxu1 %v14852_v48  ;;  %v14904_v47 = vld [vmem:[#allocation14 + $0xc0] sm:$0xff]   ;;  %v363_v48 = vpack.c.bf16 %v321_v41, %v315_v38  ;;  %v357_v41 = vld [vmem:[#allocation2 + $0x170] sm:$0xff] }
 0x2dc   :  { %3503 = vmatprep.subr.bf16.mxu0 %v14857_v52  ;;  %3722 = vmatprep.subr.bf16.mxu1 %v14860_v53  ;;  %v14906_v52 = vld [vmem:[#allocation14 + $0x80] sm:$0xff]   ;;  %v370_v53 = vpack.c.bf16 %v334_v43, %v328_v42  ;;  %v14925_v42 = vld [vmem:[#allocation14 + $0x28] sm:$0xff]  }
 0x2dd   :  { %v351_v38 = vld [vmem:[#allocation2 + $0x140] sm:$0xff]  ;;  %v14926_v43 = vld [vmem:[#allocation14 + $0xa8] sm:$0xff]  }
 0x2df   :  { %3504 = vmatpush1.bf16.msra.mxu0 %v14855_v55  ;;  %3723 = vmatpush1.bf16.msra.mxu1 %v14858_v57  ;;  %v14907_v55 = vld [vmem:[#allocation14 + $0x48] sm:$0xff]  }
 0x2e0   :  { %3505 = vmatprep.subr.bf16.mxu0 %v14863_v58  ;;  %3724 = vmatprep.subr.bf16.mxu1 %v14866_v61  ;;  %v14908_v57 = vld [vmem:[#allocation14 + $0xc8] sm:$0xff]   ;;  %v327_v58 = vld [vmem:[#allocation2 + $0x80] sm:$0xff] }
 0x2e1   :  { %v333_v61 = vld [vmem:[#allocation2 + $0xb0] sm:$0xff] }
 0x2e3   :  { %3506 = vmatpush1.bf16.msra.mxu0 %v14861_v62  ;;  %3725 = vmatpush1.bf16.msra.mxu1 %v14864_v0  ;;  %v340_v62 = vld [vmem:[#allocation2 + $0xe8] sm:$0xff]  ;;  %v346_v0 = vld [vmem:[#allocation2 + $0x118] sm:$0xff] }
 0x2e4   :  { %3507 = vmatprep.subr.bf16.mxu0 %v14869_v1  ;;  %3726 = vmatprep.subr.bf16.mxu1 %v14872_v2  ;;  %v14909_v1 = vld [vmem:[#allocation14 + $0x8] sm:$0xff]  }
 0x2e5   :  { %v14910_v2 = vld [vmem:[#allocation14 + $0x88] sm:$0xff]  }
 0x2e7   :  { %3508 = vmatpush1.bf16.msra.mxu0 %v14867_v3  ;;  %3727 = vmatpush1.bf16.msra.mxu1 %v14870_v5  ;;  %v14911_v3 = vld [vmem:[#allocation14 + $0x50] sm:$0xff]  }
 0x2e8   :  { %3509 = vmatprep.subr.bf16.mxu0 %v14875_v6  ;;  %3728 = vmatprep.subr.bf16.mxu1 %v14878_v8  ;;  %v14912_v5 = vld [vmem:[#allocation14 + $0xd0] sm:$0xff]   ;;  %v369_v6 = vpack.c.bf16 %v333_v61, %v327_v58  ;;  %v14934_v58 = vld [vmem:[#allocation14 + $0xb8] sm:$0xff]  }
 0x2e9   :  { %v14913_v8 = vld [vmem:[#allocation14 + $0x10] sm:$0xff]  }
 0x2ea   :  { %v14937_v61 = vld [vmem:[#allocation17 + $0x4] ss:$16 sps:$4 sm:$0xff]  }
 0x2eb   :  { %3510 = vmatpush1.bf16.msra.mxu0 %v14873_v10  ;;  %3729 = vmatpush1.bf16.msra.mxu1 %v14876_v11  ;;  %v14914_v10 = vld [vmem:[#allocation14 + $0x90] sm:$0xff]   ;;  %v376_v11 = vpack.c.bf16 %v346_v0, %v340_v62  ;;  %v14940_v62 = vld [vmem:[#allocation17 + $0xc] ss:$16 sps:$4 sm:$0xff]   ;;  %v3781_v0 = vlaneseq }
 0x2ec   :  { %3511 = vmatprep.subr.bf16.mxu0 %v14881_v13  ;;  %3730 = vmatprep.subr.bf16.mxu1 %v14884_v14  ;;  %v14915_v13 = vld [vmem:[#allocation14 + $0x58] sm:$0xff]  }
 0x2ed   :  { %v14916_v14 = vld [vmem:[#allocation14 + $0xd8] sm:$0xff]  }
 0x2ef   :  { %3512 = vmatpush1.bf16.msra.mxu0 %v14879_v16  ;;  %3731 = vmatpush1.bf16.msra.mxu1 %v14882_v17  ;;  %v339_v16 = vld [vmem:[#allocation2 + $0xe0] sm:$0xff]  ;;  %v345_v17 = vld [vmem:[#allocation2 + $0x110] sm:$0xff] }
 0x2f0   :  { %3513 = vmatprep.subr.bf16.mxu0 %v14887_v18  ;;  %3732 = vmatprep.subr.bf16.mxu1 %v14890_v21  ;;  %v352_v18 = vld [vmem:[#allocation2 + $0x148] sm:$0xff]  ;;  %v358_v21 = vld [vmem:[#allocation2 + $0x178] sm:$0xff] }
 0x2f3   :  { %3514 = vmatpush1.bf16.msra.mxu0 %v14885_v22  ;;  %3733 = vmatpush1.bf16.msra.mxu1 %v14888_v24  ;;  %v14917_v22 = vld [vmem:[#allocation14 + $0x18] sm:$0xff]  }
 0x2f4   :  { %3515 = vmatprep.subr.bf16.mxu0 %v14893_v25  ;;  %3734 = vmatprep.subr.bf16.mxu1 %v14896_v26  ;;  %v14918_v24 = vld [vmem:[#allocation14 + $0x98] sm:$0xff]   ;;  %v14919_v25 = vld [vmem:[#allocation14 + $0x60] sm:$0xff]  }
 0x2f5   :  { %v14920_v26 = vld [vmem:[#allocation14 + $0xe0] sm:$0xff]  }
 0x2f7   :  { %3516 = vmatpush1.bf16.msra.mxu0 %v14891_v28  ;;  %3735 = vmatpush1.bf16.msra.mxu1 %v14894_v31  ;;  %v375_v28 = vpack.c.bf16 %v345_v17, %v339_v16  ;;  %v14921_v31 = vld [vmem:[#allocation14 + $0x20] sm:$0xff]  }
 0x2f8   :  { %3517 = vmatprep.subr.bf16.mxu0 %v14899_v32  ;;  %3736 = vmatprep.subr.bf16.mxu1 %v14902_v34  ;;  %v14922_v32 = vld [vmem:[#allocation14 + $0xa0] sm:$0xff]   ;;  %v382_v34 = vpack.c.bf16 %v358_v21, %v352_v18 }
 0x2fb   :  { %3518 = vmatpush1.bf16.msra.mxu0 %v14897_v35  ;;  %3737 = vmatpush1.bf16.msra.mxu1 %v14900_v36  ;;  %v14923_v35 = vld [vmem:[#allocation14 + $0x68] sm:$0xff]  }
 0x2fc   :  { %13457 = vmatprep.subr.bf16.mxu0 %v14903_v45  ;;  %13497 = vmatprep.subr.bf16.mxu1 %v14904_v47  ;;  %v14924_v36 = vld [vmem:[#allocation14 + $0xe8] sm:$0xff]   ;;  %v381_v45 = vpack.c.bf16 %v357_v41, %v351_v38  ;;  %v14927_v47 = vld [vmem:[#allocation14 + $0x70] sm:$0xff]  }
 0x2fe   :  { %3520 = vmatmul.mubr.bf16.vlgmr.msra.gmra.mrb[0].mxu0 %v363_v48  ;;  %3739 = vmatmul.mubr.bf16.vlgmr.msra.gmra.mrb[0].mxu1 %v363_v48  ;;  %v14928_v48 = vld [vmem:[#allocation14 + $0xf0] sm:$0xff]  }
 0x2ff   :  { %3529 = vmatprep.mubr.bf16.mxu0 %v370_v53  ;;  %3748 = vmatprep.mubr.bf16.mxu1 %v370_v53  ;;  %v14931_v53 = vld [vmem:[#allocation14 + $0x78] sm:$0xff]  }
 0x300   :  { %13458 = vmatpush3.bf16.msra.mxu0 %v14905_v51  ;;  %13498 = vmatpush3.bf16.msra.mxu1 %v14906_v52  ;;  %v14929_v51 = vld [vmem:[#allocation14 + $0x30] sm:$0xff]  }
 0x301   :  { %13459 = vmatprep.subr.bf16.mxu0 %v14907_v55  ;;  %13499 = vmatprep.subr.bf16.mxu1 %v14908_v57  ;;  %v14930_v52 = vld [vmem:[#allocation14 + $0xb0] sm:$0xff]   ;;  %v14932_v55 = vld [vmem:[#allocation14 + $0xf8] sm:$0xff]  }
 0x302   :  { %v14933_v57 = vld [vmem:[#allocation14 + $0x38] sm:$0xff]  }
 0x304   :  { %13460 = vmatpush3.bf16.msra.mxu0 %v14909_v1  ;;  %13500 = vmatpush3.bf16.msra.mxu1 %v14910_v2  ;;  %v3782_v1 = vshrl.u32 %v3781_v0, 7 }
 0x305   :  { %13461 = vmatprep.subr.bf16.mxu0 %v14911_v3  ;;  %13501 = vmatprep.subr.bf16.mxu1 %v14912_v5  ;;  %v3779_v5 = vld [vmem:[#allocation13] sm:$0xf] }
 0x306   :  { %3530 = vmatmul.mubr.bf16.gmra.mrb[4].mxu0 %v369_v6  ;;  %3749 = vmatmul.mubr.bf16.gmra.mrb[4].mxu1 %v369_v6  ;;  %v17141_v2 = vsub.s32 0, %v3782_v1  ;;  %v17143_v3 = vsub.s32 2, %v3782_v1  ;;  %v17145_v6 = vsub.s32 1, %v3782_v1 }
 0x307   :  { %3539 = vmatprep.mubr.bf16.mxu0 %v376_v11  ;;  %3758 = vmatprep.mubr.bf16.mxu1 %v376_v11 }
 0x308   :  { %13462 = vmatpush3.bf16.msra.mxu0 %v14913_v8  ;;  %13502 = vmatpush3.bf16.msra.mxu1 %v14914_v10  ;;  %17910 = vst [vmem:[#allocation63_spill] sm:$0xff] %v17141_v2  ;;  %17911 = vst [vmem:[#allocation64_spill] sm:$0xff] %v17143_v3  ;;  %v17147_v8 = vsub.s32 3, %v3782_v1  ;;  %v17150_v10 = vrot.slane %v3779_v5, %v17141_v2  ;;  %v17153_v11 = vrot.slane %v3779_v5, %v17143_v3  ;;  %v14935_v1 = vld [vmem:[#allocation17] ss:$16 sps:$4 sm:$0xff]  }
 0x309   :  { %13463 = vmatprep.subr.bf16.mxu0 %v14915_v13  ;;  %13503 = vmatprep.subr.bf16.mxu1 %v14916_v14  ;;  %17912 = vst [vmem:[#allocation65_spill] sm:$0xff] %v17145_v6  ;;  %v17156_v13 = vrot.slane %v3779_v5, %v17145_v6 }
 0x30a   :  { %17913 = vst [vmem:[#allocation66_spill] sm:$0xff] %v17147_v8  ;;  %v17159_v14 = vrot.slane %v3779_v5, %v17147_v8  ;;  %v14938_v5 = vld [vmem:[#allocation17 + $0x8] ss:$16 sps:$4 sm:$0xff]  }
 0x30c   :  { %13464 = vmatpush3.bf16.msra.mxu0 %v14917_v22  ;;  %13504 = vmatpush3.bf16.msra.mxu1 %v14918_v24 }
 0x30d   :  { %13465 = vmatprep.subr.bf16.mxu0 %v14919_v25  ;;  %13505 = vmatprep.subr.bf16.mxu1 %v14920_v26 }
 0x30e   :  { %3540 = vmatmul.mubr.bf16.gmra.mrb[8].mxu0 %v375_v28  ;;  %3759 = vmatmul.mubr.bf16.gmra.mrb[8].mxu1 %v375_v28 }
 0x30f   :  { %3549 = vmatprep.mubr.bf16.mxu0 %v382_v34  ;;  %3768 = vmatprep.mubr.bf16.mxu1 %v382_v34 }
 0x310   :  { %13466 = vmatpush3.bf16.msra.mxu0 %v14921_v31  ;;  %13506 = vmatpush3.bf16.msra.mxu1 %v14922_v32 }
 0x311   :  { %13467 = vmatprep.subr.bf16.mxu0 %v14923_v35  ;;  %13507 = vmatprep.subr.bf16.mxu1 %v14924_v36 }
 0x314   :  { %13468 = vmatpush3.bf16.msra.mxu0 %v14925_v42  ;;  %13508 = vmatpush3.bf16.msra.mxu1 %v14926_v43 }
 0x315   :  { %13469 = vmatprep.subr.bf16.mxu0 %v14927_v47  ;;  %13509 = vmatprep.subr.bf16.mxu1 %v14928_v48 }
 0x316   :  { %3550 = vmatmul.mubr.bf16.gmra.mrb[12].mxu0 %v381_v45  ;;  %3769 = vmatmul.mubr.bf16.gmra.mrb[12].mxu1 %v381_v45 }
 0x318   :  { %13470 = vmatpush3.bf16.msra.mxu0 %v14929_v51  ;;  %13510 = vmatpush3.bf16.msra.mxu1 %v14930_v52 }
 0x319   :  { %13471 = vmatprep.subr.bf16.mxu0 %v14931_v53  ;;  %13511 = vmatprep.subr.bf16.mxu1 %v14932_v55 }
 0x31c   :  { %13472 = vmatpush3.bf16.msra.mxu0 %v14933_v57  ;;  %13512 = vmatpush3.bf16.msra.mxu1 %v14934_v58 }
 0x31d   :  { %5626 = vmatprep.subr.bf16.mxu0 %v14937_v61  ;;  %5845 = vmatprep.subr.bf16.mxu1 %v14940_v62 }
 0x3d1   :  { %v3521_v16 = vpop.f32.mrb[0].mxu0  ;;  %v3740_v17 = vpop.f32.mrb[0].mxu1 }
 0x3d2   :  { %v3801_v18 = vadd.f32 %v17150_v10, %v3521_v16  ;;  %v3803_v21 = vadd.f32 %v17153_v11, %v3740_v17  ;;  %v3523_v22 = vpop.f32.mrb[1].mxu0  ;;  %v3742_v24 = vpop.f32.mrb[1].mxu1 }
 0x3d3   :  { %v3802_v25 = vadd.f32 %v17156_v13, %v3523_v22  ;;  %v3804_v26 = vadd.f32 %v17159_v14, %v3742_v24  ;;  %v3525_v28 = vpop.f32.mrb[2].mxu0  ;;  %v3744_v31 = vpop.f32.mrb[2].mxu1  ;;  %v14943_v22 = vld [vmem:[#allocation17 + $0x24] ss:$16 sps:$4 sm:$0xff]   ;;  %v14946_v24 = vld [vmem:[#allocation17 + $0x2c] ss:$16 sps:$4 sm:$0xff]  }
 0x3d4   :  { %v3805_v32 = vadd.f32 %v17150_v10, %v3525_v28  ;;  %v3807_v34 = vadd.f32 %v17153_v11, %v3744_v31  ;;  %v3527_v35 = vpop.f32.mrb[3].mxu0  ;;  %v3746_v36 = vpop.f32.mrb[3].mxu1  ;;  %v3833_v38 = vmax.f32 %v3801_v18, 0.0  ;;  %v3835_v43 = vmax.f32 %v3803_v21, 0.0 }
 0x3d5   :  { %v3806_v41 = vadd.f32 %v17156_v13, %v3527_v35  ;;  %v3808_v42 = vadd.f32 %v17159_v14, %v3746_v36  ;;  %v3834_v45 = vmax.f32 %v3802_v25, 0.0  ;;  %v3836_v51 = vmax.f32 %v3804_v26, 0.0 }
 0x3d6   :  { %v3837_v47 = vmax.f32 %v3805_v32, 0.0  ;;  %v3839_v48 = vmax.f32 %v3807_v34, 0.0 }
 0x3d7   :  { %v3838_v52 = vmax.f32 %v3806_v41, 0.0  ;;  %v3840_v53 = vmax.f32 %v3808_v42, 0.0 }
 0x3d8   :  { %v3865_v55 = vpack.c.bf16 %v3837_v47, %v3833_v38  ;;  %v3867_v57 = vpack.c.bf16 %v3839_v48, %v3835_v43  ;;  %v14941_v38 = vld [vmem:[#allocation17 + $0x20] ss:$16 sps:$4 sm:$0xff]   ;;  %v14949_v47 = vld [vmem:[#allocation17 + $0x44] ss:$16 sps:$4 sm:$0xff]  }
 0x3d9   :  { %v3866_v58 = vpack.c.bf16 %v3838_v52, %v3834_v45  ;;  %v3868_v61 = vpack.c.bf16 %v3840_v53, %v3836_v51  ;;  %v3531_v62 = vpop.f32.mrb[4].mxu0  ;;  %v3750_v0 = vpop.f32.mrb[4].mxu1  ;;  %v14944_v45 = vld [vmem:[#allocation17 + $0x28] ss:$16 sps:$4 sm:$0xff]  }
 0x3da   :  { %v3809_v16 = vadd.f32 %v17150_v10, %v3531_v62  ;;  %v3811_v17 = vadd.f32 %v17153_v11, %v3750_v0  ;;  %v3533_v18 = vpop.f32.mrb[5].mxu0  ;;  %v3752_v21 = vpop.f32.mrb[5].mxu1 }
 0x3db   :  { %v3810_v25 = vadd.f32 %v17156_v13, %v3533_v18  ;;  %v3812_v26 = vadd.f32 %v17159_v14, %v3752_v21  ;;  %v3535_v28 = vpop.f32.mrb[6].mxu0  ;;  %v3754_v31 = vpop.f32.mrb[6].mxu1  ;;  %4176 = vmatprep.mubr.bf16.mxu0 %v3866_v58  ;;  %4241 = vmatprep.mubr.bf16.mxu1 %v3868_v61  ;;  %v14952_v58 = vld [vmem:[#allocation17 + $0x4c] ss:$16 sps:$4 sm:$0xff]   ;;  %v14947_v21 = vld [vmem:[#allocation17 + $0x40] ss:$16 sps:$4 sm:$0xff]  }
 0x3dc   :  { %v3813_v32 = vadd.f32 %v17150_v10, %v3535_v28  ;;  %v3815_v34 = vadd.f32 %v17153_v11, %v3754_v31  ;;  %v3537_v35 = vpop.f32.mrb[7].mxu0  ;;  %v3756_v36 = vpop.f32.mrb[7].mxu1  ;;  %4177 = vmatmul.mubr.bf16.vlgmr.msra.gmra.mrb[16].mxu0 %v3865_v55  ;;  %4242 = vmatmul.mubr.bf16.vlgmr.msra.gmra.mrb[16].mxu1 %v3867_v57  ;;  %v3841_v41 = vmax.f32 %v3809_v16, 0.0  ;;  %v3843_v48 = vmax.f32 %v3811_v17, 0.0  ;;  %v14950_v28 = vld [vmem:[#allocation17 + $0x48] ss:$16 sps:$4 sm:$0xff]  }
 0x3dd   :  { %v3814_v42 = vadd.f32 %v17156_v13, %v3537_v35  ;;  %v3816_v43 = vadd.f32 %v17159_v14, %v3756_v36  ;;  %5627 = vmatpush1.bf16.msra.mxu0 %v14935_v1  ;;  %5846 = vmatpush1.bf16.msra.mxu1 %v14938_v5  ;;  %v3842_v51 = vmax.f32 %v3810_v25, 0.0  ;;  %v3844_v61 = vmax.f32 %v3812_v26, 0.0  ;;  %v14955_v26 = vld [vmem:[#allocation17 + $0x64] ss:$16 sps:$4 sm:$0xff]   ;;  %v14958_v31 = vld [vmem:[#allocation17 + $0x6c] ss:$16 sps:$4 sm:$0xff]  }
 0x3de   :  { %v3845_v52 = vmax.f32 %v3813_v32, 0.0  ;;  %v3847_v53 = vmax.f32 %v3815_v34, 0.0  ;;  %5628 = vmatprep.subr.bf16.mxu0 %v14943_v22  ;;  %5847 = vmatprep.subr.bf16.mxu1 %v14946_v24 }
 0x3df   :  { %v3846_v55 = vmax.f32 %v3814_v42, 0.0  ;;  %v3848_v57 = vmax.f32 %v3816_v43, 0.0 }
 0x3e0   :  { %v3869_v62 = vpack.c.bf16 %v3845_v52, %v3841_v41  ;;  %v3871_v0 = vpack.c.bf16 %v3847_v53, %v3843_v48  ;;  %v14956_v52 = vld [vmem:[#allocation17 + $0x68] ss:$16 sps:$4 sm:$0xff]   ;;  %v14961_v53 = vld [vmem:[#allocation17 + $0x84] ss:$16 sps:$4 sm:$0xff]  }
 0x3e1   :  { %v3870_v16 = vpack.c.bf16 %v3846_v55, %v3842_v51  ;;  %v3872_v18 = vpack.c.bf16 %v3848_v57, %v3844_v61  ;;  %5629 = vmatpush1.bf16.msra.mxu0 %v14941_v38  ;;  %5848 = vmatpush1.bf16.msra.mxu1 %v14944_v45  ;;  %v3541_v1 = vpop.f32.mrb[8].mxu0  ;;  %v3760_v5 = vpop.f32.mrb[8].mxu1  ;;  %v14953_v45 = vld [vmem:[#allocation17 + $0x60] ss:$16 sps:$4 sm:$0xff]  }
 0x3e2   :  { %v3817_v17 = vadd.f32 %v17150_v10, %v3541_v1  ;;  %v3819_v25 = vadd.f32 %v17153_v11, %v3760_v5  ;;  %v3543_v22 = vpop.f32.mrb[9].mxu0  ;;  %v3762_v24 = vpop.f32.mrb[9].mxu1  ;;  %5630 = vmatprep.subr.bf16.mxu0 %v14949_v47  ;;  %5849 = vmatprep.subr.bf16.mxu1 %v14952_v58 }
 0x3e3   :  { %v3818_v32 = vadd.f32 %v17156_v13, %v3543_v22  ;;  %v3820_v34 = vadd.f32 %v17159_v14, %v3762_v24  ;;  %v3545_v35 = vpop.f32.mrb[10].mxu0  ;;  %v3764_v36 = vpop.f32.mrb[10].mxu1  ;;  %4184 = vmatprep.mubr.bf16.mxu0 %v3870_v16  ;;  %4249 = vmatprep.mubr.bf16.mxu1 %v3872_v18  ;;  %v14964_v16 = vld [vmem:[#allocation17 + $0x8c] ss:$16 sps:$4 sm:$0xff]   ;;  %v14959_v24 = vld [vmem:[#allocation17 + $0x80] ss:$16 sps:$4 sm:$0xff]  }
 0x3e4   :  { %v3821_v38 = vadd.f32 %v17150_v10, %v3545_v35  ;;  %v3823_v41 = vadd.f32 %v17153_v11, %v3764_v36  ;;  %v3547_v42 = vpop.f32.mrb[11].mxu0  ;;  %v3766_v43 = vpop.f32.mrb[11].mxu1  ;;  %4185 = vmatmul.mubr.bf16.gmra.mrb[20].mxu0 %v3869_v62  ;;  %4250 = vmatmul.mubr.bf16.gmra.mrb[20].mxu1 %v3871_v0  ;;  %v3849_v47 = vmax.f32 %v3817_v17, 0.0  ;;  %v3851_v58 = vmax.f32 %v3819_v25, 0.0  ;;  %v14962_v35 = vld [vmem:[#allocation17 + $0x88] ss:$16 sps:$4 sm:$0xff]  }
 0x3e5   :  { %v3822_v48 = vadd.f32 %v17156_v13, %v3547_v42  ;;  %v3824_v51 = vadd.f32 %v17159_v14, %v3766_v43  ;;  %5631 = vmatpush1.bf16.msra.mxu0 %v14947_v21  ;;  %5850 = vmatpush1.bf16.msra.mxu1 %v14950_v28  ;;  %v3850_v61 = vmax.f32 %v3818_v32, 0.0  ;;  %v3852_v18 = vmax.f32 %v3820_v34, 0.0  ;;  %v14967_v34 = vld [vmem:[#allocation17 + $0xa4] ss:$16 sps:$4 sm:$0xff]   ;;  %v14970_v36 = vld [vmem:[#allocation17 + $0xac] ss:$16 sps:$4 sm:$0xff]  }
 0x3e6   :  { %v3853_v55 = vmax.f32 %v3821_v38, 0.0  ;;  %v3855_v57 = vmax.f32 %v3823_v41, 0.0  ;;  %5632 = vmatprep.subr.bf16.mxu0 %v14955_v26  ;;  %5851 = vmatprep.subr.bf16.mxu1 %v14958_v31 }
 0x3e7   :  { %v3854_v62 = vmax.f32 %v3822_v48, 0.0  ;;  %v3856_v0 = vmax.f32 %v3824_v51, 0.0 }
 0x3e8   :  { %v3873_v1 = vpack.c.bf16 %v3853_v55, %v3849_v47  ;;  %v3875_v5 = vpack.c.bf16 %v3855_v57, %v3851_v58  ;;  %v14973_v57 = vld [vmem:[#allocation17 + $0xc4] ss:$16 sps:$4 sm:$0xff]  }
 0x3e9   :  { %v3874_v17 = vpack.c.bf16 %v3854_v62, %v3850_v61  ;;  %v3876_v22 = vpack.c.bf16 %v3856_v0, %v3852_v18  ;;  %5633 = vmatpush1.bf16.msra.mxu0 %v14953_v45  ;;  %5852 = vmatpush1.bf16.msra.mxu1 %v14956_v52  ;;  %v3551_v21 = vpop.f32.mrb[12].mxu0  ;;  %v3770_v28 = vpop.f32.mrb[12].mxu1  ;;  %v14965_v45 = vld [vmem:[#allocation17 + $0xa0] ss:$16 sps:$4 sm:$0xff]  }
 0x3ea   :  { %v3825_v25 = vadd.f32 %v17150_v10, %v3551_v21  ;;  %v3827_v32 = vadd.f32 %v17153_v11, %v3770_v28  ;;  %v3553_v26 = vpop.f32.mrb[13].mxu0  ;;  %v3772_v31 = vpop.f32.mrb[13].mxu1  ;;  %5634 = vmatprep.subr.bf16.mxu0 %v14961_v53  ;;  %5853 = vmatprep.subr.bf16.mxu1 %v14964_v16  ;;  %v14968_v53 = vld [vmem:[#allocation17 + $0xa8] ss:$16 sps:$4 sm:$0xff]   ;;  %v14976_v16 = vld [vmem:[#allocation17 + $0xcc] ss:$16 sps:$4 sm:$0xff]  }
 0x3eb   :  { %v3826_v38 = vadd.f32 %v17156_v13, %v3553_v26  ;;  %v3828_v41 = vadd.f32 %v17159_v14, %v3772_v31  ;;  %v3555_v42 = vpop.f32.mrb[14].mxu0  ;;  %v3774_v43 = vpop.f32.mrb[14].mxu1  ;;  %4192 = vmatprep.mubr.bf16.mxu0 %v3874_v17  ;;  %4257 = vmatprep.mubr.bf16.mxu1 %v3876_v22  ;;  %v534_v17 = vld [vmem:[#allocation8 + $0x38] sm:$0xff]  ;;  %v14977_v31 = vld [vmem:[#allocation17 + $0xe0] ss:$16 sps:$4 sm:$0xff]  }
 0x3ec   :  { %v3829_v47 = vadd.f32 %v17150_v10, %v3555_v42  ;;  %v3831_v48 = vadd.f32 %v17153_v11, %v3774_v43  ;;  %v3557_v51 = vpop.f32.mrb[15].mxu0  ;;  %v3776_v52 = vpop.f32.mrb[15].mxu1  ;;  %4193 = vmatmul.mubr.bf16.gmra.mrb[24].mxu0 %v3873_v1  ;;  %4258 = vmatmul.mubr.bf16.gmra.mrb[24].mxu1 %v3875_v5  ;;  %v3857_v58 = vmax.f32 %v3825_v25, 0.0  ;;  %v3859_v18 = vmax.f32 %v3827_v32, 0.0  ;;  %v528_v11 = vld [vmem:[#allocation8 + $0x8] sm:$0xff] }
 0x3ed   :  { %v3830_v61 = vadd.f32 %v17156_v13, %v3557_v51  ;;  %v3832_v55 = vadd.f32 %v17159_v14, %v3776_v52  ;;  %5635 = vmatpush1.bf16.msra.mxu0 %v14959_v24  ;;  %5854 = vmatpush1.bf16.msra.mxu1 %v14962_v35  ;;  %v3858_v62 = vmax.f32 %v3826_v38, 0.0  ;;  %v3860_v1 = vmax.f32 %v3828_v41, 0.0  ;;  %v14971_v14 = vld [vmem:[#allocation17 + $0xc0] ss:$16 sps:$4 sm:$0xff]   ;;  %v14974_v24 = vld [vmem:[#allocation17 + $0xc8] ss:$16 sps:$4 sm:$0xff]  }
 0x3ee   :  { %v3861_v0 = vmax.f32 %v3829_v47, 0.0  ;;  %v3863_v10 = vmax.f32 %v3831_v48, 0.0  ;;  %5636 = vmatprep.subr.bf16.mxu0 %v14967_v34  ;;  %5855 = vmatprep.subr.bf16.mxu1 %v14970_v36  ;;  %v14979_v35 = vld [vmem:[#allocation17 + $0xe4] ss:$16 sps:$4 sm:$0xff]   ;;  %v14982_v32 = vld [vmem:[#allocation17 + $0xec] ss:$16 sps:$4 sm:$0xff]   ;;  %v17193_v26 = vpack.c.bf16 %v534_v17, %v528_v11 }
 0x3ef   :  { %v3862_v5 = vmax.f32 %v3830_v61, 0.0  ;;  %v3864_v22 = vmax.f32 %v3832_v55, 0.0  ;;  %v14980_v34 = vld [vmem:[#allocation17 + $0xe8] ss:$16 sps:$4 sm:$0xff]   ;;  %v14985_v36 = vld [vmem:[#allocation17 + $0x104] ss:$16 sps:$4 sm:$0xff]  }
 0x3f0   :  { %v3877_v21 = vpack.c.bf16 %v3861_v0, %v3857_v58  ;;  %v3879_v28 = vpack.c.bf16 %v3863_v10, %v3859_v18  ;;  %v14988_v38 = vld [vmem:[#allocation17 + $0x10c] ss:$16 sps:$4 sm:$0xff]   ;;  %v14983_v41 = vld [vmem:[#allocation17 + $0x100] ss:$16 sps:$4 sm:$0xff]   ;;  %v14986_v42 = vld [vmem:[#allocation17 + $0x108] ss:$16 sps:$4 sm:$0xff]  }
 0x3f1   :  { %v3878_v13 = vpack.c.bf16 %v3862_v5, %v3858_v62  ;;  %v3880_v25 = vpack.c.bf16 %v3864_v22, %v3860_v1  ;;  %5637 = vmatpush1.bf16.msra.mxu0 %v14965_v45  ;;  %5856 = vmatpush1.bf16.msra.mxu1 %v14968_v53  ;;  %v14991_v43 = vld [vmem:[#allocation17 + $0x124] ss:$16 sps:$4 sm:$0xff]   ;;  %v14994_v45 = vld [vmem:[#allocation17 + $0x12c] ss:$16 sps:$4 sm:$0xff]   ;;  %v14989_v47 = vld [vmem:[#allocation17 + $0x120] ss:$16 sps:$4 sm:$0xff]  }
 0x3f2   :  { %5638 = vmatprep.subr.bf16.mxu0 %v14973_v57  ;;  %5857 = vmatprep.subr.bf16.mxu1 %v14976_v16  ;;  %v14992_v48 = vld [vmem:[#allocation17 + $0x128] ss:$16 sps:$4 sm:$0xff]   ;;  %v14997_v51 = vld [vmem:[#allocation17 + $0x144] ss:$16 sps:$4 sm:$0xff]   ;;  %v15000_v52 = vld [vmem:[#allocation17 + $0x14c] ss:$16 sps:$4 sm:$0xff]  }
 0x3f3   :  { %4200 = vmatprep.mubr.bf16.mxu0 %v3878_v13  ;;  %4265 = vmatprep.mubr.bf16.mxu1 %v3880_v25  ;;  %v14995_v53 = vld [vmem:[#allocation17 + $0x140] ss:$16 sps:$4 sm:$0xff]   ;;  %v14998_v58 = vld [vmem:[#allocation17 + $0x148] ss:$16 sps:$4 sm:$0xff]   ;;  %v15003_v61 = vld [vmem:[#allocation17 + $0x164] ss:$16 sps:$4 sm:$0xff]  }
 0x3f4   :  { %4201 = vmatmul.mubr.bf16.gmra.mrb[28].mxu0 %v3877_v21  ;;  %4266 = vmatmul.mubr.bf16.gmra.mrb[28].mxu1 %v3879_v28  ;;  %v15006_v55 = vld [vmem:[#allocation17 + $0x16c] ss:$16 sps:$4 sm:$0xff]   ;;  %v15001_v57 = vld [vmem:[#allocation17 + $0x160] ss:$16 sps:$4 sm:$0xff]   ;;  %v15004_v16 = vld [vmem:[#allocation17 + $0x168] ss:$16 sps:$4 sm:$0xff]  }
 0x3f5   :  { %5639 = vmatpush1.bf16.msra.mxu0 %v14971_v14  ;;  %5858 = vmatpush1.bf16.msra.mxu1 %v14974_v24  ;;  %v15009_v18 = vld [vmem:[#allocation17 + $0x184] ss:$16 sps:$4 sm:$0xff]   ;;  %v15012_v62 = vld [vmem:[#allocation17 + $0x18c] ss:$16 sps:$4 sm:$0xff]   ;;  %v15007_v0 = vld [vmem:[#allocation17 + $0x180] ss:$16 sps:$4 sm:$0xff]  }
 0x3f6   :  { %5640 = vmatprep.subr.bf16.mxu0 %v14979_v35  ;;  %5859 = vmatprep.subr.bf16.mxu1 %v14982_v32  ;;  %v15010_v10 = vld [vmem:[#allocation17 + $0x188] ss:$16 sps:$4 sm:$0xff]   ;;  %v15015_v11 = vld [vmem:[#allocation17 + $0x1a4] ss:$16 sps:$4 sm:$0xff]   ;;  %v15018_v17 = vld [vmem:[#allocation17 + $0x1ac] ss:$16 sps:$4 sm:$0xff]  }
 0x3f7   :  { %5658 = vmatprep.mubr.bf16.mxu0 %v17193_v26  ;;  %5877 = vmatprep.mubr.bf16.mxu1 %v17193_v26  ;;  %v15013_v1 = vld [vmem:[#allocation17 + $0x1a0] ss:$16 sps:$4 sm:$0xff]   ;;  %v15016_v5 = vld [vmem:[#allocation17 + $0x1a8] ss:$16 sps:$4 sm:$0xff]   ;;  %v15021_v22 = vld [vmem:[#allocation17 + $0x1c4] ss:$16 sps:$4 sm:$0xff]  }
 0x3f8   :  { %v15024_v21 = vld [vmem:[#allocation17 + $0x1cc] ss:$16 sps:$4 sm:$0xff]   ;;  %v15019_v28 = vld [vmem:[#allocation17 + $0x1c0] ss:$16 sps:$4 sm:$0xff]   ;;  %v15022_v13 = vld [vmem:[#allocation17 + $0x1c8] ss:$16 sps:$4 sm:$0xff]  }
 0x3f9   :  { %5641 = vmatpush1.bf16.msra.mxu0 %v14977_v31  ;;  %5860 = vmatpush1.bf16.msra.mxu1 %v14980_v34  ;;  %v15027_v25 = vld [vmem:[#allocation17 + $0x1e4] ss:$16 sps:$4 sm:$0xff]   ;;  %v15030_v14 = vld [vmem:[#allocation17 + $0x1ec] ss:$16 sps:$4 sm:$0xff]   ;;  %v15025_v24 = vld [vmem:[#allocation17 + $0x1e0] ss:$16 sps:$4 sm:$0xff]  }
 0x3fa   :  { %5642 = vmatprep.subr.bf16.mxu0 %v14985_v36  ;;  %5861 = vmatprep.subr.bf16.mxu1 %v14988_v38  ;;  %v15028_v35 = vld [vmem:[#allocation17 + $0x1e8] ss:$16 sps:$4 sm:$0xff]   ;;  %v15033_v32 = vld [vmem:[#allocation17 + $0x204] ss:$16 sps:$4 sm:$0xff]   ;;  %v15036_v31 = vld [vmem:[#allocation17 + $0x20c] ss:$16 sps:$4 sm:$0xff]  }
 0x3fb   :  { %v527_v34 = vld [vmem:[#allocation8] sm:$0xff]  ;;  %v533_v36 = vld [vmem:[#allocation8 + $0x30] sm:$0xff]  ;;  %v540_v38 = vld [vmem:[#allocation8 + $0x68] sm:$0xff] }
 0x3fd   :  { %5643 = vmatpush1.bf16.msra.mxu0 %v14983_v41  ;;  %5862 = vmatpush1.bf16.msra.mxu1 %v14986_v42  ;;  %v546_v41 = vld [vmem:[#allocation8 + $0x98] sm:$0xff]  ;;  %v17197_v42 = vpack.c.bf16 %v533_v36, %v527_v34  ;;  %v15066_v36 = vld [vmem:[#allocation17 + $0x2ac] ss:$16 sps:$4 sm:$0xff]  }
 0x3fe   :  { %5644 = vmatprep.subr.bf16.mxu0 %v14991_v43  ;;  %5863 = vmatprep.subr.bf16.mxu1 %v14994_v45  ;;  %v15031_v43 = vld [vmem:[#allocation17 + $0x200] ss:$16 sps:$4 sm:$0xff]   ;;  %v15034_v45 = vld [vmem:[#allocation17 + $0x208] ss:$16 sps:$4 sm:$0xff]   ;;  %v15063_v34 = vld [vmem:[#allocation17 + $0x2a4] ss:$16 sps:$4 sm:$0xff]  }
 0x401   :  { %5645 = vmatpush1.bf16.msra.mxu0 %v14989_v47  ;;  %5864 = vmatpush1.bf16.msra.mxu1 %v14992_v48  ;;  %v15039_v47 = vld [vmem:[#allocation17 + $0x224] ss:$16 sps:$4 sm:$0xff]   ;;  %v15042_v48 = vld [vmem:[#allocation17 + $0x22c] ss:$16 sps:$4 sm:$0xff]  }
 0x402   :  { %5646 = vmatprep.subr.bf16.mxu0 %v14997_v51  ;;  %5865 = vmatprep.subr.bf16.mxu1 %v15000_v52  ;;  %v15037_v51 = vld [vmem:[#allocation17 + $0x220] ss:$16 sps:$4 sm:$0xff]   ;;  %v15040_v52 = vld [vmem:[#allocation17 + $0x228] ss:$16 sps:$4 sm:$0xff]  }
 0x405   :  { %5647 = vmatpush1.bf16.msra.mxu0 %v14995_v53  ;;  %5866 = vmatpush1.bf16.msra.mxu1 %v14998_v58  ;;  %v17199_v53 = vpack.c.bf16 %v546_v41, %v540_v38  ;;  %v15045_v58 = vld [vmem:[#allocation17 + $0x244] ss:$16 sps:$4 sm:$0xff]   ;;  %v15061_v38 = vld [vmem:[#allocation17 + $0x2a0] ss:$16 sps:$4 sm:$0xff]   ;;  %v15064_v41 = vld [vmem:[#allocation17 + $0x2a8] ss:$16 sps:$4 sm:$0xff]  }
 0x406   :  { %5648 = vmatprep.subr.bf16.mxu0 %v15003_v61  ;;  %5867 = vmatprep.subr.bf16.mxu1 %v15006_v55  ;;  %v15048_v61 = vld [vmem:[#allocation17 + $0x24c] ss:$16 sps:$4 sm:$0xff]  }
 0x407   :  { %v539_v55 = vld [vmem:[#allocation8 + $0x60] sm:$0xff] }
 0x409   :  { %5649 = vmatpush1.bf16.msra.mxu0 %v15001_v57  ;;  %5868 = vmatpush1.bf16.msra.mxu1 %v15004_v16  ;;  %v545_v57 = vld [vmem:[#allocation8 + $0x90] sm:$0xff]  ;;  %v552_v16 = vld [vmem:[#allocation8 + $0xc8] sm:$0xff] }
 0x40a   :  { %5650 = vmatprep.subr.bf16.mxu0 %v15009_v18  ;;  %5869 = vmatprep.subr.bf16.mxu1 %v15012_v62  ;;  %v558_v18 = vld [vmem:[#allocation8 + $0xf8] sm:$0xff]  ;;  %v17205_v62 = vpack.c.bf16 %v545_v57, %v539_v55  ;;  %v536_v55 = vld [vmem:[#allocation8 + $0x48] sm:$0xff] }
 0x40d   :  { %5651 = vmatpush1.bf16.msra.mxu0 %v15007_v0  ;;  %5870 = vmatpush1.bf16.msra.mxu1 %v15010_v10  ;;  %v15043_v0 = vld [vmem:[#allocation17 + $0x240] ss:$16 sps:$4 sm:$0xff]   ;;  %v15046_v10 = vld [vmem:[#allocation17 + $0x248] ss:$16 sps:$4 sm:$0xff]  }
 0x40e   :  { %5652 = vmatprep.subr.bf16.mxu0 %v15015_v11  ;;  %5871 = vmatprep.subr.bf16.mxu1 %v15018_v17  ;;  %v15051_v11 = vld [vmem:[#allocation17 + $0x264] ss:$16 sps:$4 sm:$0xff]   ;;  %v15054_v17 = vld [vmem:[#allocation17 + $0x26c] ss:$16 sps:$4 sm:$0xff]  }
 0x411   :  { %5653 = vmatpush1.bf16.msra.mxu0 %v15013_v1  ;;  %5872 = vmatpush1.bf16.msra.mxu1 %v15016_v5  ;;  %v15049_v1 = vld [vmem:[#allocation17 + $0x260] ss:$16 sps:$4 sm:$0xff]   ;;  %v15052_v5 = vld [vmem:[#allocation17 + $0x268] ss:$16 sps:$4 sm:$0xff]  }
 0x412   :  { %5654 = vmatprep.subr.bf16.mxu0 %v15021_v22  ;;  %5873 = vmatprep.subr.bf16.mxu1 %v15024_v21  ;;  %v17207_v22 = vpack.c.bf16 %v558_v18, %v552_v16  ;;  %v15057_v21 = vld [vmem:[#allocation17 + $0x284] ss:$16 sps:$4 sm:$0xff]   ;;  %v15078_v18 = vld [vmem:[#allocation17 + $0x2ec] ss:$16 sps:$4 sm:$0xff]  }
 0x413   :  { %v15075_v16 = vld [vmem:[#allocation17 + $0x2e4] ss:$16 sps:$4 sm:$0xff]  }
 0x415   :  { %5655 = vmatpush1.bf16.msra.mxu0 %v15019_v28  ;;  %5874 = vmatpush1.bf16.msra.mxu1 %v15022_v13  ;;  %v15060_v28 = vld [vmem:[#allocation17 + $0x28c] ss:$16 sps:$4 sm:$0xff]  }
 0x416   :  { %5656 = vmatprep.subr.bf16.mxu0 %v15027_v25  ;;  %5875 = vmatprep.subr.bf16.mxu1 %v15030_v14  ;;  %v551_v13 = vld [vmem:[#allocation8 + $0xc0] sm:$0xff]  ;;  %v557_v25 = vld [vmem:[#allocation8 + $0xf0] sm:$0xff]  ;;  %v564_v14 = vld [vmem:[#allocation8 + $0x128] sm:$0xff] }
 0x419   :  { %5657 = vmatpush1.bf16.msra.mxu0 %v15025_v24  ;;  %5876 = vmatpush1.bf16.msra.mxu1 %v15028_v35  ;;  %v570_v24 = vld [vmem:[#allocation8 + $0x158] sm:$0xff]  ;;  %v17213_v35 = vpack.c.bf16 %v557_v25, %v551_v13  ;;  %v15090_v13 = vld [vmem:[#allocation17 + $0x32c] ss:$16 sps:$4 sm:$0xff]   ;;  %v15085_v25 = vld [vmem:[#allocation17 + $0x320] ss:$16 sps:$4 sm:$0xff]  }
 0x41a   :  { %5699 = vmatprep.subr.bf16.mxu0 %v15033_v32  ;;  %5918 = vmatprep.subr.bf16.mxu1 %v15036_v31  ;;  %v15055_v32 = vld [vmem:[#allocation17 + $0x280] ss:$16 sps:$4 sm:$0xff]   ;;  %v15058_v31 = vld [vmem:[#allocation17 + $0x288] ss:$16 sps:$4 sm:$0xff]  }
 0x41c   :  { %5659 = vmatmul.mubr.bf16.vlgmr.msra.gmra.mrb[32].mxu0 %v17197_v42  ;;  %5878 = vmatmul.mubr.bf16.vlgmr.msra.gmra.mrb[32].mxu1 %v17197_v42 }
 0x41d   :  { %5700 = vmatpush1.bf16.msra.mxu0 %v15031_v43  ;;  %5919 = vmatpush1.bf16.msra.mxu1 %v15034_v45  ;;  %v17215_v43 = vpack.c.bf16 %v570_v24, %v564_v14  ;;  %v563_v45 = vld [vmem:[#allocation8 + $0x120] sm:$0xff]  ;;  %v15088_v14 = vld [vmem:[#allocation17 + $0x328] ss:$16 sps:$4 sm:$0xff]   ;;  %v15093_v24 = vld [vmem:[#allocation17 + $0x344] ss:$16 sps:$4 sm:$0xff]  }
 0x41e   :  { %5701 = vmatprep.subr.bf16.mxu0 %v15039_v47  ;;  %5920 = vmatprep.subr.bf16.mxu1 %v15042_v48  ;;  %v569_v47 = vld [vmem:[#allocation8 + $0x150] sm:$0xff]  ;;  %v15069_v48 = vld [vmem:[#allocation17 + $0x2c4] ss:$16 sps:$4 sm:$0xff]  }
 0x41f   :  { %5668 = vmatprep.mubr.bf16.mxu0 %v17199_v53  ;;  %5887 = vmatprep.mubr.bf16.mxu1 %v17199_v53  ;;  %v17221_v57 = vpack.c.bf16 %v569_v47, %v563_v45  ;;  %v15100_v45 = vld [vmem:[#allocation17 + $0x368] ss:$16 sps:$4 sm:$0xff]   ;;  %v15105_v47 = vld [vmem:[#allocation17 + $0x384] ss:$16 sps:$4 sm:$0xff]  }
 0x421   :  { %5702 = vmatpush1.bf16.msra.mxu0 %v15037_v51  ;;  %5921 = vmatpush1.bf16.msra.mxu1 %v15040_v52  ;;  %v15072_v51 = vld [vmem:[#allocation17 + $0x2cc] ss:$16 sps:$4 sm:$0xff]   ;;  %v15067_v52 = vld [vmem:[#allocation17 + $0x2c0] ss:$16 sps:$4 sm:$0xff]  }
 0x422   :  { %5703 = vmatprep.subr.bf16.mxu0 %v15045_v58  ;;  %5922 = vmatprep.subr.bf16.mxu1 %v15048_v61  ;;  %v15070_v58 = vld [vmem:[#allocation17 + $0x2c8] ss:$16 sps:$4 sm:$0xff]  }
 0x423   :  { %v530_v61 = vld [vmem:[#allocation8 + $0x18] sm:$0xff] }
 0x424   :  { %5669 = vmatmul.mubr.bf16.gmra.mrb[36].mxu0 %v17205_v62  ;;  %5888 = vmatmul.mubr.bf16.gmra.mrb[36].mxu1 %v17205_v62 }
 0x425   :  { %5704 = vmatpush1.bf16.msra.mxu0 %v15043_v0  ;;  %5923 = vmatpush1.bf16.msra.mxu1 %v15046_v10  ;;  %v15073_v0 = vld [vmem:[#allocation17 + $0x2e0] ss:$16 sps:$4 sm:$0xff]   ;;  %v15076_v10 = vld [vmem:[#allocation17 + $0x2e8] ss:$16 sps:$4 sm:$0xff]  }
 0x426   :  { %5705 = vmatprep.subr.bf16.mxu0 %v15051_v11  ;;  %5924 = vmatprep.subr.bf16.mxu1 %v15054_v17  ;;  %v17223_v11 = vpack.c.bf16 %v536_v55, %v530_v61  ;;  %v15081_v17 = vld [vmem:[#allocation17 + $0x304] ss:$16 sps:$4 sm:$0xff]   ;;  %v15114_v61 = vld [vmem:[#allocation17 + $0x3ac] ss:$16 sps:$4 sm:$0xff]   ;;  %v15109_v55 = vld [vmem:[#allocation17 + $0x3a0] ss:$16 sps:$4 sm:$0xff]  }
 0x427   :  { %5678 = vmatprep.mubr.bf16.mxu0 %v17207_v22  ;;  %5897 = vmatprep.mubr.bf16.mxu1 %v17207_v22 }
 0x429   :  { %5706 = vmatpush1.bf16.msra.mxu0 %v15049_v1  ;;  %5925 = vmatpush1.bf16.msra.mxu1 %v15052_v5  ;;  %v15084_v1 = vld [vmem:[#allocation17 + $0x30c] ss:$16 sps:$4 sm:$0xff]   ;;  %v15079_v5 = vld [vmem:[#allocation17 + $0x300] ss:$16 sps:$4 sm:$0xff]  }
 0x42a   :  { %5707 = vmatprep.subr.bf16.mxu0 %v15057_v21  ;;  %5926 = vmatprep.subr.bf16.mxu1 %v15060_v28  ;;  %v15082_v21 = vld [vmem:[#allocation17 + $0x308] ss:$16 sps:$4 sm:$0xff]   ;;  %v15087_v28 = vld [vmem:[#allocation17 + $0x324] ss:$16 sps:$4 sm:$0xff]  }
 0x42c   :  { %5679 = vmatmul.mubr.bf16.gmra.mrb[40].mxu0 %v17213_v35  ;;  %5898 = vmatmul.mubr.bf16.gmra.mrb[40].mxu1 %v17213_v35 }
 0x42d   :  { %5708 = vmatpush1.bf16.msra.mxu0 %v15055_v32  ;;  %5927 = vmatpush1.bf16.msra.mxu1 %v15058_v31  ;;  %v15096_v32 = vld [vmem:[#allocation17 + $0x34c] ss:$16 sps:$4 sm:$0xff]   ;;  %v15091_v31 = vld [vmem:[#allocation17 + $0x340] ss:$16 sps:$4 sm:$0xff]  }
 0x42e   :  { %5709 = vmatprep.subr.bf16.mxu0 %v15063_v34  ;;  %5928 = vmatprep.subr.bf16.mxu1 %v15066_v36  ;;  %v15094_v34 = vld [vmem:[#allocation17 + $0x348] ss:$16 sps:$4 sm:$0xff]   ;;  %v15099_v36 = vld [vmem:[#allocation17 + $0x364] ss:$16 sps:$4 sm:$0xff]  }
 0x42f   :  { %5688 = vmatprep.mubr.bf16.mxu0 %v17215_v43  ;;  %5907 = vmatprep.mubr.bf16.mxu1 %v17215_v43 }
 0x431   :  { %5710 = vmatpush1.bf16.msra.mxu0 %v15061_v38  ;;  %5929 = vmatpush1.bf16.msra.mxu1 %v15064_v41  ;;  %v15102_v38 = vld [vmem:[#allocation17 + $0x36c] ss:$16 sps:$4 sm:$0xff]   ;;  %v15097_v41 = vld [vmem:[#allocation17 + $0x360] ss:$16 sps:$4 sm:$0xff]  }
 0x432   :  { %5711 = vmatprep.subr.bf16.mxu0 %v15069_v48  ;;  %5930 = vmatprep.subr.bf16.mxu1 %v15072_v51  ;;  %v15108_v48 = vld [vmem:[#allocation17 + $0x38c] ss:$16 sps:$4 sm:$0xff]   ;;  %v15103_v51 = vld [vmem:[#allocation17 + $0x380] ss:$16 sps:$4 sm:$0xff]  }
 0x434   :  { %5689 = vmatmul.mubr.bf16.gmra.mrb[44].mxu0 %v17221_v57  ;;  %5908 = vmatmul.mubr.bf16.gmra.mrb[44].mxu1 %v17221_v57 }
 0x435   :  { %5712 = vmatpush1.bf16.msra.mxu0 %v15067_v52  ;;  %5931 = vmatpush1.bf16.msra.mxu1 %v15070_v58  ;;  %v15106_v52 = vld [vmem:[#allocation17 + $0x388] ss:$16 sps:$4 sm:$0xff]   ;;  %v15111_v58 = vld [vmem:[#allocation17 + $0x3a4] ss:$16 sps:$4 sm:$0xff]  }
 0x436   :  { %5713 = vmatprep.subr.bf16.mxu0 %v15075_v16  ;;  %5932 = vmatprep.subr.bf16.mxu1 %v15078_v18  ;;  %v15112_v16 = vld [vmem:[#allocation17 + $0x3a8] ss:$16 sps:$4 sm:$0xff]   ;;  %v15117_v18 = vld [vmem:[#allocation17 + $0x3c4] ss:$16 sps:$4 sm:$0xff]  }
 0x437   :  { %5731 = vmatprep.mubr.bf16.mxu0 %v17223_v11  ;;  %5950 = vmatprep.mubr.bf16.mxu1 %v17223_v11 }
 0x439   :  { %5714 = vmatpush1.bf16.msra.mxu0 %v15073_v0  ;;  %5933 = vmatpush1.bf16.msra.mxu1 %v15076_v10  ;;  %v15120_v0 = vld [vmem:[#allocation17 + $0x3cc] ss:$16 sps:$4 sm:$0xff]   ;;  %v15115_v10 = vld [vmem:[#allocation17 + $0x3c0] ss:$16 sps:$4 sm:$0xff]  }
 0x43a   :  { %5715 = vmatprep.subr.bf16.mxu0 %v15081_v17  ;;  %5934 = vmatprep.subr.bf16.mxu1 %v15084_v1  ;;  %v15118_v17 = vld [vmem:[#allocation17 + $0x3c8] ss:$16 sps:$4 sm:$0xff]   ;;  %v15123_v1 = vld [vmem:[#allocation17 + $0x3e4] ss:$16 sps:$4 sm:$0xff]  }
 0x43d   :  { %5716 = vmatpush1.bf16.msra.mxu0 %v15079_v5  ;;  %5935 = vmatpush1.bf16.msra.mxu1 %v15082_v21  ;;  %v15126_v5 = vld [vmem:[#allocation17 + $0x3ec] ss:$16 sps:$4 sm:$0xff]   ;;  %v15121_v21 = vld [vmem:[#allocation17 + $0x3e0] ss:$16 sps:$4 sm:$0xff]  }
 0x43e   :  { %5717 = vmatprep.subr.bf16.mxu0 %v15087_v28  ;;  %5936 = vmatprep.subr.bf16.mxu1 %v15090_v13  ;;  %v15124_v28 = vld [vmem:[#allocation17 + $0x3e8] ss:$16 sps:$4 sm:$0xff]   ;;  %v15129_v13 = vld [vmem:[#allocation17 + $0x404] ss:$16 sps:$4 sm:$0xff]  }
 0x441   :  { %5718 = vmatpush1.bf16.msra.mxu0 %v15085_v25  ;;  %5937 = vmatpush1.bf16.msra.mxu1 %v15088_v14  ;;  %v15132_v25 = vld [vmem:[#allocation17 + $0x40c] ss:$16 sps:$4 sm:$0xff]  }
 0x442   :  { %5719 = vmatprep.subr.bf16.mxu0 %v15093_v24  ;;  %5938 = vmatprep.subr.bf16.mxu1 %v15096_v32  ;;  %v529_v14 = vld [vmem:[#allocation8 + $0x10] sm:$0xff]  ;;  %v535_v24 = vld [vmem:[#allocation8 + $0x40] sm:$0xff]  ;;  %v542_v32 = vld [vmem:[#allocation8 + $0x78] sm:$0xff] }
 0x445   :  { %5720 = vmatpush1.bf16.msra.mxu0 %v15091_v31  ;;  %5939 = vmatpush1.bf16.msra.mxu1 %v15094_v34  ;;  %v548_v31 = vld [vmem:[#allocation8 + $0xa8] sm:$0xff]  ;;  %v17229_v34 = vpack.c.bf16 %v535_v24, %v529_v14  ;;  %v559_v14 = vld [vmem:[#allocation8 + $0x100] sm:$0xff] }
 0x446   :  { %5721 = vmatprep.subr.bf16.mxu0 %v15099_v36  ;;  %5940 = vmatprep.subr.bf16.mxu1 %v15102_v38  ;;  %v15127_v36 = vld [vmem:[#allocation17 + $0x400] ss:$16 sps:$4 sm:$0xff]   ;;  %v15130_v38 = vld [vmem:[#allocation17 + $0x408] ss:$16 sps:$4 sm:$0xff]   ;;  %v15153_v24 = vld [vmem:[#allocation17 + $0x484] ss:$16 sps:$4 sm:$0xff]  }
 0x449   :  { %5722 = vmatpush1.bf16.msra.mxu0 %v15097_v41  ;;  %5941 = vmatpush1.bf16.msra.mxu1 %v15100_v45  ;;  %v15135_v41 = vld [vmem:[#allocation17 + $0x424] ss:$16 sps:$4 sm:$0xff]   ;;  %v15138_v45 = vld [vmem:[#allocation17 + $0x42c] ss:$16 sps:$4 sm:$0xff]  }
 0x44a   :  { %5723 = vmatprep.subr.bf16.mxu0 %v15105_v47  ;;  %5942 = vmatprep.subr.bf16.mxu1 %v15108_v48  ;;  %v15133_v47 = vld [vmem:[#allocation17 + $0x420] ss:$16 sps:$4 sm:$0xff]   ;;  %v15136_v48 = vld [vmem:[#allocation17 + $0x428] ss:$16 sps:$4 sm:$0xff]  }
 0x44d   :  { %5724 = vmatpush1.bf16.msra.mxu0 %v15103_v51  ;;  %5943 = vmatpush1.bf16.msra.mxu1 %v15106_v52  ;;  %v17231_v51 = vpack.c.bf16 %v548_v31, %v542_v32  ;;  %v15141_v52 = vld [vmem:[#allocation17 + $0x444] ss:$16 sps:$4 sm:$0xff]   ;;  %v15156_v32 = vld [vmem:[#allocation17 + $0x48c] ss:$16 sps:$4 sm:$0xff]  }
 0x44e   :  { %5725 = vmatprep.subr.bf16.mxu0 %v15111_v58  ;;  %5944 = vmatprep.subr.bf16.mxu1 %v15114_v61  ;;  %v15144_v58 = vld [vmem:[#allocation17 + $0x44c] ss:$16 sps:$4 sm:$0xff]  }
 0x44f   :  { %v541_v61 = vld [vmem:[#allocation8 + $0x70] sm:$0xff] }
 0x451   :  { %5726 = vmatpush1.bf16.msra.mxu0 %v15109_v55  ;;  %5945 = vmatpush1.bf16.msra.mxu1 %v15112_v16  ;;  %v547_v55 = vld [vmem:[#allocation8 + $0xa0] sm:$0xff]  ;;  %v554_v16 = vld [vmem:[#allocation8 + $0xd8] sm:$0xff] }
 0x452   :  { %5727 = vmatprep.subr.bf16.mxu0 %v15117_v18  ;;  %5946 = vmatprep.subr.bf16.mxu1 %v15120_v0  ;;  %v560_v18 = vld [vmem:[#allocation8 + $0x108] sm:$0xff]  ;;  %v17237_v0 = vpack.c.bf16 %v547_v55, %v541_v61  ;;  %v565_v55 = vld [vmem:[#allocation8 + $0x130] sm:$0xff] }
 0x453   :  { %v15160_v61 = vld [vmem:[#allocation17 + $0x4a8] ss:$16 sps:$4 sm:$0xff]  }
 0x455   :  { %5728 = vmatpush1.bf16.msra.mxu0 %v15115_v10  ;;  %5947 = vmatpush1.bf16.msra.mxu1 %v15118_v17  ;;  %v15139_v10 = vld [vmem:[#allocation17 + $0x440] ss:$16 sps:$4 sm:$0xff]   ;;  %v15142_v17 = vld [vmem:[#allocation17 + $0x448] ss:$16 sps:$4 sm:$0xff]  }
 0x456   :  { %5729 = vmatprep.subr.bf16.mxu0 %v15123_v1  ;;  %5948 = vmatprep.subr.bf16.mxu1 %v15126_v5  ;;  %v15147_v1 = vld [vmem:[#allocation17 + $0x464] ss:$16 sps:$4 sm:$0xff]   ;;  %v15150_v5 = vld [vmem:[#allocation17 + $0x46c] ss:$16 sps:$4 sm:$0xff]  }
 0x459   :  { %5730 = vmatpush1.bf16.msra.mxu0 %v15121_v21  ;;  %5949 = vmatpush1.bf16.msra.mxu1 %v15124_v28  ;;  %v15145_v21 = vld [vmem:[#allocation17 + $0x460] ss:$16 sps:$4 sm:$0xff]   ;;  %v15148_v28 = vld [vmem:[#allocation17 + $0x468] ss:$16 sps:$4 sm:$0xff]  }
 0x45a   :  { %5772 = vmatprep.subr.bf16.mxu0 %v15129_v13  ;;  %5991 = vmatprep.subr.bf16.mxu1 %v15132_v25  ;;  %v17239_v13 = vpack.c.bf16 %v560_v18, %v554_v16  ;;  %v553_v25 = vld [vmem:[#allocation8 + $0xd0] sm:$0xff]  ;;  %v571_v16 = vld [vmem:[#allocation8 + $0x160] sm:$0xff]  ;;  %v15165_v18 = vld [vmem:[#allocation17 + $0x4c4] ss:$16 sps:$4 sm:$0xff]  }
 0x45b   :  { %v17245_v31 = vpack.c.bf16 %v559_v14, %v553_v25  ;;  %v15171_v25 = vld [vmem:[#allocation17 + $0x4e4] ss:$16 sps:$4 sm:$0xff]   ;;  %v15174_v14 = vld [vmem:[#allocation17 + $0x4ec] ss:$16 sps:$4 sm:$0xff]  }
 0x45c   :  { %5732 = vmatmul.mubr.bf16.vlgmr.msra.gmra.mrb[32].mxu0 %v17229_v34  ;;  %5951 = vmatmul.mubr.bf16.vlgmr.msra.gmra.mrb[32].mxu1 %v17229_v34 }
 0x45d   :  { %5773 = vmatpush1.bf16.msra.mxu0 %v15127_v36  ;;  %5992 = vmatpush1.bf16.msra.mxu1 %v15130_v38  ;;  %v566_v36 = vld [vmem:[#allocation8 + $0x138] sm:$0xff]  ;;  %v572_v38 = vld [vmem:[#allocation8 + $0x168] sm:$0xff] }
 0x45e   :  { %5774 = vmatprep.subr.bf16.mxu0 %v15135_v41  ;;  %5993 = vmatprep.subr.bf16.mxu1 %v15138_v45  ;;  %v15151_v41 = vld [vmem:[#allocation17 + $0x480] ss:$16 sps:$4 sm:$0xff]   ;;  %v15154_v45 = vld [vmem:[#allocation17 + $0x488] ss:$16 sps:$4 sm:$0xff]  }
 0x45f   :  { %5741 = vmatprep.mubr.bf16.mxu0 %v17231_v51  ;;  %5960 = vmatprep.mubr.bf16.mxu1 %v17231_v51 }
 0x461   :  { %5775 = vmatpush1.bf16.msra.mxu0 %v15133_v47  ;;  %5994 = vmatpush1.bf16.msra.mxu1 %v15136_v48  ;;  %v15159_v47 = vld [vmem:[#allocation17 + $0x4a4] ss:$16 sps:$4 sm:$0xff]   ;;  %v15162_v48 = vld [vmem:[#allocation17 + $0x4ac] ss:$16 sps:$4 sm:$0xff]  }
 0x462   :  { %5776 = vmatprep.subr.bf16.mxu0 %v15141_v52  ;;  %5995 = vmatprep.subr.bf16.mxu1 %v15144_v58  ;;  %v17247_v52 = vpack.c.bf16 %v572_v38, %v566_v36  ;;  %v15157_v58 = vld [vmem:[#allocation17 + $0x4a0] ss:$16 sps:$4 sm:$0xff]   ;;  %v15172_v36 = vld [vmem:[#allocation17 + $0x4e8] ss:$16 sps:$4 sm:$0xff]   ;;  %v15177_v38 = vld [vmem:[#allocation17 + $0x504] ss:$16 sps:$4 sm:$0xff]  }
 0x464   :  { %5742 = vmatmul.mubr.bf16.gmra.mrb[36].mxu0 %v17237_v0  ;;  %5961 = vmatmul.mubr.bf16.gmra.mrb[36].mxu1 %v17237_v0 }
 0x465   :  { %5777 = vmatpush1.bf16.msra.mxu0 %v15139_v10  ;;  %5996 = vmatpush1.bf16.msra.mxu1 %v15142_v17  ;;  %v15168_v10 = vld [vmem:[#allocation17 + $0x4cc] ss:$16 sps:$4 sm:$0xff]   ;;  %v17253_v17 = vpack.c.bf16 %v571_v16, %v565_v55  ;;  %v15184_v55 = vld [vmem:[#allocation17 + $0x528] ss:$16 sps:$4 sm:$0xff]   ;;  %v15189_v16 = vld [vmem:[#allocation17 + $0x544] ss:$16 sps:$4 sm:$0xff]  }
 0x466   :  { %5778 = vmatprep.subr.bf16.mxu0 %v15147_v1  ;;  %5997 = vmatprep.subr.bf16.mxu1 %v15150_v5  ;;  %v532_v1 = vld [vmem:[#allocation8 + $0x28] sm:$0xff]  ;;  %v538_v5 = vld [vmem:[#allocation8 + $0x58] sm:$0xff] }
 0x467   :  { %5751 = vmatprep.mubr.bf16.mxu0 %v17239_v13  ;;  %5970 = vmatprep.mubr.bf16.mxu1 %v17239_v13 }
 0x469   :  { %5779 = vmatpush1.bf16.msra.mxu0 %v15145_v21  ;;  %5998 = vmatpush1.bf16.msra.mxu1 %v15148_v28  ;;  %v15163_v21 = vld [vmem:[#allocation17 + $0x4c0] ss:$16 sps:$4 sm:$0xff]   ;;  %v15166_v28 = vld [vmem:[#allocation17 + $0x4c8] ss:$16 sps:$4 sm:$0xff]  }
 0x46a   :  { %5780 = vmatprep.subr.bf16.mxu0 %v15153_v24  ;;  %5999 = vmatprep.subr.bf16.mxu1 %v15156_v32  ;;  %v17255_v24 = vpack.c.bf16 %v538_v5, %v532_v1  ;;  %v15169_v32 = vld [vmem:[#allocation17 + $0x4e0] ss:$16 sps:$4 sm:$0xff]   ;;  %v15190_v1 = vld [vmem:[#allocation17 + $0x548] ss:$16 sps:$4 sm:$0xff]   ;;  %v15195_v5 = vld [vmem:[#allocation17 + $0x564] ss:$16 sps:$4 sm:$0xff]  }
 0x46c   :  { %5752 = vmatmul.mubr.bf16.gmra.mrb[40].mxu0 %v17245_v31  ;;  %5971 = vmatmul.mubr.bf16.gmra.mrb[40].mxu1 %v17245_v31 }
 0x46d   :  { %5781 = vmatpush1.bf16.msra.mxu0 %v15151_v41  ;;  %6000 = vmatpush1.bf16.msra.mxu1 %v15154_v45  ;;  %v15180_v41 = vld [vmem:[#allocation17 + $0x50c] ss:$16 sps:$4 sm:$0xff]   ;;  %v15175_v45 = vld [vmem:[#allocation17 + $0x500] ss:$16 sps:$4 sm:$0xff]  }
 0x46e   :  { %5782 = vmatprep.subr.bf16.mxu0 %v15159_v47  ;;  %6001 = vmatprep.subr.bf16.mxu1 %v15162_v48  ;;  %v15178_v47 = vld [vmem:[#allocation17 + $0x508] ss:$16 sps:$4 sm:$0xff]   ;;  %v15183_v48 = vld [vmem:[#allocation17 + $0x524] ss:$16 sps:$4 sm:$0xff]  }
 0x46f   :  { %5761 = vmatprep.mubr.bf16.mxu0 %v17247_v52  ;;  %5980 = vmatprep.mubr.bf16.mxu1 %v17247_v52 }
 0x471   :  { %5783 = vmatpush1.bf16.msra.mxu0 %v15157_v58  ;;  %6002 = vmatpush1.bf16.msra.mxu1 %v15160_v61  ;;  %v15186_v58 = vld [vmem:[#allocation17 + $0x52c] ss:$16 sps:$4 sm:$0xff]   ;;  %v15181_v61 = vld [vmem:[#allocation17 + $0x520] ss:$16 sps:$4 sm:$0xff]  }
 0x472   :  { %5784 = vmatprep.subr.bf16.mxu0 %v15165_v18  ;;  %6003 = vmatprep.subr.bf16.mxu1 %v15168_v10  ;;  %v15192_v18 = vld [vmem:[#allocation17 + $0x54c] ss:$16 sps:$4 sm:$0xff]   ;;  %v15187_v10 = vld [vmem:[#allocation17 + $0x540] ss:$16 sps:$4 sm:$0xff]  }
 0x474   :  { %5762 = vmatmul.mubr.bf16.gmra.mrb[44].mxu0 %v17253_v17  ;;  %5981 = vmatmul.mubr.bf16.gmra.mrb[44].mxu1 %v17253_v17 }
 0x475   :  { %5785 = vmatpush1.bf16.msra.mxu0 %v15163_v21  ;;  %6004 = vmatpush1.bf16.msra.mxu1 %v15166_v28  ;;  %v15198_v21 = vld [vmem:[#allocation17 + $0x56c] ss:$16 sps:$4 sm:$0xff]   ;;  %v15193_v28 = vld [vmem:[#allocation17 + $0x560] ss:$16 sps:$4 sm:$0xff]  }
 0x476   :  { %5786 = vmatprep.subr.bf16.mxu0 %v15171_v25  ;;  %6005 = vmatprep.subr.bf16.mxu1 %v15174_v14  ;;  %v15196_v25 = vld [vmem:[#allocation17 + $0x568] ss:$16 sps:$4 sm:$0xff]   ;;  %v15201_v14 = vld [vmem:[#allocation17 + $0x584] ss:$16 sps:$4 sm:$0xff]  }
 0x477   :  { %5804 = vmatprep.mubr.bf16.mxu0 %v17255_v24  ;;  %6023 = vmatprep.mubr.bf16.mxu1 %v17255_v24 }
 0x479   :  { %5787 = vmatpush1.bf16.msra.mxu0 %v15169_v32  ;;  %6006 = vmatpush1.bf16.msra.mxu1 %v15172_v36  ;;  %v15204_v32 = vld [vmem:[#allocation17 + $0x58c] ss:$16 sps:$4 sm:$0xff]   ;;  %v15199_v36 = vld [vmem:[#allocation17 + $0x580] ss:$16 sps:$4 sm:$0xff]  }
 0x47a   :  { %5788 = vmatprep.subr.bf16.mxu0 %v15177_v38  ;;  %6007 = vmatprep.subr.bf16.mxu1 %v15180_v41  ;;  %v15202_v38 = vld [vmem:[#allocation17 + $0x588] ss:$16 sps:$4 sm:$0xff]   ;;  %v15207_v41 = vld [vmem:[#allocation17 + $0x5a4] ss:$16 sps:$4 sm:$0xff]  }
 0x47d   :  { %5789 = vmatpush1.bf16.msra.mxu0 %v15175_v45  ;;  %6008 = vmatpush1.bf16.msra.mxu1 %v15178_v47  ;;  %v15210_v45 = vld [vmem:[#allocation17 + $0x5ac] ss:$16 sps:$4 sm:$0xff]   ;;  %v15205_v47 = vld [vmem:[#allocation17 + $0x5a0] ss:$16 sps:$4 sm:$0xff]  }
 0x47e   :  { %5790 = vmatprep.subr.bf16.mxu0 %v15183_v48  ;;  %6009 = vmatprep.subr.bf16.mxu1 %v15186_v58  ;;  %v15208_v48 = vld [vmem:[#allocation17 + $0x5a8] ss:$16 sps:$4 sm:$0xff]   ;;  %v15213_v58 = vld [vmem:[#allocation17 + $0x5c4] ss:$16 sps:$4 sm:$0xff]  }
 0x481   :  { %5791 = vmatpush1.bf16.msra.mxu0 %v15181_v61  ;;  %6010 = vmatpush1.bf16.msra.mxu1 %v15184_v55  ;;  %v15216_v61 = vld [vmem:[#allocation17 + $0x5cc] ss:$16 sps:$4 sm:$0xff]   ;;  %v15211_v55 = vld [vmem:[#allocation17 + $0x5c0] ss:$16 sps:$4 sm:$0xff]  }
 0x482   :  { %5792 = vmatprep.subr.bf16.mxu0 %v15189_v16  ;;  %6011 = vmatprep.subr.bf16.mxu1 %v15192_v18  ;;  %v15214_v16 = vld [vmem:[#allocation17 + $0x5c8] ss:$16 sps:$4 sm:$0xff]   ;;  %v15219_v18 = vld [vmem:[#allocation17 + $0x5e4] ss:$16 sps:$4 sm:$0xff]  }
 0x485   :  { %5793 = vmatpush1.bf16.msra.mxu0 %v15187_v10  ;;  %6012 = vmatpush1.bf16.msra.mxu1 %v15190_v1  ;;  %v15222_v10 = vld [vmem:[#allocation17 + $0x5ec] ss:$16 sps:$4 sm:$0xff]   ;;  %v15217_v1 = vld [vmem:[#allocation17 + $0x5e0] ss:$16 sps:$4 sm:$0xff]  }
 0x486   :  { %5794 = vmatprep.subr.bf16.mxu0 %v15195_v5  ;;  %6013 = vmatprep.subr.bf16.mxu1 %v15198_v21  ;;  %v15220_v5 = vld [vmem:[#allocation17 + $0x5e8] ss:$16 sps:$4 sm:$0xff]   ;;  %v531_v21 = vld [vmem:[#allocation8 + $0x20] sm:$0xff] }
 0x489   :  { %5795 = vmatpush1.bf16.msra.mxu0 %v15193_v28  ;;  %6014 = vmatpush1.bf16.msra.mxu1 %v15196_v25  ;;  %v537_v28 = vld [vmem:[#allocation8 + $0x50] sm:$0xff]  ;;  %v15225_v25 = vld [vmem:[#allocation16 + $0x4] ss:$16 sps:$4 sm:$0xff]  }
 0x48a   :  { %5796 = vmatprep.subr.bf16.mxu0 %v15201_v14  ;;  %6015 = vmatprep.subr.bf16.mxu1 %v15204_v32  ;;  %v15228_v14 = vld [vmem:[#allocation16 + $0xc] ss:$16 sps:$4 sm:$0xff]   ;;  %v17261_v32 = vpack.c.bf16 %v537_v28, %v531_v21  ;;  %v556_v21 = vld [vmem:[#allocation8 + $0xe8] sm:$0xff]  ;;  %v562_v28 = vld [vmem:[#allocation8 + $0x118] sm:$0xff] }
 0x48d   :  { %5797 = vmatpush1.bf16.msra.mxu0 %v15199_v36  ;;  %6016 = vmatpush1.bf16.msra.mxu1 %v15202_v38  ;;  %v544_v36 = vld [vmem:[#allocation8 + $0x88] sm:$0xff]  ;;  %v550_v38 = vld [vmem:[#allocation8 + $0xb8] sm:$0xff] }
 0x48e   :  { %5798 = vmatprep.subr.bf16.mxu0 %v15207_v41  ;;  %6017 = vmatprep.subr.bf16.mxu1 %v15210_v45  ;;  %v15223_v41 = vld [vmem:[#allocation16] ss:$16 sps:$4 sm:$0xff]   ;;  %v15226_v45 = vld [vmem:[#allocation16 + $0x8] ss:$16 sps:$4 sm:$0xff]  }
 0x491   :  { %5799 = vmatpush1.bf16.msra.mxu0 %v15205_v47  ;;  %6018 = vmatpush1.bf16.msra.mxu1 %v15208_v48  ;;  %v15231_v47 = vld [vmem:[#allocation16 + $0x24] ss:$16 sps:$4 sm:$0xff]   ;;  %v15234_v48 = vld [vmem:[#allocation16 + $0x2c] ss:$16 sps:$4 sm:$0xff]  }
 0x492   :  { %5800 = vmatprep.subr.bf16.mxu0 %v15213_v58  ;;  %6019 = vmatprep.subr.bf16.mxu1 %v15216_v61  ;;  %v17263_v58 = vpack.c.bf16 %v550_v38, %v544_v36  ;;  %v15229_v61 = vld [vmem:[#allocation16 + $0x20] ss:$16 sps:$4 sm:$0xff]   ;;  %v15243_v36 = vld [vmem:[#allocation16 + $0x64] ss:$16 sps:$4 sm:$0xff]   ;;  %v15246_v38 = vld [vmem:[#allocation16 + $0x6c] ss:$16 sps:$4 sm:$0xff]  }
 0x495   :  { %5801 = vmatpush1.bf16.msra.mxu0 %v15211_v55  ;;  %6020 = vmatpush1.bf16.msra.mxu1 %v15214_v16  ;;  %v15232_v55 = vld [vmem:[#allocation16 + $0x28] ss:$16 sps:$4 sm:$0xff]   ;;  %v543_v16 = vld [vmem:[#allocation8 + $0x80] sm:$0xff] }
 0x496   :  { %5802 = vmatprep.subr.bf16.mxu0 %v15219_v18  ;;  %6021 = vmatprep.subr.bf16.mxu1 %v15222_v10  ;;  %v549_v18 = vld [vmem:[#allocation8 + $0xb0] sm:$0xff]  ;;  %v15237_v10 = vld [vmem:[#allocation16 + $0x44] ss:$16 sps:$4 sm:$0xff]  }
 0x499   :  { %5803 = vmatpush1.bf16.msra.mxu0 %v15217_v1  ;;  %6022 = vmatpush1.bf16.msra.mxu1 %v15220_v5  ;;  %v15240_v1 = vld [vmem:[#allocation16 + $0x4c] ss:$16 sps:$4 sm:$0xff]   ;;  %v17269_v5 = vpack.c.bf16 %v549_v18, %v543_v16 }
 0x49a   :  { %7024 = vmatprep.subr.bf16.mxu0 %v15225_v25  ;;  %7243 = vmatprep.subr.bf16.mxu1 %v15228_v14  ;;  %v15235_v25 = vld [vmem:[#allocation16 + $0x40] ss:$16 sps:$4 sm:$0xff]   ;;  %v15238_v14 = vld [vmem:[#allocation16 + $0x48] ss:$16 sps:$4 sm:$0xff]  }
 0x49b   :  { %v561_v16 = vld [vmem:[#allocation8 + $0x110] sm:$0xff] }
 0x49c   :  { %5805 = vmatmul.mubr.bf16.vlgmr.msra.gmra.mrb[32].mxu0 %v17261_v32  ;;  %6024 = vmatmul.mubr.bf16.vlgmr.msra.gmra.mrb[32].mxu1 %v17261_v32 }
 0x49d   :  { %7025 = vmatpush1.bf16.msra.mxu0 %v15223_v41  ;;  %7244 = vmatpush1.bf16.msra.mxu1 %v15226_v45  ;;  %v17271_v41 = vpack.c.bf16 %v562_v28, %v556_v21  ;;  %v15241_v45 = vld [vmem:[#allocation16 + $0x60] ss:$16 sps:$4 sm:$0xff]   ;;  %v15250_v28 = vld [vmem:[#allocation16 + $0x88] ss:$16 sps:$4 sm:$0xff]  }
 0x49e   :  { %7026 = vmatprep.subr.bf16.mxu0 %v15231_v47  ;;  %7245 = vmatprep.subr.bf16.mxu1 %v15234_v48  ;;  %v15244_v47 = vld [vmem:[#allocation16 + $0x68] ss:$16 sps:$4 sm:$0xff]   ;;  %v555_v48 = vld [vmem:[#allocation8 + $0xe0] sm:$0xff] }
 0x49f   :  { %5814 = vmatprep.mubr.bf16.mxu0 %v17263_v58  ;;  %6033 = vmatprep.mubr.bf16.mxu1 %v17263_v58  ;;  %v17277_v18 = vpack.c.bf16 %v561_v16, %v555_v48  ;;  %v15247_v21 = vld [vmem:[#allocation16 + $0x80] ss:$16 sps:$4 sm:$0xff]   ;;  %v15256_v48 = vld [vmem:[#allocation16 + $0xa8] ss:$16 sps:$4 sm:$0xff]  }
 0x4a0   :  { %v567_v16 = vld [vmem:[#allocation8 + $0x140] sm:$0xff] }
 0x4a1   :  { %7027 = vmatpush1.bf16.msra.mxu0 %v15229_v61  ;;  %7246 = vmatpush1.bf16.msra.mxu1 %v15232_v55  ;;  %v15249_v61 = vld [vmem:[#allocation16 + $0x84] ss:$16 sps:$4 sm:$0xff]   ;;  %v15252_v55 = vld [vmem:[#allocation16 + $0x8c] ss:$16 sps:$4 sm:$0xff]  }
 0x4a2   :  { %7028 = vmatprep.subr.bf16.mxu0 %v15237_v10  ;;  %7247 = vmatprep.subr.bf16.mxu1 %v15240_v1  ;;  %v568_v10 = vld [vmem:[#allocation8 + $0x148] sm:$0xff]  ;;  %v574_v1 = vld [vmem:[#allocation8 + $0x178] sm:$0xff] }
 0x4a4   :  { %5815 = vmatmul.mubr.bf16.gmra.mrb[36].mxu0 %v17269_v5  ;;  %6034 = vmatmul.mubr.bf16.gmra.mrb[36].mxu1 %v17269_v5 }
 0x4a5   :  { %7029 = vmatpush1.bf16.msra.mxu0 %v15235_v25  ;;  %7248 = vmatpush1.bf16.msra.mxu1 %v15238_v14  ;;  %v15255_v25 = vld [vmem:[#allocation16 + $0xa4] ss:$16 sps:$4 sm:$0xff]   ;;  %v15258_v14 = vld [vmem:[#allocation16 + $0xac] ss:$16 sps:$4 sm:$0xff]  }
 0x4a6   :  { %7030 = vmatprep.subr.bf16.mxu0 %v15243_v36  ;;  %7249 = vmatprep.subr.bf16.mxu1 %v15246_v38  ;;  %v17279_v36 = vpack.c.bf16 %v574_v1, %v568_v10  ;;  %v15253_v38 = vld [vmem:[#allocation16 + $0xa0] ss:$16 sps:$4 sm:$0xff]   ;;  %v17288_v10 = vld [vmem:[%s17914_s13] ss:$0 sm:$0xff] }
 0x4a7   :  { %5824 = vmatprep.mubr.bf16.mxu0 %v17271_v41  ;;  %6043 = vmatprep.mubr.bf16.mxu1 %v17271_v41 }
 0x4a9   :  { %7031 = vmatpush1.bf16.msra.mxu0 %v15241_v45  ;;  %7250 = vmatpush1.bf16.msra.mxu1 %v15244_v47  ;;  %v15261_v45 = vld [vmem:[#allocation16 + $0xc4] ss:$16 sps:$4 sm:$0xff]   ;;  %v15264_v47 = vld [vmem:[#allocation16 + $0xcc] ss:$16 sps:$4 sm:$0xff]  }
 0x4aa   :  { %7032 = vmatprep.subr.bf16.mxu0 %v15249_v61  ;;  %7251 = vmatprep.subr.bf16.mxu1 %v15252_v55 }
 0x4ac   :  { %5825 = vmatmul.mubr.bf16.gmra.mrb[40].mxu0 %v17277_v18  ;;  %6044 = vmatmul.mubr.bf16.gmra.mrb[40].mxu1 %v17277_v18 }
 0x4ad   :  { %7033 = vmatpush1.bf16.msra.mxu0 %v15247_v21  ;;  %7252 = vmatpush1.bf16.msra.mxu1 %v15250_v28  ;;  %v17290_v28 = vpack.c.bf16 %v573_v12, %v567_v16 }
 0x4ae   :  { %7034 = vmatprep.subr.bf16.mxu0 %v15255_v25  ;;  %7253 = vmatprep.subr.bf16.mxu1 %v15258_v14  ;;  %v462_v25 = vld [vmem:[#allocation7 + $0x38] sm:$0xff] }
 0x4af   :  { %v13473_v61 = vpop.f32.mrb[16].mxu0  ;;  %v13513_v55 = vpop.f32.mrb[16].mxu1  ;;  %5834 = vmatprep.mubr.bf16.mxu0 %v17279_v36  ;;  %6053 = vmatprep.mubr.bf16.mxu1 %v17279_v36  ;;  %v504_v56 = vpack.c.bf16 %v462_v25, %v456_v4  ;;  %v15271_v4 = vld [vmem:[#allocation16 + $0x100] ss:$16 sps:$4 sm:$0xff]   ;;  %v15279_v25 = vld [vmem:[#allocation16 + $0x124] ss:$16 sps:$4 sm:$0xff]  }
 0x4b0   :  { %v13474_v1 = vpop.f32.mrb[17].mxu0  ;;  %v13514_v21 = vpop.f32.mrb[17].mxu1 }
 0x4b1   :  { %v13475_v14 = vadd.f32 %v13474_v1, %v13473_v61  ;;  %v13515_v60 = vadd.f32 %v13514_v21, %v13513_v55  ;;  %7035 = vmatpush1.bf16.msra.mxu0 %v15253_v38  ;;  %7254 = vmatpush1.bf16.msra.mxu1 %v15256_v48  ;;  %v13476_v49 = vpop.f32.mrb[18].mxu0  ;;  %v13516_v40 = vpop.f32.mrb[18].mxu1  ;;  %v15265_v61 = vld [vmem:[#allocation16 + $0xe0] ss:$16 sps:$4 sm:$0xff]   ;;  %v15276_v55 = vld [vmem:[#allocation16 + $0x10c] ss:$16 sps:$4 sm:$0xff]  }
 0x4b2   :  { %v13477_v29 = vpop.f32.mrb[19].mxu0  ;;  %v13517_v23 = vpop.f32.mrb[19].mxu1  ;;  %7036 = vmatprep.subr.bf16.mxu0 %v15261_v45  ;;  %7255 = vmatprep.subr.bf16.mxu1 %v15264_v47  ;;  %v15268_v45 = vld [vmem:[#allocation16 + $0xe8] ss:$16 sps:$4 sm:$0xff]   ;;  %v15273_v47 = vld [vmem:[#allocation16 + $0x104] ss:$16 sps:$4 sm:$0xff]  }
 0x4b3   :  { %v4179_v63 = vadd.f32 %v13475_v14, %v17288_v10  ;;  %v13478_v12 = vadd.f32 %v13477_v29, %v13476_v49  ;;  %v13518_v16 = vadd.f32 %v13517_v23, %v13516_v40  ;;  %v15274_v21 = vld [vmem:[#allocation16 + $0x108] ss:$16 sps:$4 sm:$0xff]   ;;  %v15282_v14 = vld [vmem:[#allocation16 + $0x12c] ss:$16 sps:$4 sm:$0xff]  }
 0x4b4   :  { %5835 = vmatmul.mubr.bf16.gmra.mrb[44].mxu0 %v17290_v28  ;;  %6054 = vmatmul.mubr.bf16.gmra.mrb[44].mxu1 %v17290_v28 }
 0x4b5   :  { %v17295_v38 = vadd.f32 %v13515_v60, %v4179_v63  ;;  %v4182_v48 = vadd.f32 %v13478_v12, %v17288_v10  ;;  %7037 = vmatpush1.bf16.msra.mxu0 %v15259_v30  ;;  %7256 = vmatpush1.bf16.msra.mxu1 %v15262_v19 }
 0x4b6   :  { %7038 = vmatprep.subr.bf16.mxu0 %v15267_v15  ;;  %7257 = vmatprep.subr.bf16.mxu1 %v15270_v7 }
 0x4b7   :  { %v17298_v1 = vadd.f32 %v13518_v16, %v4182_v48  ;;  %v13479_v23 = vpop.f32.mrb[20].mxu0  ;;  %v13519_v29 = vpop.f32.mrb[20].mxu1  ;;  %7056 = vmatprep.mubr.bf16.mxu0 %v504_v56  ;;  %7275 = vmatprep.mubr.bf16.mxu1 %v504_v56 }
 0x4b8   :  { %v13480_v40 = vpop.f32.mrb[21].mxu0  ;;  %v13520_v49 = vpop.f32.mrb[21].mxu1 }
 0x4b9   :  { %v13481_v63 = vadd.f32 %v13480_v40, %v13479_v23  ;;  %v13521_v60 = vadd.f32 %v13520_v49, %v13519_v29  ;;  %7039 = vmatpush1.bf16.msra.mxu0 %v15265_v61  ;;  %7258 = vmatpush1.bf16.msra.mxu1 %v15268_v45  ;;  %v13482_v30 = vpop.f32.mrb[22].mxu0  ;;  %v13522_v19 = vpop.f32.mrb[22].mxu1  ;;  %v15277_v61 = vld [vmem:[#allocation16 + $0x120] ss:$16 sps:$4 sm:$0xff]   ;;  %v15280_v45 = vld [vmem:[#allocation16 + $0x128] ss:$16 sps:$4 sm:$0xff]  }
 0x4ba   :  { %v13483_v15 = vpop.f32.mrb[23].mxu0  ;;  %v13523_v7 = vpop.f32.mrb[23].mxu1  ;;  %7040 = vmatprep.subr.bf16.mxu0 %v15273_v47  ;;  %7259 = vmatprep.subr.bf16.mxu1 %v15276_v55  ;;  %v15285_v29 = vld [vmem:[#allocation16 + $0x144] ss:$16 sps:$4 sm:$0xff]   ;;  %v15288_v40 = vld [vmem:[#allocation16 + $0x14c] ss:$16 sps:$4 sm:$0xff]  }
 0x4bb   :  { %v4187_v12 = vadd.f32 %v13481_v63, %v17288_v10  ;;  %v13484_v16 = vadd.f32 %v13483_v15, %v13482_v30  ;;  %v13524_v56 = vadd.f32 %v13523_v7, %v13522_v19 }
 0x4bd   :  { %v17301_v48 = vadd.f32 %v13521_v60, %v4187_v12  ;;  %v4190_v23 = vadd.f32 %v13484_v16, %v17288_v10  ;;  %7041 = vmatpush1.bf16.msra.mxu0 %v15271_v4  ;;  %7260 = vmatpush1.bf16.msra.mxu1 %v15274_v21  ;;  %v15283_v4 = vld [vmem:[#allocation16 + $0x140] ss:$16 sps:$4 sm:$0xff]   ;;  %v15286_v21 = vld [vmem:[#allocation16 + $0x148] ss:$16 sps:$4 sm:$0xff]  }
 0x4be   :  { %7042 = vmatprep.subr.bf16.mxu0 %v15279_v25  ;;  %7261 = vmatprep.subr.bf16.mxu1 %v15282_v14  ;;  %v15291_v25 = vld [vmem:[#allocation16 + $0x164] ss:$16 sps:$4 sm:$0xff]   ;;  %v15294_v14 = vld [vmem:[#allocation16 + $0x16c] ss:$16 sps:$4 sm:$0xff]  }
 0x4bf   :  { %v17304_v47 = vadd.f32 %v13524_v56, %v4190_v23  ;;  %v13485_v55 = vpop.f32.mrb[24].mxu0  ;;  %v13525_v49 = vpop.f32.mrb[24].mxu1 }
 0x4c0   :  { %v13486_v44 = vpop.f32.mrb[25].mxu0  ;;  %v13526_v63 = vpop.f32.mrb[25].mxu1 }
 0x4c1   :  { %v13487_v30 = vadd.f32 %v13486_v44, %v13485_v55  ;;  %v13527_v19 = vadd.f32 %v13526_v63, %v13525_v49  ;;  %7043 = vmatpush1.bf16.msra.mxu0 %v15277_v61  ;;  %7262 = vmatpush1.bf16.msra.mxu1 %v15280_v45  ;;  %v13488_v60 = vpop.f32.mrb[26].mxu0  ;;  %v13528_v15 = vpop.f32.mrb[26].mxu1  ;;  %v15289_v61 = vld [vmem:[#allocation16 + $0x160] ss:$16 sps:$4 sm:$0xff]   ;;  %v15292_v45 = vld [vmem:[#allocation16 + $0x168] ss:$16 sps:$4 sm:$0xff]  }
 0x4c2   :  { %v13489_v7 = vpop.f32.mrb[27].mxu0  ;;  %v13529_v12 = vpop.f32.mrb[27].mxu1  ;;  %7044 = vmatprep.subr.bf16.mxu0 %v15285_v29  ;;  %7263 = vmatprep.subr.bf16.mxu1 %v15288_v40  ;;  %v15297_v55 = vld [vmem:[#allocation16 + $0x184] ss:$16 sps:$4 sm:$0xff]   ;;  %v15300_v49 = vld [vmem:[#allocation16 + $0x18c] ss:$16 sps:$4 sm:$0xff]  }
 0x4c3   :  { %v4195_v16 = vadd.f32 %v13487_v30, %v17288_v10  ;;  %v13490_v56 = vadd.f32 %v13489_v7, %v13488_v60  ;;  %v13530_v23 = vadd.f32 %v13529_v12, %v13528_v15 }
 0x4c5   :  { %v17307_v37 = vadd.f32 %v13527_v19, %v4195_v16  ;;  %v4198_v44 = vadd.f32 %v13490_v56, %v17288_v10  ;;  %7045 = vmatpush1.bf16.msra.mxu0 %v15283_v4  ;;  %7264 = vmatpush1.bf16.msra.mxu1 %v15286_v21  ;;  %v15295_v4 = vld [vmem:[#allocation16 + $0x180] ss:$16 sps:$4 sm:$0xff]   ;;  %v15298_v21 = vld [vmem:[#allocation16 + $0x188] ss:$16 sps:$4 sm:$0xff]  }
 0x4c6   :  { %7046 = vmatprep.subr.bf16.mxu0 %v15291_v25  ;;  %7265 = vmatprep.subr.bf16.mxu1 %v15294_v14  ;;  %v15303_v25 = vld [vmem:[#allocation16 + $0x1a4] ss:$16 sps:$4 sm:$0xff]   ;;  %v15306_v14 = vld [vmem:[#allocation16 + $0x1ac] ss:$16 sps:$4 sm:$0xff]  }
 0x4c7   :  { %v17310_v29 = vadd.f32 %v13530_v23, %v4198_v44  ;;  %v13491_v40 = vpop.f32.mrb[28].mxu0  ;;  %v13531_v63 = vpop.f32.mrb[28].mxu1 }
 0x4c8   :  { %v13492_v59 = vpop.f32.mrb[29].mxu0  ;;  %v13532_v30 = vpop.f32.mrb[29].mxu1 }
 0x4c9   :  { %v13493_v60 = vadd.f32 %v13492_v59, %v13491_v40  ;;  %v13533_v15 = vadd.f32 %v13532_v30, %v13531_v63  ;;  %7047 = vmatpush1.bf16.msra.mxu0 %v15289_v61  ;;  %7266 = vmatpush1.bf16.msra.mxu1 %v15292_v45  ;;  %v13494_v19 = vpop.f32.mrb[30].mxu0  ;;  %v13534_v7 = vpop.f32.mrb[30].mxu1  ;;  %v15301_v61 = vld [vmem:[#allocation16 + $0x1a0] ss:$16 sps:$4 sm:$0xff]   ;;  %v15304_v45 = vld [vmem:[#allocation16 + $0x1a8] ss:$16 sps:$4 sm:$0xff]  }
 0x4ca   :  { %v13495_v12 = vpop.f32.mrb[31].mxu0  ;;  %v13535_v16 = vpop.f32.mrb[31].mxu1  ;;  %7048 = vmatprep.subr.bf16.mxu0 %v15297_v55  ;;  %7267 = vmatprep.subr.bf16.mxu1 %v15300_v49  ;;  %v15309_v40 = vld [vmem:[#allocation16 + $0x1c4] ss:$16 sps:$4 sm:$0xff]   ;;  %v15312_v63 = vld [vmem:[#allocation16 + $0x1cc] ss:$16 sps:$4 sm:$0xff]  }
 0x4cb   :  { %v4203_v56 = vadd.f32 %v13493_v60, %v17288_v10  ;;  %v13496_v23 = vadd.f32 %v13495_v12, %v13494_v19  ;;  %v13536_v44 = vadd.f32 %v13535_v16, %v13534_v7  ;;  %v15307_v49 = vld [vmem:[#allocation16 + $0x1c0] ss:$16 sps:$4 sm:$0xff]   ;;  %v15310_v30 = vld [vmem:[#allocation16 + $0x1c8] ss:$16 sps:$4 sm:$0xff]   ;;  %v15315_v60 = vld [vmem:[#allocation16 + $0x1e4] ss:$16 sps:$4 sm:$0xff]  }
 0x4cc   :  { %v15313_v19 = vld [vmem:[#allocation16 + $0x1e0] ss:$16 sps:$4 sm:$0xff]   ;;  %v15324_v12 = vld [vmem:[#allocation16 + $0x20c] ss:$16 sps:$4 sm:$0xff]  }
 0x4cd   :  { %v17313_v54 = vadd.f32 %v13533_v15, %v4203_v56  ;;  %v4206_v59 = vadd.f32 %v13496_v23, %v17288_v10  ;;  %7049 = vmatpush1.bf16.msra.mxu0 %v15295_v4  ;;  %7268 = vmatpush1.bf16.msra.mxu1 %v15298_v21  ;;  %v15318_v15 = vld [vmem:[#allocation16 + $0x1ec] ss:$16 sps:$4 sm:$0xff]   ;;  %v15316_v10 = vld [vmem:[#allocation16 + $0x1e8] ss:$16 sps:$4 sm:$0xff]   ;;  %v15321_v21 = vld [vmem:[#allocation16 + $0x204] ss:$16 sps:$4 sm:$0xff]  }
 0x4ce   :  { %7050 = vmatprep.subr.bf16.mxu0 %v15303_v25  ;;  %7269 = vmatprep.subr.bf16.mxu1 %v15306_v14  ;;  %v455_v7 = vld [vmem:[#allocation7] sm:$0xff]  ;;  %v461_v4 = vld [vmem:[#allocation7 + $0x30] sm:$0xff]  ;;  %v468_v25 = vld [vmem:[#allocation7 + $0x68] sm:$0xff] }
 0x4cf   :  { %17915 = vst [vmem:[#allocation67_spill] sm:$0xff] %v17313_v54  ;;  %v17316_v55 = vadd.f32 %v13536_v44, %v4206_v59  ;;  %v503_v16 = vpack.c.bf16 %v461_v4, %v455_v7  ;;  %v474_v14 = vld [vmem:[#allocation7 + $0x98] sm:$0xff]  ;;  %v15319_v56 = vld [vmem:[#allocation16 + $0x200] ss:$16 sps:$4 sm:$0xff]   ;;  %v15330_v59 = vld [vmem:[#allocation16 + $0x22c] ss:$16 sps:$4 sm:$0xff]  }
 0x4d0   :  { %v15322_v23 = vld [vmem:[#allocation16 + $0x208] ss:$16 sps:$4 sm:$0xff]   ;;  %v15327_v44 = vld [vmem:[#allocation16 + $0x224] ss:$16 sps:$4 sm:$0xff]   ;;  %v15331_v7 = vld [vmem:[#allocation16 + $0x240] ss:$16 sps:$4 sm:$0xff]  }
 0x4d1   :  { %17916 = vst [vmem:[#allocation68_spill] sm:$0xff] %v17316_v55  ;;  %7051 = vmatpush1.bf16.msra.mxu0 %v15301_v61  ;;  %7270 = vmatpush1.bf16.msra.mxu1 %v15304_v45  ;;  %v510_v61 = vpack.c.bf16 %v474_v14, %v468_v25  ;;  %v15325_v45 = vld [vmem:[#allocation16 + $0x220] ss:$16 sps:$4 sm:$0xff]   ;;  %v15334_v4 = vld [vmem:[#allocation16 + $0x248] ss:$16 sps:$4 sm:$0xff]  }
 0x4d2   :  { %7052 = vmatprep.subr.bf16.mxu0 %v15309_v40  ;;  %7271 = vmatprep.subr.bf16.mxu1 %v15312_v63  ;;  %v15328_v40 = vld [vmem:[#allocation16 + $0x228] ss:$16 sps:$4 sm:$0xff]   ;;  %v467_v63 = vld [vmem:[#allocation7 + $0x60] sm:$0xff] }
 0x4d3   :  { %v15337_v25 = vld [vmem:[#allocation16 + $0x260] ss:$16 sps:$4 sm:$0xff]   ;;  %v15340_v14 = vld [vmem:[#allocation16 + $0x268] ss:$16 sps:$4 sm:$0xff]  }
 0x4d4   :  { %v15555_v54 = vld [vmem:[#allocation25 + $0x40] ss:$16 sps:$4 sm:$0xff]  }
 0x4d5   :  { %7053 = vmatpush1.bf16.msra.mxu0 %v15307_v49  ;;  %7272 = vmatpush1.bf16.msra.mxu1 %v15310_v30  ;;  %v473_v49 = vld [vmem:[#allocation7 + $0x90] sm:$0xff]  ;;  %v15333_v30 = vld [vmem:[#allocation16 + $0x244] ss:$16 sps:$4 sm:$0xff]  }
 0x4d6   :  { %7054 = vmatprep.subr.bf16.mxu0 %v15315_v60  ;;  %7273 = vmatprep.subr.bf16.mxu1 %v15318_v15  ;;  %v15336_v60 = vld [vmem:[#allocation16 + $0x24c] ss:$16 sps:$4 sm:$0xff]   ;;  %v509_v15 = vpack.c.bf16 %v473_v49, %v467_v63  ;;  %v15343_v63 = vld [vmem:[#allocation16 + $0x280] ss:$16 sps:$4 sm:$0xff]   ;;  %v15346_v49 = vld [vmem:[#allocation16 + $0x288] ss:$16 sps:$4 sm:$0xff]  }
 0x4d9   :  { %7055 = vmatpush1.bf16.msra.mxu0 %v15313_v19  ;;  %7274 = vmatpush1.bf16.msra.mxu1 %v15316_v10  ;;  %v480_v19 = vld [vmem:[#allocation7 + $0xc8] sm:$0xff]  ;;  %v486_v10 = vld [vmem:[#allocation7 + $0xf8] sm:$0xff] }
 0x4da   :  { %7097 = vmatprep.subr.bf16.mxu0 %v15321_v21  ;;  %7316 = vmatprep.subr.bf16.mxu1 %v15324_v12  ;;  %v15339_v21 = vld [vmem:[#allocation16 + $0x264] ss:$16 sps:$4 sm:$0xff]   ;;  %v15342_v12 = vld [vmem:[#allocation16 + $0x26c] ss:$16 sps:$4 sm:$0xff]  }
 0x4dc   :  { %7057 = vmatmul.mubr.bf16.vlgmr.msra.gmra.mrb[32].mxu0 %v503_v16  ;;  %7276 = vmatmul.mubr.bf16.vlgmr.msra.gmra.mrb[32].mxu1 %v503_v16  ;;  %v516_v16 = vpack.c.bf16 %v486_v10, %v480_v19  ;;  %v15349_v19 = vld [vmem:[#allocation16 + $0x2a0] ss:$16 sps:$4 sm:$0xff]   ;;  %v15352_v10 = vld [vmem:[#allocation16 + $0x2a8] ss:$16 sps:$4 sm:$0xff]  }
 0x4dd   :  { %7098 = vmatpush1.bf16.msra.mxu0 %v15319_v56  ;;  %7317 = vmatpush1.bf16.msra.mxu1 %v15322_v23  ;;  %v479_v56 = vld [vmem:[#allocation7 + $0xc0] sm:$0xff]  ;;  %v485_v23 = vld [vmem:[#allocation7 + $0xf0] sm:$0xff] }
 0x4de   :  { %7099 = vmatprep.subr.bf16.mxu0 %v15327_v44  ;;  %7318 = vmatprep.subr.bf16.mxu1 %v15330_v59  ;;  %v15345_v44 = vld [vmem:[#allocation16 + $0x284] ss:$16 sps:$4 sm:$0xff]   ;;  %v15348_v59 = vld [vmem:[#allocation16 + $0x28c] ss:$16 sps:$4 sm:$0xff]  }
 0x4df   :  { %7066 = vmatprep.mubr.bf16.mxu0 %v510_v61  ;;  %7285 = vmatprep.mubr.bf16.mxu1 %v510_v61  ;;  %v515_v61 = vpack.c.bf16 %v485_v23, %v479_v56  ;;  %v15355_v56 = vld [vmem:[#allocation16 + $0x2c0] ss:$16 sps:$4 sm:$0xff]   ;;  %v15358_v23 = vld [vmem:[#allocation16 + $0x2c8] ss:$16 sps:$4 sm:$0xff]  }
 0x4e1   :  { %7100 = vmatpush1.bf16.msra.mxu0 %v15325_v45  ;;  %7319 = vmatpush1.bf16.msra.mxu1 %v15328_v40  ;;  %v492_v45 = vld [vmem:[#allocation7 + $0x128] sm:$0xff]  ;;  %v498_v40 = vld [vmem:[#allocation7 + $0x158] sm:$0xff] }
 0x4e2   :  { %7101 = vmatprep.subr.bf16.mxu0 %v15333_v30  ;;  %7320 = vmatprep.subr.bf16.mxu1 %v15336_v60  ;;  %v15351_v30 = vld [vmem:[#allocation16 + $0x2a4] ss:$16 sps:$4 sm:$0xff]   ;;  %v15354_v60 = vld [vmem:[#allocation16 + $0x2ac] ss:$16 sps:$4 sm:$0xff]  }
 0x4e4   :  { %7067 = vmatmul.mubr.bf16.gmra.mrb[36].mxu0 %v509_v15  ;;  %7286 = vmatmul.mubr.bf16.gmra.mrb[36].mxu1 %v509_v15  ;;  %v522_v15 = vpack.c.bf16 %v498_v40, %v492_v45  ;;  %v15361_v45 = vld [vmem:[#allocation16 + $0x2e0] ss:$16 sps:$4 sm:$0xff]   ;;  %v15364_v40 = vld [vmem:[#allocation16 + $0x2e8] ss:$16 sps:$4 sm:$0xff]  }
 0x4e5   :  { %7102 = vmatpush1.bf16.msra.mxu0 %v15331_v7  ;;  %7321 = vmatpush1.bf16.msra.mxu1 %v15334_v4  ;;  %v491_v7 = vld [vmem:[#allocation7 + $0x120] sm:$0xff]  ;;  %v497_v4 = vld [vmem:[#allocation7 + $0x150] sm:$0xff] }
 0x4e6   :  { %7103 = vmatprep.subr.bf16.mxu0 %v15339_v21  ;;  %7322 = vmatprep.subr.bf16.mxu1 %v15342_v12  ;;  %v15357_v21 = vld [vmem:[#allocation16 + $0x2c4] ss:$16 sps:$4 sm:$0xff]   ;;  %v15360_v12 = vld [vmem:[#allocation16 + $0x2cc] ss:$16 sps:$4 sm:$0xff]  }
 0x4e7   :  { %7076 = vmatprep.mubr.bf16.mxu0 %v516_v16  ;;  %7295 = vmatprep.mubr.bf16.mxu1 %v516_v16  ;;  %v521_v16 = vpack.c.bf16 %v497_v4, %v491_v7  ;;  %v15376_v7 = vld [vmem:[#allocation16 + $0x328] ss:$16 sps:$4 sm:$0xff]   ;;  %v15381_v4 = vld [vmem:[#allocation16 + $0x344] ss:$16 sps:$4 sm:$0xff]  }
 0x4e9   :  { %7104 = vmatpush1.bf16.msra.mxu0 %v15337_v25  ;;  %7323 = vmatpush1.bf16.msra.mxu1 %v15340_v14  ;;  %v458_v25 = vld [vmem:[#allocation7 + $0x18] sm:$0xff]  ;;  %v464_v14 = vld [vmem:[#allocation7 + $0x48] sm:$0xff] }
 0x4ea   :  { %7105 = vmatprep.subr.bf16.mxu0 %v15345_v44  ;;  %7324 = vmatprep.subr.bf16.mxu1 %v15348_v59  ;;  %v15363_v44 = vld [vmem:[#allocation16 + $0x2e4] ss:$16 sps:$4 sm:$0xff]   ;;  %v15366_v59 = vld [vmem:[#allocation16 + $0x2ec] ss:$16 sps:$4 sm:$0xff]  }
 0x4ec   :  { %7077 = vmatmul.mubr.bf16.gmra.mrb[40].mxu0 %v515_v61  ;;  %7296 = vmatmul.mubr.bf16.gmra.mrb[40].mxu1 %v515_v61  ;;  %v506_v61 = vpack.c.bf16 %v464_v14, %v458_v25  ;;  %v15387_v25 = vld [vmem:[#allocation16 + $0x364] ss:$16 sps:$4 sm:$0xff]   ;;  %v15390_v14 = vld [vmem:[#allocation16 + $0x36c] ss:$16 sps:$4 sm:$0xff]  }
 0x4ed   :  { %7106 = vmatpush1.bf16.msra.mxu0 %v15343_v63  ;;  %7325 = vmatpush1.bf16.msra.mxu1 %v15346_v49  ;;  %v15369_v63 = vld [vmem:[#allocation16 + $0x304] ss:$16 sps:$4 sm:$0xff]   ;;  %v15372_v49 = vld [vmem:[#allocation16 + $0x30c] ss:$16 sps:$4 sm:$0xff]  }
 0x4ee   :  { %7107 = vmatprep.subr.bf16.mxu0 %v15351_v30  ;;  %7326 = vmatprep.subr.bf16.mxu1 %v15354_v60  ;;  %v15367_v30 = vld [vmem:[#allocation16 + $0x300] ss:$16 sps:$4 sm:$0xff]   ;;  %v15370_v60 = vld [vmem:[#allocation16 + $0x308] ss:$16 sps:$4 sm:$0xff]  }
 0x4ef   :  { %7086 = vmatprep.mubr.bf16.mxu0 %v522_v15  ;;  %7305 = vmatprep.mubr.bf16.mxu1 %v522_v15  ;;  %v15375_v15 = vld [vmem:[#allocation16 + $0x324] ss:$16 sps:$4 sm:$0xff]  }
 0x4f1   :  { %7108 = vmatpush1.bf16.msra.mxu0 %v15349_v19  ;;  %7327 = vmatpush1.bf16.msra.mxu1 %v15352_v10  ;;  %v15378_v19 = vld [vmem:[#allocation16 + $0x32c] ss:$16 sps:$4 sm:$0xff]   ;;  %v15373_v10 = vld [vmem:[#allocation16 + $0x320] ss:$16 sps:$4 sm:$0xff]  }
 0x4f2   :  { %7109 = vmatprep.subr.bf16.mxu0 %v15357_v21  ;;  %7328 = vmatprep.subr.bf16.mxu1 %v15360_v12  ;;  %v15384_v21 = vld [vmem:[#allocation16 + $0x34c] ss:$16 sps:$4 sm:$0xff]   ;;  %v15379_v12 = vld [vmem:[#allocation16 + $0x340] ss:$16 sps:$4 sm:$0xff]  }
 0x4f4   :  { %7087 = vmatmul.mubr.bf16.gmra.mrb[44].mxu0 %v521_v16  ;;  %7306 = vmatmul.mubr.bf16.gmra.mrb[44].mxu1 %v521_v16  ;;  %v15382_v16 = vld [vmem:[#allocation16 + $0x348] ss:$16 sps:$4 sm:$0xff]  }
 0x4f5   :  { %7110 = vmatpush1.bf16.msra.mxu0 %v15355_v56  ;;  %7329 = vmatpush1.bf16.msra.mxu1 %v15358_v23  ;;  %v15385_v56 = vld [vmem:[#allocation16 + $0x360] ss:$16 sps:$4 sm:$0xff]   ;;  %v15388_v23 = vld [vmem:[#allocation16 + $0x368] ss:$16 sps:$4 sm:$0xff]  }
 0x4f6   :  { %7111 = vmatprep.subr.bf16.mxu0 %v15363_v44  ;;  %7330 = vmatprep.subr.bf16.mxu1 %v15366_v59  ;;  %v15393_v44 = vld [vmem:[#allocation16 + $0x384] ss:$16 sps:$4 sm:$0xff]   ;;  %v15396_v59 = vld [vmem:[#allocation16 + $0x38c] ss:$16 sps:$4 sm:$0xff]  }
 0x4f7   :  { %7129 = vmatprep.mubr.bf16.mxu0 %v506_v61  ;;  %7348 = vmatprep.mubr.bf16.mxu1 %v506_v61  ;;  %v15391_v61 = vld [vmem:[#allocation16 + $0x380] ss:$16 sps:$4 sm:$0xff]  }
 0x4f9   :  { %7112 = vmatpush1.bf16.msra.mxu0 %v15361_v45  ;;  %7331 = vmatpush1.bf16.msra.mxu1 %v15364_v40  ;;  %v15394_v45 = vld [vmem:[#allocation16 + $0x388] ss:$16 sps:$4 sm:$0xff]   ;;  %v15399_v40 = vld [vmem:[#allocation16 + $0x3a4] ss:$16 sps:$4 sm:$0xff]  }
 0x4fa   :  { %7113 = vmatprep.subr.bf16.mxu0 %v15369_v63  ;;  %7332 = vmatprep.subr.bf16.mxu1 %v15372_v49  ;;  %v15402_v63 = vld [vmem:[#allocation16 + $0x3ac] ss:$16 sps:$4 sm:$0xff]   ;;  %v15397_v49 = vld [vmem:[#allocation16 + $0x3a0] ss:$16 sps:$4 sm:$0xff]  }
 0x4fd   :  { %7114 = vmatpush1.bf16.msra.mxu0 %v15367_v30  ;;  %7333 = vmatpush1.bf16.msra.mxu1 %v15370_v60  ;;  %v15400_v30 = vld [vmem:[#allocation16 + $0x3a8] ss:$16 sps:$4 sm:$0xff]   ;;  %v15405_v60 = vld [vmem:[#allocation16 + $0x3c4] ss:$16 sps:$4 sm:$0xff]  }
 0x4fe   :  { %7115 = vmatprep.subr.bf16.mxu0 %v15375_v15  ;;  %7334 = vmatprep.subr.bf16.mxu1 %v15378_v19  ;;  %v15408_v15 = vld [vmem:[#allocation16 + $0x3cc] ss:$16 sps:$4 sm:$0xff]   ;;  %v15403_v19 = vld [vmem:[#allocation16 + $0x3c0] ss:$16 sps:$4 sm:$0xff]  }
 0x501   :  { %7116 = vmatpush1.bf16.msra.mxu0 %v15373_v10  ;;  %7335 = vmatpush1.bf16.msra.mxu1 %v15376_v7  ;;  %v15406_v10 = vld [vmem:[#allocation16 + $0x3c8] ss:$16 sps:$4 sm:$0xff]   ;;  %v15411_v7 = vld [vmem:[#allocation16 + $0x3e4] ss:$16 sps:$4 sm:$0xff]  }
 0x502   :  { %7117 = vmatprep.subr.bf16.mxu0 %v15381_v4  ;;  %7336 = vmatprep.subr.bf16.mxu1 %v15384_v21  ;;  %v15414_v4 = vld [vmem:[#allocation16 + $0x3ec] ss:$16 sps:$4 sm:$0xff]   ;;  %v15409_v21 = vld [vmem:[#allocation16 + $0x3e0] ss:$16 sps:$4 sm:$0xff]  }
 0x505   :  { %7118 = vmatpush1.bf16.msra.mxu0 %v15379_v12  ;;  %7337 = vmatpush1.bf16.msra.mxu1 %v15382_v16  ;;  %v15412_v12 = vld [vmem:[#allocation16 + $0x3e8] ss:$16 sps:$4 sm:$0xff]   ;;  %v457_v16 = vld [vmem:[#allocation7 + $0x10] sm:$0xff] }
 0x506   :  { %7119 = vmatprep.subr.bf16.mxu0 %v15387_v25  ;;  %7338 = vmatprep.subr.bf16.mxu1 %v15390_v14  ;;  %v463_v25 = vld [vmem:[#allocation7 + $0x40] sm:$0xff]  ;;  %v15417_v14 = vld [vmem:[#allocation16 + $0x404] ss:$16 sps:$4 sm:$0xff]  }
 0x509   :  { %7120 = vmatpush1.bf16.msra.mxu0 %v15385_v56  ;;  %7339 = vmatpush1.bf16.msra.mxu1 %v15388_v23  ;;  %v15420_v56 = vld [vmem:[#allocation16 + $0x40c] ss:$16 sps:$4 sm:$0xff]   ;;  %v505_v23 = vpack.c.bf16 %v463_v25, %v457_v16  ;;  %v15427_v16 = vld [vmem:[#allocation16 + $0x440] ss:$16 sps:$4 sm:$0xff]   ;;  %v15430_v25 = vld [vmem:[#allocation16 + $0x448] ss:$16 sps:$4 sm:$0xff]  }
 0x50a   :  { %7121 = vmatprep.subr.bf16.mxu0 %v15393_v44  ;;  %7340 = vmatprep.subr.bf16.mxu1 %v15396_v59  ;;  %v470_v44 = vld [vmem:[#allocation7 + $0x78] sm:$0xff]  ;;  %v476_v59 = vld [vmem:[#allocation7 + $0xa8] sm:$0xff] }
 0x50d   :  { %7122 = vmatpush1.bf16.msra.mxu0 %v15391_v61  ;;  %7341 = vmatpush1.bf16.msra.mxu1 %v15394_v45  ;;  %v15415_v61 = vld [vmem:[#allocation16 + $0x400] ss:$16 sps:$4 sm:$0xff]   ;;  %v15418_v45 = vld [vmem:[#allocation16 + $0x408] ss:$16 sps:$4 sm:$0xff]  }
 0x50e   :  { %7123 = vmatprep.subr.bf16.mxu0 %v15399_v40  ;;  %7342 = vmatprep.subr.bf16.mxu1 %v15402_v63  ;;  %v15423_v40 = vld [vmem:[#allocation16 + $0x424] ss:$16 sps:$4 sm:$0xff]   ;;  %v15426_v63 = vld [vmem:[#allocation16 + $0x42c] ss:$16 sps:$4 sm:$0xff]  }
 0x511   :  { %7124 = vmatpush1.bf16.msra.mxu0 %v15397_v49  ;;  %7343 = vmatpush1.bf16.msra.mxu1 %v15400_v30  ;;  %v512_v49 = vpack.c.bf16 %v476_v59, %v470_v44  ;;  %v15421_v30 = vld [vmem:[#allocation16 + $0x420] ss:$16 sps:$4 sm:$0xff]   ;;  %v15436_v59 = vld [vmem:[#allocation16 + $0x468] ss:$16 sps:$4 sm:$0xff]  }
 0x512   :  { %7125 = vmatprep.subr.bf16.mxu0 %v15405_v60  ;;  %7344 = vmatprep.subr.bf16.mxu1 %v15408_v15  ;;  %v15424_v60 = vld [vmem:[#allocation16 + $0x428] ss:$16 sps:$4 sm:$0xff]   ;;  %v469_v15 = vld [vmem:[#allocation7 + $0x70] sm:$0xff] }
 0x513   :  { %v15433_v44 = vld [vmem:[#allocation16 + $0x460] ss:$16 sps:$4 sm:$0xff]  }
 0x515   :  { %7126 = vmatpush1.bf16.msra.mxu0 %v15403_v19  ;;  %7345 = vmatpush1.bf16.msra.mxu1 %v15406_v10  ;;  %v475_v19 = vld [vmem:[#allocation7 + $0xa0] sm:$0xff]  ;;  %v15429_v10 = vld [vmem:[#allocation16 + $0x444] ss:$16 sps:$4 sm:$0xff]  }
 0x516   :  { %7127 = vmatprep.subr.bf16.mxu0 %v15411_v7  ;;  %7346 = vmatprep.subr.bf16.mxu1 %v15414_v4  ;;  %v15432_v7 = vld [vmem:[#allocation16 + $0x44c] ss:$16 sps:$4 sm:$0xff]   ;;  %v511_v4 = vpack.c.bf16 %v475_v19, %v469_v15  ;;  %v15439_v15 = vld [vmem:[#allocation16 + $0x480] ss:$16 sps:$4 sm:$0xff]   ;;  %v15442_v19 = vld [vmem:[#allocation16 + $0x488] ss:$16 sps:$4 sm:$0xff]  }
 0x519   :  { %7128 = vmatpush1.bf16.msra.mxu0 %v15409_v21  ;;  %7347 = vmatpush1.bf16.msra.mxu1 %v15412_v12  ;;  %v482_v21 = vld [vmem:[#allocation7 + $0xd8] sm:$0xff]  ;;  %v488_v12 = vld [vmem:[#allocation7 + $0x108] sm:$0xff] }
 0x51a   :  { %7170 = vmatprep.subr.bf16.mxu0 %v15417_v14  ;;  %7389 = vmatprep.subr.bf16.mxu1 %v15420_v56  ;;  %v15435_v14 = vld [vmem:[#allocation16 + $0x464] ss:$16 sps:$4 sm:$0xff]   ;;  %v15438_v56 = vld [vmem:[#allocation16 + $0x46c] ss:$16 sps:$4 sm:$0xff]  }
 0x51c   :  { %7130 = vmatmul.mubr.bf16.vlgmr.msra.gmra.mrb[32].mxu0 %v505_v23  ;;  %7349 = vmatmul.mubr.bf16.vlgmr.msra.gmra.mrb[32].mxu1 %v505_v23  ;;  %v518_v23 = vpack.c.bf16 %v488_v12, %v482_v21  ;;  %v15445_v21 = vld [vmem:[#allocation16 + $0x4a0] ss:$16 sps:$4 sm:$0xff]   ;;  %v15448_v12 = vld [vmem:[#allocation16 + $0x4a8] ss:$16 sps:$4 sm:$0xff]  }
 0x51d   :  { %7171 = vmatpush1.bf16.msra.mxu0 %v15415_v61  ;;  %7390 = vmatpush1.bf16.msra.mxu1 %v15418_v45  ;;  %v481_v61 = vld [vmem:[#allocation7 + $0xd0] sm:$0xff]  ;;  %v487_v45 = vld [vmem:[#allocation7 + $0x100] sm:$0xff] }
 0x51e   :  { %7172 = vmatprep.subr.bf16.mxu0 %v15423_v40  ;;  %7391 = vmatprep.subr.bf16.mxu1 %v15426_v63  ;;  %v15441_v40 = vld [vmem:[#allocation16 + $0x484] ss:$16 sps:$4 sm:$0xff]   ;;  %v15444_v63 = vld [vmem:[#allocation16 + $0x48c] ss:$16 sps:$4 sm:$0xff]  }
 0x51f   :  { %7139 = vmatprep.mubr.bf16.mxu0 %v512_v49  ;;  %7358 = vmatprep.mubr.bf16.mxu1 %v512_v49  ;;  %v517_v49 = vpack.c.bf16 %v487_v45, %v481_v61  ;;  %v15451_v61 = vld [vmem:[#allocation16 + $0x4c0] ss:$16 sps:$4 sm:$0xff]   ;;  %v15454_v45 = vld [vmem:[#allocation16 + $0x4c8] ss:$16 sps:$4 sm:$0xff]  }
 0x521   :  { %7173 = vmatpush1.bf16.msra.mxu0 %v15421_v30  ;;  %7392 = vmatpush1.bf16.msra.mxu1 %v15424_v60  ;;  %v494_v30 = vld [vmem:[#allocation7 + $0x138] sm:$0xff]  ;;  %v500_v60 = vld [vmem:[#allocation7 + $0x168] sm:$0xff] }
 0x522   :  { %7174 = vmatprep.subr.bf16.mxu0 %v15429_v10  ;;  %7393 = vmatprep.subr.bf16.mxu1 %v15432_v7  ;;  %v15447_v10 = vld [vmem:[#allocation16 + $0x4a4] ss:$16 sps:$4 sm:$0xff]   ;;  %v15450_v7 = vld [vmem:[#allocation16 + $0x4ac] ss:$16 sps:$4 sm:$0xff]  }
 0x524   :  { %7140 = vmatmul.mubr.bf16.gmra.mrb[36].mxu0 %v511_v4  ;;  %7359 = vmatmul.mubr.bf16.gmra.mrb[36].mxu1 %v511_v4  ;;  %v524_v4 = vpack.c.bf16 %v500_v60, %v494_v30  ;;  %v15457_v30 = vld [vmem:[#allocation16 + $0x4e0] ss:$16 sps:$4 sm:$0xff]   ;;  %v15460_v60 = vld [vmem:[#allocation16 + $0x4e8] ss:$16 sps:$4 sm:$0xff]  }
 0x525   :  { %7175 = vmatpush1.bf16.msra.mxu0 %v15427_v16  ;;  %7394 = vmatpush1.bf16.msra.mxu1 %v15430_v25  ;;  %v493_v16 = vld [vmem:[#allocation7 + $0x130] sm:$0xff]  ;;  %v499_v25 = vld [vmem:[#allocation7 + $0x160] sm:$0xff] }
 0x526   :  { %7176 = vmatprep.subr.bf16.mxu0 %v15435_v14  ;;  %7395 = vmatprep.subr.bf16.mxu1 %v15438_v56  ;;  %v15453_v14 = vld [vmem:[#allocation16 + $0x4c4] ss:$16 sps:$4 sm:$0xff]   ;;  %v15456_v56 = vld [vmem:[#allocation16 + $0x4cc] ss:$16 sps:$4 sm:$0xff]  }
 0x527   :  { %7149 = vmatprep.mubr.bf16.mxu0 %v518_v23  ;;  %7368 = vmatprep.mubr.bf16.mxu1 %v518_v23  ;;  %v523_v23 = vpack.c.bf16 %v499_v25, %v493_v16  ;;  %v15472_v16 = vld [vmem:[#allocation16 + $0x528] ss:$16 sps:$4 sm:$0xff]   ;;  %v15477_v25 = vld [vmem:[#allocation16 + $0x544] ss:$16 sps:$4 sm:$0xff]  }
 0x529   :  { %7177 = vmatpush1.bf16.msra.mxu0 %v15433_v44  ;;  %7396 = vmatpush1.bf16.msra.mxu1 %v15436_v59  ;;  %v460_v44 = vld [vmem:[#allocation7 + $0x28] sm:$0xff]  ;;  %v466_v59 = vld [vmem:[#allocation7 + $0x58] sm:$0xff] }
 0x52a   :  { %7178 = vmatprep.subr.bf16.mxu0 %v15441_v40  ;;  %7397 = vmatprep.subr.bf16.mxu1 %v15444_v63  ;;  %v15459_v40 = vld [vmem:[#allocation16 + $0x4e4] ss:$16 sps:$4 sm:$0xff]   ;;  %v15462_v63 = vld [vmem:[#allocation16 + $0x4ec] ss:$16 sps:$4 sm:$0xff]  }
 0x52c   :  { %7150 = vmatmul.mubr.bf16.gmra.mrb[40].mxu0 %v517_v49  ;;  %7369 = vmatmul.mubr.bf16.gmra.mrb[40].mxu1 %v517_v49  ;;  %v508_v49 = vpack.c.bf16 %v466_v59, %v460_v44  ;;  %v15483_v44 = vld [vmem:[#allocation16 + $0x564] ss:$16 sps:$4 sm:$0xff]   ;;  %v15486_v59 = vld [vmem:[#allocation16 + $0x56c] ss:$16 sps:$4 sm:$0xff]  }
 0x52d   :  { %7179 = vmatpush1.bf16.msra.mxu0 %v15439_v15  ;;  %7398 = vmatpush1.bf16.msra.mxu1 %v15442_v19  ;;  %v15465_v15 = vld [vmem:[#allocation16 + $0x504] ss:$16 sps:$4 sm:$0xff]   ;;  %v15468_v19 = vld [vmem:[#allocation16 + $0x50c] ss:$16 sps:$4 sm:$0xff]  }
 0x52e   :  { %7180 = vmatprep.subr.bf16.mxu0 %v15447_v10  ;;  %7399 = vmatprep.subr.bf16.mxu1 %v15450_v7  ;;  %v15463_v10 = vld [vmem:[#allocation16 + $0x500] ss:$16 sps:$4 sm:$0xff]   ;;  %v15466_v7 = vld [vmem:[#allocation16 + $0x508] ss:$16 sps:$4 sm:$0xff]  }
 0x52f   :  { %7159 = vmatprep.mubr.bf16.mxu0 %v524_v4  ;;  %7378 = vmatprep.mubr.bf16.mxu1 %v524_v4  ;;  %v15471_v4 = vld [vmem:[#allocation16 + $0x524] ss:$16 sps:$4 sm:$0xff]  }
 0x531   :  { %7181 = vmatpush1.bf16.msra.mxu0 %v15445_v21  ;;  %7400 = vmatpush1.bf16.msra.mxu1 %v15448_v12  ;;  %v15474_v21 = vld [vmem:[#allocation16 + $0x52c] ss:$16 sps:$4 sm:$0xff]   ;;  %v15469_v12 = vld [vmem:[#allocation16 + $0x520] ss:$16 sps:$4 sm:$0xff]  }
 0x532   :  { %7182 = vmatprep.subr.bf16.mxu0 %v15453_v14  ;;  %7401 = vmatprep.subr.bf16.mxu1 %v15456_v56  ;;  %v15480_v14 = vld [vmem:[#allocation16 + $0x54c] ss:$16 sps:$4 sm:$0xff]   ;;  %v15475_v56 = vld [vmem:[#allocation16 + $0x540] ss:$16 sps:$4 sm:$0xff]  }
 0x534   :  { %7160 = vmatmul.mubr.bf16.gmra.mrb[44].mxu0 %v523_v23  ;;  %7379 = vmatmul.mubr.bf16.gmra.mrb[44].mxu1 %v523_v23  ;;  %v15478_v23 = vld [vmem:[#allocation16 + $0x548] ss:$16 sps:$4 sm:$0xff]  }
 0x535   :  { %7183 = vmatpush1.bf16.msra.mxu0 %v15451_v61  ;;  %7402 = vmatpush1.bf16.msra.mxu1 %v15454_v45  ;;  %v15481_v61 = vld [vmem:[#allocation16 + $0x560] ss:$16 sps:$4 sm:$0xff]   ;;  %v15484_v45 = vld [vmem:[#allocation16 + $0x568] ss:$16 sps:$4 sm:$0xff]  }
 0x536   :  { %7184 = vmatprep.subr.bf16.mxu0 %v15459_v40  ;;  %7403 = vmatprep.subr.bf16.mxu1 %v15462_v63  ;;  %v15489_v40 = vld [vmem:[#allocation16 + $0x584] ss:$16 sps:$4 sm:$0xff]   ;;  %v15492_v63 = vld [vmem:[#allocation16 + $0x58c] ss:$16 sps:$4 sm:$0xff]  }
 0x537   :  { %7202 = vmatprep.mubr.bf16.mxu0 %v508_v49  ;;  %7421 = vmatprep.mubr.bf16.mxu1 %v508_v49  ;;  %v15487_v49 = vld [vmem:[#allocation16 + $0x580] ss:$16 sps:$4 sm:$0xff]  }
 0x539   :  { %7185 = vmatpush1.bf16.msra.mxu0 %v15457_v30  ;;  %7404 = vmatpush1.bf16.msra.mxu1 %v15460_v60  ;;  %v15490_v30 = vld [vmem:[#allocation16 + $0x588] ss:$16 sps:$4 sm:$0xff]   ;;  %v15495_v60 = vld [vmem:[#allocation16 + $0x5a4] ss:$16 sps:$4 sm:$0xff]  }
 0x53a   :  { %7186 = vmatprep.subr.bf16.mxu0 %v15465_v15  ;;  %7405 = vmatprep.subr.bf16.mxu1 %v15468_v19  ;;  %v15498_v15 = vld [vmem:[#allocation16 + $0x5ac] ss:$16 sps:$4 sm:$0xff]   ;;  %v15493_v19 = vld [vmem:[#allocation16 + $0x5a0] ss:$16 sps:$4 sm:$0xff]  }
 0x53d   :  { %7187 = vmatpush1.bf16.msra.mxu0 %v15463_v10  ;;  %7406 = vmatpush1.bf16.msra.mxu1 %v15466_v7  ;;  %v15496_v10 = vld [vmem:[#allocation16 + $0x5a8] ss:$16 sps:$4 sm:$0xff]   ;;  %v15501_v7 = vld [vmem:[#allocation16 + $0x5c4] ss:$16 sps:$4 sm:$0xff]  }
 0x53e   :  { %7188 = vmatprep.subr.bf16.mxu0 %v15471_v4  ;;  %7407 = vmatprep.subr.bf16.mxu1 %v15474_v21  ;;  %v15504_v4 = vld [vmem:[#allocation16 + $0x5cc] ss:$16 sps:$4 sm:$0xff]   ;;  %v15499_v21 = vld [vmem:[#allocation16 + $0x5c0] ss:$16 sps:$4 sm:$0xff]  }
 0x541   :  { %7189 = vmatpush1.bf16.msra.mxu0 %v15469_v12  ;;  %7408 = vmatpush1.bf16.msra.mxu1 %v15472_v16  ;;  %v15502_v12 = vld [vmem:[#allocation16 + $0x5c8] ss:$16 sps:$4 sm:$0xff]   ;;  %v15507_v16 = vld [vmem:[#allocation16 + $0x5e4] ss:$16 sps:$4 sm:$0xff]  }
 0x542   :  { %7190 = vmatprep.subr.bf16.mxu0 %v15477_v25  ;;  %7409 = vmatprep.subr.bf16.mxu1 %v15480_v14  ;;  %v15510_v25 = vld [vmem:[#allocation16 + $0x5ec] ss:$16 sps:$4 sm:$0xff]   ;;  %v15505_v14 = vld [vmem:[#allocation16 + $0x5e0] ss:$16 sps:$4 sm:$0xff]  }
 0x545   :  { %7191 = vmatpush1.bf16.msra.mxu0 %v15475_v56  ;;  %7410 = vmatpush1.bf16.msra.mxu1 %v15478_v23  ;;  %v15508_v56 = vld [vmem:[#allocation16 + $0x5e8] ss:$16 sps:$4 sm:$0xff]   ;;  %v459_v23 = vld [vmem:[#allocation7 + $0x20] sm:$0xff] }
 0x546   :  { %7192 = vmatprep.subr.bf16.mxu0 %v15483_v44  ;;  %7411 = vmatprep.subr.bf16.mxu1 %v15486_v59  ;;  %v465_v44 = vld [vmem:[#allocation7 + $0x50] sm:$0xff]  ;;  %v472_v59 = vld [vmem:[#allocation7 + $0x88] sm:$0xff] }
 0x549   :  { %7193 = vmatpush1.bf16.msra.mxu0 %v15481_v61  ;;  %7412 = vmatpush1.bf16.msra.mxu1 %v15484_v45  ;;  %v478_v61 = vld [vmem:[#allocation7 + $0xb8] sm:$0xff]  ;;  %v15511_v45 = vld [vmem:[#allocation20 + $0x40] sm:$0xff]  }
 0x54a   :  { %7194 = vmatprep.subr.bf16.mxu0 %v15489_v40  ;;  %7413 = vmatprep.subr.bf16.mxu1 %v15492_v63  ;;  %v15512_v40 = vld [vmem:[#allocation20 + $0xc0] sm:$0xff]   ;;  %v507_v63 = vpack.c.bf16 %v465_v44, %v459_v23  ;;  %v15521_v44 = vld [vmem:[#allocation20 + $0x10] sm:$0xff]  }
 0x54d   :  { %7195 = vmatpush1.bf16.msra.mxu0 %v15487_v49  ;;  %7414 = vmatpush1.bf16.msra.mxu1 %v15490_v30  ;;  %v514_v49 = vpack.c.bf16 %v478_v61, %v472_v59  ;;  %v15513_v30 = vld [vmem:[#allocation20] sm:$0xff]   ;;  %v15522_v59 = vld [vmem:[#allocation20 + $0x90] sm:$0xff]   ;;  %v15523_v61 = vld [vmem:[#allocation20 + $0x58] sm:$0xff]  }
 0x54e   :  { %7196 = vmatprep.subr.bf16.mxu0 %v15495_v60  ;;  %7415 = vmatprep.subr.bf16.mxu1 %v15498_v15  ;;  %v15514_v60 = vld [vmem:[#allocation20 + $0x80] sm:$0xff]   ;;  %v15515_v15 = vld [vmem:[#allocation20 + $0x48] sm:$0xff]  }
 0x551   :  { %7197 = vmatpush1.bf16.msra.mxu0 %v15493_v19  ;;  %7416 = vmatpush1.bf16.msra.mxu1 %v15496_v10  ;;  %v15516_v19 = vld [vmem:[#allocation20 + $0xc8] sm:$0xff]   ;;  %v471_v10 = vld [vmem:[#allocation7 + $0x80] sm:$0xff] }
 0x552   :  { %7198 = vmatprep.subr.bf16.mxu0 %v15501_v7  ;;  %7417 = vmatprep.subr.bf16.mxu1 %v15504_v4  ;;  %v477_v7 = vld [vmem:[#allocation7 + $0xb0] sm:$0xff]  ;;  %v484_v4 = vld [vmem:[#allocation7 + $0xe8] sm:$0xff] }
 0x555   :  { %7199 = vmatpush1.bf16.msra.mxu0 %v15499_v21  ;;  %7418 = vmatpush1.bf16.msra.mxu1 %v15502_v12  ;;  %v490_v21 = vld [vmem:[#allocation7 + $0x118] sm:$0xff]  ;;  %v15517_v12 = vld [vmem:[#allocation20 + $0x8] sm:$0xff]  }
 0x556   :  { %7200 = vmatprep.subr.bf16.mxu0 %v15507_v16  ;;  %7419 = vmatprep.subr.bf16.mxu1 %v15510_v25  ;;  %v15518_v16 = vld [vmem:[#allocation20 + $0x88] sm:$0xff]   ;;  %v15519_v25 = vld [vmem:[#allocation20 + $0x50] sm:$0xff]   ;;  %v520_v23 = vpack.c.bf16 %v490_v21, %v484_v4  ;;  %v15529_v21 = vld [vmem:[#allocation20 + $0x20] sm:$0xff]  }
 0x559   :  { %7201 = vmatpush1.bf16.msra.mxu0 %v15505_v14  ;;  %7420 = vmatpush1.bf16.msra.mxu1 %v15508_v56  ;;  %v15520_v14 = vld [vmem:[#allocation20 + $0xd0] sm:$0xff]   ;;  %v513_v56 = vpack.c.bf16 %v477_v7, %v471_v10  ;;  %v15528_v10 = vld [vmem:[#allocation20 + $0xe0] sm:$0xff]  }
 0x55a   :  { %13537 = vmatprep.subr.bf16.mxu0 %v15511_v45  ;;  %13577 = vmatprep.subr.bf16.mxu1 %v15512_v40  ;;  %v15524_v45 = vld [vmem:[#allocation20 + $0xd8] sm:$0xff]  }
 0x55b   :  { %v483_v40 = vld [vmem:[#allocation7 + $0xe0] sm:$0xff] }
 0x55c   :  { %7203 = vmatmul.mubr.bf16.vlgmr.msra.gmra.mrb[32].mxu0 %v507_v63  ;;  %7422 = vmatmul.mubr.bf16.vlgmr.msra.gmra.mrb[32].mxu1 %v507_v63  ;;  %v489_v63 = vld [vmem:[#allocation7 + $0x110] sm:$0xff] }
 0x55d   :  { %7212 = vmatprep.mubr.bf16.mxu0 %v514_v49  ;;  %7431 = vmatprep.mubr.bf16.mxu1 %v514_v49  ;;  %v496_v49 = vld [vmem:[#allocation7 + $0x148] sm:$0xff]  ;;  %v519_v7 = vpack.c.bf16 %v489_v63, %v483_v40  ;;  %v15537_v40 = vld [vmem:[#allocation20 + $0x30] sm:$0xff]  }
 0x55e   :  { %13538 = vmatpush3.bf16.msra.mxu0 %v15513_v30  ;;  %13578 = vmatpush3.bf16.msra.mxu1 %v15514_v60  ;;  %v502_v30 = vld [vmem:[#allocation7 + $0x178] sm:$0xff]  ;;  %v15525_v60 = vld [vmem:[#allocation20 + $0x18] sm:$0xff]  }
 0x55f   :  { %13539 = vmatprep.subr.bf16.mxu0 %v15515_v15  ;;  %13579 = vmatprep.subr.bf16.mxu1 %v15516_v19  ;;  %v15526_v15 = vld [vmem:[#allocation20 + $0x98] sm:$0xff]   ;;  %v15527_v19 = vld [vmem:[#allocation20 + $0x60] sm:$0xff]   ;;  %v526_v4 = vpack.c.bf16 %v502_v30, %v496_v49  ;;  %v15538_v63 = vld [vmem:[#allocation20 + $0xb0] sm:$0xff]  }
 0x560   :  { %v15539_v49 = vld [vmem:[#allocation20 + $0x78] sm:$0xff]  }
 0x561   :  { %v15540_v30 = vld [vmem:[#allocation20 + $0xf8] sm:$0xff]  }
 0x562   :  { %13540 = vmatpush3.bf16.msra.mxu0 %v15517_v12  ;;  %13580 = vmatpush3.bf16.msra.mxu1 %v15518_v16  ;;  %v15530_v12 = vld [vmem:[#allocation20 + $0xa0] sm:$0xff]   ;;  %v15531_v16 = vld [vmem:[#allocation20 + $0x68] sm:$0xff]  }
 0x563   :  { %13541 = vmatprep.subr.bf16.mxu0 %v15519_v25  ;;  %13581 = vmatprep.subr.bf16.mxu1 %v15520_v14  ;;  %v15532_v25 = vld [vmem:[#allocation20 + $0xe8] sm:$0xff]   ;;  %v495_v14 = vld [vmem:[#allocation7 + $0x140] sm:$0xff] }
 0x564   :  { %7213 = vmatmul.mubr.bf16.gmra.mrb[36].mxu0 %v513_v56  ;;  %7432 = vmatmul.mubr.bf16.gmra.mrb[36].mxu1 %v513_v56  ;;  %v501_v56 = vld [vmem:[#allocation7 + $0x170] sm:$0xff] }
 0x565   :  { %7222 = vmatprep.mubr.bf16.mxu0 %v520_v23  ;;  %7441 = vmatprep.mubr.bf16.mxu1 %v520_v23  ;;  %v15533_v23 = vld [vmem:[#allocation20 + $0x28] sm:$0xff]  }
 0x566   :  { %13542 = vmatpush3.bf16.msra.mxu0 %v15521_v44  ;;  %13582 = vmatpush3.bf16.msra.mxu1 %v15522_v59  ;;  %v15534_v44 = vld [vmem:[#allocation20 + $0xa8] sm:$0xff]   ;;  %v525_v59 = vpack.c.bf16 %v501_v56, %v495_v14 }
 0x567   :  { %13543 = vmatprep.subr.bf16.mxu0 %v15523_v61  ;;  %13583 = vmatprep.subr.bf16.mxu1 %v15524_v45  ;;  %v15535_v61 = vld [vmem:[#allocation20 + $0x70] sm:$0xff]  }
 0x568   :  { %v15536_v45 = vld [vmem:[#allocation20 + $0xf0] sm:$0xff]  }
 0x56a   :  { %13544 = vmatpush3.bf16.msra.mxu0 %v15525_v60  ;;  %13584 = vmatpush3.bf16.msra.mxu1 %v15526_v15  ;;  %v15541_v60 = vld [vmem:[#allocation20 + $0x38] sm:$0xff]  }
 0x56b   :  { %13545 = vmatprep.subr.bf16.mxu0 %v15527_v19  ;;  %13585 = vmatprep.subr.bf16.mxu1 %v15528_v10  ;;  %v15542_v15 = vld [vmem:[#allocation20 + $0xb8] sm:$0xff]  }
 0x56c   :  { %7223 = vmatmul.mubr.bf16.gmra.mrb[40].mxu0 %v519_v7  ;;  %7442 = vmatmul.mubr.bf16.gmra.mrb[40].mxu1 %v519_v7  ;;  %v15545_v19 = vld [vmem:[#allocation25 + $0x4] ss:$16 sps:$4 sm:$0xff]   ;;  %v15548_v10 = vld [vmem:[#allocation25 + $0xc] ss:$16 sps:$4 sm:$0xff]  }
 0x56d   :  { %7232 = vmatprep.mubr.bf16.mxu0 %v526_v4  ;;  %7451 = vmatprep.mubr.bf16.mxu1 %v526_v4  ;;  %v7462_v7 = vld [vmem:[#allocation19] sm:$0xf] }
 0x56e   :  { %13546 = vmatpush3.bf16.msra.mxu0 %v15529_v21  ;;  %13586 = vmatpush3.bf16.msra.mxu1 %v15530_v12  ;;  %v17319_v4 = vrot.slane %v7462_v7, %v17141_v2  ;;  %v17322_v21 = vrot.slane %v7462_v7, %v17143_v3  ;;  %v17325_v12 = vrot.slane %v7462_v7, %v17145_v6 }
 0x56f   :  { %13547 = vmatprep.subr.bf16.mxu0 %v15531_v16  ;;  %13587 = vmatprep.subr.bf16.mxu1 %v15532_v25  ;;  %v17328_v16 = vrot.slane %v7462_v7, %v17147_v8 }
 0x572   :  { %13548 = vmatpush3.bf16.msra.mxu0 %v15533_v23  ;;  %13588 = vmatpush3.bf16.msra.mxu1 %v15534_v44 }
 0x573   :  { %13549 = vmatprep.subr.bf16.mxu0 %v15535_v61  ;;  %13589 = vmatprep.subr.bf16.mxu1 %v15536_v45 }
 0x574   :  { %7233 = vmatmul.mubr.bf16.gmra.mrb[44].mxu0 %v525_v59  ;;  %7452 = vmatmul.mubr.bf16.gmra.mrb[44].mxu1 %v525_v59 }
 0x576   :  { %13550 = vmatpush3.bf16.msra.mxu0 %v15537_v40  ;;  %13590 = vmatpush3.bf16.msra.mxu1 %v15538_v63 }
 0x577   :  { %13551 = vmatprep.subr.bf16.mxu0 %v15539_v49  ;;  %13591 = vmatprep.subr.bf16.mxu1 %v15540_v30 }
 0x57a   :  { %13552 = vmatpush3.bf16.msra.mxu0 %v15541_v60  ;;  %13592 = vmatpush3.bf16.msra.mxu1 %v15542_v15 }
 0x57b   :  { %9309 = vmatprep.subr.bf16.mxu0 %v15545_v19  ;;  %9528 = vmatprep.subr.bf16.mxu1 %v15548_v10 }
 0x62f   :  { %v7204_v25 = vpop.f32.mrb[32].mxu0  ;;  %v7423_v14 = vpop.f32.mrb[32].mxu1 }
 0x630   :  { %v7484_v56 = vadd.f32 %v17319_v4, %v7204_v25  ;;  %v7486_v23 = vadd.f32 %v17322_v21, %v7423_v14  ;;  %v7206_v44 = vpop.f32.mrb[33].mxu0  ;;  %v7425_v59 = vpop.f32.mrb[33].mxu1 }
 0x631   :  { %v7485_v61 = vadd.f32 %v17325_v12, %v7206_v44  ;;  %v7487_v45 = vadd.f32 %v17328_v16, %v7425_v59  ;;  %v7208_v40 = vpop.f32.mrb[34].mxu0  ;;  %v7427_v63 = vpop.f32.mrb[34].mxu1 }
 0x632   :  { %v7488_v49 = vadd.f32 %v17319_v4, %v7208_v40  ;;  %v7490_v30 = vadd.f32 %v17322_v21, %v7427_v63  ;;  %v7210_v60 = vpop.f32.mrb[35].mxu0  ;;  %v7429_v15 = vpop.f32.mrb[35].mxu1  ;;  %v7516_v7 = vmax.f32 %v7484_v56, 0.0  ;;  %v7518_v25 = vmax.f32 %v7486_v23, 0.0 }
 0x633   :  { %v7489_v19 = vadd.f32 %v17325_v12, %v7210_v60  ;;  %v7491_v10 = vadd.f32 %v17328_v16, %v7429_v15  ;;  %v7517_v6 = vmax.f32 %v7485_v61, 0.0  ;;  %v7519_v44 = vmax.f32 %v7487_v45, 0.0 }
 0x634   :  { %v7520_v14 = vmax.f32 %v7488_v49, 0.0  ;;  %v7522_v8 = vmax.f32 %v7490_v30, 0.0  ;;  %v15551_v49 = vld [vmem:[#allocation25 + $0x24] ss:$16 sps:$4 sm:$0xff]   ;;  %v15554_v30 = vld [vmem:[#allocation25 + $0x2c] ss:$16 sps:$4 sm:$0xff]  }
 0x635   :  { %v7521_v3 = vmax.f32 %v7489_v19, 0.0  ;;  %v7523_v59 = vmax.f32 %v7491_v10, 0.0 }
 0x636   :  { %v7548_v2 = vpack.c.bf16 %v7520_v14, %v7516_v7  ;;  %v7550_v46 = vpack.c.bf16 %v7522_v8, %v7518_v25  ;;  %v15549_v14 = vld [vmem:[#allocation25 + $0x20] ss:$16 sps:$4 sm:$0xff]  }
 0x637   :  { %v7549_v39 = vpack.c.bf16 %v7521_v3, %v7517_v6  ;;  %v7551_v40 = vpack.c.bf16 %v7523_v59, %v7519_v44  ;;  %v7214_v33 = vpop.f32.mrb[36].mxu0  ;;  %v7433_v63 = vpop.f32.mrb[36].mxu1  ;;  %v15552_v44 = vld [vmem:[#allocation25 + $0x28] ss:$16 sps:$4 sm:$0xff]   ;;  %v15557_v59 = vld [vmem:[#allocation25 + $0x44] ss:$16 sps:$4 sm:$0xff]  }
 0x638   :  { %v7492_v60 = vadd.f32 %v17319_v4, %v7214_v33  ;;  %v7494_v15 = vadd.f32 %v17322_v21, %v7433_v63  ;;  %v7216_v56 = vpop.f32.mrb[37].mxu0  ;;  %v7435_v23 = vpop.f32.mrb[37].mxu1 }
 0x639   :  { %v7493_v61 = vadd.f32 %v17325_v12, %v7216_v56  ;;  %v7495_v45 = vadd.f32 %v17328_v16, %v7435_v23  ;;  %v7218_v19 = vpop.f32.mrb[38].mxu0  ;;  %v7437_v8 = vpop.f32.mrb[38].mxu1  ;;  %7859 = vmatprep.mubr.bf16.mxu0 %v7549_v39  ;;  %7924 = vmatprep.mubr.bf16.mxu1 %v7551_v40  ;;  %v15560_v23 = vld [vmem:[#allocation25 + $0x4c] ss:$16 sps:$4 sm:$0xff]  }
 0x63a   :  { %v7496_v3 = vadd.f32 %v17319_v4, %v7218_v19  ;;  %v7498_v6 = vadd.f32 %v17322_v21, %v7437_v8  ;;  %v7220_v10 = vpop.f32.mrb[39].mxu0  ;;  %v7439_v33 = vpop.f32.mrb[39].mxu1  ;;  %7860 = vmatmul.mubr.bf16.vlgmr.msra.gmra.mrb[48].mxu0 %v7548_v2  ;;  %7925 = vmatmul.mubr.bf16.vlgmr.msra.gmra.mrb[48].mxu1 %v7550_v46  ;;  %v7524_v63 = vmax.f32 %v7492_v60, 0.0  ;;  %v7526_v39 = vmax.f32 %v7494_v15, 0.0  ;;  %v15558_v60 = vld [vmem:[#allocation25 + $0x48] ss:$16 sps:$4 sm:$0xff]  }
 0x63b   :  { %v7497_v7 = vadd.f32 %v17325_v12, %v7220_v10  ;;  %v7499_v25 = vadd.f32 %v17328_v16, %v7439_v33  ;;  %9310 = vmatpush1.bf16.msra.mxu0 %v15543_v27  ;;  %9529 = vmatpush1.bf16.msra.mxu1 %v15546_v20  ;;  %v7525_v19 = vmax.f32 %v7493_v61, 0.0  ;;  %v7527_v8 = vmax.f32 %v7495_v45, 0.0  ;;  %v15563_v61 = vld [vmem:[#allocation25 + $0x64] ss:$16 sps:$4 sm:$0xff]   ;;  %v15566_v45 = vld [vmem:[#allocation25 + $0x6c] ss:$16 sps:$4 sm:$0xff]  }
 0x63c   :  { %v7528_v40 = vmax.f32 %v7496_v3, 0.0  ;;  %v7530_v56 = vmax.f32 %v7498_v6, 0.0  ;;  %9311 = vmatprep.subr.bf16.mxu0 %v15551_v49  ;;  %9530 = vmatprep.subr.bf16.mxu1 %v15554_v30 }
 0x63d   :  { %v7529_v2 = vmax.f32 %v7497_v7, 0.0  ;;  %v7531_v46 = vmax.f32 %v7499_v25, 0.0 }
 0x63e   :  { %v7552_v9 = vpack.c.bf16 %v7528_v40, %v7524_v63  ;;  %v7554_v10 = vpack.c.bf16 %v7530_v56, %v7526_v39 }
 0x63f   :  { %v7553_v55 = vpack.c.bf16 %v7529_v2, %v7525_v19  ;;  %v7555_v33 = vpack.c.bf16 %v7531_v46, %v7527_v8  ;;  %9312 = vmatpush1.bf16.msra.mxu0 %v15549_v14  ;;  %9531 = vmatpush1.bf16.msra.mxu1 %v15552_v44  ;;  %v7224_v20 = vpop.f32.mrb[40].mxu0  ;;  %v7443_v27 = vpop.f32.mrb[40].mxu1  ;;  %v15564_v19 = vld [vmem:[#allocation25 + $0x68] ss:$16 sps:$4 sm:$0xff]   ;;  %v15569_v8 = vld [vmem:[#allocation25 + $0x84] ss:$16 sps:$4 sm:$0xff]  }
 0x640   :  { %v7500_v15 = vadd.f32 %v17319_v4, %v7224_v20  ;;  %v7502_v49 = vadd.f32 %v17322_v21, %v7443_v27  ;;  %v7226_v30 = vpop.f32.mrb[41].mxu0  ;;  %v7445_v3 = vpop.f32.mrb[41].mxu1  ;;  %9313 = vmatprep.subr.bf16.mxu0 %v15557_v59  ;;  %9532 = vmatprep.subr.bf16.mxu1 %v15560_v23  ;;  %v15561_v23 = vld [vmem:[#allocation25 + $0x60] ss:$16 sps:$4 sm:$0xff]   ;;  %v15572_v20 = vld [vmem:[#allocation25 + $0x8c] ss:$16 sps:$4 sm:$0xff]  }
 0x641   :  { %v7501_v6 = vadd.f32 %v17325_v12, %v7226_v30  ;;  %v7503_v7 = vadd.f32 %v17328_v16, %v7445_v3  ;;  %v7228_v25 = vpop.f32.mrb[42].mxu0  ;;  %v7447_v14 = vpop.f32.mrb[42].mxu1  ;;  %7867 = vmatprep.mubr.bf16.mxu0 %v7553_v55  ;;  %7932 = vmatprep.mubr.bf16.mxu1 %v7555_v33 }
 0x642   :  { %v7504_v44 = vadd.f32 %v17319_v4, %v7228_v25  ;;  %v7506_v63 = vadd.f32 %v17322_v21, %v7447_v14  ;;  %v7230_v39 = vpop.f32.mrb[43].mxu0  ;;  %v7449_v40 = vpop.f32.mrb[43].mxu1  ;;  %7868 = vmatmul.mubr.bf16.gmra.mrb[52].mxu0 %v7552_v9  ;;  %7933 = vmatmul.mubr.bf16.gmra.mrb[52].mxu1 %v7554_v10  ;;  %v7532_v2 = vmax.f32 %v7500_v15, 0.0  ;;  %v7534_v55 = vmax.f32 %v7502_v49, 0.0  ;;  %v15570_v15 = vld [vmem:[#allocation25 + $0x88] ss:$16 sps:$4 sm:$0xff]  }
 0x643   :  { %v7505_v59 = vadd.f32 %v17325_v12, %v7230_v39  ;;  %v7507_v56 = vadd.f32 %v17328_v16, %v7449_v40  ;;  %9314 = vmatpush1.bf16.msra.mxu0 %v15555_v54  ;;  %9533 = vmatpush1.bf16.msra.mxu1 %v15558_v60  ;;  %v7533_v27 = vmax.f32 %v7501_v6, 0.0  ;;  %v7535_v30 = vmax.f32 %v7503_v7, 0.0  ;;  %v15567_v40 = vld [vmem:[#allocation25 + $0x80] ss:$16 sps:$4 sm:$0xff]   ;;  %v15575_v6 = vld [vmem:[#allocation25 + $0xa4] ss:$16 sps:$4 sm:$0xff]  }
 0x644   :  { %v7536_v46 = vmax.f32 %v7504_v44, 0.0  ;;  %v7538_v33 = vmax.f32 %v7506_v63, 0.0  ;;  %9315 = vmatprep.subr.bf16.mxu0 %v15563_v61  ;;  %9534 = vmatprep.subr.bf16.mxu1 %v15566_v45  ;;  %v15578_v7 = vld [vmem:[#allocation25 + $0xac] ss:$16 sps:$4 sm:$0xff]  }
 0x645   :  { %v7537_v9 = vmax.f32 %v7505_v59, 0.0  ;;  %v7539_v10 = vmax.f32 %v7507_v56, 0.0 }
 0x646   :  { %v7556_v3 = vpack.c.bf16 %v7536_v46, %v7532_v2  ;;  %v7558_v25 = vpack.c.bf16 %v7538_v33, %v7534_v55 }
 0x647   :  { %v7557_v14 = vpack.c.bf16 %v7537_v9, %v7533_v27  ;;  %v7559_v39 = vpack.c.bf16 %v7539_v10, %v7535_v30  ;;  %9316 = vmatpush1.bf16.msra.mxu0 %v15561_v23  ;;  %9535 = vmatpush1.bf16.msra.mxu1 %v15564_v19  ;;  %v7234_v54 = vpop.f32.mrb[44].mxu0  ;;  %v7453_v60 = vpop.f32.mrb[44].mxu1  ;;  %v15576_v27 = vld [vmem:[#allocation25 + $0xa8] ss:$16 sps:$4 sm:$0xff]   ;;  %v15581_v30 = vld [vmem:[#allocation25 + $0xc4] ss:$16 sps:$4 sm:$0xff]  }
 0x648   :  { %v7508_v49 = vadd.f32 %v17319_v4, %v7234_v54  ;;  %v7510_v61 = vadd.f32 %v17322_v21, %v7453_v60  ;;  %v7236_v45 = vpop.f32.mrb[45].mxu0  ;;  %v7455_v44 = vpop.f32.mrb[45].mxu1  ;;  %9317 = vmatprep.subr.bf16.mxu0 %v15569_v8  ;;  %9536 = vmatprep.subr.bf16.mxu1 %v15572_v20  ;;  %v15573_v20 = vld [vmem:[#allocation25 + $0xa0] ss:$16 sps:$4 sm:$0xff]  }
 0x649   :  { %v7509_v63 = vadd.f32 %v17325_v12, %v7236_v45  ;;  %v7511_v59 = vadd.f32 %v17328_v16, %v7455_v44  ;;  %v7238_v56 = vpop.f32.mrb[46].mxu0  ;;  %v7457_v23 = vpop.f32.mrb[46].mxu1  ;;  %7875 = vmatprep.mubr.bf16.mxu0 %v7557_v14  ;;  %7940 = vmatprep.mubr.bf16.mxu1 %v7559_v39  ;;  %v15585_v44 = vld [vmem:[#allocation25 + $0xe0] ss:$16 sps:$4 sm:$0xff]  }
 0x64a   :  { %v7512_v19 = vadd.f32 %v17319_v4, %v7238_v56  ;;  %v7514_v2 = vadd.f32 %v17322_v21, %v7457_v23  ;;  %v7240_v55 = vpop.f32.mrb[47].mxu0  ;;  %v7459_v46 = vpop.f32.mrb[47].mxu1  ;;  %7876 = vmatmul.mubr.bf16.gmra.mrb[56].mxu0 %v7556_v3  ;;  %7941 = vmatmul.mubr.bf16.gmra.mrb[56].mxu1 %v7558_v25  ;;  %v7540_v9 = vmax.f32 %v7508_v49, 0.0  ;;  %v7542_v10 = vmax.f32 %v7510_v61, 0.0  ;;  %v15584_v4 = vld [vmem:[#allocation25 + $0xcc] ss:$16 sps:$4 sm:$0xff]  }
 0x64b   :  { %v7513_v8 = vadd.f32 %v17325_v12, %v7240_v55  ;;  %v7515_v33 = vadd.f32 %v17328_v16, %v7459_v46  ;;  %9318 = vmatpush1.bf16.msra.mxu0 %v15567_v40  ;;  %9537 = vmatpush1.bf16.msra.mxu1 %v15570_v15  ;;  %v7541_v21 = vmax.f32 %v7509_v63, 0.0  ;;  %v7543_v54 = vmax.f32 %v7511_v59, 0.0  ;;  %v15579_v40 = vld [vmem:[#allocation25 + $0xc0] ss:$16 sps:$4 sm:$0xff]   ;;  %v15582_v15 = vld [vmem:[#allocation25 + $0xc8] ss:$16 sps:$4 sm:$0xff]  }
 0x64c   :  { %v7544_v14 = vmax.f32 %v7512_v19, 0.0  ;;  %v7546_v39 = vmax.f32 %v7514_v2, 0.0  ;;  %9319 = vmatprep.subr.bf16.mxu0 %v15575_v6  ;;  %9538 = vmatprep.subr.bf16.mxu1 %v15578_v7  ;;  %v15587_v49 = vld [vmem:[#allocation25 + $0xe4] ss:$16 sps:$4 sm:$0xff]   ;;  %v15590_v61 = vld [vmem:[#allocation25 + $0xec] ss:$16 sps:$4 sm:$0xff]  }
 0x64d   :  { %v7545_v3 = vmax.f32 %v7513_v8, 0.0  ;;  %v7547_v25 = vmax.f32 %v7515_v33, 0.0  ;;  %v15588_v6 = vld [vmem:[#allocation25 + $0xe8] ss:$16 sps:$4 sm:$0xff]   ;;  %v15593_v7 = vld [vmem:[#allocation25 + $0x104] ss:$16 sps:$4 sm:$0xff]  }
 0x64e   :  { %v7560_v60 = vpack.c.bf16 %v7544_v14, %v7540_v9  ;;  %v7562_v12 = vpack.c.bf16 %v7546_v39, %v7542_v10  ;;  %v15596_v63 = vld [vmem:[#allocation25 + $0x10c] ss:$16 sps:$4 sm:$0xff]   ;;  %v15591_v59 = vld [vmem:[#allocation25 + $0x100] ss:$16 sps:$4 sm:$0xff]   ;;  %v15594_v56 = vld [vmem:[#allocation25 + $0x108] ss:$16 sps:$4 sm:$0xff]  }
 0x64f   :  { %v7561_v45 = vpack.c.bf16 %v7545_v3, %v7541_v21  ;;  %v7563_v16 = vpack.c.bf16 %v7547_v25, %v7543_v54  ;;  %9320 = vmatpush1.bf16.msra.mxu0 %v15573_v20  ;;  %9539 = vmatpush1.bf16.msra.mxu1 %v15576_v27  ;;  %v15599_v23 = vld [vmem:[#allocation25 + $0x124] ss:$16 sps:$4 sm:$0xff]   ;;  %v15602_v19 = vld [vmem:[#allocation25 + $0x12c] ss:$16 sps:$4 sm:$0xff]   ;;  %v15597_v2 = vld [vmem:[#allocation25 + $0x120] ss:$16 sps:$4 sm:$0xff]  }
 0x650   :  { %9321 = vmatprep.subr.bf16.mxu0 %v15581_v30  ;;  %9540 = vmatprep.subr.bf16.mxu1 %v15584_v4  ;;  %v15600_v55 = vld [vmem:[#allocation25 + $0x128] ss:$16 sps:$4 sm:$0xff]   ;;  %v15605_v46 = vld [vmem:[#allocation25 + $0x144] ss:$16 sps:$4 sm:$0xff]   ;;  %v15608_v8 = vld [vmem:[#allocation25 + $0x14c] ss:$16 sps:$4 sm:$0xff]  }
 0x651   :  { %7883 = vmatprep.mubr.bf16.mxu0 %v7561_v45  ;;  %7948 = vmatprep.mubr.bf16.mxu1 %v7563_v16  ;;  %v15603_v33 = vld [vmem:[#allocation25 + $0x140] ss:$16 sps:$4 sm:$0xff]   ;;  %v15611_v20 = vld [vmem:[#allocation25 + $0x164] ss:$16 sps:$4 sm:$0xff]   ;;  %v15614_v27 = vld [vmem:[#allocation25 + $0x16c] ss:$16 sps:$4 sm:$0xff]  }
 0x652   :  { %7884 = vmatmul.mubr.bf16.gmra.mrb[60].mxu0 %v7560_v60  ;;  %7949 = vmatmul.mubr.bf16.gmra.mrb[60].mxu1 %v7562_v12  ;;  %v15609_v30 = vld [vmem:[#allocation25 + $0x160] ss:$16 sps:$4 sm:$0xff]   ;;  %v15612_v9 = vld [vmem:[#allocation25 + $0x168] ss:$16 sps:$4 sm:$0xff]   ;;  %v15617_v10 = vld [vmem:[#allocation25 + $0x184] ss:$16 sps:$4 sm:$0xff]  }
 0x653   :  { %9322 = vmatpush1.bf16.msra.mxu0 %v15579_v40  ;;  %9541 = vmatpush1.bf16.msra.mxu1 %v15582_v15  ;;  %v15620_v14 = vld [vmem:[#allocation25 + $0x18c] ss:$16 sps:$4 sm:$0xff]   ;;  %v15615_v39 = vld [vmem:[#allocation25 + $0x180] ss:$16 sps:$4 sm:$0xff]   ;;  %v15618_v4 = vld [vmem:[#allocation25 + $0x188] ss:$16 sps:$4 sm:$0xff]  }
 0x654   :  { %9323 = vmatprep.subr.bf16.mxu0 %v15587_v49  ;;  %9542 = vmatprep.subr.bf16.mxu1 %v15590_v61  ;;  %v15623_v21 = vld [vmem:[#allocation25 + $0x1a4] ss:$16 sps:$4 sm:$0xff]   ;;  %v15626_v54 = vld [vmem:[#allocation25 + $0x1ac] ss:$16 sps:$4 sm:$0xff]   ;;  %v15621_v3 = vld [vmem:[#allocation25 + $0x1a0] ss:$16 sps:$4 sm:$0xff]  }
 0x655   :  { %9341 = vmatprep.mubr.bf16.mxu0 %v17193_v26  ;;  %9560 = vmatprep.mubr.bf16.mxu1 %v17193_v26  ;;  %v15606_v26 = vld [vmem:[#allocation25 + $0x148] ss:$16 sps:$4 sm:$0xff]   ;;  %v15629_v60 = vld [vmem:[#allocation25 + $0x1c4] ss:$16 sps:$4 sm:$0xff]   ;;  %v15632_v12 = vld [vmem:[#allocation25 + $0x1cc] ss:$16 sps:$4 sm:$0xff]  }
 0x656   :  { %v15624_v25 = vld [vmem:[#allocation25 + $0x1a8] ss:$16 sps:$4 sm:$0xff]   ;;  %v15627_v45 = vld [vmem:[#allocation25 + $0x1c0] ss:$16 sps:$4 sm:$0xff]   ;;  %v15635_v40 = vld [vmem:[#allocation25 + $0x1e4] ss:$16 sps:$4 sm:$0xff]  }
 0x657   :  { %9324 = vmatpush1.bf16.msra.mxu0 %v15585_v44  ;;  %9543 = vmatpush1.bf16.msra.mxu1 %v15588_v6  ;;  %v15630_v16 = vld [vmem:[#allocation25 + $0x1c8] ss:$16 sps:$4 sm:$0xff]   ;;  %v15638_v15 = vld [vmem:[#allocation25 + $0x1ec] ss:$16 sps:$4 sm:$0xff]   ;;  %v15633_v49 = vld [vmem:[#allocation25 + $0x1e0] ss:$16 sps:$4 sm:$0xff]  }
 0x658   :  { %9325 = vmatprep.subr.bf16.mxu0 %v15593_v7  ;;  %9544 = vmatprep.subr.bf16.mxu1 %v15596_v63  ;;  %v15636_v61 = vld [vmem:[#allocation25 + $0x1e8] ss:$16 sps:$4 sm:$0xff]   ;;  %v15641_v44 = vld [vmem:[#allocation25 + $0x204] ss:$16 sps:$4 sm:$0xff]   ;;  %v15644_v6 = vld [vmem:[#allocation25 + $0x20c] ss:$16 sps:$4 sm:$0xff]  }
 0x659   :  { %v15639_v7 = vld [vmem:[#allocation25 + $0x200] ss:$16 sps:$4 sm:$0xff]   ;;  %v15642_v63 = vld [vmem:[#allocation25 + $0x208] ss:$16 sps:$4 sm:$0xff]  }
 0x65b   :  { %9326 = vmatpush1.bf16.msra.mxu0 %v15591_v59  ;;  %9545 = vmatpush1.bf16.msra.mxu1 %v15594_v56  ;;  %v15647_v59 = vld [vmem:[#allocation25 + $0x224] ss:$16 sps:$4 sm:$0xff]   ;;  %v15650_v56 = vld [vmem:[#allocation25 + $0x22c] ss:$16 sps:$4 sm:$0xff]  }
 0x65c   :  { %9327 = vmatprep.subr.bf16.mxu0 %v15599_v23  ;;  %9546 = vmatprep.subr.bf16.mxu1 %v15602_v19  ;;  %v15645_v23 = vld [vmem:[#allocation25 + $0x220] ss:$16 sps:$4 sm:$0xff]   ;;  %v15648_v19 = vld [vmem:[#allocation25 + $0x228] ss:$16 sps:$4 sm:$0xff]  }
 0x65f   :  { %9328 = vmatpush1.bf16.msra.mxu0 %v15597_v2  ;;  %9547 = vmatpush1.bf16.msra.mxu1 %v15600_v55  ;;  %v15653_v2 = vld [vmem:[#allocation25 + $0x244] ss:$16 sps:$4 sm:$0xff]   ;;  %v15656_v55 = vld [vmem:[#allocation25 + $0x24c] ss:$16 sps:$4 sm:$0xff]  }
 0x660   :  { %9329 = vmatprep.subr.bf16.mxu0 %v15605_v46  ;;  %9548 = vmatprep.subr.bf16.mxu1 %v15608_v8  ;;  %v15651_v46 = vld [vmem:[#allocation25 + $0x240] ss:$16 sps:$4 sm:$0xff]   ;;  %v15654_v8 = vld [vmem:[#allocation25 + $0x248] ss:$16 sps:$4 sm:$0xff]  }
 0x663   :  { %9330 = vmatpush1.bf16.msra.mxu0 %v15603_v33  ;;  %9549 = vmatpush1.bf16.msra.mxu1 %v15606_v26  ;;  %v15659_v33 = vld [vmem:[#allocation25 + $0x264] ss:$16 sps:$4 sm:$0xff]   ;;  %v15657_v26 = vld [vmem:[#allocation25 + $0x260] ss:$16 sps:$4 sm:$0xff]  }
 0x664   :  { %9331 = vmatprep.subr.bf16.mxu0 %v15611_v20  ;;  %9550 = vmatprep.subr.bf16.mxu1 %v15614_v27  ;;  %v15660_v20 = vld [vmem:[#allocation25 + $0x268] ss:$16 sps:$4 sm:$0xff]   ;;  %v15665_v27 = vld [vmem:[#allocation25 + $0x284] ss:$16 sps:$4 sm:$0xff]  }
 0x667   :  { %9332 = vmatpush1.bf16.msra.mxu0 %v15609_v30  ;;  %9551 = vmatpush1.bf16.msra.mxu1 %v15612_v9  ;;  %v15663_v30 = vld [vmem:[#allocation25 + $0x280] ss:$16 sps:$4 sm:$0xff]   ;;  %v15666_v9 = vld [vmem:[#allocation25 + $0x288] ss:$16 sps:$4 sm:$0xff]  }
 0x668   :  { %9333 = vmatprep.subr.bf16.mxu0 %v15617_v10  ;;  %9552 = vmatprep.subr.bf16.mxu1 %v15620_v14  ;;  %v15671_v10 = vld [vmem:[#allocation25 + $0x2a4] ss:$16 sps:$4 sm:$0xff]   ;;  %v15669_v14 = vld [vmem:[#allocation25 + $0x2a0] ss:$16 sps:$4 sm:$0xff]  }
 0x66b   :  { %9334 = vmatpush1.bf16.msra.mxu0 %v15615_v39  ;;  %9553 = vmatpush1.bf16.msra.mxu1 %v15618_v4  ;;  %v15672_v39 = vld [vmem:[#allocation25 + $0x2a8] ss:$16 sps:$4 sm:$0xff]   ;;  %v15677_v4 = vld [vmem:[#allocation25 + $0x2c4] ss:$16 sps:$4 sm:$0xff]  }
 0x66c   :  { %9335 = vmatprep.subr.bf16.mxu0 %v15623_v21  ;;  %9554 = vmatprep.subr.bf16.mxu1 %v15626_v54  ;;  %v15675_v21 = vld [vmem:[#allocation25 + $0x2c0] ss:$16 sps:$4 sm:$0xff]   ;;  %v15678_v54 = vld [vmem:[#allocation25 + $0x2c8] ss:$16 sps:$4 sm:$0xff]  }
 0x66f   :  { %9336 = vmatpush1.bf16.msra.mxu0 %v15621_v3  ;;  %9555 = vmatpush1.bf16.msra.mxu1 %v15624_v25  ;;  %v15683_v3 = vld [vmem:[#allocation25 + $0x2e4] ss:$16 sps:$4 sm:$0xff]   ;;  %v15681_v25 = vld [vmem:[#allocation25 + $0x2e0] ss:$16 sps:$4 sm:$0xff]  }
 0x670   :  { %9337 = vmatprep.subr.bf16.mxu0 %v15629_v60  ;;  %9556 = vmatprep.subr.bf16.mxu1 %v15632_v12  ;;  %v15684_v60 = vld [vmem:[#allocation25 + $0x2e8] ss:$16 sps:$4 sm:$0xff]   ;;  %v15689_v12 = vld [vmem:[#allocation25 + $0x304] ss:$16 sps:$4 sm:$0xff]  }
 0x673   :  { %9338 = vmatpush1.bf16.msra.mxu0 %v15627_v45  ;;  %9557 = vmatpush1.bf16.msra.mxu1 %v15630_v16  ;;  %v15687_v45 = vld [vmem:[#allocation25 + $0x300] ss:$16 sps:$4 sm:$0xff]   ;;  %v15690_v16 = vld [vmem:[#allocation25 + $0x308] ss:$16 sps:$4 sm:$0xff]  }
 0x674   :  { %9339 = vmatprep.subr.bf16.mxu0 %v15635_v40  ;;  %9558 = vmatprep.subr.bf16.mxu1 %v15638_v15  ;;  %v15695_v40 = vld [vmem:[#allocation25 + $0x324] ss:$16 sps:$4 sm:$0xff]   ;;  %v15693_v15 = vld [vmem:[#allocation25 + $0x320] ss:$16 sps:$4 sm:$0xff]  }
 0x677   :  { %9340 = vmatpush1.bf16.msra.mxu0 %v15633_v49  ;;  %9559 = vmatpush1.bf16.msra.mxu1 %v15636_v61  ;;  %v15696_v49 = vld [vmem:[#allocation25 + $0x328] ss:$16 sps:$4 sm:$0xff]   ;;  %v15701_v61 = vld [vmem:[#allocation25 + $0x344] ss:$16 sps:$4 sm:$0xff]  }
 0x678   :  { %9382 = vmatprep.subr.bf16.mxu0 %v15641_v44  ;;  %9601 = vmatprep.subr.bf16.mxu1 %v15644_v6  ;;  %v15704_v44 = vld [vmem:[#allocation25 + $0x34c] ss:$16 sps:$4 sm:$0xff]   ;;  %v15699_v6 = vld [vmem:[#allocation25 + $0x340] ss:$16 sps:$4 sm:$0xff]  }
 0x67a   :  { %9342 = vmatmul.mubr.bf16.vlgmr.msra.gmra.mrb[64].mxu0 %v17197_v42  ;;  %9561 = vmatmul.mubr.bf16.vlgmr.msra.gmra.mrb[64].mxu1 %v17197_v42  ;;  %v15662_v42 = vld [vmem:[#allocation25 + $0x26c] ss:$16 sps:$4 sm:$0xff]  }
 0x67b   :  { %9383 = vmatpush1.bf16.msra.mxu0 %v15639_v7  ;;  %9602 = vmatpush1.bf16.msra.mxu1 %v15642_v63  ;;  %v15707_v7 = vld [vmem:[#allocation25 + $0x364] ss:$16 sps:$4 sm:$0xff]   ;;  %v15710_v63 = vld [vmem:[#allocation25 + $0x36c] ss:$16 sps:$4 sm:$0xff]  }
 0x67c   :  { %9384 = vmatprep.subr.bf16.mxu0 %v15647_v59  ;;  %9603 = vmatprep.subr.bf16.mxu1 %v15650_v56  ;;  %v15705_v59 = vld [vmem:[#allocation25 + $0x360] ss:$16 sps:$4 sm:$0xff]   ;;  %v15708_v56 = vld [vmem:[#allocation25 + $0x368] ss:$16 sps:$4 sm:$0xff]  }
 0x67d   :  { %9351 = vmatprep.mubr.bf16.mxu0 %v17199_v53  ;;  %9570 = vmatprep.mubr.bf16.mxu1 %v17199_v53  ;;  %v15668_v53 = vld [vmem:[#allocation25 + $0x28c] ss:$16 sps:$4 sm:$0xff]  }
 0x67f   :  { %9385 = vmatpush1.bf16.msra.mxu0 %v15645_v23  ;;  %9604 = vmatpush1.bf16.msra.mxu1 %v15648_v19  ;;  %v15713_v23 = vld [vmem:[#allocation25 + $0x384] ss:$16 sps:$4 sm:$0xff]   ;;  %v15716_v19 = vld [vmem:[#allocation25 + $0x38c] ss:$16 sps:$4 sm:$0xff]  }
 0x680   :  { %9386 = vmatprep.subr.bf16.mxu0 %v15653_v2  ;;  %9605 = vmatprep.subr.bf16.mxu1 %v15656_v55  ;;  %v15711_v2 = vld [vmem:[#allocation25 + $0x380] ss:$16 sps:$4 sm:$0xff]   ;;  %v15714_v55 = vld [vmem:[#allocation25 + $0x388] ss:$16 sps:$4 sm:$0xff]  }
 0x682   :  { %9352 = vmatmul.mubr.bf16.gmra.mrb[68].mxu0 %v17205_v62  ;;  %9571 = vmatmul.mubr.bf16.gmra.mrb[68].mxu1 %v17205_v62  ;;  %v15674_v62 = vld [vmem:[#allocation25 + $0x2ac] ss:$16 sps:$4 sm:$0xff]  }
 0x683   :  { %9387 = vmatpush1.bf16.msra.mxu0 %v15651_v46  ;;  %9606 = vmatpush1.bf16.msra.mxu1 %v15654_v8  ;;  %v15719_v46 = vld [vmem:[#allocation25 + $0x3a4] ss:$16 sps:$4 sm:$0xff]   ;;  %v15722_v8 = vld [vmem:[#allocation25 + $0x3ac] ss:$16 sps:$4 sm:$0xff]  }
 0x684   :  { %9388 = vmatprep.subr.bf16.mxu0 %v15659_v33  ;;  %9607 = vmatprep.subr.bf16.mxu1 %v15662_v42  ;;  %v15717_v33 = vld [vmem:[#allocation25 + $0x3a0] ss:$16 sps:$4 sm:$0xff]   ;;  %v15720_v42 = vld [vmem:[#allocation25 + $0x3a8] ss:$16 sps:$4 sm:$0xff]  }
 0x685   :  { %9361 = vmatprep.mubr.bf16.mxu0 %v17207_v22  ;;  %9580 = vmatprep.mubr.bf16.mxu1 %v17207_v22  ;;  %v15680_v22 = vld [vmem:[#allocation25 + $0x2cc] ss:$16 sps:$4 sm:$0xff]  }
 0x687   :  { %9389 = vmatpush1.bf16.msra.mxu0 %v15657_v26  ;;  %9608 = vmatpush1.bf16.msra.mxu1 %v15660_v20  ;;  %v15725_v26 = vld [vmem:[#allocation25 + $0x3c4] ss:$16 sps:$4 sm:$0xff]   ;;  %v15728_v20 = vld [vmem:[#allocation25 + $0x3cc] ss:$16 sps:$4 sm:$0xff]  }
 0x688   :  { %9390 = vmatprep.subr.bf16.mxu0 %v15665_v27  ;;  %9609 = vmatprep.subr.bf16.mxu1 %v15668_v53  ;;  %v15723_v27 = vld [vmem:[#allocation25 + $0x3c0] ss:$16 sps:$4 sm:$0xff]   ;;  %v15726_v53 = vld [vmem:[#allocation25 + $0x3c8] ss:$16 sps:$4 sm:$0xff]  }
 0x68a   :  { %9362 = vmatmul.mubr.bf16.gmra.mrb[72].mxu0 %v17213_v35  ;;  %9581 = vmatmul.mubr.bf16.gmra.mrb[72].mxu1 %v17213_v35  ;;  %v15686_v35 = vld [vmem:[#allocation25 + $0x2ec] ss:$16 sps:$4 sm:$0xff]  }
 0x68b   :  { %9391 = vmatpush1.bf16.msra.mxu0 %v15663_v30  ;;  %9610 = vmatpush1.bf16.msra.mxu1 %v15666_v9  ;;  %v15731_v30 = vld [vmem:[#allocation25 + $0x3e4] ss:$16 sps:$4 sm:$0xff]   ;;  %v15734_v9 = vld [vmem:[#allocation25 + $0x3ec] ss:$16 sps:$4 sm:$0xff]  }
 0x68c   :  { %9392 = vmatprep.subr.bf16.mxu0 %v15671_v10  ;;  %9611 = vmatprep.subr.bf16.mxu1 %v15674_v62  ;;  %v15729_v10 = vld [vmem:[#allocation25 + $0x3e0] ss:$16 sps:$4 sm:$0xff]   ;;  %v15732_v62 = vld [vmem:[#allocation25 + $0x3e8] ss:$16 sps:$4 sm:$0xff]  }
 0x68d   :  { %9371 = vmatprep.mubr.bf16.mxu0 %v17215_v43  ;;  %9590 = vmatprep.mubr.bf16.mxu1 %v17215_v43  ;;  %v15692_v43 = vld [vmem:[#allocation25 + $0x30c] ss:$16 sps:$4 sm:$0xff]  }
 0x68f   :  { %9393 = vmatpush1.bf16.msra.mxu0 %v15669_v14  ;;  %9612 = vmatpush1.bf16.msra.mxu1 %v15672_v39  ;;  %v15737_v14 = vld [vmem:[#allocation25 + $0x404] ss:$16 sps:$4 sm:$0xff]   ;;  %v15740_v39 = vld [vmem:[#allocation25 + $0x40c] ss:$16 sps:$4 sm:$0xff]  }
 0x690   :  { %9394 = vmatprep.subr.bf16.mxu0 %v15677_v4  ;;  %9613 = vmatprep.subr.bf16.mxu1 %v15680_v22  ;;  %v15735_v4 = vld [vmem:[#allocation25 + $0x400] ss:$16 sps:$4 sm:$0xff]   ;;  %v15738_v22 = vld [vmem:[#allocation25 + $0x408] ss:$16 sps:$4 sm:$0xff]  }
 0x692   :  { %9372 = vmatmul.mubr.bf16.gmra.mrb[76].mxu0 %v17221_v57  ;;  %9591 = vmatmul.mubr.bf16.gmra.mrb[76].mxu1 %v17221_v57  ;;  %v15698_v57 = vld [vmem:[#allocation25 + $0x32c] ss:$16 sps:$4 sm:$0xff]  }
 0x693   :  { %9395 = vmatpush1.bf16.msra.mxu0 %v15675_v21  ;;  %9614 = vmatpush1.bf16.msra.mxu1 %v15678_v54  ;;  %v15743_v21 = vld [vmem:[#allocation25 + $0x424] ss:$16 sps:$4 sm:$0xff]   ;;  %v15746_v54 = vld [vmem:[#allocation25 + $0x42c] ss:$16 sps:$4 sm:$0xff]  }
 0x694   :  { %9396 = vmatprep.subr.bf16.mxu0 %v15683_v3  ;;  %9615 = vmatprep.subr.bf16.mxu1 %v15686_v35  ;;  %v15741_v3 = vld [vmem:[#allocation25 + $0x420] ss:$16 sps:$4 sm:$0xff]   ;;  %v15744_v35 = vld [vmem:[#allocation25 + $0x428] ss:$16 sps:$4 sm:$0xff]  }
 0x695   :  { %9414 = vmatprep.mubr.bf16.mxu0 %v17223_v11  ;;  %9633 = vmatprep.mubr.bf16.mxu1 %v17223_v11  ;;  %v15702_v11 = vld [vmem:[#allocation25 + $0x348] ss:$16 sps:$4 sm:$0xff]  }
 0x697   :  { %9397 = vmatpush1.bf16.msra.mxu0 %v15681_v25  ;;  %9616 = vmatpush1.bf16.msra.mxu1 %v15684_v60  ;;  %v15749_v25 = vld [vmem:[#allocation25 + $0x444] ss:$16 sps:$4 sm:$0xff]   ;;  %v15752_v60 = vld [vmem:[#allocation25 + $0x44c] ss:$16 sps:$4 sm:$0xff]  }
 0x698   :  { %9398 = vmatprep.subr.bf16.mxu0 %v15689_v12  ;;  %9617 = vmatprep.subr.bf16.mxu1 %v15692_v43  ;;  %v15747_v12 = vld [vmem:[#allocation25 + $0x440] ss:$16 sps:$4 sm:$0xff]   ;;  %v15750_v43 = vld [vmem:[#allocation25 + $0x448] ss:$16 sps:$4 sm:$0xff]  }
 0x69b   :  { %9399 = vmatpush1.bf16.msra.mxu0 %v15687_v45  ;;  %9618 = vmatpush1.bf16.msra.mxu1 %v15690_v16  ;;  %v15755_v45 = vld [vmem:[#allocation25 + $0x464] ss:$16 sps:$4 sm:$0xff]   ;;  %v15753_v16 = vld [vmem:[#allocation25 + $0x460] ss:$16 sps:$4 sm:$0xff]  }
 0x69c   :  { %9400 = vmatprep.subr.bf16.mxu0 %v15695_v40  ;;  %9619 = vmatprep.subr.bf16.mxu1 %v15698_v57  ;;  %v15756_v40 = vld [vmem:[#allocation25 + $0x468] ss:$16 sps:$4 sm:$0xff]   ;;  %v15761_v57 = vld [vmem:[#allocation25 + $0x484] ss:$16 sps:$4 sm:$0xff]  }
 0x69f   :  { %9401 = vmatpush1.bf16.msra.mxu0 %v15693_v15  ;;  %9620 = vmatpush1.bf16.msra.mxu1 %v15696_v49  ;;  %v15759_v15 = vld [vmem:[#allocation25 + $0x480] ss:$16 sps:$4 sm:$0xff]   ;;  %v15762_v49 = vld [vmem:[#allocation25 + $0x488] ss:$16 sps:$4 sm:$0xff]  }
 0x6a0   :  { %9402 = vmatprep.subr.bf16.mxu0 %v15701_v61  ;;  %9621 = vmatprep.subr.bf16.mxu1 %v15704_v44  ;;  %v15767_v61 = vld [vmem:[#allocation25 + $0x4a4] ss:$16 sps:$4 sm:$0xff]   ;;  %v15765_v44 = vld [vmem:[#allocation25 + $0x4a0] ss:$16 sps:$4 sm:$0xff]  }
 0x6a3   :  { %9403 = vmatpush1.bf16.msra.mxu0 %v15699_v6  ;;  %9622 = vmatpush1.bf16.msra.mxu1 %v15702_v11  ;;  %v15768_v6 = vld [vmem:[#allocation25 + $0x4a8] ss:$16 sps:$4 sm:$0xff]   ;;  %v15773_v11 = vld [vmem:[#allocation25 + $0x4c4] ss:$16 sps:$4 sm:$0xff]  }
 0x6a4   :  { %9404 = vmatprep.subr.bf16.mxu0 %v15707_v7  ;;  %9623 = vmatprep.subr.bf16.mxu1 %v15710_v63  ;;  %v15771_v7 = vld [vmem:[#allocation25 + $0x4c0] ss:$16 sps:$4 sm:$0xff]   ;;  %v15774_v63 = vld [vmem:[#allocation25 + $0x4c8] ss:$16 sps:$4 sm:$0xff]  }
 0x6a7   :  { %9405 = vmatpush1.bf16.msra.mxu0 %v15705_v59  ;;  %9624 = vmatpush1.bf16.msra.mxu1 %v15708_v56  ;;  %v15779_v59 = vld [vmem:[#allocation25 + $0x4e4] ss:$16 sps:$4 sm:$0xff]   ;;  %v15777_v56 = vld [vmem:[#allocation25 + $0x4e0] ss:$16 sps:$4 sm:$0xff]  }
 0x6a8   :  { %9406 = vmatprep.subr.bf16.mxu0 %v15713_v23  ;;  %9625 = vmatprep.subr.bf16.mxu1 %v15716_v19  ;;  %v15780_v23 = vld [vmem:[#allocation25 + $0x4e8] ss:$16 sps:$4 sm:$0xff]   ;;  %v15785_v19 = vld [vmem:[#allocation25 + $0x504] ss:$16 sps:$4 sm:$0xff]  }
 0x6ab   :  { %9407 = vmatpush1.bf16.msra.mxu0 %v15711_v2  ;;  %9626 = vmatpush1.bf16.msra.mxu1 %v15714_v55  ;;  %v15783_v2 = vld [vmem:[#allocation25 + $0x500] ss:$16 sps:$4 sm:$0xff]   ;;  %v15786_v55 = vld [vmem:[#allocation25 + $0x508] ss:$16 sps:$4 sm:$0xff]  }
 0x6ac   :  { %9408 = vmatprep.subr.bf16.mxu0 %v15719_v46  ;;  %9627 = vmatprep.subr.bf16.mxu1 %v15722_v8  ;;  %v15791_v46 = vld [vmem:[#allocation25 + $0x524] ss:$16 sps:$4 sm:$0xff]   ;;  %v15789_v8 = vld [vmem:[#allocation25 + $0x520] ss:$16 sps:$4 sm:$0xff]  }
 0x6af   :  { %9409 = vmatpush1.bf16.msra.mxu0 %v15717_v33  ;;  %9628 = vmatpush1.bf16.msra.mxu1 %v15720_v42  ;;  %v15792_v33 = vld [vmem:[#allocation25 + $0x528] ss:$16 sps:$4 sm:$0xff]   ;;  %v15797_v42 = vld [vmem:[#allocation25 + $0x544] ss:$16 sps:$4 sm:$0xff]  }
 0x6b0   :  { %9410 = vmatprep.subr.bf16.mxu0 %v15725_v26  ;;  %9629 = vmatprep.subr.bf16.mxu1 %v15728_v20  ;;  %v15800_v26 = vld [vmem:[#allocation25 + $0x54c] ss:$16 sps:$4 sm:$0xff]   ;;  %v15795_v20 = vld [vmem:[#allocation25 + $0x540] ss:$16 sps:$4 sm:$0xff]  }
 0x6b3   :  { %9411 = vmatpush1.bf16.msra.mxu0 %v15723_v27  ;;  %9630 = vmatpush1.bf16.msra.mxu1 %v15726_v53  ;;  %v15803_v27 = vld [vmem:[#allocation25 + $0x564] ss:$16 sps:$4 sm:$0xff]   ;;  %v15806_v53 = vld [vmem:[#allocation25 + $0x56c] ss:$16 sps:$4 sm:$0xff]  }
 0x6b4   :  { %9412 = vmatprep.subr.bf16.mxu0 %v15731_v30  ;;  %9631 = vmatprep.subr.bf16.mxu1 %v15734_v9  ;;  %v15801_v30 = vld [vmem:[#allocation25 + $0x560] ss:$16 sps:$4 sm:$0xff]   ;;  %v15804_v9 = vld [vmem:[#allocation25 + $0x568] ss:$16 sps:$4 sm:$0xff]  }
 0x6b7   :  { %9413 = vmatpush1.bf16.msra.mxu0 %v15729_v10  ;;  %9632 = vmatpush1.bf16.msra.mxu1 %v15732_v62  ;;  %v15809_v10 = vld [vmem:[#allocation25 + $0x584] ss:$16 sps:$4 sm:$0xff]   ;;  %v15812_v62 = vld [vmem:[#allocation25 + $0x58c] ss:$16 sps:$4 sm:$0xff]  }
 0x6b8   :  { %9455 = vmatprep.subr.bf16.mxu0 %v15737_v14  ;;  %9674 = vmatprep.subr.bf16.mxu1 %v15740_v39  ;;  %v15807_v14 = vld [vmem:[#allocation25 + $0x580] ss:$16 sps:$4 sm:$0xff]   ;;  %v15810_v39 = vld [vmem:[#allocation25 + $0x588] ss:$16 sps:$4 sm:$0xff]  }
 0x6ba   :  { %9415 = vmatmul.mubr.bf16.vlgmr.msra.gmra.mrb[64].mxu0 %v17229_v34  ;;  %9634 = vmatmul.mubr.bf16.vlgmr.msra.gmra.mrb[64].mxu1 %v17229_v34  ;;  %v15758_v34 = vld [vmem:[#allocation25 + $0x46c] ss:$16 sps:$4 sm:$0xff]  }
 0x6bb   :  { %9456 = vmatpush1.bf16.msra.mxu0 %v15735_v4  ;;  %9675 = vmatpush1.bf16.msra.mxu1 %v15738_v22  ;;  %v15815_v4 = vld [vmem:[#allocation25 + $0x5a4] ss:$16 sps:$4 sm:$0xff]   ;;  %v15818_v22 = vld [vmem:[#allocation25 + $0x5ac] ss:$16 sps:$4 sm:$0xff]  }
 0x6bc   :  { %9457 = vmatprep.subr.bf16.mxu0 %v15743_v21  ;;  %9676 = vmatprep.subr.bf16.mxu1 %v15746_v54  ;;  %v15813_v21 = vld [vmem:[#allocation25 + $0x5a0] ss:$16 sps:$4 sm:$0xff]   ;;  %v15816_v54 = vld [vmem:[#allocation25 + $0x5a8] ss:$16 sps:$4 sm:$0xff]  }
 0x6bd   :  { %9424 = vmatprep.mubr.bf16.mxu0 %v17231_v51  ;;  %9643 = vmatprep.mubr.bf16.mxu1 %v17231_v51  ;;  %v15764_v51 = vld [vmem:[#allocation25 + $0x48c] ss:$16 sps:$4 sm:$0xff]  }
 0x6bf   :  { %9458 = vmatpush1.bf16.msra.mxu0 %v15741_v3  ;;  %9677 = vmatpush1.bf16.msra.mxu1 %v15744_v35  ;;  %v15821_v3 = vld [vmem:[#allocation25 + $0x5c4] ss:$16 sps:$4 sm:$0xff]   ;;  %v15824_v35 = vld [vmem:[#allocation25 + $0x5cc] ss:$16 sps:$4 sm:$0xff]  }
 0x6c0   :  { %9459 = vmatprep.subr.bf16.mxu0 %v15749_v25  ;;  %9678 = vmatprep.subr.bf16.mxu1 %v15752_v60  ;;  %v15819_v25 = vld [vmem:[#allocation25 + $0x5c0] ss:$16 sps:$4 sm:$0xff]   ;;  %v15822_v60 = vld [vmem:[#allocation25 + $0x5c8] ss:$16 sps:$4 sm:$0xff]  }
 0x6c2   :  { %9425 = vmatmul.mubr.bf16.gmra.mrb[68].mxu0 %v17237_v0  ;;  %9644 = vmatmul.mubr.bf16.gmra.mrb[68].mxu1 %v17237_v0  ;;  %v15770_v0 = vld [vmem:[#allocation25 + $0x4ac] ss:$16 sps:$4 sm:$0xff]  }
 0x6c3   :  { %9460 = vmatpush1.bf16.msra.mxu0 %v15747_v12  ;;  %9679 = vmatpush1.bf16.msra.mxu1 %v15750_v43  ;;  %v15827_v12 = vld [vmem:[#allocation25 + $0x5e4] ss:$16 sps:$4 sm:$0xff]   ;;  %v15830_v43 = vld [vmem:[#allocation25 + $0x5ec] ss:$16 sps:$4 sm:$0xff]  }
 0x6c4   :  { %9461 = vmatprep.subr.bf16.mxu0 %v15755_v45  ;;  %9680 = vmatprep.subr.bf16.mxu1 %v15758_v34  ;;  %v15825_v45 = vld [vmem:[#allocation25 + $0x5e0] ss:$16 sps:$4 sm:$0xff]   ;;  %v15828_v34 = vld [vmem:[#allocation25 + $0x5e8] ss:$16 sps:$4 sm:$0xff]  }
 0x6c5   :  { %9434 = vmatprep.mubr.bf16.mxu0 %v17239_v13  ;;  %9653 = vmatprep.mubr.bf16.mxu1 %v17239_v13  ;;  %v15776_v13 = vld [vmem:[#allocation25 + $0x4cc] ss:$16 sps:$4 sm:$0xff]  }
 0x6c7   :  { %9462 = vmatpush1.bf16.msra.mxu0 %v15753_v16  ;;  %9681 = vmatpush1.bf16.msra.mxu1 %v15756_v40  ;;  %v15833_v16 = vld [vmem:[#allocation23 + $0x4] ss:$16 sps:$4 sm:$0xff]   ;;  %v15836_v40 = vld [vmem:[#allocation23 + $0xc] ss:$16 sps:$4 sm:$0xff]  }
 0x6c8   :  { %9463 = vmatprep.subr.bf16.mxu0 %v15761_v57  ;;  %9682 = vmatprep.subr.bf16.mxu1 %v15764_v51  ;;  %v15831_v57 = vld [vmem:[#allocation23] ss:$16 sps:$4 sm:$0xff]   ;;  %v15834_v51 = vld [vmem:[#allocation23 + $0x8] ss:$16 sps:$4 sm:$0xff]  }
 0x6ca   :  { %9435 = vmatmul.mubr.bf16.gmra.mrb[72].mxu0 %v17245_v31  ;;  %9654 = vmatmul.mubr.bf16.gmra.mrb[72].mxu1 %v17245_v31  ;;  %v15782_v31 = vld [vmem:[#allocation25 + $0x4ec] ss:$16 sps:$4 sm:$0xff]  }
 0x6cb   :  { %9464 = vmatpush1.bf16.msra.mxu0 %v15759_v15  ;;  %9683 = vmatpush1.bf16.msra.mxu1 %v15762_v49  ;;  %v15839_v15 = vld [vmem:[#allocation23 + $0x24] ss:$16 sps:$4 sm:$0xff]   ;;  %v15842_v49 = vld [vmem:[#allocation23 + $0x2c] ss:$16 sps:$4 sm:$0xff]  }
 0x6cc   :  { %9465 = vmatprep.subr.bf16.mxu0 %v15767_v61  ;;  %9684 = vmatprep.subr.bf16.mxu1 %v15770_v0  ;;  %v15837_v61 = vld [vmem:[#allocation23 + $0x20] ss:$16 sps:$4 sm:$0xff]   ;;  %v15840_v0 = vld [vmem:[#allocation23 + $0x28] ss:$16 sps:$4 sm:$0xff]  }
 0x6cd   :  { %9444 = vmatprep.mubr.bf16.mxu0 %v17247_v52  ;;  %9663 = vmatprep.mubr.bf16.mxu1 %v17247_v52  ;;  %v15788_v52 = vld [vmem:[#allocation25 + $0x50c] ss:$16 sps:$4 sm:$0xff]  }
 0x6cf   :  { %9466 = vmatpush1.bf16.msra.mxu0 %v15765_v44  ;;  %9685 = vmatpush1.bf16.msra.mxu1 %v15768_v6  ;;  %v15845_v44 = vld [vmem:[#allocation23 + $0x44] ss:$16 sps:$4 sm:$0xff]   ;;  %v15848_v6 = vld [vmem:[#allocation23 + $0x4c] ss:$16 sps:$4 sm:$0xff]  }
 0x6d0   :  { %9467 = vmatprep.subr.bf16.mxu0 %v15773_v11  ;;  %9686 = vmatprep.subr.bf16.mxu1 %v15776_v13  ;;  %v15843_v11 = vld [vmem:[#allocation23 + $0x40] ss:$16 sps:$4 sm:$0xff]   ;;  %v15846_v13 = vld [vmem:[#allocation23 + $0x48] ss:$16 sps:$4 sm:$0xff]  }
 0x6d2   :  { %9445 = vmatmul.mubr.bf16.gmra.mrb[76].mxu0 %v17253_v17  ;;  %9664 = vmatmul.mubr.bf16.gmra.mrb[76].mxu1 %v17253_v17  ;;  %v15794_v17 = vld [vmem:[#allocation25 + $0x52c] ss:$16 sps:$4 sm:$0xff]  }
 0x6d3   :  { %9468 = vmatpush1.bf16.msra.mxu0 %v15771_v7  ;;  %9687 = vmatpush1.bf16.msra.mxu1 %v15774_v63  ;;  %v15851_v7 = vld [vmem:[#allocation23 + $0x64] ss:$16 sps:$4 sm:$0xff]   ;;  %v15849_v63 = vld [vmem:[#allocation23 + $0x60] ss:$16 sps:$4 sm:$0xff]  }
 0x6d4   :  { %9469 = vmatprep.subr.bf16.mxu0 %v15779_v59  ;;  %9688 = vmatprep.subr.bf16.mxu1 %v15782_v31  ;;  %v15852_v59 = vld [vmem:[#allocation23 + $0x68] ss:$16 sps:$4 sm:$0xff]   ;;  %v15857_v31 = vld [vmem:[#allocation23 + $0x84] ss:$16 sps:$4 sm:$0xff]  }
 0x6d5   :  { %9487 = vmatprep.mubr.bf16.mxu0 %v17255_v24  ;;  %9706 = vmatprep.mubr.bf16.mxu1 %v17255_v24  ;;  %v15798_v24 = vld [vmem:[#allocation25 + $0x548] ss:$16 sps:$4 sm:$0xff]  }
 0x6d7   :  { %9470 = vmatpush1.bf16.msra.mxu0 %v15777_v56  ;;  %9689 = vmatpush1.bf16.msra.mxu1 %v15780_v23  ;;  %v15855_v56 = vld [vmem:[#allocation23 + $0x80] ss:$16 sps:$4 sm:$0xff]   ;;  %v15858_v23 = vld [vmem:[#allocation23 + $0x88] ss:$16 sps:$4 sm:$0xff]  }
 0x6d8   :  { %9471 = vmatprep.subr.bf16.mxu0 %v15785_v19  ;;  %9690 = vmatprep.subr.bf16.mxu1 %v15788_v52  ;;  %v15863_v19 = vld [vmem:[#allocation23 + $0xa4] ss:$16 sps:$4 sm:$0xff]   ;;  %v15861_v52 = vld [vmem:[#allocation23 + $0xa0] ss:$16 sps:$4 sm:$0xff]  }
 0x6db   :  { %9472 = vmatpush1.bf16.msra.mxu0 %v15783_v2  ;;  %9691 = vmatpush1.bf16.msra.mxu1 %v15786_v55  ;;  %v15864_v2 = vld [vmem:[#allocation23 + $0xa8] ss:$16 sps:$4 sm:$0xff]   ;;  %v15869_v55 = vld [vmem:[#allocation23 + $0xc4] ss:$16 sps:$4 sm:$0xff]  }
 0x6dc   :  { %9473 = vmatprep.subr.bf16.mxu0 %v15791_v46  ;;  %9692 = vmatprep.subr.bf16.mxu1 %v15794_v17 }
 0x6df   :  { %9474 = vmatpush1.bf16.msra.mxu0 %v15789_v8  ;;  %9693 = vmatpush1.bf16.msra.mxu1 %v15792_v33  ;;  %v17408_v8 = vld [vmem:[#allocation22] ss:$0 sm:$0xff] }
 0x6e0   :  { %9475 = vmatprep.subr.bf16.mxu0 %v15797_v42  ;;  %9694 = vmatprep.subr.bf16.mxu1 %v15800_v26 }
 0x6e3   :  { %9476 = vmatpush1.bf16.msra.mxu0 %v15795_v20  ;;  %9695 = vmatpush1.bf16.msra.mxu1 %v15798_v24 }
 0x6e4   :  { %9477 = vmatprep.subr.bf16.mxu0 %v15803_v27  ;;  %9696 = vmatprep.subr.bf16.mxu1 %v15806_v53  ;;  %v15867_v27 = vld [vmem:[#allocation23 + $0xc0] ss:$16 sps:$4 sm:$0xff]   ;;  %v15870_v53 = vld [vmem:[#allocation23 + $0xc8] ss:$16 sps:$4 sm:$0xff]  }
 0x6e7   :  { %9478 = vmatpush1.bf16.msra.mxu0 %v15801_v30  ;;  %9697 = vmatpush1.bf16.msra.mxu1 %v15804_v9 }
 0x6e8   :  { %9479 = vmatprep.subr.bf16.mxu0 %v15809_v10  ;;  %9698 = vmatprep.subr.bf16.mxu1 %v15812_v62  ;;  %v15875_v10 = vld [vmem:[#allocation23 + $0xe4] ss:$16 sps:$4 sm:$0xff]   ;;  %v15878_v62 = vld [vmem:[#allocation23 + $0xec] ss:$16 sps:$4 sm:$0xff]  }
 0x6eb   :  { %9480 = vmatpush1.bf16.msra.mxu0 %v15807_v14  ;;  %9699 = vmatpush1.bf16.msra.mxu1 %v15810_v39 }
 0x6ec   :  { %9481 = vmatprep.subr.bf16.mxu0 %v15815_v4  ;;  %9700 = vmatprep.subr.bf16.mxu1 %v15818_v22 }
 0x6ef   :  { %9482 = vmatpush1.bf16.msra.mxu0 %v15813_v21  ;;  %9701 = vmatpush1.bf16.msra.mxu1 %v15816_v54  ;;  %v15873_v21 = vld [vmem:[#allocation23 + $0xe0] ss:$16 sps:$4 sm:$0xff]   ;;  %v15876_v54 = vld [vmem:[#allocation23 + $0xe8] ss:$16 sps:$4 sm:$0xff]  }
 0x6f0   :  { %9483 = vmatprep.subr.bf16.mxu0 %v15821_v3  ;;  %9702 = vmatprep.subr.bf16.mxu1 %v15824_v35  ;;  %v15881_v3 = vld [vmem:[#allocation23 + $0x104] ss:$16 sps:$4 sm:$0xff]   ;;  %v15884_v35 = vld [vmem:[#allocation23 + $0x10c] ss:$16 sps:$4 sm:$0xff]  }
 0x6f3   :  { %9484 = vmatpush1.bf16.msra.mxu0 %v15819_v25  ;;  %9703 = vmatpush1.bf16.msra.mxu1 %v15822_v60  ;;  %v4274_v25 = vmax.f32 %v17295_v38, 0.0 }
 0x6f4   :  { %9485 = vmatprep.subr.bf16.mxu0 %v15827_v12  ;;  %9704 = vmatprep.subr.bf16.mxu1 %v15830_v43 }
 0x6f7   :  { %9486 = vmatpush1.bf16.msra.mxu0 %v15825_v45  ;;  %9705 = vmatpush1.bf16.msra.mxu1 %v15828_v34 }
 0x6f8   :  { %10707 = vmatprep.subr.bf16.mxu0 %v15833_v16  ;;  %10926 = vmatprep.subr.bf16.mxu1 %v15836_v40  ;;  %v15879_v40 = vld [vmem:[#allocation23 + $0x100] ss:$16 sps:$4 sm:$0xff]  }
 0x6fa   :  { %9488 = vmatmul.mubr.bf16.vlgmr.msra.gmra.mrb[64].mxu0 %v17261_v32  ;;  %9707 = vmatmul.mubr.bf16.vlgmr.msra.gmra.mrb[64].mxu1 %v17261_v32  ;;  %v15854_v32 = vld [vmem:[#allocation23 + $0x6c] ss:$16 sps:$4 sm:$0xff]  }
 0x6fb   :  { %10708 = vmatpush1.bf16.msra.mxu0 %v15831_v57  ;;  %10927 = vmatpush1.bf16.msra.mxu1 %v15834_v51 }
 0x6fc   :  { %10709 = vmatprep.subr.bf16.mxu0 %v15839_v15  ;;  %10928 = vmatprep.subr.bf16.mxu1 %v15842_v49 }
 0x6fd   :  { %9497 = vmatprep.mubr.bf16.mxu0 %v17263_v58  ;;  %9716 = vmatprep.mubr.bf16.mxu1 %v17263_v58  ;;  %v15860_v58 = vld [vmem:[#allocation23 + $0x8c] ss:$16 sps:$4 sm:$0xff]  }
 0x6ff   :  { %10710 = vmatpush1.bf16.msra.mxu0 %v15837_v61  ;;  %10929 = vmatpush1.bf16.msra.mxu1 %v15840_v0  ;;  %v15882_v0 = vld [vmem:[#allocation23 + $0x108] ss:$16 sps:$4 sm:$0xff]  }
 0x700   :  { %10711 = vmatprep.subr.bf16.mxu0 %v15845_v44  ;;  %10930 = vmatprep.subr.bf16.mxu1 %v15848_v6 }
 0x702   :  { %9498 = vmatmul.mubr.bf16.gmra.mrb[68].mxu0 %v17269_v5  ;;  %9717 = vmatmul.mubr.bf16.gmra.mrb[68].mxu1 %v17269_v5  ;;  %v15866_v5 = vld [vmem:[#allocation23 + $0xac] ss:$16 sps:$4 sm:$0xff]  }
 0x703   :  { %10712 = vmatpush1.bf16.msra.mxu0 %v15843_v11  ;;  %10931 = vmatpush1.bf16.msra.mxu1 %v15846_v13  ;;  %v15890_v11 = vld [vmem:[#allocation23 + $0x12c] ss:$16 sps:$4 sm:$0xff]  }
 0x704   :  { %10713 = vmatprep.subr.bf16.mxu0 %v15851_v7  ;;  %10932 = vmatprep.subr.bf16.mxu1 %v15854_v32 }
 0x705   :  { %9507 = vmatprep.mubr.bf16.mxu0 %v17271_v41  ;;  %9726 = vmatprep.mubr.bf16.mxu1 %v17271_v41  ;;  %v15872_v41 = vld [vmem:[#allocation23 + $0xcc] ss:$16 sps:$4 sm:$0xff]  }
 0x707   :  { %10714 = vmatpush1.bf16.msra.mxu0 %v15849_v63  ;;  %10933 = vmatpush1.bf16.msra.mxu1 %v15852_v59 }
 0x708   :  { %10715 = vmatprep.subr.bf16.mxu0 %v15857_v31  ;;  %10934 = vmatprep.subr.bf16.mxu1 %v15860_v58  ;;  %v15885_v31 = vld [vmem:[#allocation23 + $0x120] ss:$16 sps:$4 sm:$0xff]   ;;  %v15888_v58 = vld [vmem:[#allocation23 + $0x128] ss:$16 sps:$4 sm:$0xff]  }
 0x70a   :  { %9508 = vmatmul.mubr.bf16.gmra.mrb[72].mxu0 %v17277_v18  ;;  %9727 = vmatmul.mubr.bf16.gmra.mrb[72].mxu1 %v17277_v18 }
 0x70b   :  { %10716 = vmatpush1.bf16.msra.mxu0 %v15855_v56  ;;  %10935 = vmatpush1.bf16.msra.mxu1 %v15858_v23  ;;  %v15893_v23 = vld [vmem:[#allocation23 + $0x144] ss:$16 sps:$4 sm:$0xff]  }
 0x70c   :  { %10717 = vmatprep.subr.bf16.mxu0 %v15863_v19  ;;  %10936 = vmatprep.subr.bf16.mxu1 %v15866_v5  ;;  %v15896_v19 = vld [vmem:[#allocation23 + $0x14c] ss:$16 sps:$4 sm:$0xff]   ;;  %v4276_v5 = vmax.f32 %v17301_v48, 0.0 }
 0x70d   :  { %v13553_v46 = vpop.f32.mrb[48].mxu0  ;;  %v13593_v17 = vpop.f32.mrb[48].mxu1  ;;  %9517 = vmatprep.mubr.bf16.mxu0 %v17279_v36  ;;  %9736 = vmatprep.mubr.bf16.mxu1 %v17279_v36 }
 0x70e   :  { %v13554_v33 = vpop.f32.mrb[49].mxu0  ;;  %v13594_v42 = vpop.f32.mrb[49].mxu1 }
 0x70f   :  { %v13555_v26 = vadd.f32 %v13554_v33, %v13553_v46  ;;  %v13595_v18 = vadd.f32 %v13594_v42, %v13593_v17  ;;  %10718 = vmatpush1.bf16.msra.mxu0 %v15861_v52  ;;  %10937 = vmatpush1.bf16.msra.mxu1 %v15864_v2  ;;  %v13556_v20 = vpop.f32.mrb[50].mxu0  ;;  %v13596_v24 = vpop.f32.mrb[50].mxu1  ;;  %v4277_v46 = vmax.f32 %v17304_v47, 0.0  ;;  %v15891_v42 = vld [vmem:[#allocation23 + $0x140] ss:$16 sps:$4 sm:$0xff]  }
 0x710   :  { %v13557_v30 = vpop.f32.mrb[51].mxu0  ;;  %v13597_v9 = vpop.f32.mrb[51].mxu1  ;;  %10719 = vmatprep.subr.bf16.mxu0 %v15869_v55  ;;  %10938 = vmatprep.subr.bf16.mxu1 %v15872_v41 }
 0x711   :  { %v7862_v36 = vadd.f32 %v13555_v26, %v17408_v8  ;;  %v13558_v14 = vadd.f32 %v13557_v30, %v13556_v20  ;;  %v13598_v39 = vadd.f32 %v13597_v9, %v13596_v24  ;;  %v15894_v30 = vld [vmem:[#allocation23 + $0x148] ss:$16 sps:$4 sm:$0xff]  }
 0x712   :  { %9518 = vmatmul.mubr.bf16.gmra.mrb[76].mxu0 %v17290_v28  ;;  %9737 = vmatmul.mubr.bf16.gmra.mrb[76].mxu1 %v17290_v28  ;;  %v4275_v28 = vmax.f32 %v17298_v1, 0.0 }
 0x713   :  { %v7927_v4 = vadd.f32 %v13595_v18, %v7862_v36  ;;  %v7865_v22 = vadd.f32 %v13558_v14, %v17408_v8  ;;  %10720 = vmatpush1.bf16.msra.mxu0 %v15867_v27  ;;  %10939 = vmatpush1.bf16.msra.mxu1 %v15870_v53 }
 0x714   :  { %10721 = vmatprep.subr.bf16.mxu0 %v15875_v10  ;;  %10940 = vmatprep.subr.bf16.mxu1 %v15878_v62  ;;  %v15899_v10 = vld [vmem:[#allocation23 + $0x164] ss:$16 sps:$4 sm:$0xff]   ;;  %v15902_v62 = vld [vmem:[#allocation23 + $0x16c] ss:$16 sps:$4 sm:$0xff]  }
 0x715   :  { %v7957_v60 = vmax.f32 %v7927_v4, 0.0  ;;  %v7930_v12 = vadd.f32 %v13598_v39, %v7865_v22  ;;  %v13559_v43 = vpop.f32.mrb[52].mxu0  ;;  %v13599_v45 = vpop.f32.mrb[52].mxu1  ;;  %10739 = vmatprep.mubr.bf16.mxu0 %v17045_v50  ;;  %10958 = vmatprep.mubr.bf16.mxu1 %v17045_v50  ;;  %v15887_v50 = vld [vmem:[#allocation23 + $0x124] ss:$16 sps:$4 sm:$0xff]  }
 0x716   :  { %v13560_v34 = vpop.f32.mrb[53].mxu0  ;;  %v13600_v16 = vpop.f32.mrb[53].mxu1 }
 0x717   :  { %v17418_v57 = vadd.f32 %v7957_v60, %v4274_v25  ;;  %v7958_v51 = vmax.f32 %v7930_v12, 0.0  ;;  %v13561_v15 = vadd.f32 %v13560_v34, %v13559_v43  ;;  %v13601_v49 = vadd.f32 %v13600_v16, %v13599_v45  ;;  %10722 = vmatpush1.bf16.msra.mxu0 %v15873_v21  ;;  %10941 = vmatpush1.bf16.msra.mxu1 %v15876_v54  ;;  %v13562_v38 = vpop.f32.mrb[54].mxu0  ;;  %v13602_v61 = vpop.f32.mrb[54].mxu1  ;;  %v15897_v54 = vld [vmem:[#allocation23 + $0x160] ss:$16 sps:$4 sm:$0xff]  }
 0x718   :  { %v13563_v44 = vpop.f32.mrb[55].mxu0  ;;  %v13603_v6 = vpop.f32.mrb[55].mxu1  ;;  %10723 = vmatprep.subr.bf16.mxu0 %v15881_v3  ;;  %10942 = vmatprep.subr.bf16.mxu1 %v15884_v35  ;;  %v15900_v3 = vld [vmem:[#allocation23 + $0x168] ss:$16 sps:$4 sm:$0xff]   ;;  %v15905_v35 = vld [vmem:[#allocation23 + $0x184] ss:$16 sps:$4 sm:$0xff]  }
 0x719   :  { %v17420_v1 = vadd.f32 %v7958_v51, %v4275_v28  ;;  %v7870_v13 = vadd.f32 %v13561_v15, %v17408_v8  ;;  %v13564_v7 = vadd.f32 %v13563_v44, %v13562_v38  ;;  %v13604_v32 = vadd.f32 %v13603_v6, %v13602_v61  ;;  %v15908_v25 = vld [vmem:[#allocation23 + $0x18c] ss:$16 sps:$4 sm:$0xff]   ;;  %v15903_v51 = vld [vmem:[#allocation23 + $0x180] ss:$16 sps:$4 sm:$0xff]   ;;  %v15906_v6 = vld [vmem:[#allocation23 + $0x188] ss:$16 sps:$4 sm:$0xff]  }
 0x71a   :  { %v4278_v60 = vmax.f32 %v17307_v37, 0.0  ;;  %v4279_v34 = vmax.f32 %v17310_v29, 0.0 }
 0x71b   :  { %v7935_v63 = vadd.f32 %v13601_v49, %v7870_v13  ;;  %v7873_v59 = vadd.f32 %v13564_v7, %v17408_v8  ;;  %10724 = vmatpush1.bf16.msra.mxu0 %v15879_v40  ;;  %10943 = vmatpush1.bf16.msra.mxu1 %v15882_v0  ;;  %v11656_v56 = vpack.c.bf16 %v17420_v1, %v17418_v57  ;;  %v15914_v13 = vld [vmem:[#allocation23 + $0x1ac] ss:$16 sps:$4 sm:$0xff]  }
 0x71c   :  { %10725 = vmatprep.subr.bf16.mxu0 %v15887_v50  ;;  %10944 = vmatprep.subr.bf16.mxu1 %v15890_v11  ;;  %v15911_v11 = vld [vmem:[#allocation23 + $0x1a4] ss:$16 sps:$4 sm:$0xff]  }
 0x71d   :  { %v7959_v52 = vmax.f32 %v7935_v63, 0.0  ;;  %v7938_v2 = vadd.f32 %v13604_v32, %v7873_v59  ;;  %v13565_v55 = vpop.f32.mrb[56].mxu0  ;;  %v13605_v41 = vpop.f32.mrb[56].mxu1  ;;  %v16160_v57 = vld [vmem:[%s17779_s22 + $0x8] sm:$0xff]   ;;  %v16161_v1 = vld [vmem:[%s17779_s22 + $0x10] sm:$0xff]  }
 0x71e   :  { %v13566_v17 = vpop.f32.mrb[57].mxu0  ;;  %v13606_v33 = vpop.f32.mrb[57].mxu1 }
 0x71f   :  { %v17428_v26 = vadd.f32 %v7959_v52, %v4276_v5  ;;  %v7960_v18 = vmax.f32 %v7938_v2, 0.0  ;;  %v13567_v20 = vadd.f32 %v13566_v17, %v13565_v55  ;;  %v13607_v24 = vadd.f32 %v13606_v33, %v13605_v41  ;;  %10726 = vmatpush1.bf16.msra.mxu0 %v15885_v31  ;;  %10945 = vmatpush1.bf16.msra.mxu1 %v15888_v58  ;;  %v13568_v27 = vpop.f32.mrb[58].mxu0  ;;  %v13608_v53 = vpop.f32.mrb[58].mxu1  ;;  %v15909_v58 = vld [vmem:[#allocation23 + $0x1a0] ss:$16 sps:$4 sm:$0xff]   ;;  %v17917_v2 = vld [vmem:[#allocation67_spill] sm:$0xff] }
 0x720   :  { %v13569_v48 = vpop.f32.mrb[59].mxu0  ;;  %v13609_v9 = vpop.f32.mrb[59].mxu1  ;;  %10727 = vmatprep.subr.bf16.mxu0 %v15893_v23  ;;  %10946 = vmatprep.subr.bf16.mxu1 %v15896_v19  ;;  %v15912_v23 = vld [vmem:[#allocation23 + $0x1a8] ss:$16 sps:$4 sm:$0xff]   ;;  %v15917_v5 = vld [vmem:[#allocation23 + $0x1c4] ss:$16 sps:$4 sm:$0xff]  }
 0x721   :  { %v17430_v47 = vadd.f32 %v7960_v18, %v4277_v46  ;;  %v7878_v36 = vadd.f32 %v13567_v20, %v17408_v8  ;;  %v13570_v14 = vadd.f32 %v13569_v48, %v13568_v27  ;;  %v13610_v39 = vadd.f32 %v13609_v9, %v13608_v53  ;;  %v15920_v52 = vld [vmem:[#allocation23 + $0x1cc] ss:$16 sps:$4 sm:$0xff]   ;;  %v17918_v17 = vld [vmem:[#allocation68_spill] sm:$0xff]  ;;  %v15918_v20 = vld [vmem:[#allocation23 + $0x1c8] ss:$16 sps:$4 sm:$0xff]  }
 0x722   :  { %v4280_v55 = vmax.f32 %v17917_v2, 0.0  ;;  %v4281_v33 = vmax.f32 %v17918_v17, 0.0  ;;  %v15915_v18 = vld [vmem:[#allocation23 + $0x1c0] ss:$16 sps:$4 sm:$0xff]   ;;  %v15926_v27 = vld [vmem:[#allocation23 + $0x1ec] ss:$16 sps:$4 sm:$0xff]  }
 0x723   :  { %v11657_v4 = vpack.c.bf16 %v17430_v47, %v17428_v26  ;;  %v7943_v22 = vadd.f32 %v13607_v24, %v7878_v36  ;;  %v7881_v21 = vadd.f32 %v13570_v14, %v17408_v8  ;;  %10728 = vmatpush1.bf16.msra.mxu0 %v15891_v42  ;;  %10947 = vmatpush1.bf16.msra.mxu1 %v15894_v30  ;;  %v15923_v24 = vld [vmem:[#allocation23 + $0x1e4] ss:$16 sps:$4 sm:$0xff]   ;;  %v15921_v30 = vld [vmem:[#allocation23 + $0x1e0] ss:$16 sps:$4 sm:$0xff]   ;;  %v15924_v48 = vld [vmem:[#allocation23 + $0x1e8] ss:$16 sps:$4 sm:$0xff]  }
 0x724   :  { %10729 = vmatprep.subr.bf16.mxu0 %v15899_v10  ;;  %10948 = vmatprep.subr.bf16.mxu1 %v15902_v62  ;;  %v15929_v10 = vld [vmem:[#allocation23 + $0x204] ss:$16 sps:$4 sm:$0xff]   ;;  %v15932_v62 = vld [vmem:[#allocation23 + $0x20c] ss:$16 sps:$4 sm:$0xff]   ;;  %v15927_v36 = vld [vmem:[#allocation23 + $0x200] ss:$16 sps:$4 sm:$0xff]  }
 0x725   :  { %v7961_v12 = vmax.f32 %v7943_v22, 0.0  ;;  %v7946_v43 = vadd.f32 %v13610_v39, %v7881_v21  ;;  %v13571_v45 = vpop.f32.mrb[60].mxu0  ;;  %v13611_v28 = vpop.f32.mrb[60].mxu1  ;;  %v15930_v14 = vld [vmem:[#allocation23 + $0x208] ss:$16 sps:$4 sm:$0xff]   ;;  %v17919_v21 = vld [vmem:[#allocation40_spill] sm:$0xff] }
 0x726   :  { %v13572_v16 = vpop.f32.mrb[61].mxu0  ;;  %v13612_v40 = vpop.f32.mrb[61].mxu1  ;;  %v15935_v39 = vld [vmem:[#allocation23 + $0x224] ss:$16 sps:$4 sm:$0xff]   ;;  %v15938_v22 = vld [vmem:[#allocation23 + $0x22c] ss:$16 sps:$4 sm:$0xff]  }
 0x727   :  { %v17438_v15 = vadd.f32 %v7961_v12, %v4278_v60  ;;  %v7962_v49 = vmax.f32 %v7946_v43, 0.0  ;;  %v13573_v38 = vadd.f32 %v13572_v16, %v13571_v45  ;;  %v13613_v61 = vadd.f32 %v13612_v40, %v13611_v28  ;;  %10730 = vmatpush1.bf16.msra.mxu0 %v15897_v54  ;;  %10949 = vmatpush1.bf16.msra.mxu1 %v15900_v3  ;;  %v13574_v0 = vpop.f32.mrb[62].mxu0  ;;  %v13614_v44 = vpop.f32.mrb[62].mxu1  ;;  %v15933_v54 = vld [vmem:[#allocation23 + $0x220] ss:$16 sps:$4 sm:$0xff]   ;;  %v17920_v60 = vld [vmem:[#allocation41_spill] sm:$0xff] }
 0x728   :  { %v13575_v37 = vpop.f32.mrb[63].mxu0  ;;  %v13615_v50 = vpop.f32.mrb[63].mxu1  ;;  %10731 = vmatprep.subr.bf16.mxu0 %v15905_v35  ;;  %10950 = vmatprep.subr.bf16.mxu1 %v15908_v25  ;;  %v15936_v3 = vld [vmem:[#allocation23 + $0x228] ss:$16 sps:$4 sm:$0xff]   ;;  %v15941_v35 = vld [vmem:[#allocation23 + $0x244] ss:$16 sps:$4 sm:$0xff]  }
 0x729   :  { %v17440_v29 = vadd.f32 %v7962_v49, %v4279_v34  ;;  %v7886_v7 = vadd.f32 %v13573_v38, %v17408_v8  ;;  %v13576_v32 = vadd.f32 %v13575_v37, %v13574_v0  ;;  %v13616_v63 = vadd.f32 %v13615_v50, %v13614_v44  ;;  %v15944_v25 = vld [vmem:[#allocation23 + $0x24c] ss:$16 sps:$4 sm:$0xff]   ;;  %v15939_v12 = vld [vmem:[#allocation23 + $0x240] ss:$16 sps:$4 sm:$0xff]   ;;  %v15942_v43 = vld [vmem:[#allocation23 + $0x248] ss:$16 sps:$4 sm:$0xff]  }
 0x72a   :  { %v15947_v45 = vld [vmem:[#allocation23 + $0x264] ss:$16 sps:$4 sm:$0xff]   ;;  %v15950_v28 = vld [vmem:[#allocation23 + $0x26c] ss:$16 sps:$4 sm:$0xff]   ;;  %v15945_v16 = vld [vmem:[#allocation23 + $0x260] ss:$16 sps:$4 sm:$0xff]  }
 0x72b   :  { %v7951_v59 = vadd.f32 %v13613_v61, %v7886_v7  ;;  %v7889_v31 = vadd.f32 %v13576_v32, %v17408_v8  ;;  %10732 = vmatpush1.bf16.msra.mxu0 %v15903_v51  ;;  %10951 = vmatpush1.bf16.msra.mxu1 %v15906_v6  ;;  %v11658_v19 = vpack.c.bf16 %v17440_v29, %v17438_v15  ;;  %v17921_v34 = vld [vmem:[#allocation42_spill] sm:$0xff]  ;;  %v15948_v40 = vld [vmem:[#allocation23 + $0x268] ss:$16 sps:$4 sm:$0xff]   ;;  %v15956_v49 = vld [vmem:[#allocation23 + $0x28c] ss:$16 sps:$4 sm:$0xff]  }
 0x72c   :  { %10733 = vmatprep.subr.bf16.mxu0 %v15911_v11  ;;  %10952 = vmatprep.subr.bf16.mxu1 %v15914_v13  ;;  %v15953_v51 = vld [vmem:[#allocation23 + $0x284] ss:$16 sps:$4 sm:$0xff]   ;;  %v17922_v38 = vld [vmem:[#allocation43_spill] sm:$0xff]  ;;  %v15951_v61 = vld [vmem:[#allocation23 + $0x280] ss:$16 sps:$4 sm:$0xff]  }
 0x72d   :  { %v7963_v41 = vmax.f32 %v7951_v59, 0.0  ;;  %v7954_v46 = vadd.f32 %v13616_v63, %v7889_v31  ;;  %v15954_v0 = vld [vmem:[#allocation23 + $0x288] ss:$16 sps:$4 sm:$0xff]   ;;  %v15959_v44 = vld [vmem:[#allocation23 + $0x2a4] ss:$16 sps:$4 sm:$0xff]  }
 0x72e   :  { %v15962_v6 = vld [vmem:[#allocation23 + $0x2ac] ss:$16 sps:$4 sm:$0xff]   ;;  %v17923_v37 = vld [vmem:[#allocation44_spill] sm:$0xff]  ;;  %v15960_v11 = vld [vmem:[#allocation23 + $0x2a8] ss:$16 sps:$4 sm:$0xff]  }
 0x72f   :  { %v17448_v42 = vadd.f32 %v7963_v41, %v4280_v55  ;;  %v7964_v8 = vmax.f32 %v7954_v46, 0.0  ;;  %10734 = vmatpush1.bf16.msra.mxu0 %v15909_v58  ;;  %10953 = vmatpush1.bf16.msra.mxu1 %v15912_v23  ;;  %v15957_v50 = vld [vmem:[#allocation23 + $0x2a0] ss:$16 sps:$4 sm:$0xff]   ;;  %v15965_v13 = vld [vmem:[#allocation23 + $0x2c4] ss:$16 sps:$4 sm:$0xff]   ;;  %v17924_v32 = vld [vmem:[#allocation45_spill] sm:$0xff] }
 0x730   :  { %10735 = vmatprep.subr.bf16.mxu0 %v15917_v5  ;;  %10954 = vmatprep.subr.bf16.mxu1 %v15920_v52  ;;  %v15968_v7 = vld [vmem:[#allocation23 + $0x2cc] ss:$16 sps:$4 sm:$0xff]   ;;  %v15963_v63 = vld [vmem:[#allocation23 + $0x2c0] ss:$16 sps:$4 sm:$0xff]   ;;  %v15966_v59 = vld [vmem:[#allocation23 + $0x2c8] ss:$16 sps:$4 sm:$0xff]  }
 0x731   :  { %v17450_v53 = vadd.f32 %v7964_v8, %v4281_v33  ;;  %v15971_v31 = vld [vmem:[#allocation23 + $0x2e4] ss:$16 sps:$4 sm:$0xff]   ;;  %v15974_v58 = vld [vmem:[#allocation23 + $0x2ec] ss:$16 sps:$4 sm:$0xff]   ;;  %v15969_v5 = vld [vmem:[#allocation23 + $0x2e0] ss:$16 sps:$4 sm:$0xff]  }
 0x732   :  { %v17925_v23 = vld [vmem:[#allocation46_spill] sm:$0xff]  ;;  %v15972_v52 = vld [vmem:[#allocation23 + $0x2e8] ss:$16 sps:$4 sm:$0xff]   ;;  %v15980_v55 = vld [vmem:[#allocation23 + $0x30c] ss:$16 sps:$4 sm:$0xff]  }
 0x733   :  { %10736 = vmatpush1.bf16.msra.mxu0 %v15915_v18  ;;  %10955 = vmatpush1.bf16.msra.mxu1 %v15918_v20  ;;  %v11659_v9 = vpack.c.bf16 %v17450_v53, %v17448_v42  ;;  %v15977_v2 = vld [vmem:[#allocation23 + $0x304] ss:$16 sps:$4 sm:$0xff]   ;;  %v17926_v41 = vld [vmem:[#allocation47_spill] sm:$0xff]  ;;  %v15975_v46 = vld [vmem:[#allocation23 + $0x300] ss:$16 sps:$4 sm:$0xff]  }
 0x734   :  { %10737 = vmatprep.subr.bf16.mxu0 %v15923_v24  ;;  %10956 = vmatprep.subr.bf16.mxu1 %v15926_v27  ;;  %v15978_v17 = vld [vmem:[#allocation23 + $0x308] ss:$16 sps:$4 sm:$0xff]   ;;  %v15983_v33 = vld [vmem:[#allocation23 + $0x324] ss:$16 sps:$4 sm:$0xff]   ;;  %v15986_v8 = vld [vmem:[#allocation23 + $0x32c] ss:$16 sps:$4 sm:$0xff]  }
 0x735   :  { %v15981_v18 = vld [vmem:[#allocation23 + $0x320] ss:$16 sps:$4 sm:$0xff]   ;;  %v15984_v20 = vld [vmem:[#allocation23 + $0x328] ss:$16 sps:$4 sm:$0xff]   ;;  %v15989_v24 = vld [vmem:[#allocation23 + $0x344] ss:$16 sps:$4 sm:$0xff]  }
 0x736   :  { %v15992_v27 = vld [vmem:[#allocation23 + $0x34c] ss:$16 sps:$4 sm:$0xff]   ;;  %v17643_v29 = vld [vmem:[#allocation28] sm:$0xff]   ;;  %v17651_v42 = vld [vmem:[#allocation28 + $0x10] sm:$0xff]  }
 0x737   :  { %10738 = vmatpush1.bf16.msra.mxu0 %v15921_v30  ;;  %10957 = vmatpush1.bf16.msra.mxu1 %v15924_v48  ;;  %v15987_v30 = vld [vmem:[#allocation23 + $0x340] ss:$16 sps:$4 sm:$0xff]   ;;  %v15990_v48 = vld [vmem:[#allocation23 + $0x348] ss:$16 sps:$4 sm:$0xff]  }
 0x738   :  { %10780 = vmatprep.subr.bf16.mxu0 %v15929_v10  ;;  %10999 = vmatprep.subr.bf16.mxu1 %v15932_v62  ;;  %v15995_v10 = vld [vmem:[#allocation23 + $0x364] ss:$16 sps:$4 sm:$0xff]   ;;  %v15998_v62 = vld [vmem:[#allocation23 + $0x36c] ss:$16 sps:$4 sm:$0xff]  }
 0x739   :  { %v16163_v26 = vld [vmem:[%s17779_s22 + $0x20] sm:$0xff]   ;;  %v16164_v47 = vld [vmem:[%s17779_s22 + $0x28] sm:$0xff]   ;;  %v16166_v15 = vld [vmem:[%s17779_s22 + $0x38] sm:$0xff]  }
 0x73a   :  { %10740 = vmatmul.mubr.bf16.vlgmr.msra.gmra.mrb[64].mxu0 %v17919_v21  ;;  %10959 = vmatmul.mubr.bf16.vlgmr.msra.gmra.mrb[64].mxu1 %v17919_v21  ;;  %v15999_v21 = vld [vmem:[#allocation23 + $0x380] ss:$16 sps:$4 sm:$0xff]   ;;  %v17655_v53 = vld [vmem:[#allocation28 + $0x18] sm:$0xff]  }
 0x73b   :  { %10781 = vmatpush1.bf16.msra.mxu0 %v15927_v36  ;;  %11000 = vmatpush1.bf16.msra.mxu1 %v15930_v14  ;;  %v15993_v36 = vld [vmem:[#allocation23 + $0x360] ss:$16 sps:$4 sm:$0xff]   ;;  %v15996_v14 = vld [vmem:[#allocation23 + $0x368] ss:$16 sps:$4 sm:$0xff]  }
 0x73c   :  { %10782 = vmatprep.subr.bf16.mxu0 %v15935_v39  ;;  %11001 = vmatprep.subr.bf16.mxu1 %v15938_v22  ;;  %v16001_v39 = vld [vmem:[#allocation23 + $0x384] ss:$16 sps:$4 sm:$0xff]   ;;  %v16004_v22 = vld [vmem:[#allocation23 + $0x38c] ss:$16 sps:$4 sm:$0xff]  }
 0x73d   :  { %10749 = vmatprep.mubr.bf16.mxu0 %v17920_v60  ;;  %10968 = vmatprep.mubr.bf16.mxu1 %v17920_v60  ;;  %v16008_v60 = vld [vmem:[#allocation23 + $0x3a8] ss:$16 sps:$4 sm:$0xff]  }
 0x73f   :  { %10783 = vmatpush1.bf16.msra.mxu0 %v15933_v54  ;;  %11002 = vmatpush1.bf16.msra.mxu1 %v15936_v3  ;;  %v16002_v54 = vld [vmem:[#allocation23 + $0x388] ss:$16 sps:$4 sm:$0xff]   ;;  %v16007_v3 = vld [vmem:[#allocation23 + $0x3a4] ss:$16 sps:$4 sm:$0xff]  }
 0x740   :  { %10784 = vmatprep.subr.bf16.mxu0 %v15941_v35  ;;  %11003 = vmatprep.subr.bf16.mxu1 %v15944_v25  ;;  %v16010_v35 = vld [vmem:[#allocation23 + $0x3ac] ss:$16 sps:$4 sm:$0xff]   ;;  %v16005_v25 = vld [vmem:[#allocation23 + $0x3a0] ss:$16 sps:$4 sm:$0xff]  }
 0x742   :  { %10750 = vmatmul.mubr.bf16.gmra.mrb[68].mxu0 %v17921_v34  ;;  %10969 = vmatmul.mubr.bf16.gmra.mrb[68].mxu1 %v17921_v34  ;;  %v16019_v34 = vld [vmem:[#allocation23 + $0x3e4] ss:$16 sps:$4 sm:$0xff]  }
 0x743   :  { %10785 = vmatpush1.bf16.msra.mxu0 %v15939_v12  ;;  %11004 = vmatpush1.bf16.msra.mxu1 %v15942_v43  ;;  %v16013_v12 = vld [vmem:[#allocation23 + $0x3c4] ss:$16 sps:$4 sm:$0xff]   ;;  %v16016_v43 = vld [vmem:[#allocation23 + $0x3cc] ss:$16 sps:$4 sm:$0xff]  }
 0x744   :  { %10786 = vmatprep.subr.bf16.mxu0 %v15947_v45  ;;  %11005 = vmatprep.subr.bf16.mxu1 %v15950_v28  ;;  %v16011_v45 = vld [vmem:[#allocation23 + $0x3c0] ss:$16 sps:$4 sm:$0xff]   ;;  %v16014_v28 = vld [vmem:[#allocation23 + $0x3c8] ss:$16 sps:$4 sm:$0xff]  }
 0x745   :  { %10759 = vmatprep.mubr.bf16.mxu0 %v17922_v38  ;;  %10978 = vmatprep.mubr.bf16.mxu1 %v17922_v38  ;;  %v16028_v38 = vld [vmem:[#allocation23 + $0x40c] ss:$16 sps:$4 sm:$0xff]  }
 0x747   :  { %10787 = vmatpush1.bf16.msra.mxu0 %v15945_v16  ;;  %11006 = vmatpush1.bf16.msra.mxu1 %v15948_v40  ;;  %v16022_v16 = vld [vmem:[#allocation23 + $0x3ec] ss:$16 sps:$4 sm:$0xff]   ;;  %v16017_v40 = vld [vmem:[#allocation23 + $0x3e0] ss:$16 sps:$4 sm:$0xff]  }
 0x748   :  { %10788 = vmatprep.subr.bf16.mxu0 %v15953_v51  ;;  %11007 = vmatprep.subr.bf16.mxu1 %v15956_v49  ;;  %v16020_v51 = vld [vmem:[#allocation23 + $0x3e8] ss:$16 sps:$4 sm:$0xff]   ;;  %v16025_v49 = vld [vmem:[#allocation23 + $0x404] ss:$16 sps:$4 sm:$0xff]  }
 0x74a   :  { %10760 = vmatmul.mubr.bf16.gmra.mrb[72].mxu0 %v17923_v37  ;;  %10979 = vmatmul.mubr.bf16.gmra.mrb[72].mxu1 %v17923_v37  ;;  %v17927_v37 = vld [vmem:[#allocation48_spill] sm:$0xff] }
 0x74b   :  { %10789 = vmatpush1.bf16.msra.mxu0 %v15951_v61  ;;  %11008 = vmatpush1.bf16.msra.mxu1 %v15954_v0  ;;  %v16023_v61 = vld [vmem:[#allocation23 + $0x400] ss:$16 sps:$4 sm:$0xff]   ;;  %v16026_v0 = vld [vmem:[#allocation23 + $0x408] ss:$16 sps:$4 sm:$0xff]  }
 0x74c   :  { %10790 = vmatprep.subr.bf16.mxu0 %v15959_v44  ;;  %11009 = vmatprep.subr.bf16.mxu1 %v15962_v6  ;;  %v16031_v44 = vld [vmem:[#allocation23 + $0x424] ss:$16 sps:$4 sm:$0xff]   ;;  %v16034_v6 = vld [vmem:[#allocation23 + $0x42c] ss:$16 sps:$4 sm:$0xff]  }
 0x74d   :  { %10769 = vmatprep.mubr.bf16.mxu0 %v17924_v32  ;;  %10988 = vmatprep.mubr.bf16.mxu1 %v17924_v32  ;;  %v17928_v32 = vld [vmem:[#allocation49_spill] sm:$0xff] }
 0x74f   :  { %10791 = vmatpush1.bf16.msra.mxu0 %v15957_v50  ;;  %11010 = vmatpush1.bf16.msra.mxu1 %v15960_v11  ;;  %v16029_v50 = vld [vmem:[#allocation23 + $0x420] ss:$16 sps:$4 sm:$0xff]   ;;  %v16032_v11 = vld [vmem:[#allocation23 + $0x428] ss:$16 sps:$4 sm:$0xff]  }
 0x750   :  { %10792 = vmatprep.subr.bf16.mxu0 %v15965_v13  ;;  %11011 = vmatprep.subr.bf16.mxu1 %v15968_v7  ;;  %v16037_v13 = vld [vmem:[#allocation23 + $0x444] ss:$16 sps:$4 sm:$0xff]   ;;  %v16040_v7 = vld [vmem:[#allocation23 + $0x44c] ss:$16 sps:$4 sm:$0xff]  }
 0x752   :  { %10770 = vmatmul.mubr.bf16.gmra.mrb[76].mxu0 %v17925_v23  ;;  %10989 = vmatmul.mubr.bf16.gmra.mrb[76].mxu1 %v17925_v23  ;;  %v17929_v23 = vld [vmem:[#allocation50_spill] sm:$0xff] }
 0x753   :  { %10793 = vmatpush1.bf16.msra.mxu0 %v15963_v63  ;;  %11012 = vmatpush1.bf16.msra.mxu1 %v15966_v59  ;;  %v16035_v63 = vld [vmem:[#allocation23 + $0x440] ss:$16 sps:$4 sm:$0xff]   ;;  %v16038_v59 = vld [vmem:[#allocation23 + $0x448] ss:$16 sps:$4 sm:$0xff]  }
 0x754   :  { %10794 = vmatprep.subr.bf16.mxu0 %v15971_v31  ;;  %11013 = vmatprep.subr.bf16.mxu1 %v15974_v58  ;;  %v16043_v31 = vld [vmem:[#allocation23 + $0x464] ss:$16 sps:$4 sm:$0xff]   ;;  %v16046_v58 = vld [vmem:[#allocation23 + $0x46c] ss:$16 sps:$4 sm:$0xff]  }
 0x755   :  { %10812 = vmatprep.mubr.bf16.mxu0 %v17926_v41  ;;  %11031 = vmatprep.mubr.bf16.mxu1 %v17926_v41  ;;  %v17930_v41 = vld [vmem:[#allocation51_spill] sm:$0xff] }
 0x757   :  { %10795 = vmatpush1.bf16.msra.mxu0 %v15969_v5  ;;  %11014 = vmatpush1.bf16.msra.mxu1 %v15972_v52  ;;  %v16041_v5 = vld [vmem:[#allocation23 + $0x460] ss:$16 sps:$4 sm:$0xff]   ;;  %v16044_v52 = vld [vmem:[#allocation23 + $0x468] ss:$16 sps:$4 sm:$0xff]  }
 0x758   :  { %10796 = vmatprep.subr.bf16.mxu0 %v15977_v2  ;;  %11015 = vmatprep.subr.bf16.mxu1 %v15980_v55  ;;  %v16049_v2 = vld [vmem:[#allocation23 + $0x484] ss:$16 sps:$4 sm:$0xff]   ;;  %v16052_v55 = vld [vmem:[#allocation23 + $0x48c] ss:$16 sps:$4 sm:$0xff]  }
 0x75b   :  { %10797 = vmatpush1.bf16.msra.mxu0 %v15975_v46  ;;  %11016 = vmatpush1.bf16.msra.mxu1 %v15978_v17  ;;  %v16047_v46 = vld [vmem:[#allocation23 + $0x480] ss:$16 sps:$4 sm:$0xff]   ;;  %v16050_v17 = vld [vmem:[#allocation23 + $0x488] ss:$16 sps:$4 sm:$0xff]  }
 0x75c   :  { %10798 = vmatprep.subr.bf16.mxu0 %v15983_v33  ;;  %11017 = vmatprep.subr.bf16.mxu1 %v15986_v8  ;;  %v16055_v33 = vld [vmem:[#allocation23 + $0x4a4] ss:$16 sps:$4 sm:$0xff]   ;;  %v16058_v8 = vld [vmem:[#allocation23 + $0x4ac] ss:$16 sps:$4 sm:$0xff]  }
 0x75f   :  { %10799 = vmatpush1.bf16.msra.mxu0 %v15981_v18  ;;  %11018 = vmatpush1.bf16.msra.mxu1 %v15984_v20  ;;  %v17931_v18 = vld [vmem:[#allocation52_spill] sm:$0xff] }
 0x760   :  { %10800 = vmatprep.subr.bf16.mxu0 %v15989_v24  ;;  %11019 = vmatprep.subr.bf16.mxu1 %v15992_v27  ;;  %v16053_v20 = vld [vmem:[#allocation23 + $0x4a0] ss:$16 sps:$4 sm:$0xff]   ;;  %v16056_v24 = vld [vmem:[#allocation23 + $0x4a8] ss:$16 sps:$4 sm:$0xff]   ;;  %v16061_v27 = vld [vmem:[#allocation23 + $0x4c4] ss:$16 sps:$4 sm:$0xff]  }
 0x763   :  { %10801 = vmatpush1.bf16.msra.mxu0 %v15987_v30  ;;  %11020 = vmatpush1.bf16.msra.mxu1 %v15990_v48  ;;  %v16064_v30 = vld [vmem:[#allocation23 + $0x4cc] ss:$16 sps:$4 sm:$0xff]  }
 0x764   :  { %10802 = vmatprep.subr.bf16.mxu0 %v15995_v10  ;;  %11021 = vmatprep.subr.bf16.mxu1 %v15998_v62  ;;  %v17932_v48 = vld [vmem:[#allocation53_spill] sm:$0xff]  ;;  %v16059_v10 = vld [vmem:[#allocation23 + $0x4c0] ss:$16 sps:$4 sm:$0xff]  }
 0x765   :  { %v16062_v62 = vld [vmem:[#allocation23 + $0x4c8] ss:$16 sps:$4 sm:$0xff]  }
 0x767   :  { %10803 = vmatpush1.bf16.msra.mxu0 %v15993_v36  ;;  %11022 = vmatpush1.bf16.msra.mxu1 %v15996_v14  ;;  %v16067_v36 = vld [vmem:[#allocation23 + $0x4e4] ss:$16 sps:$4 sm:$0xff]   ;;  %v16070_v14 = vld [vmem:[#allocation23 + $0x4ec] ss:$16 sps:$4 sm:$0xff]  }
 0x768   :  { %10804 = vmatprep.subr.bf16.mxu0 %v16001_v39  ;;  %11023 = vmatprep.subr.bf16.mxu1 %v16004_v22  ;;  %v17933_v39 = vld [vmem:[#allocation54_spill] sm:$0xff] }
 0x769   :  { %v16065_v22 = vld [vmem:[#allocation23 + $0x4e0] ss:$16 sps:$4 sm:$0xff]  }
 0x76b   :  { %10805 = vmatpush1.bf16.msra.mxu0 %v15999_v21  ;;  %11024 = vmatpush1.bf16.msra.mxu1 %v16002_v54  ;;  %v16068_v21 = vld [vmem:[#allocation23 + $0x4e8] ss:$16 sps:$4 sm:$0xff]   ;;  %v16073_v54 = vld [vmem:[#allocation23 + $0x504] ss:$16 sps:$4 sm:$0xff]  }
 0x76c   :  { %10806 = vmatprep.subr.bf16.mxu0 %v16007_v3  ;;  %11025 = vmatprep.subr.bf16.mxu1 %v16010_v35  ;;  %v16076_v3 = vld [vmem:[#allocation23 + $0x50c] ss:$16 sps:$4 sm:$0xff]  }
 0x76d   :  { %v17934_v35 = vld [vmem:[#allocation55_spill] sm:$0xff] }
 0x76f   :  { %10807 = vmatpush1.bf16.msra.mxu0 %v16005_v25  ;;  %11026 = vmatpush1.bf16.msra.mxu1 %v16008_v60  ;;  %v16071_v25 = vld [vmem:[#allocation23 + $0x500] ss:$16 sps:$4 sm:$0xff]   ;;  %v16074_v60 = vld [vmem:[#allocation23 + $0x508] ss:$16 sps:$4 sm:$0xff]  }
 0x770   :  { %10808 = vmatprep.subr.bf16.mxu0 %v16013_v12  ;;  %11027 = vmatprep.subr.bf16.mxu1 %v16016_v43  ;;  %v16079_v12 = vld [vmem:[#allocation23 + $0x524] ss:$16 sps:$4 sm:$0xff]   ;;  %v16082_v43 = vld [vmem:[#allocation23 + $0x52c] ss:$16 sps:$4 sm:$0xff]  }
 0x773   :  { %10809 = vmatpush1.bf16.msra.mxu0 %v16011_v45  ;;  %11028 = vmatpush1.bf16.msra.mxu1 %v16014_v28  ;;  %v16077_v45 = vld [vmem:[#allocation23 + $0x520] ss:$16 sps:$4 sm:$0xff]   ;;  %v16080_v28 = vld [vmem:[#allocation23 + $0x528] ss:$16 sps:$4 sm:$0xff]  }
 0x774   :  { %10810 = vmatprep.subr.bf16.mxu0 %v16019_v34  ;;  %11029 = vmatprep.subr.bf16.mxu1 %v16022_v16  ;;  %v16085_v34 = vld [vmem:[#allocation23 + $0x544] ss:$16 sps:$4 sm:$0xff]   ;;  %v16088_v16 = vld [vmem:[#allocation23 + $0x54c] ss:$16 sps:$4 sm:$0xff]  }
 0x777   :  { %10811 = vmatpush1.bf16.msra.mxu0 %v16017_v40  ;;  %11030 = vmatpush1.bf16.msra.mxu1 %v16020_v51  ;;  %v16083_v40 = vld [vmem:[#allocation23 + $0x540] ss:$16 sps:$4 sm:$0xff]   ;;  %v16086_v51 = vld [vmem:[#allocation23 + $0x548] ss:$16 sps:$4 sm:$0xff]  }
 0x778   :  { %10853 = vmatprep.subr.bf16.mxu0 %v16025_v49  ;;  %11072 = vmatprep.subr.bf16.mxu1 %v16028_v38  ;;  %v16091_v49 = vld [vmem:[#allocation23 + $0x564] ss:$16 sps:$4 sm:$0xff]   ;;  %v16094_v38 = vld [vmem:[#allocation23 + $0x56c] ss:$16 sps:$4 sm:$0xff]  }
 0x77a   :  { %10813 = vmatmul.mubr.bf16.vlgmr.msra.gmra.mrb[64].mxu0 %v17927_v37  ;;  %11032 = vmatmul.mubr.bf16.vlgmr.msra.gmra.mrb[64].mxu1 %v17927_v37  ;;  %v16095_v37 = vld [vmem:[#allocation23 + $0x580] ss:$16 sps:$4 sm:$0xff]  }
 0x77b   :  { %10854 = vmatpush1.bf16.msra.mxu0 %v16023_v61  ;;  %11073 = vmatpush1.bf16.msra.mxu1 %v16026_v0  ;;  %v16089_v61 = vld [vmem:[#allocation23 + $0x560] ss:$16 sps:$4 sm:$0xff]   ;;  %v16092_v0 = vld [vmem:[#allocation23 + $0x568] ss:$16 sps:$4 sm:$0xff]  }
 0x77c   :  { %10855 = vmatprep.subr.bf16.mxu0 %v16031_v44  ;;  %11074 = vmatprep.subr.bf16.mxu1 %v16034_v6  ;;  %v16097_v44 = vld [vmem:[#allocation23 + $0x584] ss:$16 sps:$4 sm:$0xff]   ;;  %v16100_v6 = vld [vmem:[#allocation23 + $0x58c] ss:$16 sps:$4 sm:$0xff]  }
 0x77d   :  { %10822 = vmatprep.mubr.bf16.mxu0 %v17928_v32  ;;  %11041 = vmatprep.mubr.bf16.mxu1 %v17928_v32  ;;  %v16104_v32 = vld [vmem:[#allocation23 + $0x5a8] ss:$16 sps:$4 sm:$0xff]  }
 0x77f   :  { %10856 = vmatpush1.bf16.msra.mxu0 %v16029_v50  ;;  %11075 = vmatpush1.bf16.msra.mxu1 %v16032_v11  ;;  %v16098_v50 = vld [vmem:[#allocation23 + $0x588] ss:$16 sps:$4 sm:$0xff]   ;;  %v16103_v11 = vld [vmem:[#allocation23 + $0x5a4] ss:$16 sps:$4 sm:$0xff]  }
 0x780   :  { %10857 = vmatprep.subr.bf16.mxu0 %v16037_v13  ;;  %11076 = vmatprep.subr.bf16.mxu1 %v16040_v7  ;;  %v16106_v13 = vld [vmem:[#allocation23 + $0x5ac] ss:$16 sps:$4 sm:$0xff]   ;;  %v16101_v7 = vld [vmem:[#allocation23 + $0x5a0] ss:$16 sps:$4 sm:$0xff]  }
 0x782   :  { %10823 = vmatmul.mubr.bf16.gmra.mrb[68].mxu0 %v17929_v23  ;;  %11042 = vmatmul.mubr.bf16.gmra.mrb[68].mxu1 %v17929_v23  ;;  %v16115_v23 = vld [vmem:[#allocation23 + $0x5e4] ss:$16 sps:$4 sm:$0xff]  }
 0x783   :  { %10858 = vmatpush1.bf16.msra.mxu0 %v16035_v63  ;;  %11077 = vmatpush1.bf16.msra.mxu1 %v16038_v59  ;;  %v16109_v63 = vld [vmem:[#allocation23 + $0x5c4] ss:$16 sps:$4 sm:$0xff]   ;;  %v16112_v59 = vld [vmem:[#allocation23 + $0x5cc] ss:$16 sps:$4 sm:$0xff]  }
 0x784   :  { %10859 = vmatprep.subr.bf16.mxu0 %v16043_v31  ;;  %11078 = vmatprep.subr.bf16.mxu1 %v16046_v58  ;;  %v16107_v31 = vld [vmem:[#allocation23 + $0x5c0] ss:$16 sps:$4 sm:$0xff]   ;;  %v16110_v58 = vld [vmem:[#allocation23 + $0x5c8] ss:$16 sps:$4 sm:$0xff]  }
 0x785   :  { %10832 = vmatprep.mubr.bf16.mxu0 %v17930_v41  ;;  %11051 = vmatprep.mubr.bf16.mxu1 %v17930_v41  ;;  %v16121_v41 = vld [vmem:[#allocation26 + $0xc0] sm:$0xff]  }
 0x787   :  { %10860 = vmatpush1.bf16.msra.mxu0 %v16041_v5  ;;  %11079 = vmatpush1.bf16.msra.mxu1 %v16044_v52  ;;  %v16118_v5 = vld [vmem:[#allocation23 + $0x5ec] ss:$16 sps:$4 sm:$0xff]   ;;  %v16113_v52 = vld [vmem:[#allocation23 + $0x5e0] ss:$16 sps:$4 sm:$0xff]  }
 0x788   :  { %10861 = vmatprep.subr.bf16.mxu0 %v16049_v2  ;;  %11080 = vmatprep.subr.bf16.mxu1 %v16052_v55  ;;  %v16116_v2 = vld [vmem:[#allocation23 + $0x5e8] ss:$16 sps:$4 sm:$0xff]   ;;  %v16119_v55 = vld [vmem:[#allocation26 + $0x40] sm:$0xff]  }
 0x78a   :  { %10833 = vmatmul.mubr.bf16.gmra.mrb[72].mxu0 %v17931_v18  ;;  %11052 = vmatmul.mubr.bf16.gmra.mrb[72].mxu1 %v17931_v18  ;;  %v17935_v18 = vld [vmem:[#allocation56_spill] sm:$0xff] }
 0x78b   :  { %10862 = vmatpush1.bf16.msra.mxu0 %v16047_v46  ;;  %11081 = vmatpush1.bf16.msra.mxu1 %v16050_v17  ;;  %v16120_v46 = vld [vmem:[#allocation26] sm:$0xff]  }
 0x78c   :  { %10863 = vmatprep.subr.bf16.mxu0 %v16055_v33  ;;  %11082 = vmatprep.subr.bf16.mxu1 %v16058_v8  ;;  %v16122_v17 = vld [vmem:[#allocation26 + $0x80] sm:$0xff]   ;;  %v16123_v33 = vld [vmem:[#allocation26 + $0x48] sm:$0xff]  }
 0x78d   :  { %10842 = vmatprep.mubr.bf16.mxu0 %v17932_v48  ;;  %11061 = vmatprep.mubr.bf16.mxu1 %v17932_v48  ;;  %v16125_v8 = vld [vmem:[#allocation26 + $0xc8] sm:$0xff]   ;;  %v16129_v48 = vld [vmem:[#allocation26 + $0xd0] sm:$0xff]  }
 0x78f   :  { %10864 = vmatpush1.bf16.msra.mxu0 %v16053_v20  ;;  %11083 = vmatpush1.bf16.msra.mxu1 %v16056_v24  ;;  %v17936_v20 = vld [vmem:[#allocation57_spill] sm:$0xff] }
 0x790   :  { %10865 = vmatprep.subr.bf16.mxu0 %v16061_v27  ;;  %11084 = vmatprep.subr.bf16.mxu1 %v16064_v30  ;;  %v16124_v24 = vld [vmem:[#allocation26 + $0x8] sm:$0xff]   ;;  %v16127_v30 = vld [vmem:[#allocation26 + $0x50] sm:$0xff]  }
 0x791   :  { %v16126_v27 = vld [vmem:[#allocation26 + $0x88] sm:$0xff]  }
 0x792   :  { %10843 = vmatmul.mubr.bf16.gmra.mrb[76].mxu0 %v17933_v39  ;;  %11062 = vmatmul.mubr.bf16.gmra.mrb[76].mxu1 %v17933_v39  ;;  %v17937_v39 = vld [vmem:[#allocation58_spill] sm:$0xff] }
 0x793   :  { %10866 = vmatpush1.bf16.msra.mxu0 %v16059_v10  ;;  %11085 = vmatpush1.bf16.msra.mxu1 %v16062_v62  ;;  %v16128_v10 = vld [vmem:[#allocation26 + $0x10] sm:$0xff]  }
 0x794   :  { %10867 = vmatprep.subr.bf16.mxu0 %v16067_v36  ;;  %11086 = vmatprep.subr.bf16.mxu1 %v16070_v14  ;;  %v16130_v62 = vld [vmem:[#allocation26 + $0x90] sm:$0xff]   ;;  %v16131_v36 = vld [vmem:[#allocation26 + $0x58] sm:$0xff]  }
 0x795   :  { %10885 = vmatprep.mubr.bf16.mxu0 %v17934_v35  ;;  %11104 = vmatprep.mubr.bf16.mxu1 %v17934_v35  ;;  %v16133_v14 = vld [vmem:[#allocation26 + $0xd8] sm:$0xff]   ;;  %v16137_v35 = vld [vmem:[#allocation26 + $0xe0] sm:$0xff]  }
 0x797   :  { %10868 = vmatpush1.bf16.msra.mxu0 %v16065_v22  ;;  %11087 = vmatpush1.bf16.msra.mxu1 %v16068_v21  ;;  %v17938_v22 = vld [vmem:[#allocation59_spill] sm:$0xff] }
 0x798   :  { %10869 = vmatprep.subr.bf16.mxu0 %v16073_v54  ;;  %11088 = vmatprep.subr.bf16.mxu1 %v16076_v3  ;;  %v16132_v21 = vld [vmem:[#allocation26 + $0x18] sm:$0xff]   ;;  %v16135_v3 = vld [vmem:[#allocation26 + $0x60] sm:$0xff]  }
 0x799   :  { %v16134_v54 = vld [vmem:[#allocation26 + $0x98] sm:$0xff]  }
 0x79b   :  { %10870 = vmatpush1.bf16.msra.mxu0 %v16071_v25  ;;  %11089 = vmatpush1.bf16.msra.mxu1 %v16074_v60  ;;  %v16136_v25 = vld [vmem:[#allocation26 + $0x20] sm:$0xff]  }
 0x79c   :  { %10871 = vmatprep.subr.bf16.mxu0 %v16079_v12  ;;  %11090 = vmatprep.subr.bf16.mxu1 %v16082_v43  ;;  %v16138_v60 = vld [vmem:[#allocation26 + $0xa0] sm:$0xff]   ;;  %v16139_v12 = vld [vmem:[#allocation26 + $0x68] sm:$0xff]  }
 0x79d   :  { %v16141_v43 = vld [vmem:[#allocation26 + $0xe8] sm:$0xff]  }
 0x79f   :  { %10872 = vmatpush1.bf16.msra.mxu0 %v16077_v45  ;;  %11091 = vmatpush1.bf16.msra.mxu1 %v16080_v28  ;;  %v17939_v45 = vld [vmem:[#allocation60_spill] sm:$0xff]  ;;  %v17940_v28 = vld [vmem:[#allocation61_spill] sm:$0xff] }
 0x7a0   :  { %10873 = vmatprep.subr.bf16.mxu0 %v16085_v34  ;;  %11092 = vmatprep.subr.bf16.mxu1 %v16088_v16  ;;  %v16140_v34 = vld [vmem:[#allocation26 + $0x28] sm:$0xff]   ;;  %v17941_v16 = vld [vmem:[#allocation62_spill] sm:$0xff] }
 0x7a3   :  { %10874 = vmatpush1.bf16.msra.mxu0 %v16083_v40  ;;  %11093 = vmatpush1.bf16.msra.mxu1 %v16086_v51  ;;  %v16142_v40 = vld [vmem:[#allocation26 + $0xa8] sm:$0xff]   ;;  %v16143_v51 = vld [vmem:[#allocation26 + $0x70] sm:$0xff]  }
 0x7a4   :  { %10875 = vmatprep.subr.bf16.mxu0 %v16091_v49  ;;  %11094 = vmatprep.subr.bf16.mxu1 %v16094_v38  ;;  %v16145_v49 = vld [vmem:[#allocation26 + $0xf0] sm:$0xff]  }
 0x7a5   :  { %v16144_v38 = vld [vmem:[#allocation26 + $0x30] sm:$0xff]  }
 0x7a7   :  { %10876 = vmatpush1.bf16.msra.mxu0 %v16089_v61  ;;  %11095 = vmatpush1.bf16.msra.mxu1 %v16092_v0  ;;  %v16146_v61 = vld [vmem:[#allocation26 + $0xb0] sm:$0xff]   ;;  %v16147_v0 = vld [vmem:[#allocation26 + $0x78] sm:$0xff]  }
 0x7a8   :  { %10877 = vmatprep.subr.bf16.mxu0 %v16097_v44  ;;  %11096 = vmatprep.subr.bf16.mxu1 %v16100_v6  ;;  %v16149_v44 = vld [vmem:[#allocation26 + $0xf8] sm:$0xff]  }
 0x7a9   :  { %v16148_v6 = vld [vmem:[#allocation26 + $0x38] sm:$0xff]  }
 0x7ab   :  { %10878 = vmatpush1.bf16.msra.mxu0 %v16095_v37  ;;  %11097 = vmatpush1.bf16.msra.mxu1 %v16098_v50  ;;  %v16150_v37 = vld [vmem:[#allocation26 + $0xb8] sm:$0xff]  }
 0x7ac   :  { %10879 = vmatprep.subr.bf16.mxu0 %v16103_v11  ;;  %11098 = vmatprep.subr.bf16.mxu1 %v16106_v13  ;;  %v17503_v50 = vld [vmem:[%s17777_s20] sm:$0xff]   ;;  %v11797_v13 = vld [vmem:[%s17942_s7 + $0x8] sm:$0xff] }
 0x7ad   :  { %v11796_v11 = vld [vmem:[%s17942_s7] sm:$0xff] }
 0x7af   :  { %10880 = vmatpush1.bf16.msra.mxu0 %v16101_v7  ;;  %11099 = vmatpush1.bf16.msra.mxu1 %v16104_v32  ;;  %v11798_v7 = vld [vmem:[%s17942_s7 + $0x10] sm:$0xff]  ;;  %v11805_v32 = vsel %vm11804_vm0, %v11796_v11, -inf }
 0x7b0   :  { %10881 = vmatprep.subr.bf16.mxu0 %v16109_v63  ;;  %11100 = vmatprep.subr.bf16.mxu1 %v16112_v59  ;;  %v11811_v63 = vsel %vm11804_vm0, %v11798_v7, -inf  ;;  %v11799_v59 = vld [vmem:[%s17942_s7 + $0x18] sm:$0xff] }
 0x7b1   :  { %11806 = vmax.xlane.f32.xlu0 %v11805_v32  ;;  %11812 = vmax.xlane.f32.xlu1 %v11811_v63 }
 0x7b3   :  { %10882 = vmatpush1.bf16.msra.mxu0 %v16107_v31  ;;  %11101 = vmatpush1.bf16.msra.mxu1 %v16110_v58  ;;  %v11808_v31 = vsel %vm11804_vm0, %v11797_v13, -inf  ;;  %v11814_v58 = vsel %vm11804_vm0, %v11799_v59, -inf }
 0x7b4   :  { %10883 = vmatprep.subr.bf16.mxu0 %v16115_v23  ;;  %11102 = vmatprep.subr.bf16.mxu1 %v16118_v5  ;;  %v11800_v23 = vld [vmem:[%s17942_s7 + $0x20] sm:$0xff]  ;;  %v11801_v5 = vld [vmem:[%s17942_s7 + $0x28] sm:$0xff] }
 0x7b5   :  { %11809 = vmax.xlane.f32.xlu0 %v11808_v31  ;;  %11815 = vmax.xlane.f32.xlu1 %v11814_v58 }
 0x7b7   :  { %10884 = vmatpush1.bf16.msra.mxu0 %v16113_v52  ;;  %11103 = vmatpush1.bf16.msra.mxu1 %v16116_v2  ;;  %v11817_v52 = vsel %vm11804_vm0, %v11800_v23, -inf  ;;  %v11820_v2 = vsel %vm11804_vm0, %v11801_v5, -inf  ;;  %v16152_v23 = vld [vmem:[%s17777_s20 + $0x8] sm:$0xff]  }
 0x7b8   :  { %13617 = vmatprep.subr.bf16.mxu0 %v16119_v55  ;;  %13657 = vmatprep.subr.bf16.mxu1 %v16121_v41  ;;  %v11802_v55 = vld [vmem:[%s17942_s7 + $0x30] sm:$0xff]  ;;  %v11803_v41 = vld [vmem:[%s17942_s7 + $0x38] sm:$0xff] }
 0x7b9   :  { %11818 = vmax.xlane.f32.xlu0 %v11817_v52  ;;  %11821 = vmax.xlane.f32.xlu1 %v11820_v2 }
 0x7ba   :  { %10886 = vmatmul.mubr.bf16.vlgmr.msra.gmra.mrb[64].mxu0 %v17935_v18  ;;  %11105 = vmatmul.mubr.bf16.vlgmr.msra.gmra.mrb[64].mxu1 %v17935_v18 }
 0x7bb   :  { %10895 = vmatprep.mubr.bf16.mxu0 %v17936_v20  ;;  %11114 = vmatprep.mubr.bf16.mxu1 %v17936_v20  ;;  %v17944_v20 = vld [vmem:[#allocation64_spill] sm:$0xff] }
 0x7bc   :  { %13618 = vmatpush3.bf16.msra.mxu0 %v16120_v46  ;;  %13658 = vmatpush3.bf16.msra.mxu1 %v16122_v17  ;;  %v11823_v46 = vsel %vm11804_vm0, %v11802_v55, -inf  ;;  %v11826_v17 = vsel %vm11804_vm0, %v11803_v41, -inf }
 0x7bd   :  { %13619 = vmatprep.subr.bf16.mxu0 %v16123_v33  ;;  %13659 = vmatprep.subr.bf16.mxu1 %v16125_v8  ;;  %v11145_v33 = vld [vmem:[%s17774_s17] sm:$0xf] }
 0x7be   :  { %11824 = vmax.xlane.f32.xlu0 %v11823_v46  ;;  %11827 = vmax.xlane.f32.xlu1 %v11826_v17  ;;  %v17943_v8 = vld [vmem:[#allocation63_spill] sm:$0xff] }
 0x7bf   :  { %v17542_v18 = vrot.slane %v11145_v33, %v17943_v8 }
 0x7c0   :  { %13620 = vmatpush3.bf16.msra.mxu0 %v16124_v24  ;;  %13660 = vmatpush3.bf16.msra.mxu1 %v16126_v27  ;;  %v17545_v24 = vrot.slane %v11145_v33, %v17944_v20  ;;  %v17945_v27 = vld [vmem:[#allocation65_spill] sm:$0xff] }
 0x7c1   :  { %13621 = vmatprep.subr.bf16.mxu0 %v16127_v30  ;;  %13661 = vmatprep.subr.bf16.mxu1 %v16129_v48  ;;  %v17548_v30 = vrot.slane %v11145_v33, %v17945_v27  ;;  %v17946_v48 = vld [vmem:[#allocation66_spill] sm:$0xff] }
 0x7c2   :  { %10896 = vmatmul.mubr.bf16.gmra.mrb[68].mxu0 %v17937_v39  ;;  %11115 = vmatmul.mubr.bf16.gmra.mrb[68].mxu1 %v17937_v39 }
 0x7c3   :  { %10905 = vmatprep.mubr.bf16.mxu0 %v17938_v22  ;;  %11124 = vmatprep.mubr.bf16.mxu1 %v17938_v22 }
 0x7c4   :  { %13622 = vmatpush3.bf16.msra.mxu0 %v16128_v10  ;;  %13662 = vmatpush3.bf16.msra.mxu1 %v16130_v62  ;;  %v17551_v10 = vrot.slane %v11145_v33, %v17946_v48 }
 0x7c5   :  { %13623 = vmatprep.subr.bf16.mxu0 %v16131_v36  ;;  %13663 = vmatprep.subr.bf16.mxu1 %v16133_v14 }
 0x7c8   :  { %13624 = vmatpush3.bf16.msra.mxu0 %v16132_v21  ;;  %13664 = vmatpush3.bf16.msra.mxu1 %v16134_v54 }
 0x7c9   :  { %13625 = vmatprep.subr.bf16.mxu0 %v16135_v3  ;;  %13665 = vmatprep.subr.bf16.mxu1 %v16137_v35 }
 0x7ca   :  { %10906 = vmatmul.mubr.bf16.gmra.mrb[72].mxu0 %v17939_v45  ;;  %11125 = vmatmul.mubr.bf16.gmra.mrb[72].mxu1 %v17939_v45 }
 0x7cb   :  { %10915 = vmatprep.mubr.bf16.mxu0 %v17940_v28  ;;  %11134 = vmatprep.mubr.bf16.mxu1 %v17940_v28 }
 0x7cc   :  { %13626 = vmatpush3.bf16.msra.mxu0 %v16136_v25  ;;  %13666 = vmatpush3.bf16.msra.mxu1 %v16138_v60 }
 0x7cd   :  { %13627 = vmatprep.subr.bf16.mxu0 %v16139_v12  ;;  %13667 = vmatprep.subr.bf16.mxu1 %v16141_v43 }
 0x7d0   :  { %13628 = vmatpush3.bf16.msra.mxu0 %v16140_v34  ;;  %13668 = vmatpush3.bf16.msra.mxu1 %v16142_v40 }
 0x7d1   :  { %13629 = vmatprep.subr.bf16.mxu0 %v16143_v51  ;;  %13669 = vmatprep.subr.bf16.mxu1 %v16145_v49 }
 0x7d2   :  { %10916 = vmatmul.mubr.bf16.gmra.mrb[76].mxu0 %v17941_v16  ;;  %11135 = vmatmul.mubr.bf16.gmra.mrb[76].mxu1 %v17941_v16 }
 0x7d4   :  { %13630 = vmatpush3.bf16.msra.mxu0 %v16144_v38  ;;  %13670 = vmatpush3.bf16.msra.mxu1 %v16146_v61 }
 0x7d5   :  { %13631 = vmatprep.subr.bf16.mxu0 %v16147_v0  ;;  %13671 = vmatprep.subr.bf16.mxu1 %v16149_v44 }
 0x7d8   :  { %13632 = vmatpush3.bf16.msra.mxu0 %v16148_v6  ;;  %13672 = vmatpush3.bf16.msra.mxu1 %v16150_v37 }
 0x7d9   :  { %13733 = vmatprep.subr.bf16.mxu0 %v17503_v50 }
 0x88d   :  { %v10887_v62 = vpop.f32.mrb[64].mxu0  ;;  %v11106_v36 = vpop.f32.mrb[64].mxu1 }
 0x88e   :  { %v11167_v14 = vadd.f32 %v17542_v18, %v10887_v62  ;;  %v11169_v39 = vadd.f32 %v17545_v24, %v11106_v36  ;;  %v10889_v22 = vpop.f32.mrb[65].mxu0  ;;  %v11108_v21 = vpop.f32.mrb[65].mxu1 }
 0x88f   :  { %v11168_v54 = vadd.f32 %v17548_v30, %v10889_v22  ;;  %v11170_v3 = vadd.f32 %v17551_v10, %v11108_v21  ;;  %v10891_v35 = vpop.f32.mrb[66].mxu0  ;;  %v11110_v25 = vpop.f32.mrb[66].mxu1 }
 0x890   :  { %v11171_v60 = vadd.f32 %v17542_v18, %v10891_v35  ;;  %v11173_v12 = vadd.f32 %v17545_v24, %v11110_v25  ;;  %v10893_v43 = vpop.f32.mrb[67].mxu0  ;;  %v11112_v45 = vpop.f32.mrb[67].mxu1  ;;  %v11199_v16 = vmax.f32 %v11167_v14, 0.0  ;;  %v11201_v40 = vmax.f32 %v11169_v39, 0.0  ;;  %v16153_v14 = vld [vmem:[%s17777_s20 + $0x10] sm:$0xff]  }
 0x891   :  { %v11172_v28 = vadd.f32 %v17548_v30, %v10893_v43  ;;  %v11174_v34 = vadd.f32 %v17551_v10, %v11112_v45  ;;  %v11200_v38 = vmax.f32 %v11168_v54, 0.0  ;;  %v11202_v61 = vmax.f32 %v11170_v3, 0.0 }
 0x892   :  { %v11203_v51 = vmax.f32 %v11171_v60, 0.0  ;;  %v11205_v49 = vmax.f32 %v11173_v12, 0.0 }
 0x893   :  { %v11204_v0 = vmax.f32 %v11172_v28, 0.0  ;;  %v11206_v44 = vmax.f32 %v11174_v34, 0.0 }
 0x894   :  { %v11231_v6 = vpack.c.bf16 %v11203_v51, %v11199_v16  ;;  %v11233_v37 = vpack.c.bf16 %v11205_v49, %v11201_v40  ;;  %v16154_v16 = vld [vmem:[%s17777_s20 + $0x18] sm:$0xff]  }
 0x895   :  { %v11232_v11 = vpack.c.bf16 %v11204_v0, %v11200_v38  ;;  %v11234_v13 = vpack.c.bf16 %v11206_v44, %v11202_v61  ;;  %v10897_v7 = vpop.f32.mrb[68].mxu0  ;;  %v11116_v32 = vpop.f32.mrb[68].mxu1 }
 0x896   :  { %v11175_v63 = vadd.f32 %v17542_v18, %v10897_v7  ;;  %v11177_v59 = vadd.f32 %v17545_v24, %v11116_v32  ;;  %v10899_v31 = vpop.f32.mrb[69].mxu0  ;;  %v11118_v58 = vpop.f32.mrb[69].mxu1 }
 0x897   :  { %v11176_v5 = vadd.f32 %v17548_v30, %v10899_v31  ;;  %v11178_v52 = vadd.f32 %v17551_v10, %v11118_v58  ;;  %v10901_v2 = vpop.f32.mrb[70].mxu0  ;;  %v11120_v55 = vpop.f32.mrb[70].mxu1  ;;  %11542 = vmatprep.mubr.bf16.mxu0 %v11232_v11  ;;  %11607 = vmatprep.mubr.bf16.mxu1 %v11234_v13 }
 0x898   :  { %v11179_v41 = vadd.f32 %v17542_v18, %v10901_v2  ;;  %v11181_v46 = vadd.f32 %v17545_v24, %v11120_v55  ;;  %v10903_v17 = vpop.f32.mrb[71].mxu0  ;;  %v11122_v33 = vpop.f32.mrb[71].mxu1  ;;  %11543 = vmatmul.mubr.bf16.vlgmr.msra.gmra.mrb[80].mxu0 %v11231_v6  ;;  %11608 = vmatmul.mubr.bf16.vlgmr.msra.gmra.mrb[80].mxu1 %v11233_v37  ;;  %v11207_v27 = vmax.f32 %v11175_v63, 0.0  ;;  %v11209_v48 = vmax.f32 %v11177_v59, 0.0  ;;  %v16155_v59 = vld [vmem:[%s17777_s20 + $0x20] sm:$0xff]  }
 0x899   :  { %v11180_v8 = vadd.f32 %v17548_v30, %v10903_v17  ;;  %v11182_v20 = vadd.f32 %v17551_v10, %v11122_v33  ;;  %13734 = vmatpush3.bf16.msra.mxu0 %v17503_v50  ;;  %v11208_v39 = vmax.f32 %v11176_v5, 0.0  ;;  %v11210_v22 = vmax.f32 %v11178_v52, 0.0 }
 0x89a   :  { %v11211_v62 = vmax.f32 %v11179_v41, 0.0  ;;  %v11213_v36 = vmax.f32 %v11181_v46, 0.0  ;;  %13735 = vmatprep.subr.bf16.mxu0 %v16152_v23 }
 0x89b   :  { %v11212_v21 = vmax.f32 %v11180_v8, 0.0  ;;  %v11214_v54 = vmax.f32 %v11182_v20, 0.0 }
 0x89c   :  { %v11235_v3 = vpack.c.bf16 %v11211_v62, %v11207_v27  ;;  %v11237_v35 = vpack.c.bf16 %v11213_v36, %v11209_v48  ;;  %v16156_v48 = vld [vmem:[%s17777_s20 + $0x28] sm:$0xff]  }
 0x89d   :  { %v11236_v25 = vpack.c.bf16 %v11212_v21, %v11208_v39  ;;  %v11238_v60 = vpack.c.bf16 %v11214_v54, %v11210_v22  ;;  %13736 = vmatpush3.bf16.msra.mxu0 %v16152_v23  ;;  %v10907_v12 = vpop.f32.mrb[72].mxu0  ;;  %v11126_v50 = vpop.f32.mrb[72].mxu1 }
 0x89e   :  { %v11183_v43 = vadd.f32 %v17542_v18, %v10907_v12  ;;  %v11185_v45 = vadd.f32 %v17545_v24, %v11126_v50  ;;  %v10909_v28 = vpop.f32.mrb[73].mxu0  ;;  %v11128_v34 = vpop.f32.mrb[73].mxu1  ;;  %13737 = vmatprep.subr.bf16.mxu0 %v16153_v14 }
 0x89f   :  { %v11184_v40 = vadd.f32 %v17548_v30, %v10909_v28  ;;  %v11186_v51 = vadd.f32 %v17551_v10, %v11128_v34  ;;  %v10911_v49 = vpop.f32.mrb[74].mxu0  ;;  %v11130_v38 = vpop.f32.mrb[74].mxu1  ;;  %11550 = vmatprep.mubr.bf16.mxu0 %v11236_v25  ;;  %11615 = vmatprep.mubr.bf16.mxu1 %v11238_v60 }
 0x8a0   :  { %v11187_v61 = vadd.f32 %v17542_v18, %v10911_v49  ;;  %v11189_v0 = vadd.f32 %v17545_v24, %v11130_v38  ;;  %v10913_v44 = vpop.f32.mrb[75].mxu0  ;;  %v11132_v6 = vpop.f32.mrb[75].mxu1  ;;  %11551 = vmatmul.mubr.bf16.gmra.mrb[84].mxu0 %v11235_v3  ;;  %11616 = vmatmul.mubr.bf16.gmra.mrb[84].mxu1 %v11237_v35  ;;  %v11215_v13 = vmax.f32 %v11183_v43, 0.0  ;;  %v11217_v7 = vmax.f32 %v11185_v45, 0.0  ;;  %v16159_v49 = vld [vmem:[%s17779_s22] sm:$0xff]   ;;  %v17663_v38 = vld [vmem:[#allocation28 + $0x28] sm:$0xff]  }
 0x8a1   :  { %v11188_v37 = vadd.f32 %v17548_v30, %v10913_v44  ;;  %v11190_v11 = vadd.f32 %v17551_v10, %v11132_v6  ;;  %13738 = vmatpush3.bf16.msra.mxu0 %v16153_v14  ;;  %v11216_v31 = vmax.f32 %v11184_v40, 0.0  ;;  %v11218_v58 = vmax.f32 %v11186_v51, 0.0  ;;  %13757 = vmatprep.subr.bf16.mxu1 %v16159_v49  ;;  %v17671_v44 = vld [vmem:[%s17776_s19] ss:$0 sm:$0xff] }
 0x8a2   :  { %v11219_v32 = vmax.f32 %v11187_v61, 0.0  ;;  %v11221_v63 = vmax.f32 %v11189_v0, 0.0  ;;  %13739 = vmatprep.subr.bf16.mxu0 %v16154_v16  ;;  %13758 = vmatpush3.bf16.msra.mxu1 %v16159_v49 }
 0x8a3   :  { %v11220_v23 = vmax.f32 %v11188_v37, 0.0  ;;  %v11222_v5 = vmax.f32 %v11190_v11, 0.0  ;;  %13759 = vmatprep.subr.bf16.mxu1 %v16160_v57 }
 0x8a4   :  { %v11239_v52 = vpack.c.bf16 %v11219_v32, %v11215_v13  ;;  %v11241_v2 = vpack.c.bf16 %v11221_v63, %v11217_v7 }
 0x8a5   :  { %v11240_v55 = vpack.c.bf16 %v11220_v23, %v11216_v31  ;;  %v11242_v41 = vpack.c.bf16 %v11222_v5, %v11218_v58  ;;  %13740 = vmatpush3.bf16.msra.mxu0 %v16154_v16  ;;  %v10917_v46 = vpop.f32.mrb[76].mxu0  ;;  %v11136_v17 = vpop.f32.mrb[76].mxu1 }
 0x8a6   :  { %v11191_v33 = vadd.f32 %v17542_v18, %v10917_v46  ;;  %v11193_v8 = vadd.f32 %v17545_v24, %v11136_v17  ;;  %v10919_v20 = vpop.f32.mrb[77].mxu0  ;;  %v11138_v27 = vpop.f32.mrb[77].mxu1  ;;  %13741 = vmatprep.subr.bf16.mxu0 %v16155_v59  ;;  %13760 = vmatpush3.bf16.msra.mxu1 %v16160_v57 }
 0x8a7   :  { %v11192_v62 = vadd.f32 %v17548_v30, %v10919_v20  ;;  %v11194_v36 = vadd.f32 %v17551_v10, %v11138_v27  ;;  %v10921_v14 = vpop.f32.mrb[78].mxu0  ;;  %v11140_v39 = vpop.f32.mrb[78].mxu1  ;;  %11558 = vmatprep.mubr.bf16.mxu0 %v11240_v55  ;;  %11623 = vmatprep.mubr.bf16.mxu1 %v11242_v41 }
 0x8a8   :  { %v11195_v22 = vadd.f32 %v17542_v18, %v10921_v14  ;;  %v11197_v21 = vadd.f32 %v17545_v24, %v11140_v39  ;;  %v10923_v54 = vpop.f32.mrb[79].mxu0  ;;  %v11142_v3 = vpop.f32.mrb[79].mxu1  ;;  %11559 = vmatmul.mubr.bf16.gmra.mrb[88].mxu0 %v11239_v52  ;;  %11624 = vmatmul.mubr.bf16.gmra.mrb[88].mxu1 %v11241_v2  ;;  %v11223_v60 = vmax.f32 %v11191_v33, 0.0  ;;  %v11225_v12 = vmax.f32 %v11193_v8, 0.0  ;;  %v16157_v18 = vld [vmem:[%s17777_s20 + $0x30] sm:$0xff]  }
 0x8a9   :  { %v11196_v35 = vadd.f32 %v17548_v30, %v10923_v54  ;;  %v11198_v25 = vadd.f32 %v17551_v10, %v11142_v3  ;;  %13742 = vmatpush3.bf16.msra.mxu0 %v16155_v59  ;;  %v11224_v45 = vmax.f32 %v11192_v62, 0.0  ;;  %v11226_v24 = vmax.f32 %v11194_v36, 0.0  ;;  %v16158_v10 = vld [vmem:[%s17777_s20 + $0x38] sm:$0xff]   ;;  %13761 = vmatprep.subr.bf16.mxu1 %v16161_v1 }
 0x8aa   :  { %v11227_v50 = vmax.f32 %v11195_v22, 0.0  ;;  %v11229_v43 = vmax.f32 %v11197_v21, 0.0  ;;  %13743 = vmatprep.subr.bf16.mxu0 %v16156_v48  ;;  %13762 = vmatpush3.bf16.msra.mxu1 %v16161_v1 }
 0x8ab   :  { %v11228_v28 = vmax.f32 %v11196_v35, 0.0  ;;  %v11230_v34 = vmax.f32 %v11198_v25, 0.0 }
 0x8ac   :  { %v11243_v16 = vpack.c.bf16 %v11227_v50, %v11223_v60  ;;  %v11245_v40 = vpack.c.bf16 %v11229_v43, %v11225_v12 }
 0x8ad   :  { %v11244_v51 = vpack.c.bf16 %v11228_v28, %v11224_v45  ;;  %v11246_v30 = vpack.c.bf16 %v11230_v34, %v11226_v24  ;;  %13744 = vmatpush3.bf16.msra.mxu0 %v16156_v48 }
 0x8ae   :  { %13745 = vmatprep.subr.bf16.mxu0 %v16157_v18 }
 0x8af   :  { %11566 = vmatprep.mubr.bf16.mxu0 %v11244_v51  ;;  %11631 = vmatprep.mubr.bf16.mxu1 %v11246_v30  ;;  %v11807_v30 = vpop.xlane.xlu0 %11806 }
 0x8b0   :  { %11567 = vmatmul.mubr.bf16.gmra.mrb[92].mxu0 %v11243_v16  ;;  %11632 = vmatmul.mubr.bf16.gmra.mrb[92].mxu1 %v11245_v40 }
 0x8b1   :  { %13746 = vmatpush3.bf16.msra.mxu0 %v16157_v18  ;;  %13749 = vmatprep.mubr.bf16.mxu0 %v11656_v56  ;;  %v16162_v56 = vld [vmem:[%s17779_s22 + $0x18] sm:$0xff]  }
 0x8b2   :  { %13747 = vmatprep.subr.bf16.mxu0 %v16158_v10  ;;  %13763 = vmatprep.subr.bf16.mxu1 %v16162_v56 }
 0x8b3   :  { %13764 = vmatpush3.bf16.msra.mxu1 %v16162_v56 }
 0x8b4   :  { %13765 = vmatprep.subr.bf16.mxu1 %v16163_v26 }
 0x8b5   :  { %13748 = vmatpush3.bf16.msra.mxu0 %v16158_v10  ;;  %v11813_v10 = vpop.xlane.xlu1 %11812 }
 0x8b6   :  { %13781 = vmatprep.subr.bf16.mxu0 %v17643_v29 }
 0x8b7   :  { %13766 = vmatpush3.bf16.msra.mxu1 %v16163_v26 }
 0x8b8   :  { %13750 = vmatmul.mubr.bf16.vlgmr.msra.gmra.mrb[96].mxu0 %v11657_v4  ;;  %13767 = vmatprep.subr.bf16.mxu1 %v16164_v47  ;;  %v16165_v4 = vld [vmem:[%s17779_s22 + $0x30] sm:$0xff]  }
 0x8b9   :  { %13753 = vmatprep.mubr.bf16.mxu0 %v11658_v19  ;;  %v17645_v19 = vld [vmem:[#allocation28 + $0x8] sm:$0xff]   ;;  %13782 = vmatpush3.bf16.msra.mxu0 %v17643_v29 }
 0x8ba   :  { %13783 = vmatprep.subr.bf16.mxu0 %v17645_v19 }
 0x8bb   :  { %13768 = vmatpush3.bf16.msra.mxu1 %v16164_v47 }
 0x8bc   :  { %13769 = vmatprep.subr.bf16.mxu1 %v16165_v4 }
 0x8bd   :  { %13784 = vmatpush3.bf16.msra.mxu0 %v17645_v19 }
 0x8be   :  { %13785 = vmatprep.subr.bf16.mxu0 %v17651_v42 }
 0x8bf   :  { %13770 = vmatpush3.bf16.msra.mxu1 %v16165_v4 }
 0x8c0   :  { %13754 = vmatmul.mubr.bf16.gmra.mrb[100].mxu0 %v11659_v9  ;;  %13771 = vmatprep.subr.bf16.mxu1 %v16166_v15  ;;  %v17659_v9 = vld [vmem:[#allocation28 + $0x20] sm:$0xff]  }
 0x8c1   :  { %13786 = vmatpush3.bf16.msra.mxu0 %v17651_v42 }
 0x8c2   :  { %13787 = vmatprep.subr.bf16.mxu0 %v17655_v53 }
 0x8c3   :  { %13772 = vmatpush3.bf16.msra.mxu1 %v16166_v15 }
 0x8c4   :  { %13805 = vmatprep.subr.bf16.mxu1 %v17643_v29 }
 0x8c5   :  { %13788 = vmatpush3.bf16.msra.mxu0 %v17655_v53 }
 0x8c6   :  { %13789 = vmatprep.subr.bf16.mxu0 %v17659_v9 }
 0x8c9   :  { %13790 = vmatpush3.bf16.msra.mxu0 %v17659_v9 }
 0x8ca   :  { %13791 = vmatprep.subr.bf16.mxu0 %v17663_v38 }
 0x8cd   :  { %13792 = vmatpush3.bf16.msra.mxu0 %v17663_v38 }
 0x96b   :  { %v13633_v61 = vpop.f32.mrb[80].mxu0  ;;  %v13673_v0 = vpop.f32.mrb[80].mxu1 }
 0x96c   :  { %v13634_v6 = vpop.f32.mrb[81].mxu0  ;;  %v13674_v37 = vpop.f32.mrb[81].mxu1 }
 0x96d   :  { %v13635_v11 = vadd.f32 %v13634_v6, %v13633_v61  ;;  %v13675_v13 = vadd.f32 %v13674_v37, %v13673_v0  ;;  %v13636_v7 = vpop.f32.mrb[82].mxu0  ;;  %v13676_v32 = vpop.f32.mrb[82].mxu1 }
 0x96e   :  { %v13637_v63 = vpop.f32.mrb[83].mxu0  ;;  %v13677_v59 = vpop.f32.mrb[83].mxu1 }
 0x96f   :  { %v11545_v31 = vadd.f32 %v13635_v11, %v17671_v44  ;;  %v13638_v58 = vadd.f32 %v13637_v63, %v13636_v7  ;;  %v13678_v23 = vadd.f32 %v13677_v59, %v13676_v32  ;;  %v11810_v63 = vpop.xlane.xlu0 %11809 }
 0x971   :  { %v17674_v5 = vadd.f32 %v13675_v13, %v11545_v31  ;;  %v11548_v52 = vadd.f32 %v13638_v58, %v17671_v44  ;;  %v13430_v58 = vld [vmem:[%s17778_s21] ss:$0 sm:$0xff] }
 0x973   :  { %v17677_v2 = vadd.f32 %v13678_v23, %v11548_v52  ;;  %v13639_v55 = vpop.f32.mrb[84].mxu0  ;;  %v13679_v41 = vpop.f32.mrb[84].mxu1  ;;  %v11640_v32 = vmax.f32 %v17674_v5, 0.0 }
 0x974   :  { %v13640_v46 = vpop.f32.mrb[85].mxu0  ;;  %v13680_v17 = vpop.f32.mrb[85].mxu1 }
 0x975   :  { %v13641_v33 = vadd.f32 %v13640_v46, %v13639_v55  ;;  %v13681_v8 = vadd.f32 %v13680_v17, %v13679_v41  ;;  %v13642_v20 = vpop.f32.mrb[86].mxu0  ;;  %v13682_v27 = vpop.f32.mrb[86].mxu1  ;;  %v11641_v52 = vmax.f32 %v17677_v2, 0.0 }
 0x976   :  { %v13643_v48 = vpop.f32.mrb[87].mxu0  ;;  %v13683_v62 = vpop.f32.mrb[87].mxu1 }
 0x977   :  { %v11553_v36 = vadd.f32 %v13641_v33, %v17671_v44  ;;  %v13644_v14 = vadd.f32 %v13643_v48, %v13642_v20  ;;  %v13684_v39 = vadd.f32 %v13683_v62, %v13682_v27  ;;  %v11816_v55 = vpop.xlane.xlu1 %11815  ;;  %v11829_v20 = vmul.f32 %v11807_v30, %v11640_v32  ;;  %v11819_v27 = vpop.xlane.xlu0 %11818 }
 0x979   :  { %v11618_v22 = vadd.f32 %v13681_v8, %v11553_v36  ;;  %v11556_v21 = vadd.f32 %v13644_v14, %v17671_v44 }
 0x97b   :  { %v11621_v54 = vadd.f32 %v13684_v39, %v11556_v21  ;;  %v13645_v3 = vpop.f32.mrb[88].mxu0  ;;  %v13685_v35 = vpop.f32.mrb[88].mxu1  ;;  %v11642_v7 = vmax.f32 %v11618_v22, 0.0  ;;  %v11830_v39 = vmul.f32 %v11810_v63, %v11641_v52 }
 0x97c   :  { %v13646_v25 = vpop.f32.mrb[89].mxu0  ;;  %v13686_v60 = vpop.f32.mrb[89].mxu1 }
 0x97d   :  { %v13647_v12 = vadd.f32 %v13646_v25, %v13645_v3  ;;  %v13687_v50 = vadd.f32 %v13686_v60, %v13685_v35  ;;  %v13648_v43 = vpop.f32.mrb[90].mxu0  ;;  %v13688_v18 = vpop.f32.mrb[90].mxu1  ;;  %v11643_v23 = vmax.f32 %v11621_v54, 0.0  ;;  %v11831_v17 = vmul.f32 %v11813_v10, %v11642_v7 }
 0x97e   :  { %v13649_v45 = vpop.f32.mrb[91].mxu0  ;;  %v13689_v24 = vpop.f32.mrb[91].mxu1 }
 0x97f   :  { %v11561_v28 = vadd.f32 %v13647_v12, %v17671_v44  ;;  %v13650_v34 = vadd.f32 %v13649_v45, %v13648_v43  ;;  %v13690_v16 = vadd.f32 %v13689_v24, %v13688_v18  ;;  %v11832_v62 = vmul.f32 %v11816_v55, %v11643_v23  ;;  %v11822_v22 = vpop.xlane.xlu1 %11821  ;;  %v11825_v25 = vpop.xlane.xlu0 %11824 }
 0x981   :  { %v17682_v40 = vadd.f32 %v13687_v50, %v11561_v28  ;;  %v11564_v51 = vadd.f32 %v13650_v34, %v17671_v44 }
 0x983   :  { %v17685_v49 = vadd.f32 %v13690_v16, %v11564_v51  ;;  %v13651_v57 = vpop.f32.mrb[92].mxu0  ;;  %v13691_v1 = vpop.f32.mrb[92].mxu1  ;;  %v11644_v35 = vmax.f32 %v17682_v40, 0.0 }
 0x984   :  { %v13652_v56 = vpop.f32.mrb[93].mxu0  ;;  %v13692_v26 = vpop.f32.mrb[93].mxu1 }
 0x985   :  { %v13653_v47 = vadd.f32 %v13652_v56, %v13651_v57  ;;  %v13693_v4 = vadd.f32 %v13692_v26, %v13691_v1  ;;  %v13654_v15 = vpop.f32.mrb[94].mxu0  ;;  %v13694_v61 = vpop.f32.mrb[94].mxu1  ;;  %v11645_v43 = vmax.f32 %v17685_v49, 0.0  ;;  %v11833_v51 = vmul.f32 %v11819_v27, %v11644_v35 }
 0x986   :  { %v13655_v0 = vpop.f32.mrb[95].mxu0  ;;  %v13695_v6 = vpop.f32.mrb[95].mxu1 }
 0x987   :  { %v11569_v37 = vadd.f32 %v13653_v47, %v17671_v44  ;;  %v13656_v11 = vadd.f32 %v13655_v0, %v13654_v15  ;;  %v13696_v13 = vadd.f32 %v13695_v6, %v13694_v61  ;;  %v11828_v18 = vpop.xlane.xlu1 %11827  ;;  %v11834_v26 = vmul.f32 %v11822_v22, %v11645_v43 }
 0x989   :  { %v11634_v59 = vadd.f32 %v13693_v4, %v11569_v37  ;;  %v11572_v31 = vadd.f32 %v13656_v11, %v17671_v44 }
 0x98b   :  { %v11637_v41 = vadd.f32 %v13696_v13, %v11572_v31  ;;  %v13751_v46 = vpop.f32.mrb[96].mxu0  ;;  %v11646_v2 = vmax.f32 %v11634_v59, 0.0 }
 0x98c   :  { %v11774_v33 = vadd.f32 %v13751_v46, %v13430_v58  ;;  %v11765_v8 = vpop.f32.mrb[97].mxu0 }
 0x98d   :  { %v11766_v5 = vadd.f32 %v13430_v58, %v11765_v8  ;;  %v13752_v48 = vpop.f32.mrb[98].mxu0  ;;  %v11647_v50 = vmax.f32 %v11637_v41, 0.0  ;;  %v11835_v28 = vmul.f32 %v11825_v25, %v11646_v2 }
 0x98e   :  { %v11839_v36 = vadd.f32 %v11831_v17, %v11774_v33  ;;  %v11777_v44 = vadd.f32 %v13752_v48, %v13430_v58  ;;  %v11768_v14 = vpop.f32.mrb[99].mxu0 }
 0x98f   :  { %v11837_v21 = vadd.f32 %v11829_v20, %v11766_v5  ;;  %v11769_v54 = vadd.f32 %v13430_v58, %v11768_v14  ;;  %v11836_v40 = vmul.f32 %v11828_v18, %v11647_v50 }
 0x990   :  { %11847 = vst [vmem:[#allocation29 + $0x10] sm:$0xff] %v11839_v36  ;;  %v11840_v3 = vadd.f32 %v11832_v62, %v11777_v44 }
 0x991   :  { %11845 = vst [vmem:[#allocation29] sm:$0xff] %v11837_v21  ;;  %v11838_v60 = vadd.f32 %v11830_v39, %v11769_v54 }
 0x992   :  { %11848 = vst [vmem:[#allocation29 + $0x18] sm:$0xff] %v11840_v3  ;;  %v11854_v12 = vpack.c.bf16 %v11840_v3, %v11839_v36 }
 0x993   :  { %11846 = vst [vmem:[#allocation29 + $0x8] sm:$0xff] %v11838_v60  ;;  %v13755_v45 = vpop.f32.mrb[100].mxu0  ;;  %v11853_v24 = vpack.c.bf16 %v11838_v60, %v11837_v21 }
 0x994   :  { %v11790_v34 = vadd.f32 %v13755_v45, %v13430_v58  ;;  %v11781_v16 = vpop.f32.mrb[101].mxu0 }
 0x995   :  { %v11782_v30 = vadd.f32 %v13430_v58, %v11781_v16  ;;  %v13756_v10 = vpop.f32.mrb[102].mxu0  ;;  %13773 = vmatprep.mubr.bf16.mxu1 %v11853_v24 }
 0x996   :  { %v11843_v57 = vadd.f32 %v11835_v28, %v11790_v34  ;;  %v11793_v1 = vadd.f32 %v13756_v10, %v13430_v58  ;;  %v11784_v56 = vpop.f32.mrb[103].mxu0  ;;  %13774 = vmatmul.mubr.bf16.vlgmr.msra.gmra.mrb[96].mxu1 %v11854_v12 }
 0x997   :  { %v11841_v47 = vadd.f32 %v11833_v51, %v11782_v30  ;;  %v11785_v4 = vadd.f32 %v13430_v58, %v11784_v56  ;;  %13813 = vmatpush3.bf16.msra.mxu1 %v17643_v29  ;;  %v16173_v29 = vld [vmem:[#allocation28 + $0x30] sm:$0xff]  }
 0x998   :  { %11851 = vst [vmem:[#allocation29 + $0x30] sm:$0xff] %v11843_v57  ;;  %v11844_v49 = vadd.f32 %v11836_v40, %v11793_v1  ;;  %13806 = vmatprep.subr.bf16.mxu1 %v17645_v19  ;;  %13793 = vmatprep.subr.bf16.mxu0 %v16173_v29 }
 0x999   :  { %11849 = vst [vmem:[#allocation29 + $0x20] sm:$0xff] %v11841_v47  ;;  %v11842_v15 = vadd.f32 %v11834_v26, %v11785_v4  ;;  %13794 = vmatpush3.bf16.msra.mxu0 %v16173_v29 }
 0x99a   :  { %11852 = vst [vmem:[#allocation29 + $0x38] sm:$0xff] %v11844_v49  ;;  %v11856_v61 = vpack.c.bf16 %v11844_v49, %v11843_v57 }
 0x99b   :  { %11850 = vst [vmem:[#allocation29 + $0x28] sm:$0xff] %v11842_v15  ;;  %v11855_v0 = vpack.c.bf16 %v11842_v15, %v11841_v47  ;;  %13814 = vmatpush3.bf16.msra.mxu1 %v17645_v19  ;;  %v16174_v19 = vld [vmem:[#allocation28 + $0x38] sm:$0xff]  }
 0x99c   :  { %13807 = vmatprep.subr.bf16.mxu1 %v17651_v42  ;;  %13795 = vmatprep.subr.bf16.mxu0 %v16174_v19 }
 0x99d   :  { %13777 = vmatprep.mubr.bf16.mxu1 %v11855_v0  ;;  %13796 = vmatpush3.bf16.msra.mxu0 %v16174_v19 }
 0x99e   :  { %13778 = vmatmul.mubr.bf16.gmra.mrb[100].mxu1 %v11856_v61 }
 0x99f   :  { %13815 = vmatpush3.bf16.msra.mxu1 %v17651_v42  ;;  %v13439_v42 = vld [vmem:[%s17780_s23] ss:$0 sm:$0xff]  ;;  %s16614_s23 = smov [#allocation29]  }
 0x9a0   :  { %13808 = vmatprep.subr.bf16.mxu1 %v17655_v53  ;;  %s12157_s4 = sshll.u32 %s16614_s23, 4  ;;  %s12158_s4 = int_to_ptr.vmem [resolvable:$true] %s12157_s4 }
 0x9a1   :  { %s16549_s27 = scalar_lea.vmem %s12158_s4, 1024  ;;  %p16554_p11 = scmp.lt.s32.totalorder %s12158_s4, %s12158_s4 }
 0x9a2   :  { %p16550_p10 = scmp.ne.s32.totalorder %s12158_s4, %s16549_s27  ;;  %p16555_p12 = scmp.lt.s32.totalorder %s16549_s27, %s16549_s27 }
 0x9a3   :  { %13816 = vmatpush3.bf16.msra.mxu1 %v17655_v53 }
 0x9a4   :  { %13809 = vmatprep.subr.bf16.mxu1 %v17659_v9  ;;  %p16556_p13 = por %p16555_p12, %p16554_p11 }
 0x9a6   :  { %p16557_p0 = pnand %p16556_p13, %p16550_p10 }
 0x9a7   :  { %13817 = vmatpush3.bf16.msra.mxu1 %v17659_v9 }
 0x9a8   :  { %13810 = vmatprep.subr.bf16.mxu1 %v17663_v38 }
 0x9ab   :  { %13818 = vmatpush3.bf16.msra.mxu1 %v17663_v38 }
 0x9ac   :  { %13811 = vmatprep.subr.bf16.mxu1 %v16173_v29 }
 0x9af   :  { %13819 = vmatpush3.bf16.msra.mxu1 %v16173_v29 }
 0x9b0   :  { %13812 = vmatprep.subr.bf16.mxu1 %v16174_v19 }
 0x9b3   :  { %13820 = vmatpush3.bf16.msra.mxu1 %v16174_v19 }
 0xa69   :  { %v13775_v53 = vpop.f32.mrb[96].mxu1 }
 0xa6a   :  { %v11971_v9 = vadd.f32 %v13775_v53, %v13439_v42  ;;  %v11962_v6 = vpop.f32.mrb[97].mxu1 }
 0xa6b   :  { %v11963_v37 = vadd.f32 %v13439_v42, %v11962_v6  ;;  %v13776_v11 = vpop.f32.mrb[98].mxu1 }
 0xa6c   :  { %v11974_v38 = vadd.f32 %v13776_v11, %v13439_v42  ;;  %v11965_v13 = vpop.f32.mrb[99].mxu1  ;;  %v11995_v32 = vmax.f32 %v11971_v9, 0.0 }
 0xa6d   :  { %v11966_v7 = vadd.f32 %v13439_v42, %v11965_v13  ;;  %v11993_v59 = vmax.f32 %v11963_v37, 0.0 }
 0xa6e   :  { %v11996_v63 = vmax.f32 %v11974_v38, 0.0 }
 0xa6f   :  { %v11994_v31 = vmax.f32 %v11966_v7, 0.0 }
 0xa70   :  { %v12002_v58 = vpack.c.bf16 %v11996_v63, %v11995_v32 }
 0xa71   :  { %v12001_v23 = vpack.c.bf16 %v11994_v31, %v11993_v59  ;;  %v13779_v52 = vpop.f32.mrb[100].mxu1 }
 0xa72   :  { %v11987_v55 = vadd.f32 %v13779_v52, %v13439_v42  ;;  %v11978_v41 = vpop.f32.mrb[101].mxu1 }
 0xa73   :  { %v11979_v46 = vadd.f32 %v13439_v42, %v11978_v41  ;;  %v13780_v17 = vpop.f32.mrb[102].mxu1  ;;  %13797 = vmatprep.mubr.bf16.mxu0 %v12001_v23 }
 0xa74   :  { %v11990_v33 = vadd.f32 %v13780_v17, %v13439_v42  ;;  %v11981_v8 = vpop.f32.mrb[103].mxu1  ;;  %13798 = vmatmul.mubr.bf16.vlgmr.msra.gmra.mrb[104].mxu0 %v12002_v58  ;;  %v11999_v27 = vmax.f32 %v11987_v55, 0.0 }
 0xa75   :  { %v11982_v20 = vadd.f32 %v13439_v42, %v11981_v8  ;;  %v11997_v48 = vmax.f32 %v11979_v46, 0.0 }
 0xa76   :  { %v12000_v5 = vmax.f32 %v11990_v33, 0.0 }
 0xa77   :  { %v11998_v62 = vmax.f32 %v11982_v20, 0.0 }
 0xa78   :  { %v12004_v36 = vpack.c.bf16 %v12000_v5, %v11999_v27 }
 0xa79   :  { %v12003_v44 = vpack.c.bf16 %v11998_v62, %v11997_v48 }
 0xa7b   :  { %13801 = vmatprep.mubr.bf16.mxu1 %v12003_v44 }
 0xa7c   :  { %13802 = vmatmul.mubr.bf16.vlgmr.msra.gmra.mrb[104].mxu1 %v12004_v36 }
 0xa7d   :  { %16560 = shalt.err (!%p16557_p0)
}
 0xa7e   :  { %s17947_s6 = sld [smem:[#allocation83_spill]] }
 0xa84   :  { %s16561_s8 = scalar_lea.hbm %s17947_s6, 1024 }
 0xa85   :  { %p16562_p1 = scmp.ne.s32.totalorder %s17947_s6, %s16561_s8  ;;  %p16565_p2 = scmp.lt.u32.totalorder %s16561_s8, %s17947_s6 }
 0xa87   :  { %p16567_p3 = pnand %p16565_p2, %p16562_p1 }
 0xa89   :  { %16570 = shalt.err (!%p16567_p3)
}
 0xa8a   :  { %s16615_s3 = smov 128   ;;  %s16616_s15 = smov 8   ;;  %vm12141_vm1 = vcmask 15360  }
 0xa8b   :  { %12163 = dma.vmem_to_hbm [thread:$0]  %s12158_s4, 1024, %s17947_s6, [#allocation4], %s16615_s3, %s16615_s3, %s16616_s15  }
 0xa8c   :  { %s17948_s10 = sld [smem:[#allocation81_spill]]  ;;  %s17949_s16 = sld [smem:[#allocation82_spill]] }
 0xa92   :  { %v13448_v14 = vld [vmem:[%s17948_s10] ss:$0 sm:$0xff] }
 0xb47   :  { %v13799_v39 = vpop.f32.mrb[104].mxu0 }
 0xb48   :  { %v12119_v22 = vadd.f32 %v13799_v39, %v13448_v14  ;;  %v12110_v21 = vpop.f32.mrb[105].mxu0 }
 0xb49   :  { %v12111_v54 = vadd.f32 %v13448_v14, %v12110_v21  ;;  %v13800_v2 = vpop.f32.mrb[106].mxu0 }
 0xb4a   :  { %12144 = vst.msk [vmem:[%s17949_s16 + $0x10] sm:$0xff] %vm12141_vm1, %v12119_v22  ;;  %v12122_v3 = vadd.f32 %v13800_v2, %v13448_v14  ;;  %v12113_v35 = vpop.f32.mrb[107].mxu0 }
 0xb4b   :  { %12142 = vst.msk [vmem:[%s17949_s16] sm:$0xff] %vm12141_vm1, %v12111_v54  ;;  %v12114_v25 = vadd.f32 %v13448_v14, %v12113_v35 }
 0xb4c   :  { %12145 = vst.msk [vmem:[%s17949_s16 + $0x18] sm:$0xff] %vm12141_vm1, %v12122_v3 }
 0xb4d   :  { %12143 = vst.msk [vmem:[%s17949_s16 + $0x8] sm:$0xff] %vm12141_vm1, %v12114_v25 }
 0xb4f   :  { %v13803_v60 = vpop.f32.mrb[104].mxu1 }
 0xb50   :  { %v12135_v12 = vadd.f32 %v13803_v60, %v13448_v14  ;;  %v12126_v50 = vpop.f32.mrb[105].mxu1 }
 0xb51   :  { %v12127_v43 = vadd.f32 %v13448_v14, %v12126_v50  ;;  %v13804_v18 = vpop.f32.mrb[106].mxu1 }
 0xb52   :  { %12148 = vst.msk [vmem:[%s17949_s16 + $0x30] sm:$0xff] %vm12141_vm1, %v12135_v12  ;;  %v12138_v45 = vadd.f32 %v13804_v18, %v13448_v14  ;;  %v12129_v24 = vpop.f32.mrb[107].mxu1 }
 0xb53   :  { %12146 = vst.msk [vmem:[%s17949_s16 + $0x20] sm:$0xff] %vm12141_vm1, %v12127_v43  ;;  %v12130_v28 = vadd.f32 %v13448_v14, %v12129_v24 }
 0xb54   :  { %12149 = vst.msk [vmem:[%s17949_s16 + $0x38] sm:$0xff] %vm12141_vm1, %v12138_v45 }
 0xb55   :  { %12147 = vst.msk [vmem:[%s17949_s16 + $0x28] sm:$0xff] %vm12141_vm1, %v12130_v28 }
 0xb56   :  { %16589 = dma.done.wait [#allocation4], 1024  }
 0xb57   :  { %16590 = vsyncadd [#allocation4], 4294966272 }
 0xb58   :  { %12169 = vsyncpa [#allocation3], 1 }
 0xb59   :  { %12170 = vsyncpa [#allocation6], 1 }
 0xb5a   :  { %12171 = vsyncpa [#allocation9], 1 }
 0xb5b   :  { %12172 = vsyncpa [#allocation12], 1 }
 0xb5c   :  { %12173 = vsyncpa [#allocation15], 1 }
 0xb5d   :  { %12174 = vsyncpa [#allocation18], 1 }
 0xb5e   :  { %12175 = vsyncpa [#allocation21], 1 }
 0xb5f   :  { %12176 = vsyncpa [#allocation24], 1 }
 0xb60   :  { %12177 = vsyncpa [#allocation27], 1 }
 0xb61   :  { %12178 = vsyncpa [#allocation4], 1 }

</bundles_post_ra>
